<compile_context>
chip_gen: v7x
topology: tpu7x:2x2x1
jax: 0.10.0
libtpu: 0.0.40
codegen_flags: <defaults>
</compile_context>

<pallas_src>
import math

import jax
import jax.numpy as jnp
from jax.experimental import pallas as pl
from jax.experimental.pallas import tpu as pltpu

NUM_CLASS = 10
NUM_SEGMENTS = 7  # constructor arg; gives avg_size = 1 -> small demo shapes


def _round_up(x, m):
    return (x + m - 1) // m * m


def _pad2d(x, rows, cols):
    r, c = x.shape
    if r == rows and c == cols:
        return x
    return jnp.pad(x, ((0, rows - r), (0, cols - c)))


# ---------------- Pallas matmul kernels: the conv / linear hot path -----------
def _matmul_kernel(a_ref, b_ref, o_ref):
    @pl.when(pl.program_id(2) == 0)
    def _():
        o_ref[...] = jnp.zeros_like(o_ref)

    o_ref[...] += jnp.dot(a_ref[...], b_ref[...],
                          preferred_element_type=jnp.float32)


def _matmul_bias_kernel(a_ref, b_ref, bias_ref, o_ref):
    @pl.when(pl.program_id(2) == 0)
    def _():
        o_ref[...] = jnp.broadcast_to(bias_ref[...], o_ref.shape)

    o_ref[...] += jnp.dot(a_ref[...], b_ref[...],
                          preferred_element_type=jnp.float32)


def matmul_bias(a, b, bias=None):
    """a:(M,K) @ b:(K,N) (+ bias:(N,)) -> (M,N).

    bf16 operands on the MXU, f32 accumulation directly into the resident
    output tile.  Tiled over (M, N, K); M/N are 'parallel' (megacore-shardable),
    K is the 'arbitrary' reduction axis.
    """
    M, K = a.shape
    K2, N = b.shape
    assert K == K2

    tm = 256 if M >= 256 else _round_up(M, 8)
    Mp = _round_up(M, tm)
    Np = _round_up(N, 128)
    tn = 256 if Np % 256 == 0 else 128          # 256-wide feeds v6e/v7x MXU
    Kp = _round_up(K, 128)
    tk = next(t for t in (512, 384, 256, 128) if Kp % t == 0)

    a_p = _pad2d(a.astype(jnp.bfloat16), Mp, Kp)
    b_p = _pad2d(b.astype(jnp.bfloat16), Kp, Np)

    args = [a_p, b_p]
    in_specs = [
        pl.BlockSpec((tm, tk), lambda i, j, k: (i, k)),
        pl.BlockSpec((tk, tn), lambda i, j, k: (k, j)),
    ]
    if bias is not None:
        bias_p = _pad2d(bias.astype(jnp.float32).reshape(1, N), 1, Np)
        args.append(bias_p)
        in_specs.append(pl.BlockSpec((1, tn), lambda i, j, k: (0, j)))
        kernel = _matmul_bias_kernel
    else:
        kernel = _matmul_kernel

    out = pl.pallas_call(
        kernel,
        out_shape=jax.ShapeDtypeStruct((Mp, Np), jnp.float32),
        grid=(Mp // tm, Np // tn, Kp // tk),
        in_specs=in_specs,
        out_specs=pl.BlockSpec((tm, tn), lambda i, j, k: (i, j)),
        compiler_params=pltpu.CompilerParams(
            dimension_semantics=("parallel", "parallel", "arbitrary")),
    )(*args)
    if Mp != M or Np != N:
        out = out[:M, :N]
    return out


# ---------------- Fused BN-affine (+ residual) (+ ReLU) elementwise kernel ----
def _make_affine_kernel(relu, has_res):
    if has_res:
        def kernel(y_ref, sc_ref, sh_ref, res_ref, o_ref):
            v = y_ref[...] * sc_ref[...] + sh_ref[...] + res_ref[...]
            if relu:
                v = jnp.maximum(v, 0.0)
            o_ref[...] = v
    else:
        def kernel(y_ref, sc_ref, sh_ref, o_ref):
            v = y_ref[...] * sc_ref[...] + sh_ref[...]
            if relu:
                v = jnp.maximum(v, 0.0)
            o_ref[...] = v
    return kernel


def affine_pallas(y, scale, shift, residual=None, relu=False):
    shape = y.shape
    C = shape[-1]
    M = math.prod(shape[:-1])
    Cp = _round_up(C, 128)
    tm = 512 if M >= 512 else _round_up(M, 8)   # row-tiled -> pipelined DMA
    Mp = _round_up(M, tm)

    y2 = _pad2d(y.reshape(M, C), Mp, Cp)
    sc = _pad2d(scale.astype(jnp.float32).reshape(1, C), 1, Cp)
    sh = _pad2d(shift.astype(jnp.float32).reshape(1, C), 1, Cp)

    args = [y2, sc, sh]
    in_specs = [
        pl.BlockSpec((tm, Cp), lambda i: (i, 0)),
        pl.BlockSpec((1, Cp), lambda i: (0, 0)),
        pl.BlockSpec((1, Cp), lambda i: (0, 0)),
    ]
    if residual is not None:
        args.append(_pad2d(residual.reshape(M, C), Mp, Cp))
        in_specs.append(pl.BlockSpec((tm, Cp), lambda i: (i, 0)))

    out = pl.pallas_call(
        _make_affine_kernel(relu, residual is not None),
        out_shape=jax.ShapeDtypeStruct((Mp, Cp), jnp.float32),
        grid=(Mp // tm,),
        in_specs=in_specs,
        out_specs=pl.BlockSpec((tm, Cp), lambda i: (i, 0)),
        compiler_params=pltpu.CompilerParams(
            dimension_semantics=("parallel",)),
    )(*args)
    if Mp != M or Cp != C:
        out = out[:M, :C]
    return out.reshape(shape)


# ---------------- BN batch statistics: single fused Pallas reduction ----------
def _bn_stats_kernel(y_ref, sum_ref, sq_ref):
    @pl.when(pl.program_id(0) == 0)
    def _():
        sum_ref[...] = jnp.zeros_like(sum_ref)
        sq_ref[...] = jnp.zeros_like(sq_ref)

    v = y_ref[...]
    sum_ref[...] += jnp.sum(v, axis=0, keepdims=True)
    sq_ref[...] += jnp.sum(v * v, axis=0, keepdims=True)


def batch_mean_var(y):
    shape = y.shape
    C = shape[-1]
    M = math.prod(shape[:-1])
    Cp = _round_up(C, 128)
    tm = 512 if M >= 512 else _round_up(M, 8)
    Mp = _round_up(M, tm)
    y2 = _pad2d(y.reshape(M, C), Mp, Cp)

    s, sq = pl.pallas_call(
        _bn_stats_kernel,
        out_shape=(jax.ShapeDtypeStruct((1, Cp), jnp.float32),
                   jax.ShapeDtypeStruct((1, Cp), jnp.float32)),
        grid=(Mp // tm,),
        in_specs=[pl.BlockSpec((tm, Cp), lambda i: (i, 0))],
        out_specs=(pl.BlockSpec((1, Cp), lambda i: (0, 0)),
                   pl.BlockSpec((1, Cp), lambda i: (0, 0))),
        compiler_params=pltpu.CompilerParams(
            dimension_semantics=("arbitrary",)),
    )(y2)
    mean = s[0, :C] / M
    var = jnp.maximum(sq[0, :C] / M - mean * mean, 0.0)  # biased var (PyTorch norm)
    return mean, var


def batchnorm(y, bn, relu=False, residual=None, eps=1e-5):
    mean, var = batch_mean_var(y)
    scale = bn['gamma'] / jnp.sqrt(var + eps)
    shift = bn['beta'] - mean * scale
    # TODO(synk): running-mean/var buffer updates (training side effects) not modeled.
    return affine_pallas(y, scale, shift, residual=residual, relu=relu)


# ---------------- Softmax kernel (dim=1) --------------------------------------
def _softmax_kernel(x_ref, o_ref):
    x = x_ref[...]
    m = jnp.max(x, axis=1, keepdims=True)
    e = jnp.exp(x - m)
    o_ref[...] = e / jnp.sum(e, axis=1, keepdims=True)


def softmax_pallas(x):
    M, C = x.shape
    Mp = _round_up(M, 8)
    Cp = _round_up(C, 128)
    xp = jnp.pad(x, ((0, Mp - M), (0, Cp - C)), constant_values=-1e30)
    out = pl.pallas_call(
        _softmax_kernel,
        out_shape=jax.ShapeDtypeStruct((Mp, Cp), jnp.float32),
        grid=(1,),
        in_specs=[pl.BlockSpec((Mp, Cp), lambda i: (0, 0))],
        out_specs=pl.BlockSpec((Mp, Cp), lambda i: (0, 0)),
    )(xp)
    return out[:M, :C]


# ---------------- Conv3d = im2col (glue) + Pallas matmul ----------------------
def conv3d(x, w, b, stride, padding):
    """x:(N,T,H,W,Cin), w:(kT,kH,kW,Cin,Cout), b:(Cout,)|None."""
    # TODO(synk): im2col is still materialized in HBM; fusing the tap gather
    # into the matmul (manual DMA from the padded NTHWC input) is future work.
    N, T, H, W, Cin = x.shape
    kT, kH, kW, _, Cout = w.shape
    sT, sH, sW = stride
    pT, pH, pW = padding
    xp = jnp.pad(x, ((0, 0), (pT, pT), (pH, pH), (pW, pW), (0, 0)))
    To = (T + 2 * pT - kT) // sT + 1
    Ho = (H + 2 * pH - kH) // sH + 1
    Wo = (W + 2 * pW - kW) // sW + 1
    patches = []
    for dt in range(kT):
        for dh in range(kH):
            for dw in range(kW):
                patches.append(
                    xp[:, dt:dt + (To - 1) * sT + 1:sT,
                       dh:dh + (Ho - 1) * sH + 1:sH,
                       dw:dw + (Wo - 1) * sW + 1:sW, :])
    p = jnp.stack(patches, axis=-2)  # (N,To,Ho,Wo, kT*kH*kW, Cin)
    lhs = p.reshape(N * To * Ho * Wo, kT * kH * kW * Cin)
    rhs = w.reshape(kT * kH * kW * Cin, Cout)
    out = matmul_bias(lhs, rhs, b)
    return out.reshape(N, To, Ho, Wo, Cout)


# ---------------- ResBlock -----------------------------------------------------
def res_block(x, p, spatial_stride, temporal_stride):
    st = (temporal_stride, spatial_stride, spatial_stride)
    # conv1/conv2 biases are omitted: each conv feeds train-mode BatchNorm,
    # whose batch-mean subtraction cancels a constant bias exactly.
    y = conv3d(x, p['w1'], None, st, (1, 1, 1))
    y = batchnorm(y, p['bn1'], relu=True)
    y = conv3d(y, p['w2'], None, (1, 1, 1), (1, 1, 1))
    if 'wd' in p:
        sc = conv3d(x, p['wd'], None, st, (0, 0, 0))
        sc = batchnorm(sc, p['bnd'], relu=False)
    else:
        sc = x
    return batchnorm(y, p['bn2'], relu=True, residual=sc)  # relu(bn2(y) + sc)


# ---------------- AvgPool3d ----------------------------------------------------
def avg_pool3d(x, k):
    # TODO(synk): tiny pooled reduction kept in plain JAX glue (negligible work)
    N, T, H, W, C = x.shape
    kT, kH, kW = k
    To, Ho, Wo = T // kT, H // kH, W // kW
    x = x[:, :To * kT, :Ho * kH, :Wo * kW, :]
    x = x.reshape(N, To, kT, Ho, kH, Wo, kW, C)
    return x.mean(axis=(2, 4, 6))


# ---------------- Full Res3D forward -------------------------------------------
def res3d_forward(x_ncthw, params):
    x = jnp.transpose(x_ncthw, (0, 2, 3, 4, 1)).astype(jnp.float32)  # -> NTHWC
    # conv11/conv12 are NOT followed by BN in the PyTorch model -> keep biases.
    x = conv3d(x, params['conv11_w'], params['conv11_b'], (10, 1, 1), (5, 0, 0))
    x = conv3d(x, params['conv12_w'], params['conv12_b'], (10, 1, 1), (5, 1, 1))
    stage_strides = {
        'conv2': [(1, 1), (1, 1)],
        'conv3': [(1, 2), (1, 1)],
        'conv4': [(1, 2), (1, 1)],
        'conv5': [(2, 2), (1, 1)],
    }
    for stage in ('conv2', 'conv3', 'conv4', 'conv5'):
        for blk, (ss, ts) in zip(params[stage], stage_strides[stage]):
            x = res_block(x, blk, ss, ts)

    avg_size = math.floor(7 / NUM_SEGMENTS)
    if NUM_SEGMENTS in (4, 5):
        avg_size = 2
    if avg_size < 1:
        avg_size = 1
    x = avg_pool3d(x, (avg_size, 4, 4))      # (N, 1, 1, 1, 512)
    x = x.reshape(x.shape[0], -1)            # (N, 512) == torch .view(N, -1)
    x = matmul_bias(x, params['lin_w'], params['lin_b'])
    return softmax_pallas(x)


# ---------------- Deterministic synthetic parameters ---------------------------
def _conv_param(key, kT, kH, kW, cin, cout, bias=True):
    kw, kb = jax.random.split(key)
    fan_in = kT * kH * kW * cin
    w = jax.random.normal(kw, (kT, kH, kW, cin, cout), jnp.float32) / math.sqrt(fan_in)
    b = 0.01 * jax.random.normal(kb, (cout,), jnp.float32) if bias else None
    return w, b


def _bn_param(c):
    return {'gamma': jnp.ones((c,), jnp.float32),
            'beta': jnp.zeros((c,), jnp.float32)}


def _resblock_params(key, cin, cout, ss, ts):
    k1, k2, k3 = jax.random.split(key, 3)
    p = {}
    # biases of conv1/conv2 are omitted (cancelled exactly by train-mode BN)
    p['w1'], _ = _conv_param(k1, 3, 3, 3, cin, cout, bias=False)
    p['w2'], _ = _conv_param(k2, 3, 3, 3, cout, cout, bias=False)
    p['bn1'] = _bn_param(cout)
    p['bn2'] = _bn_param(cout)
    if cin != cout or ss != 1 or ts != 1:
        p['wd'], _ = _conv_param(k3, 1, 1, 1, cin, cout, bias=False)
        p['bnd'] = _bn_param(cout)
    return p


def init_params(key, num_class):
    keys = jax.random.split(key, 11)
    params = {}
    params['conv11_w'], params['conv11_b'] = _conv_param(keys[0], 20, 2, 2, 1, 32)
    params['conv12_w'], params['conv12_b'] = _conv_param(keys[1], 20, 2, 2, 32, 64)
    params['conv2'] = [_resblock_params(keys[2], 64, 64, 1, 1),
                       _resblock_params(keys[3], 64, 64, 1, 1)]
    params['conv3'] = [_resblock_params(keys[4], 64, 128, 1, 2),
                       _resblock_params(keys[5], 128, 128, 1, 1)]
    params['conv4'] = [_resblock_params(keys[6], 128, 256, 1, 2),
                       _resblock_params(keys[7], 256, 256, 1, 1)]
    params['conv5'] = [_resblock_params(keys[8], 256, 512, 2, 2),
                       _resblock_params(keys[9], 512, 512, 1, 1)]
    kw, kb = jax.random.split(keys[10])
    params['lin_w'] = jax.random.normal(kw, (512, num_class), jnp.float32) / math.sqrt(512)
    params['lin_b'] = 0.01 * jax.random.normal(kb, (num_class,), jnp.float32)
    return params


if __name__ == "__main__":
    key = jax.random.PRNGKey(0)
    pkey, xkey = jax.random.split(key)
    params = init_params(pkey, NUM_CLASS)
    # PyTorch-layout input: (N, C=1, T, H, W)
    x = jax.random.normal(xkey, (2, 1, 100, 8, 8), jnp.float32)

    fwd = jax.jit(res3d_forward)
    out = jax.block_until_ready(fwd(x, params))

    assert out.shape == (2, NUM_CLASS)
    assert bool(jnp.all(jnp.isfinite(out)))
    assert bool(jnp.allclose(jnp.sum(out, axis=1), 1.0, atol=1e-3))
    print("KERNEL_OK")
</pallas_src>

<mosaic_0001>
module attributes {stable_mosaic.version = 11 : i64} {
  func.func @_matmul_bias_kernel(%arg0: i32, %arg1: i32, %arg2: i32, %arg3: memref<256x128xbf16, #tpu.memory_space<vmem>>, %arg4: memref<128x128xbf16, #tpu.memory_space<vmem>>, %arg5: memref<1x128xf32, #tpu.memory_space<vmem>>, %arg6: memref<256x128xf32, #tpu.memory_space<vmem>>) attributes {dimension_semantics = [#tpu.dimension_semantics<parallel>, #tpu.dimension_semantics<parallel>, #tpu.dimension_semantics<arbitrary>], iteration_bounds = array<i64: 4, 1, 1>, scalar_prefetch = 0 : i64, scratch_operands = 0 : i64, tpu.core_type = #tpu.core_type<tc>, window_params = [{transform_indices = @transform_0, window_bounds = array<i64: 256, 128>}, {transform_indices = @transform_1, window_bounds = array<i64: 128, 128>}, {transform_indices = @transform_2, window_bounds = array<i64: 1, 128>}, {transform_indices = @transform_3, window_bounds = array<i64: 256, 128>}]} {
    %c0_i32 = arith.constant 0 : i32
    %0 = arith.cmpi eq, %arg2, %c0_i32 : i32
    %1 = arith.extui %0 : i1 to i32
    %c0_i32_0 = arith.constant 0 : i32
    %2 = arith.cmpi ne, %1, %c0_i32_0 : i32
    scf.if %2 {
      %c0_8 = arith.constant 0 : index
      %c0_9 = arith.constant 0 : index
      %9 = vector.load %arg5[%c0_8, %c0_9] : memref<1x128xf32, #tpu.memory_space<vmem>>, vector<1x128xf32>
      %10 = vector.shape_cast %9 : vector<1x128xf32> to vector<1x128xf32>
      %11 = vector.broadcast %10 : vector<1x128xf32> to vector<256x128xf32>
      %c0_10 = arith.constant 0 : index
      %c0_11 = arith.constant 0 : index
      %12 = vector.load %arg6[%c0_10, %c0_11] : memref<256x128xf32, #tpu.memory_space<vmem>>, vector<256x128xf32>
      tpu.vector_store %arg6[%c0_10, %c0_11], %11 {strides = array<i32>} : memref<256x128xf32, #tpu.memory_space<vmem>>, vector<256x128xf32>,
    } else {
    }
    %c0 = arith.constant 0 : index
    %c0_1 = arith.constant 0 : index
    %3 = vector.load %arg6[%c0, %c0_1] : memref<256x128xf32, #tpu.memory_space<vmem>>, vector<256x128xf32>
    %c0_2 = arith.constant 0 : index
    %c0_3 = arith.constant 0 : index
    %4 = vector.load %arg3[%c0_2, %c0_3] : memref<256x128xbf16, #tpu.memory_space<vmem>>, vector<256x128xbf16>
    %c0_4 = arith.constant 0 : index
    %c0_5 = arith.constant 0 : index
    %5 = vector.load %arg4[%c0_4, %c0_5] : memref<128x128xbf16, #tpu.memory_space<vmem>>, vector<128x128xbf16>
    %cst = arith.constant dense<0.000000e+00> : vector<256x128xf32>
    %6 = tpu.matmul %4, %5, %cst {dimension_numbers = #tpu.dot_dimension_numbers<[1], [0], [0], [1], [0, 0, 1, 1], [], []>} : vector<256x128xbf16>, vector<128x128xbf16>, vector<256x128xf32> -> vector<256x128xf32>
    %7 = arith.addf %3, %6 : vector<256x128xf32>
    %c0_6 = arith.constant 0 : index
    %c0_7 = arith.constant 0 : index
    %8 = vector.load %arg6[%c0_6, %c0_7] : memref<256x128xf32, #tpu.memory_space<vmem>>, vector<256x128xf32>
    tpu.vector_store %arg6[%c0_6, %c0_7], %7 {strides = array<i32>} : memref<256x128xf32, #tpu.memory_space<vmem>>, vector<256x128xf32>,
    return
  }
  func.func @transform_0(%arg0: i32, %arg1: i32, %arg2: i32) -> (i32, i32) {
    %c0_i32 = arith.constant 0 : i32
    return %arg0, %arg2 : i32, i32
  }
  func.func @transform_1(%arg0: i32, %arg1: i32, %arg2: i32) -> (i32, i32) {
    %c0_i32 = arith.constant 0 : i32
    return %arg2, %arg1 : i32, i32
  }
  func.func @transform_2(%arg0: i32, %arg1: i32, %arg2: i32) -> (i32, i32) {
    %c0_i32 = arith.constant 0 : i32
    %c0_i32_0 = arith.constant 0 : i32
    return %c0_i32, %arg1 : i32, i32
  }
  func.func @transform_3(%arg0: i32, %arg1: i32, %arg2: i32) -> (i32, i32) {
    %c0_i32 = arith.constant 0 : i32
    return %arg0, %arg1 : i32, i32
  }
}

module attributes {stable_mosaic.version = 11 : i64} {
  func.func @_matmul_bias_kernel(%arg0: i32, %arg1: i32, %arg2: i32, %arg3: memref<128x512xbf16, #tpu.memory_space<vmem>>, %arg4: memref<512x128xbf16, #tpu.memory_space<vmem>>, %arg5: memref<1x128xf32, #tpu.memory_space<vmem>>, %arg6: memref<128x128xf32, #tpu.memory_space<vmem>>) attributes {dimension_semantics = [#tpu.dimension_semantics<parallel>, #tpu.dimension_semantics<parallel>, #tpu.dimension_semantics<arbitrary>], iteration_bounds = array<i64: 1, 1, 5>, scalar_prefetch = 0 : i64, scratch_operands = 0 : i64, tpu.core_type = #tpu.core_type<tc>, window_params = [{transform_indices = @transform_0, window_bounds = array<i64: 128, 512>}, {transform_indices = @transform_1, window_bounds = array<i64: 512, 128>}, {transform_indices = @transform_2, window_bounds = array<i64: 1, 128>}, {transform_indices = @transform_3, window_bounds = array<i64: 128, 128>}]} {
    %c0_i32 = arith.constant 0 : i32
    %0 = arith.cmpi eq, %arg2, %c0_i32 : i32
    %1 = arith.extui %0 : i1 to i32
    %c0_i32_0 = arith.constant 0 : i32
    %2 = arith.cmpi ne, %1, %c0_i32_0 : i32
    scf.if %2 {
      %c0_8 = arith.constant 0 : index
      %c0_9 = arith.constant 0 : index
      %9 = vector.load %arg5[%c0_8, %c0_9] : memref<1x128xf32, #tpu.memory_space<vmem>>, vector<1x128xf32>
      %10 = vector.shape_cast %9 : vector<1x128xf32> to vector<1x128xf32>
      %11 = vector.broadcast %10 : vector<1x128xf32> to vector<128x128xf32>
      %c0_10 = arith.constant 0 : index
      %c0_11 = arith.constant 0 : index
      %12 = vector.load %arg6[%c0_10, %c0_11] : memref<128x128xf32, #tpu.memory_space<vmem>>, vector<128x128xf32>
      tpu.vector_store %arg6[%c0_10, %c0_11], %11 {strides = array<i32>} : memref<128x128xf32, #tpu.memory_space<vmem>>, vector<128x128xf32>,
    } else {
    }
    %c0 = arith.constant 0 : index
    %c0_1 = arith.constant 0 : index
    %3 = vector.load %arg6[%c0, %c0_1] : memref<128x128xf32, #tpu.memory_space<vmem>>, vector<128x128xf32>
    %c0_2 = arith.constant 0 : index
    %c0_3 = arith.constant 0 : index
    %4 = vector.load %arg3[%c0_2, %c0_3] : memref<128x512xbf16, #tpu.memory_space<vmem>>, vector<128x512xbf16>
    %c0_4 = arith.constant 0 : index
    %c0_5 = arith.constant 0 : index
    %5 = vector.load %arg4[%c0_4, %c0_5] : memref<512x128xbf16, #tpu.memory_space<vmem>>, vector<512x128xbf16>
    %cst = arith.constant dense<0.000000e+00> : vector<128x128xf32>
    %6 = tpu.matmul %4, %5, %cst {dimension_numbers = #tpu.dot_dimension_numbers<[1], [0], [0], [1], [0, 0, 1, 1], [], []>} : vector<128x512xbf16>, vector<512x128xbf16>, vector<128x128xf32> -> vector<128x128xf32>
    %7 = arith.addf %3, %6 : vector<128x128xf32>
    %c0_6 = arith.constant 0 : index
    %c0_7 = arith.constant 0 : index
    %8 = vector.load %arg6[%c0_6, %c0_7] : memref<128x128xf32, #tpu.memory_space<vmem>>, vector<128x128xf32>
    tpu.vector_store %arg6[%c0_6, %c0_7], %7 {strides = array<i32>} : memref<128x128xf32, #tpu.memory_space<vmem>>, vector<128x128xf32>,
    return
  }
  func.func @transform_0(%arg0: i32, %arg1: i32, %arg2: i32) -> (i32, i32) {
    %c0_i32 = arith.constant 0 : i32
    return %arg0, %arg2 : i32, i32
  }
  func.func @transform_1(%arg0: i32, %arg1: i32, %arg2: i32) -> (i32, i32) {
    %c0_i32 = arith.constant 0 : i32
    return %arg2, %arg1 : i32, i32
  }
  func.func @transform_2(%arg0: i32, %arg1: i32, %arg2: i32) -> (i32, i32) {
    %c0_i32 = arith.constant 0 : i32
    %c0_i32_0 = arith.constant 0 : i32
    return %c0_i32, %arg1 : i32, i32
  }
  func.func @transform_3(%arg0: i32, %arg1: i32, %arg2: i32) -> (i32, i32) {
    %c0_i32 = arith.constant 0 : i32
    return %arg0, %arg1 : i32, i32
  }
}

module attributes {stable_mosaic.version = 11 : i64} {
  func.func @_matmul_kernel(%arg0: i32, %arg1: i32, %arg2: i32, %arg3: memref<128x256xbf16, #tpu.memory_space<vmem>>, %arg4: memref<256x128xbf16, #tpu.memory_space<vmem>>, %arg5: memref<128x128xf32, #tpu.memory_space<vmem>>) attributes {dimension_semantics = [#tpu.dimension_semantics<parallel>, #tpu.dimension_semantics<parallel>, #tpu.dimension_semantics<arbitrary>], iteration_bounds = array<i64: 1, 1, 7>, scalar_prefetch = 0 : i64, scratch_operands = 0 : i64, tpu.core_type = #tpu.core_type<tc>, window_params = [{transform_indices = @transform_0, window_bounds = array<i64: 128, 256>}, {transform_indices = @transform_1, window_bounds = array<i64: 256, 128>}, {transform_indices = @transform_2, window_bounds = array<i64: 128, 128>}]} {
    %c0_i32 = arith.constant 0 : i32
    %0 = arith.cmpi eq, %arg2, %c0_i32 : i32
    %1 = arith.extui %0 : i1 to i32
    %c0_i32_0 = arith.constant 0 : i32
    %2 = arith.cmpi ne, %1, %c0_i32_0 : i32
    scf.if %2 {
      %cst_8 = arith.constant 0.000000e+00 : f32
      %9 = vector.broadcast %cst_8 : f32 to vector<128x128xf32>
      %c0_9 = arith.constant 0 : index
      %c0_10 = arith.constant 0 : index
      %10 = vector.load %arg5[%c0_9, %c0_10] : memref<128x128xf32, #tpu.memory_space<vmem>>, vector<128x128xf32>
      tpu.vector_store %arg5[%c0_9, %c0_10], %9 {strides = array<i32>} : memref<128x128xf32, #tpu.memory_space<vmem>>, vector<128x128xf32>,
    } else {
    }
    %c0 = arith.constant 0 : index
    %c0_1 = arith.constant 0 : index
    %3 = vector.load %arg5[%c0, %c0_1] : memref<128x128xf32, #tpu.memory_space<vmem>>, vector<128x128xf32>
    %c0_2 = arith.constant 0 : index
    %c0_3 = arith.constant 0 : index
    %4 = vector.load %arg3[%c0_2, %c0_3] : memref<128x256xbf16, #tpu.memory_space<vmem>>, vector<128x256xbf16>
    %c0_4 = arith.constant 0 : index
    %c0_5 = arith.constant 0 : index
    %5 = vector.load %arg4[%c0_4, %c0_5] : memref<256x128xbf16, #tpu.memory_space<vmem>>, vector<256x128xbf16>
    %cst = arith.constant dense<0.000000e+00> : vector<128x128xf32>
    %6 = tpu.matmul %4, %5, %cst {dimension_numbers = #tpu.dot_dimension_numbers<[1], [0], [0], [1], [0, 0, 1, 1], [], []>} : vector<128x256xbf16>, vector<256x128xbf16>, vector<128x128xf32> -> vector<128x128xf32>
    %7 = arith.addf %3, %6 : vector<128x128xf32>
    %c0_6 = arith.constant 0 : index
    %c0_7 = arith.constant 0 : index
    %8 = vector.load %arg5[%c0_6, %c0_7] : memref<128x128xf32, #tpu.memory_space<vmem>>, vector<128x128xf32>
    tpu.vector_store %arg5[%c0_6, %c0_7], %7 {strides = array<i32>} : memref<128x128xf32, #tpu.memory_space<vmem>>, vector<128x128xf32>,
    return
  }
  func.func @transform_0(%arg0: i32, %arg1: i32, %arg2: i32) -> (i32, i32) {
    %c0_i32 = arith.constant 0 : i32
    return %arg0, %arg2 : i32, i32
  }
  func.func @transform_1(%arg0: i32, %arg1: i32, %arg2: i32) -> (i32, i32) {
    %c0_i32 = arith.constant 0 : i32
    return %arg2, %arg1 : i32, i32
  }
  func.func @transform_2(%arg0: i32, %arg1: i32, %arg2: i32) -> (i32, i32) {
    %c0_i32 = arith.constant 0 : i32
    return %arg0, %arg1 : i32, i32
  }
}

module attributes {stable_mosaic.version = 11 : i64} {
  func.func @_bn_stats_kernel(%arg0: i32, %arg1: memref<128x128xf32, #tpu.memory_space<vmem>>, %arg2: memref<1x128xf32, #tpu.memory_space<vmem>>, %arg3: memref<1x128xf32, #tpu.memory_space<vmem>>) attributes {dimension_semantics = [#tpu.dimension_semantics<arbitrary>], iteration_bounds = array<i64: 1>, scalar_prefetch = 0 : i64, scratch_operands = 0 : i64, tpu.core_type = #tpu.core_type<tc>, window_params = [{transform_indices = @transform_0, window_bounds = array<i64: 128, 128>}, {pipeline_mode = #tpu.pipeline_mode<synchronous>, transform_indices = @transform_1, window_bounds = array<i64: 1, 128>}, {pipeline_mode = #tpu.pipeline_mode<synchronous>, transform_indices = @transform_2, window_bounds = array<i64: 1, 128>}]} {
    %c0_i32 = arith.constant 0 : i32
    %0 = arith.cmpi eq, %arg0, %c0_i32 : i32
    %1 = arith.extui %0 : i1 to i32
    %c0_i32_0 = arith.constant 0 : i32
    %2 = arith.cmpi ne, %1, %c0_i32_0 : i32
    scf.if %2 {
      %cst_11 = arith.constant 0.000000e+00 : f32
      %15 = vector.broadcast %cst_11 : f32 to vector<1x128xf32>
      %c0_12 = arith.constant 0 : index
      %c0_13 = arith.constant 0 : index
      %16 = vector.load %arg2[%c0_12, %c0_13] : memref<1x128xf32, #tpu.memory_space<vmem>>, vector<1x128xf32>
      tpu.vector_store %arg2[%c0_12, %c0_13], %15 {strides = array<i32>} : memref<1x128xf32, #tpu.memory_space<vmem>>, vector<1x128xf32>,
      %cst_14 = arith.constant 0.000000e+00 : f32
      %17 = vector.broadcast %cst_14 : f32 to vector<1x128xf32>
      %c0_15 = arith.constant 0 : index
      %c0_16 = arith.constant 0 : index
      %18 = vector.load %arg3[%c0_15, %c0_16] : memref<1x128xf32, #tpu.memory_space<vmem>>, vector<1x128xf32>
      tpu.vector_store %arg3[%c0_15, %c0_16], %17 {strides = array<i32>} : memref<1x128xf32, #tpu.memory_space<vmem>>, vector<1x128xf32>,
    } else {
    }
    %c0 = arith.constant 0 : index
    %c0_1 = arith.constant 0 : index
    %3 = vector.load %arg1[%c0, %c0_1] : memref<128x128xf32, #tpu.memory_space<vmem>>, vector<128x128xf32>
    %c0_2 = arith.constant 0 : index
    %c0_3 = arith.constant 0 : index
    %4 = vector.load %arg2[%c0_2, %c0_3] : memref<1x128xf32, #tpu.memory_space<vmem>>, vector<1x128xf32>
    %cst = arith.constant dense<0.000000e+00> : vector<128xf32>
    %5 = vector.multi_reduction <add>, %3, %cst [0] : vector<128x128xf32> to vector<128xf32>
    %6 = vector.shape_cast %5 : vector<128xf32> to vector<1x128xf32>
    %7 = arith.addf %4, %6 : vector<1x128xf32>
    %c0_4 = arith.constant 0 : index
    %c0_5 = arith.constant 0 : index
    %8 = vector.load %arg2[%c0_4, %c0_5] : memref<1x128xf32, #tpu.memory_space<vmem>>, vector<1x128xf32>
    tpu.vector_store %arg2[%c0_4, %c0_5], %7 {strides = array<i32>} : memref<1x128xf32, #tpu.memory_space<vmem>>, vector<1x128xf32>,
    %c0_6 = arith.constant 0 : index
    %c0_7 = arith.constant 0 : index
    %9 = vector.load %arg3[%c0_6, %c0_7] : memref<1x128xf32, #tpu.memory_space<vmem>>, vector<1x128xf32>
    %10 = arith.mulf %3, %3 : vector<128x128xf32>
    %cst_8 = arith.constant dense<0.000000e+00> : vector<128xf32>
    %11 = vector.multi_reduction <add>, %10, %cst_8 [0] : vector<128x128xf32> to vector<128xf32>
    %12 = vector.shape_cast %11 : vector<128xf32> to vector<1x128xf32>
    %13 = arith.addf %9, %12 : vector<1x128xf32>
    %c0_9 = arith.constant 0 : index
    %c0_10 = arith.constant 0 : index
    %14 = vector.load %arg3[%c0_9, %c0_10] : memref<1x128xf32, #tpu.memory_space<vmem>>, vector<1x128xf32>
    tpu.vector_store %arg3[%c0_9, %c0_10], %13 {strides = array<i32>} : memref<1x128xf32, #tpu.memory_space<vmem>>, vector<1x128xf32>,
    return
  }
  func.func @transform_0(%arg0: i32) -> (i32, i32) {
    %c0_i32 = arith.constant 0 : i32
    %c0_i32_0 = arith.constant 0 : i32
    return %arg0, %c0_i32 : i32, i32
  }
  func.func @transform_1(%arg0: i32) -> (i32, i32) {
    %c0_i32 = arith.constant 0 : i32
    %c0_i32_0 = arith.constant 0 : i32
    %c0_i32_1 = arith.constant 0 : i32
    return %c0_i32, %c0_i32_0 : i32, i32
  }
  func.func @transform_2(%arg0: i32) -> (i32, i32) {
    %c0_i32 = arith.constant 0 : i32
    %c0_i32_0 = arith.constant 0 : i32
    %c0_i32_1 = arith.constant 0 : i32
    return %c0_i32, %c0_i32_0 : i32, i32
  }
}

module attributes {stable_mosaic.version = 11 : i64} {
  func.func @kernel(%arg0: i32, %arg1: memref<128x128xf32, #tpu.memory_space<vmem>>, %arg2: memref<1x128xf32, #tpu.memory_space<vmem>>, %arg3: memref<1x128xf32, #tpu.memory_space<vmem>>, %arg4: memref<128x128xf32, #tpu.memory_space<vmem>>) attributes {dimension_semantics = [#tpu.dimension_semantics<parallel>], iteration_bounds = array<i64: 1>, scalar_prefetch = 0 : i64, scratch_operands = 0 : i64, tpu.core_type = #tpu.core_type<tc>, window_params = [{transform_indices = @transform_0, window_bounds = array<i64: 128, 128>}, {pipeline_mode = #tpu.pipeline_mode<synchronous>, transform_indices = @transform_1, window_bounds = array<i64: 1, 128>}, {pipeline_mode = #tpu.pipeline_mode<synchronous>, transform_indices = @transform_2, window_bounds = array<i64: 1, 128>}, {transform_indices = @transform_3, window_bounds = array<i64: 128, 128>}]} {
    %c0 = arith.constant 0 : index
    %c0_0 = arith.constant 0 : index
    %0 = vector.load %arg1[%c0, %c0_0] : memref<128x128xf32, #tpu.memory_space<vmem>>, vector<128x128xf32>
    %c0_1 = arith.constant 0 : index
    %c0_2 = arith.constant 0 : index
    %1 = vector.load %arg2[%c0_1, %c0_2] : memref<1x128xf32, #tpu.memory_space<vmem>>, vector<1x128xf32>
    %2 = vector.broadcast %1 : vector<1x128xf32> to vector<128x128xf32>
    %3 = arith.mulf %0, %2 : vector<128x128xf32>
    %c0_3 = arith.constant 0 : index
    %c0_4 = arith.constant 0 : index
    %4 = vector.load %arg3[%c0_3, %c0_4] : memref<1x128xf32, #tpu.memory_space<vmem>>, vector<1x128xf32>
    %5 = vector.broadcast %4 : vector<1x128xf32> to vector<128x128xf32>
    %6 = arith.addf %3, %5 : vector<128x128xf32>
    %cst = arith.constant 0.000000e+00 : f32
    %7 = vector.broadcast %cst : f32 to vector<128x128xf32>
    %8 = arith.maximumf %6, %7 : vector<128x128xf32>
    %c0_5 = arith.constant 0 : index
    %c0_6 = arith.constant 0 : index
    %9 = vector.load %arg4[%c0_5, %c0_6] : memref<128x128xf32, #tpu.memory_space<vmem>>, vector<128x128xf32>
    tpu.vector_store %arg4[%c0_5, %c0_6], %8 {strides = array<i32>} : memref<128x128xf32, #tpu.memory_space<vmem>>, vector<128x128xf32>,
    return
  }
  func.func @transform_0(%arg0: i32) -> (i32, i32) {
    %c0_i32 = arith.constant 0 : i32
    %c0_i32_0 = arith.constant 0 : i32
    return %arg0, %c0_i32 : i32, i32
  }
  func.func @transform_1(%arg0: i32) -> (i32, i32) {
    %c0_i32 = arith.constant 0 : i32
    %c0_i32_0 = arith.constant 0 : i32
    %c0_i32_1 = arith.constant 0 : i32
    return %c0_i32, %c0_i32_0 : i32, i32
  }
  func.func @transform_2(%arg0: i32) -> (i32, i32) {
    %c0_i32 = arith.constant 0 : i32
    %c0_i32_0 = arith.constant 0 : i32
    %c0_i32_1 = arith.constant 0 : i32
    return %c0_i32, %c0_i32_0 : i32, i32
  }
  func.func @transform_3(%arg0: i32) -> (i32, i32) {
    %c0_i32 = arith.constant 0 : i32
    %c0_i32_0 = arith.constant 0 : i32
    return %arg0, %c0_i32 : i32, i32
  }
}

module attributes {stable_mosaic.version = 11 : i64} {
  func.func @kernel(%arg0: i32, %arg1: memref<128x128xf32, #tpu.memory_space<vmem>>, %arg2: memref<1x128xf32, #tpu.memory_space<vmem>>, %arg3: memref<1x128xf32, #tpu.memory_space<vmem>>, %arg4: memref<128x128xf32, #tpu.memory_space<vmem>>, %arg5: memref<128x128xf32, #tpu.memory_space<vmem>>) attributes {dimension_semantics = [#tpu.dimension_semantics<parallel>], iteration_bounds = array<i64: 1>, scalar_prefetch = 0 : i64, scratch_operands = 0 : i64, tpu.core_type = #tpu.core_type<tc>, window_params = [{transform_indices = @transform_0, window_bounds = array<i64: 128, 128>}, {pipeline_mode = #tpu.pipeline_mode<synchronous>, transform_indices = @transform_1, window_bounds = array<i64: 1, 128>}, {pipeline_mode = #tpu.pipeline_mode<synchronous>, transform_indices = @transform_2, window_bounds = array<i64: 1, 128>}, {transform_indices = @transform_3, window_bounds = array<i64: 128, 128>}, {transform_indices = @transform_4, window_bounds = array<i64: 128, 128>}]} {
    %c0 = arith.constant 0 : index
    %c0_0 = arith.constant 0 : index
    %0 = vector.load %arg1[%c0, %c0_0] : memref<128x128xf32, #tpu.memory_space<vmem>>, vector<128x128xf32>
    %c0_1 = arith.constant 0 : index
    %c0_2 = arith.constant 0 : index
    %1 = vector.load %arg2[%c0_1, %c0_2] : memref<1x128xf32, #tpu.memory_space<vmem>>, vector<1x128xf32>
    %2 = vector.broadcast %1 : vector<1x128xf32> to vector<128x128xf32>
    %3 = arith.mulf %0, %2 : vector<128x128xf32>
    %c0_3 = arith.constant 0 : index
    %c0_4 = arith.constant 0 : index
    %4 = vector.load %arg3[%c0_3, %c0_4] : memref<1x128xf32, #tpu.memory_space<vmem>>, vector<1x128xf32>
    %5 = vector.broadcast %4 : vector<1x128xf32> to vector<128x128xf32>
    %6 = arith.addf %3, %5 : vector<128x128xf32>
    %c0_5 = arith.constant 0 : index
    %c0_6 = arith.constant 0 : index
    %7 = vector.load %arg4[%c0_5, %c0_6] : memref<128x128xf32, #tpu.memory_space<vmem>>, vector<128x128xf32>
    %8 = arith.addf %6, %7 : vector<128x128xf32>
    %cst = arith.constant 0.000000e+00 : f32
    %9 = vector.broadcast %cst : f32 to vector<128x128xf32>
    %10 = arith.maximumf %8, %9 : vector<128x128xf32>
    %c0_7 = arith.constant 0 : index
    %c0_8 = arith.constant 0 : index
    %11 = vector.load %arg5[%c0_7, %c0_8] : memref<128x128xf32, #tpu.memory_space<vmem>>, vector<128x128xf32>
    tpu.vector_store %arg5[%c0_7, %c0_8], %10 {strides = array<i32>} : memref<128x128xf32, #tpu.memory_space<vmem>>, vector<128x128xf32>,
    return
  }
  func.func @transform_0(%arg0: i32) -> (i32, i32) {
    %c0_i32 = arith.constant 0 : i32
    %c0_i32_0 = arith.constant 0 : i32
    return %arg0, %c0_i32 : i32, i32
  }
  func.func @transform_1(%arg0: i32) -> (i32, i32) {
    %c0_i32 = arith.constant 0 : i32
    %c0_i32_0 = arith.constant 0 : i32
    %c0_i32_1 = arith.constant 0 : i32
    return %c0_i32, %c0_i32_0 : i32, i32
  }
  func.func @transform_2(%arg0: i32) -> (i32, i32) {
    %c0_i32 = arith.constant 0 : i32
    %c0_i32_0 = arith.constant 0 : i32
    %c0_i32_1 = arith.constant 0 : i32
    return %c0_i32, %c0_i32_0 : i32, i32
  }
  func.func @transform_3(%arg0: i32) -> (i32, i32) {
    %c0_i32 = arith.constant 0 : i32
    %c0_i32_0 = arith.constant 0 : i32
    return %arg0, %c0_i32 : i32, i32
  }
  func.func @transform_4(%arg0: i32) -> (i32, i32) {
    %c0_i32 = arith.constant 0 : i32
    %c0_i32_0 = arith.constant 0 : i32
    return %arg0, %c0_i32 : i32, i32
  }
}

module attributes {stable_mosaic.version = 11 : i64} {
  func.func @_matmul_kernel(%arg0: i32, %arg1: i32, %arg2: i32, %arg3: memref<128x128xbf16, #tpu.memory_space<vmem>>, %arg4: memref<128x128xbf16, #tpu.memory_space<vmem>>, %arg5: memref<128x128xf32, #tpu.memory_space<vmem>>) attributes {dimension_semantics = [#tpu.dimension_semantics<parallel>, #tpu.dimension_semantics<parallel>, #tpu.dimension_semantics<arbitrary>], iteration_bounds = array<i64: 1, 1, 1>, scalar_prefetch = 0 : i64, scratch_operands = 0 : i64, tpu.core_type = #tpu.core_type<tc>, window_params = [{transform_indices = @transform_0, window_bounds = array<i64: 128, 128>}, {transform_indices = @transform_1, window_bounds = array<i64: 128, 128>}, {transform_indices = @transform_2, window_bounds = array<i64: 128, 128>}]} {
    %c0_i32 = arith.constant 0 : i32
    %0 = arith.cmpi eq, %arg2, %c0_i32 : i32
    %1 = arith.extui %0 : i1 to i32
    %c0_i32_0 = arith.constant 0 : i32
    %2 = arith.cmpi ne, %1, %c0_i32_0 : i32
    scf.if %2 {
      %cst_8 = arith.constant 0.000000e+00 : f32
      %9 = vector.broadcast %cst_8 : f32 to vector<128x128xf32>
      %c0_9 = arith.constant 0 : index
      %c0_10 = arith.constant 0 : index
      %10 = vector.load %arg5[%c0_9, %c0_10] : memref<128x128xf32, #tpu.memory_space<vmem>>, vector<128x128xf32>
      tpu.vector_store %arg5[%c0_9, %c0_10], %9 {strides = array<i32>} : memref<128x128xf32, #tpu.memory_space<vmem>>, vector<128x128xf32>,
    } else {
    }
    %c0 = arith.constant 0 : index
    %c0_1 = arith.constant 0 : index
    %3 = vector.load %arg5[%c0, %c0_1] : memref<128x128xf32, #tpu.memory_space<vmem>>, vector<128x128xf32>
    %c0_2 = arith.constant 0 : index
    %c0_3 = arith.constant 0 : index
    %4 = vector.load %arg3[%c0_2, %c0_3] : memref<128x128xbf16, #tpu.memory_space<vmem>>, vector<128x128xbf16>
    %c0_4 = arith.constant 0 : index
    %c0_5 = arith.constant 0 : index
    %5 = vector.load %arg4[%c0_4, %c0_5] : memref<128x128xbf16, #tpu.memory_space<vmem>>, vector<128x128xbf16>
    %cst = arith.constant dense<0.000000e+00> : vector<128x128xf32>
    %6 = tpu.matmul %4, %5, %cst {dimension_numbers = #tpu.dot_dimension_numbers<[1], [0], [0], [1], [0, 0, 1, 1], [], []>} : vector<128x128xbf16>, vector<128x128xbf16>, vector<128x128xf32> -> vector<128x128xf32>
    %7 = arith.addf %3, %6 : vector<128x128xf32>
    %c0_6 = arith.constant 0 : index
    %c0_7 = arith.constant 0 : index
    %8 = vector.load %arg5[%c0_6, %c0_7] : memref<128x128xf32, #tpu.memory_space<vmem>>, vector<128x128xf32>
    tpu.vector_store %arg5[%c0_6, %c0_7], %7 {strides = array<i32>} : memref<128x128xf32, #tpu.memory_space<vmem>>, vector<128x128xf32>,
    return
  }
  func.func @transform_0(%arg0: i32, %arg1: i32, %arg2: i32) -> (i32, i32) {
    %c0_i32 = arith.constant 0 : i32
    return %arg0, %arg2 : i32, i32
  }
  func.func @transform_1(%arg0: i32, %arg1: i32, %arg2: i32) -> (i32, i32) {
    %c0_i32 = arith.constant 0 : i32
    return %arg2, %arg1 : i32, i32
  }
  func.func @transform_2(%arg0: i32, %arg1: i32, %arg2: i32) -> (i32, i32) {
    %c0_i32 = arith.constant 0 : i32
    return %arg0, %arg1 : i32, i32
  }
}

module attributes {stable_mosaic.version = 11 : i64} {
  func.func @kernel(%arg0: i32, %arg1: memref<128x128xf32, #tpu.memory_space<vmem>>, %arg2: memref<1x128xf32, #tpu.memory_space<vmem>>, %arg3: memref<1x128xf32, #tpu.memory_space<vmem>>, %arg4: memref<128x128xf32, #tpu.memory_space<vmem>>) attributes {dimension_semantics = [#tpu.dimension_semantics<parallel>], iteration_bounds = array<i64: 1>, scalar_prefetch = 0 : i64, scratch_operands = 0 : i64, tpu.core_type = #tpu.core_type<tc>, window_params = [{transform_indices = @transform_0, window_bounds = array<i64: 128, 128>}, {pipeline_mode = #tpu.pipeline_mode<synchronous>, transform_indices = @transform_1, window_bounds = array<i64: 1, 128>}, {pipeline_mode = #tpu.pipeline_mode<synchronous>, transform_indices = @transform_2, window_bounds = array<i64: 1, 128>}, {transform_indices = @transform_3, window_bounds = array<i64: 128, 128>}]} {
    %c0 = arith.constant 0 : index
    %c0_0 = arith.constant 0 : index
    %0 = vector.load %arg1[%c0, %c0_0] : memref<128x128xf32, #tpu.memory_space<vmem>>, vector<128x128xf32>
    %c0_1 = arith.constant 0 : index
    %c0_2 = arith.constant 0 : index
    %1 = vector.load %arg2[%c0_1, %c0_2] : memref<1x128xf32, #tpu.memory_space<vmem>>, vector<1x128xf32>
    %2 = vector.broadcast %1 : vector<1x128xf32> to vector<128x128xf32>
    %3 = arith.mulf %0, %2 : vector<128x128xf32>
    %c0_3 = arith.constant 0 : index
    %c0_4 = arith.constant 0 : index
    %4 = vector.load %arg3[%c0_3, %c0_4] : memref<1x128xf32, #tpu.memory_space<vmem>>, vector<1x128xf32>
    %5 = vector.broadcast %4 : vector<1x128xf32> to vector<128x128xf32>
    %6 = arith.addf %3, %5 : vector<128x128xf32>
    %c0_5 = arith.constant 0 : index
    %c0_6 = arith.constant 0 : index
    %7 = vector.load %arg4[%c0_5, %c0_6] : memref<128x128xf32, #tpu.memory_space<vmem>>, vector<128x128xf32>
    tpu.vector_store %arg4[%c0_5, %c0_6], %6 {strides = array<i32>} : memref<128x128xf32, #tpu.memory_space<vmem>>, vector<128x128xf32>,
    return
  }
  func.func @transform_0(%arg0: i32) -> (i32, i32) {
    %c0_i32 = arith.constant 0 : i32
    %c0_i32_0 = arith.constant 0 : i32
    return %arg0, %c0_i32 : i32, i32
  }
  func.func @transform_1(%arg0: i32) -> (i32, i32) {
    %c0_i32 = arith.constant 0 : i32
    %c0_i32_0 = arith.constant 0 : i32
    %c0_i32_1 = arith.constant 0 : i32
    return %c0_i32, %c0_i32_0 : i32, i32
  }
  func.func @transform_2(%arg0: i32) -> (i32, i32) {
    %c0_i32 = arith.constant 0 : i32
    %c0_i32_0 = arith.constant 0 : i32
    %c0_i32_1 = arith.constant 0 : i32
    return %c0_i32, %c0_i32_0 : i32, i32
  }
  func.func @transform_3(%arg0: i32) -> (i32, i32) {
    %c0_i32 = arith.constant 0 : i32
    %c0_i32_0 = arith.constant 0 : i32
    return %arg0, %c0_i32 : i32, i32
  }
}

module attributes {stable_mosaic.version = 11 : i64} {
  func.func @_matmul_kernel(%arg0: i32, %arg1: i32, %arg2: i32, %arg3: memref<128x384xbf16, #tpu.memory_space<vmem>>, %arg4: memref<384x128xbf16, #tpu.memory_space<vmem>>, %arg5: memref<128x128xf32, #tpu.memory_space<vmem>>) attributes {dimension_semantics = [#tpu.dimension_semantics<parallel>, #tpu.dimension_semantics<parallel>, #tpu.dimension_semantics<arbitrary>], iteration_bounds = array<i64: 1, 1, 9>, scalar_prefetch = 0 : i64, scratch_operands = 0 : i64, tpu.core_type = #tpu.core_type<tc>, window_params = [{transform_indices = @transform_0, window_bounds = array<i64: 128, 384>}, {transform_indices = @transform_1, window_bounds = array<i64: 384, 128>}, {transform_indices = @transform_2, window_bounds = array<i64: 128, 128>}]} {
    %c0_i32 = arith.constant 0 : i32
    %0 = arith.cmpi eq, %arg2, %c0_i32 : i32
    %1 = arith.extui %0 : i1 to i32
    %c0_i32_0 = arith.constant 0 : i32
    %2 = arith.cmpi ne, %1, %c0_i32_0 : i32
    scf.if %2 {
      %cst_8 = arith.constant 0.000000e+00 : f32
      %9 = vector.broadcast %cst_8 : f32 to vector<128x128xf32>
      %c0_9 = arith.constant 0 : index
      %c0_10 = arith.constant 0 : index
      %10 = vector.load %arg5[%c0_9, %c0_10] : memref<128x128xf32, #tpu.memory_space<vmem>>, vector<128x128xf32>
      tpu.vector_store %arg5[%c0_9, %c0_10], %9 {strides = array<i32>} : memref<128x128xf32, #tpu.memory_space<vmem>>, vector<128x128xf32>,
    } else {
    }
    %c0 = arith.constant 0 : index
    %c0_1 = arith.constant 0 : index
    %3 = vector.load %arg5[%c0, %c0_1] : memref<128x128xf32, #tpu.memory_space<vmem>>, vector<128x128xf32>
    %c0_2 = arith.constant 0 : index
    %c0_3 = arith.constant 0 : index
    %4 = vector.load %arg3[%c0_2, %c0_3] : memref<128x384xbf16, #tpu.memory_space<vmem>>, vector<128x384xbf16>
    %c0_4 = arith.constant 0 : index
    %c0_5 = arith.constant 0 : index
    %5 = vector.load %arg4[%c0_4, %c0_5] : memref<384x128xbf16, #tpu.memory_space<vmem>>, vector<384x128xbf16>
    %cst = arith.constant dense<0.000000e+00> : vector<128x128xf32>
    %6 = tpu.matmul %4, %5, %cst {dimension_numbers = #tpu.dot_dimension_numbers<[1], [0], [0], [1], [0, 0, 1, 1], [], []>} : vector<128x384xbf16>, vector<384x128xbf16>, vector<128x128xf32> -> vector<128x128xf32>
    %7 = arith.addf %3, %6 : vector<128x128xf32>
    %c0_6 = arith.constant 0 : index
    %c0_7 = arith.constant 0 : index
    %8 = vector.load %arg5[%c0_6, %c0_7] : memref<128x128xf32, #tpu.memory_space<vmem>>, vector<128x128xf32>
    tpu.vector_store %arg5[%c0_6, %c0_7], %7 {strides = array<i32>} : memref<128x128xf32, #tpu.memory_space<vmem>>, vector<128x128xf32>,
    return
  }
  func.func @transform_0(%arg0: i32, %arg1: i32, %arg2: i32) -> (i32, i32) {
    %c0_i32 = arith.constant 0 : i32
    return %arg0, %arg2 : i32, i32
  }
  func.func @transform_1(%arg0: i32, %arg1: i32, %arg2: i32) -> (i32, i32) {
    %c0_i32 = arith.constant 0 : i32
    return %arg2, %arg1 : i32, i32
  }
  func.func @transform_2(%arg0: i32, %arg1: i32, %arg2: i32) -> (i32, i32) {
    %c0_i32 = arith.constant 0 : i32
    return %arg0, %arg1 : i32, i32
  }
}

module attributes {stable_mosaic.version = 11 : i64} {
  func.func @_matmul_kernel(%arg0: i32, %arg1: i32, %arg2: i32, %arg3: memref<128x128xbf16, #tpu.memory_space<vmem>>, %arg4: memref<128x256xbf16, #tpu.memory_space<vmem>>, %arg5: memref<128x256xf32, #tpu.memory_space<vmem>>) attributes {dimension_semantics = [#tpu.dimension_semantics<parallel>, #tpu.dimension_semantics<parallel>, #tpu.dimension_semantics<arbitrary>], iteration_bounds = array<i64: 1, 1, 1>, scalar_prefetch = 0 : i64, scratch_operands = 0 : i64, tpu.core_type = #tpu.core_type<tc>, window_params = [{transform_indices = @transform_0, window_bounds = array<i64: 128, 128>}, {transform_indices = @transform_1, window_bounds = array<i64: 128, 256>}, {transform_indices = @transform_2, window_bounds = array<i64: 128, 256>}]} {
    %c0_i32 = arith.constant 0 : i32
    %0 = arith.cmpi eq, %arg2, %c0_i32 : i32
    %1 = arith.extui %0 : i1 to i32
    %c0_i32_0 = arith.constant 0 : i32
    %2 = arith.cmpi ne, %1, %c0_i32_0 : i32
    scf.if %2 {
      %cst_8 = arith.constant 0.000000e+00 : f32
      %9 = vector.broadcast %cst_8 : f32 to vector<128x256xf32>
      %c0_9 = arith.constant 0 : index
      %c0_10 = arith.constant 0 : index
      %10 = vector.load %arg5[%c0_9, %c0_10] : memref<128x256xf32, #tpu.memory_space<vmem>>, vector<128x256xf32>
      tpu.vector_store %arg5[%c0_9, %c0_10], %9 {strides = array<i32>} : memref<128x256xf32, #tpu.memory_space<vmem>>, vector<128x256xf32>,
    } else {
    }
    %c0 = arith.constant 0 : index
    %c0_1 = arith.constant 0 : index
    %3 = vector.load %arg5[%c0, %c0_1] : memref<128x256xf32, #tpu.memory_space<vmem>>, vector<128x256xf32>
    %c0_2 = arith.constant 0 : index
    %c0_3 = arith.constant 0 : index
    %4 = vector.load %arg3[%c0_2, %c0_3] : memref<128x128xbf16, #tpu.memory_space<vmem>>, vector<128x128xbf16>
    %c0_4 = arith.constant 0 : index
    %c0_5 = arith.constant 0 : index
    %5 = vector.load %arg4[%c0_4, %c0_5] : memref<128x256xbf16, #tpu.memory_space<vmem>>, vector<128x256xbf16>
    %cst = arith.constant dense<0.000000e+00> : vector<128x256xf32>
    %6 = tpu.matmul %4, %5, %cst {dimension_numbers = #tpu.dot_dimension_numbers<[1], [0], [0], [1], [0, 0, 1, 1], [], []>} : vector<128x128xbf16>, vector<128x256xbf16>, vector<128x256xf32> -> vector<128x256xf32>
    %7 = arith.addf %3, %6 : vector<128x256xf32>
    %c0_6 = arith.constant 0 : index
    %c0_7 = arith.constant 0 : index
    %8 = vector.load %arg5[%c0_6, %c0_7] : memref<128x256xf32, #tpu.memory_space<vmem>>, vector<128x256xf32>
    tpu.vector_store %arg5[%c0_6, %c0_7], %7 {strides = array<i32>} : memref<128x256xf32, #tpu.memory_space<vmem>>, vector<128x256xf32>,
    return
  }
  func.func @transform_0(%arg0: i32, %arg1: i32, %arg2: i32) -> (i32, i32) {
    %c0_i32 = arith.constant 0 : i32
    return %arg0, %arg2 : i32, i32
  }
  func.func @transform_1(%arg0: i32, %arg1: i32, %arg2: i32) -> (i32, i32) {
    %c0_i32 = arith.constant 0 : i32
    return %arg2, %arg1 : i32, i32
  }
  func.func @transform_2(%arg0: i32, %arg1: i32, %arg2: i32) -> (i32, i32) {
    %c0_i32 = arith.constant 0 : i32
    return %arg0, %arg1 : i32, i32
  }
}

module attributes {stable_mosaic.version = 11 : i64} {
  func.func @_bn_stats_kernel(%arg0: i32, %arg1: memref<128x256xf32, #tpu.memory_space<vmem>>, %arg2: memref<1x256xf32, #tpu.memory_space<vmem>>, %arg3: memref<1x256xf32, #tpu.memory_space<vmem>>) attributes {dimension_semantics = [#tpu.dimension_semantics<arbitrary>], iteration_bounds = array<i64: 1>, scalar_prefetch = 0 : i64, scratch_operands = 0 : i64, tpu.core_type = #tpu.core_type<tc>, window_params = [{transform_indices = @transform_0, window_bounds = array<i64: 128, 256>}, {pipeline_mode = #tpu.pipeline_mode<synchronous>, transform_indices = @transform_1, window_bounds = array<i64: 1, 256>}, {pipeline_mode = #tpu.pipeline_mode<synchronous>, transform_indices = @transform_2, window_bounds = array<i64: 1, 256>}]} {
    %c0_i32 = arith.constant 0 : i32
    %0 = arith.cmpi eq, %arg0, %c0_i32 : i32
    %1 = arith.extui %0 : i1 to i32
    %c0_i32_0 = arith.constant 0 : i32
    %2 = arith.cmpi ne, %1, %c0_i32_0 : i32
    scf.if %2 {
      %cst_11 = arith.constant 0.000000e+00 : f32
      %15 = vector.broadcast %cst_11 : f32 to vector<1x256xf32>
      %c0_12 = arith.constant 0 : index
      %c0_13 = arith.constant 0 : index
      %16 = vector.load %arg2[%c0_12, %c0_13] : memref<1x256xf32, #tpu.memory_space<vmem>>, vector<1x256xf32>
      tpu.vector_store %arg2[%c0_12, %c0_13], %15 {strides = array<i32>} : memref<1x256xf32, #tpu.memory_space<vmem>>, vector<1x256xf32>,
      %cst_14 = arith.constant 0.000000e+00 : f32
      %17 = vector.broadcast %cst_14 : f32 to vector<1x256xf32>
      %c0_15 = arith.constant 0 : index
      %c0_16 = arith.constant 0 : index
      %18 = vector.load %arg3[%c0_15, %c0_16] : memref<1x256xf32, #tpu.memory_space<vmem>>, vector<1x256xf32>
      tpu.vector_store %arg3[%c0_15, %c0_16], %17 {strides = array<i32>} : memref<1x256xf32, #tpu.memory_space<vmem>>, vector<1x256xf32>,
    } else {
    }
    %c0 = arith.constant 0 : index
    %c0_1 = arith.constant 0 : index
    %3 = vector.load %arg1[%c0, %c0_1] : memref<128x256xf32, #tpu.memory_space<vmem>>, vector<128x256xf32>
    %c0_2 = arith.constant 0 : index
    %c0_3 = arith.constant 0 : index
    %4 = vector.load %arg2[%c0_2, %c0_3] : memref<1x256xf32, #tpu.memory_space<vmem>>, vector<1x256xf32>
    %cst = arith.constant dense<0.000000e+00> : vector<256xf32>
    %5 = vector.multi_reduction <add>, %3, %cst [0] : vector<128x256xf32> to vector<256xf32>
    %6 = vector.shape_cast %5 : vector<256xf32> to vector<1x256xf32>
    %7 = arith.addf %4, %6 : vector<1x256xf32>
    %c0_4 = arith.constant 0 : index
    %c0_5 = arith.constant 0 : index
    %8 = vector.load %arg2[%c0_4, %c0_5] : memref<1x256xf32, #tpu.memory_space<vmem>>, vector<1x256xf32>
    tpu.vector_store %arg2[%c0_4, %c0_5], %7 {strides = array<i32>} : memref<1x256xf32, #tpu.memory_space<vmem>>, vector<1x256xf32>,
    %c0_6 = arith.constant 0 : index
    %c0_7 = arith.constant 0 : index
    %9 = vector.load %arg3[%c0_6, %c0_7] : memref<1x256xf32, #tpu.memory_space<vmem>>, vector<1x256xf32>
    %10 = arith.mulf %3, %3 : vector<128x256xf32>
    %cst_8 = arith.constant dense<0.000000e+00> : vector<256xf32>
    %11 = vector.multi_reduction <add>, %10, %cst_8 [0] : vector<128x256xf32> to vector<256xf32>
    %12 = vector.shape_cast %11 : vector<256xf32> to vector<1x256xf32>
    %13 = arith.addf %9, %12 : vector<1x256xf32>
    %c0_9 = arith.constant 0 : index
    %c0_10 = arith.constant 0 : index
    %14 = vector.load %arg3[%c0_9, %c0_10] : memref<1x256xf32, #tpu.memory_space<vmem>>, vector<1x256xf32>
    tpu.vector_store %arg3[%c0_9, %c0_10], %13 {strides = array<i32>} : memref<1x256xf32, #tpu.memory_space<vmem>>, vector<1x256xf32>,
    return
  }
  func.func @transform_0(%arg0: i32) -> (i32, i32) {
    %c0_i32 = arith.constant 0 : i32
    %c0_i32_0 = arith.constant 0 : i32
    return %arg0, %c0_i32 : i32, i32
  }
  func.func @transform_1(%arg0: i32) -> (i32, i32) {
    %c0_i32 = arith.constant 0 : i32
    %c0_i32_0 = arith.constant 0 : i32
    %c0_i32_1 = arith.constant 0 : i32
    return %c0_i32, %c0_i32_0 : i32, i32
  }
  func.func @transform_2(%arg0: i32) -> (i32, i32) {
    %c0_i32 = arith.constant 0 : i32
    %c0_i32_0 = arith.constant 0 : i32
    %c0_i32_1 = arith.constant 0 : i32
    return %c0_i32, %c0_i32_0 : i32, i32
  }
}

module attributes {stable_mosaic.version = 11 : i64} {
  func.func @kernel(%arg0: i32, %arg1: memref<128x256xf32, #tpu.memory_space<vmem>>, %arg2: memref<1x256xf32, #tpu.memory_space<vmem>>, %arg3: memref<1x256xf32, #tpu.memory_space<vmem>>, %arg4: memref<128x256xf32, #tpu.memory_space<vmem>>) attributes {dimension_semantics = [#tpu.dimension_semantics<parallel>], iteration_bounds = array<i64: 1>, scalar_prefetch = 0 : i64, scratch_operands = 0 : i64, tpu.core_type = #tpu.core_type<tc>, window_params = [{transform_indices = @transform_0, window_bounds = array<i64: 128, 256>}, {pipeline_mode = #tpu.pipeline_mode<synchronous>, transform_indices = @transform_1, window_bounds = array<i64: 1, 256>}, {pipeline_mode = #tpu.pipeline_mode<synchronous>, transform_indices = @transform_2, window_bounds = array<i64: 1, 256>}, {transform_indices = @transform_3, window_bounds = array<i64: 128, 256>}]} {
    %c0 = arith.constant 0 : index
    %c0_0 = arith.constant 0 : index
    %0 = vector.load %arg1[%c0, %c0_0] : memref<128x256xf32, #tpu.memory_space<vmem>>, vector<128x256xf32>
    %c0_1 = arith.constant 0 : index
    %c0_2 = arith.constant 0 : index
    %1 = vector.load %arg2[%c0_1, %c0_2] : memref<1x256xf32, #tpu.memory_space<vmem>>, vector<1x256xf32>
    %2 = vector.broadcast %1 : vector<1x256xf32> to vector<128x256xf32>
    %3 = arith.mulf %0, %2 : vector<128x256xf32>
    %c0_3 = arith.constant 0 : index
    %c0_4 = arith.constant 0 : index
    %4 = vector.load %arg3[%c0_3, %c0_4] : memref<1x256xf32, #tpu.memory_space<vmem>>, vector<1x256xf32>
    %5 = vector.broadcast %4 : vector<1x256xf32> to vector<128x256xf32>
    %6 = arith.addf %3, %5 : vector<128x256xf32>
    %c0_5 = arith.constant 0 : index
    %c0_6 = arith.constant 0 : index
    %7 = vector.load %arg4[%c0_5, %c0_6] : memref<128x256xf32, #tpu.memory_space<vmem>>, vector<128x256xf32>
    tpu.vector_store %arg4[%c0_5, %c0_6], %6 {strides = array<i32>} : memref<128x256xf32, #tpu.memory_space<vmem>>, vector<128x256xf32>,
    return
  }
  func.func @transform_0(%arg0: i32) -> (i32, i32) {
    %c0_i32 = arith.constant 0 : i32
    %c0_i32_0 = arith.constant 0 : i32
    return %arg0, %c0_i32 : i32, i32
  }
  func.func @transform_1(%arg0: i32) -> (i32, i32) {
    %c0_i32 = arith.constant 0 : i32
    %c0_i32_0 = arith.constant 0 : i32
    %c0_i32_1 = arith.constant 0 : i32
    return %c0_i32, %c0_i32_0 : i32, i32
  }
  func.func @transform_2(%arg0: i32) -> (i32, i32) {
    %c0_i32 = arith.constant 0 : i32
    %c0_i32_0 = arith.constant 0 : i32
    %c0_i32_1 = arith.constant 0 : i32
    return %c0_i32, %c0_i32_0 : i32, i32
  }
  func.func @transform_3(%arg0: i32) -> (i32, i32) {
    %c0_i32 = arith.constant 0 : i32
    %c0_i32_0 = arith.constant 0 : i32
    return %arg0, %c0_i32 : i32, i32
  }
}

module attributes {stable_mosaic.version = 11 : i64} {
  func.func @_matmul_kernel(%arg0: i32, %arg1: i32, %arg2: i32, %arg3: memref<128x384xbf16, #tpu.memory_space<vmem>>, %arg4: memref<384x256xbf16, #tpu.memory_space<vmem>>, %arg5: memref<128x256xf32, #tpu.memory_space<vmem>>) attributes {dimension_semantics = [#tpu.dimension_semantics<parallel>, #tpu.dimension_semantics<parallel>, #tpu.dimension_semantics<arbitrary>], iteration_bounds = array<i64: 1, 1, 9>, scalar_prefetch = 0 : i64, scratch_operands = 0 : i64, tpu.core_type = #tpu.core_type<tc>, window_params = [{transform_indices = @transform_0, window_bounds = array<i64: 128, 384>}, {transform_indices = @transform_1, window_bounds = array<i64: 384, 256>}, {transform_indices = @transform_2, window_bounds = array<i64: 128, 256>}]} {
    %c0_i32 = arith.constant 0 : i32
    %0 = arith.cmpi eq, %arg2, %c0_i32 : i32
    %1 = arith.extui %0 : i1 to i32
    %c0_i32_0 = arith.constant 0 : i32
    %2 = arith.cmpi ne, %1, %c0_i32_0 : i32
    scf.if %2 {
      %cst_8 = arith.constant 0.000000e+00 : f32
      %9 = vector.broadcast %cst_8 : f32 to vector<128x256xf32>
      %c0_9 = arith.constant 0 : index
      %c0_10 = arith.constant 0 : index
      %10 = vector.load %arg5[%c0_9, %c0_10] : memref<128x256xf32, #tpu.memory_space<vmem>>, vector<128x256xf32>
      tpu.vector_store %arg5[%c0_9, %c0_10], %9 {strides = array<i32>} : memref<128x256xf32, #tpu.memory_space<vmem>>, vector<128x256xf32>,
    } else {
    }
    %c0 = arith.constant 0 : index
    %c0_1 = arith.constant 0 : index
    %3 = vector.load %arg5[%c0, %c0_1] : memref<128x256xf32, #tpu.memory_space<vmem>>, vector<128x256xf32>
    %c0_2 = arith.constant 0 : index
    %c0_3 = arith.constant 0 : index
    %4 = vector.load %arg3[%c0_2, %c0_3] : memref<128x384xbf16, #tpu.memory_space<vmem>>, vector<128x384xbf16>
    %c0_4 = arith.constant 0 : index
    %c0_5 = arith.constant 0 : index
    %5 = vector.load %arg4[%c0_4, %c0_5] : memref<384x256xbf16, #tpu.memory_space<vmem>>, vector<384x256xbf16>
    %cst = arith.constant dense<0.000000e+00> : vector<128x256xf32>
    %6 = tpu.matmul %4, %5, %cst {dimension_numbers = #tpu.dot_dimension_numbers<[1], [0], [0], [1], [0, 0, 1, 1], [], []>} : vector<128x384xbf16>, vector<384x256xbf16>, vector<128x256xf32> -> vector<128x256xf32>
    %7 = arith.addf %3, %6 : vector<128x256xf32>
    %c0_6 = arith.constant 0 : index
    %c0_7 = arith.constant 0 : index
    %8 = vector.load %arg5[%c0_6, %c0_7] : memref<128x256xf32, #tpu.memory_space<vmem>>, vector<128x256xf32>
    tpu.vector_store %arg5[%c0_6, %c0_7], %7 {strides = array<i32>} : memref<128x256xf32, #tpu.memory_space<vmem>>, vector<128x256xf32>,
    return
  }
  func.func @transform_0(%arg0: i32, %arg1: i32, %arg2: i32) -> (i32, i32) {
    %c0_i32 = arith.constant 0 : i32
    return %arg0, %arg2 : i32, i32
  }
  func.func @transform_1(%arg0: i32, %arg1: i32, %arg2: i32) -> (i32, i32) {
    %c0_i32 = arith.constant 0 : i32
    return %arg2, %arg1 : i32, i32
  }
  func.func @transform_2(%arg0: i32, %arg1: i32, %arg2: i32) -> (i32, i32) {
    %c0_i32 = arith.constant 0 : i32
    return %arg0, %arg1 : i32, i32
  }
}

module attributes {stable_mosaic.version = 11 : i64} {
  func.func @kernel(%arg0: i32, %arg1: memref<128x256xf32, #tpu.memory_space<vmem>>, %arg2: memref<1x256xf32, #tpu.memory_space<vmem>>, %arg3: memref<1x256xf32, #tpu.memory_space<vmem>>, %arg4: memref<128x256xf32, #tpu.memory_space<vmem>>) attributes {dimension_semantics = [#tpu.dimension_semantics<parallel>], iteration_bounds = array<i64: 1>, scalar_prefetch = 0 : i64, scratch_operands = 0 : i64, tpu.core_type = #tpu.core_type<tc>, window_params = [{transform_indices = @transform_0, window_bounds = array<i64: 128, 256>}, {pipeline_mode = #tpu.pipeline_mode<synchronous>, transform_indices = @transform_1, window_bounds = array<i64: 1, 256>}, {pipeline_mode = #tpu.pipeline_mode<synchronous>, transform_indices = @transform_2, window_bounds = array<i64: 1, 256>}, {transform_indices = @transform_3, window_bounds = array<i64: 128, 256>}]} {
    %c0 = arith.constant 0 : index
    %c0_0 = arith.constant 0 : index
    %0 = vector.load %arg1[%c0, %c0_0] : memref<128x256xf32, #tpu.memory_space<vmem>>, vector<128x256xf32>
    %c0_1 = arith.constant 0 : index
    %c0_2 = arith.constant 0 : index
    %1 = vector.load %arg2[%c0_1, %c0_2] : memref<1x256xf32, #tpu.memory_space<vmem>>, vector<1x256xf32>
    %2 = vector.broadcast %1 : vector<1x256xf32> to vector<128x256xf32>
    %3 = arith.mulf %0, %2 : vector<128x256xf32>
    %c0_3 = arith.constant 0 : index
    %c0_4 = arith.constant 0 : index
    %4 = vector.load %arg3[%c0_3, %c0_4] : memref<1x256xf32, #tpu.memory_space<vmem>>, vector<1x256xf32>
    %5 = vector.broadcast %4 : vector<1x256xf32> to vector<128x256xf32>
    %6 = arith.addf %3, %5 : vector<128x256xf32>
    %cst = arith.constant 0.000000e+00 : f32
    %7 = vector.broadcast %cst : f32 to vector<128x256xf32>
    %8 = arith.maximumf %6, %7 : vector<128x256xf32>
    %c0_5 = arith.constant 0 : index
    %c0_6 = arith.constant 0 : index
    %9 = vector.load %arg4[%c0_5, %c0_6] : memref<128x256xf32, #tpu.memory_space<vmem>>, vector<128x256xf32>
    tpu.vector_store %arg4[%c0_5, %c0_6], %8 {strides = array<i32>} : memref<128x256xf32, #tpu.memory_space<vmem>>, vector<128x256xf32>,
    return
  }
  func.func @transform_0(%arg0: i32) -> (i32, i32) {
    %c0_i32 = arith.constant 0 : i32
    %c0_i32_0 = arith.constant 0 : i32
    return %arg0, %c0_i32 : i32, i32
  }
  func.func @transform_1(%arg0: i32) -> (i32, i32) {
    %c0_i32 = arith.constant 0 : i32
    %c0_i32_0 = arith.constant 0 : i32
    %c0_i32_1 = arith.constant 0 : i32
    return %c0_i32, %c0_i32_0 : i32, i32
  }
  func.func @transform_2(%arg0: i32) -> (i32, i32) {
    %c0_i32 = arith.constant 0 : i32
    %c0_i32_0 = arith.constant 0 : i32
    %c0_i32_1 = arith.constant 0 : i32
    return %c0_i32, %c0_i32_0 : i32, i32
  }
  func.func @transform_3(%arg0: i32) -> (i32, i32) {
    %c0_i32 = arith.constant 0 : i32
    %c0_i32_0 = arith.constant 0 : i32
    return %arg0, %c0_i32 : i32, i32
  }
}

module attributes {stable_mosaic.version = 11 : i64} {
  func.func @kernel(%arg0: i32, %arg1: memref<128x256xf32, #tpu.memory_space<vmem>>, %arg2: memref<1x256xf32, #tpu.memory_space<vmem>>, %arg3: memref<1x256xf32, #tpu.memory_space<vmem>>, %arg4: memref<128x256xf32, #tpu.memory_space<vmem>>, %arg5: memref<128x256xf32, #tpu.memory_space<vmem>>) attributes {dimension_semantics = [#tpu.dimension_semantics<parallel>], iteration_bounds = array<i64: 1>, scalar_prefetch = 0 : i64, scratch_operands = 0 : i64, tpu.core_type = #tpu.core_type<tc>, window_params = [{transform_indices = @transform_0, window_bounds = array<i64: 128, 256>}, {pipeline_mode = #tpu.pipeline_mode<synchronous>, transform_indices = @transform_1, window_bounds = array<i64: 1, 256>}, {pipeline_mode = #tpu.pipeline_mode<synchronous>, transform_indices = @transform_2, window_bounds = array<i64: 1, 256>}, {transform_indices = @transform_3, window_bounds = array<i64: 128, 256>}, {transform_indices = @transform_4, window_bounds = array<i64: 128, 256>}]} {
    %c0 = arith.constant 0 : index
    %c0_0 = arith.constant 0 : index
    %0 = vector.load %arg1[%c0, %c0_0] : memref<128x256xf32, #tpu.memory_space<vmem>>, vector<128x256xf32>
    %c0_1 = arith.constant 0 : index
    %c0_2 = arith.constant 0 : index
    %1 = vector.load %arg2[%c0_1, %c0_2] : memref<1x256xf32, #tpu.memory_space<vmem>>, vector<1x256xf32>
    %2 = vector.broadcast %1 : vector<1x256xf32> to vector<128x256xf32>
    %3 = arith.mulf %0, %2 : vector<128x256xf32>
    %c0_3 = arith.constant 0 : index
    %c0_4 = arith.constant 0 : index
    %4 = vector.load %arg3[%c0_3, %c0_4] : memref<1x256xf32, #tpu.memory_space<vmem>>, vector<1x256xf32>
    %5 = vector.broadcast %4 : vector<1x256xf32> to vector<128x256xf32>
    %6 = arith.addf %3, %5 : vector<128x256xf32>
    %c0_5 = arith.constant 0 : index
    %c0_6 = arith.constant 0 : index
    %7 = vector.load %arg4[%c0_5, %c0_6] : memref<128x256xf32, #tpu.memory_space<vmem>>, vector<128x256xf32>
    %8 = arith.addf %6, %7 : vector<128x256xf32>
    %cst = arith.constant 0.000000e+00 : f32
    %9 = vector.broadcast %cst : f32 to vector<128x256xf32>
    %10 = arith.maximumf %8, %9 : vector<128x256xf32>
    %c0_7 = arith.constant 0 : index
    %c0_8 = arith.constant 0 : index
    %11 = vector.load %arg5[%c0_7, %c0_8] : memref<128x256xf32, #tpu.memory_space<vmem>>, vector<128x256xf32>
    tpu.vector_store %arg5[%c0_7, %c0_8], %10 {strides = array<i32>} : memref<128x256xf32, #tpu.memory_space<vmem>>, vector<128x256xf32>,
    return
  }
  func.func @transform_0(%arg0: i32) -> (i32, i32) {
    %c0_i32 = arith.constant 0 : i32
    %c0_i32_0 = arith.constant 0 : i32
    return %arg0, %c0_i32 : i32, i32
  }
  func.func @transform_1(%arg0: i32) -> (i32, i32) {
    %c0_i32 = arith.constant 0 : i32
    %c0_i32_0 = arith.constant 0 : i32
    %c0_i32_1 = arith.constant 0 : i32
    return %c0_i32, %c0_i32_0 : i32, i32
  }
  func.func @transform_2(%arg0: i32) -> (i32, i32) {
    %c0_i32 = arith.constant 0 : i32
    %c0_i32_0 = arith.constant 0 : i32
    %c0_i32_1 = arith.constant 0 : i32
    return %c0_i32, %c0_i32_0 : i32, i32
  }
  func.func @transform_3(%arg0: i32) -> (i32, i32) {
    %c0_i32 = arith.constant 0 : i32
    %c0_i32_0 = arith.constant 0 : i32
    return %arg0, %c0_i32 : i32, i32
  }
  func.func @transform_4(%arg0: i32) -> (i32, i32) {
    %c0_i32 = arith.constant 0 : i32
    %c0_i32_0 = arith.constant 0 : i32
    return %arg0, %c0_i32 : i32, i32
  }
}

module attributes {stable_mosaic.version = 11 : i64} {
  func.func @_matmul_kernel(%arg0: i32, %arg1: i32, %arg2: i32, %arg3: memref<128x384xbf16, #tpu.memory_space<vmem>>, %arg4: memref<384x256xbf16, #tpu.memory_space<vmem>>, %arg5: memref<128x256xf32, #tpu.memory_space<vmem>>) attributes {dimension_semantics = [#tpu.dimension_semantics<parallel>, #tpu.dimension_semantics<parallel>, #tpu.dimension_semantics<arbitrary>], iteration_bounds = array<i64: 1, 1, 18>, scalar_prefetch = 0 : i64, scratch_operands = 0 : i64, tpu.core_type = #tpu.core_type<tc>, window_params = [{transform_indices = @transform_0, window_bounds = array<i64: 128, 384>}, {transform_indices = @transform_1, window_bounds = array<i64: 384, 256>}, {transform_indices = @transform_2, window_bounds = array<i64: 128, 256>}]} {
    %c0_i32 = arith.constant 0 : i32
    %0 = arith.cmpi eq, %arg2, %c0_i32 : i32
    %1 = arith.extui %0 : i1 to i32
    %c0_i32_0 = arith.constant 0 : i32
    %2 = arith.cmpi ne, %1, %c0_i32_0 : i32
    scf.if %2 {
      %cst_8 = arith.constant 0.000000e+00 : f32
      %9 = vector.broadcast %cst_8 : f32 to vector<128x256xf32>
      %c0_9 = arith.constant 0 : index
      %c0_10 = arith.constant 0 : index
      %10 = vector.load %arg5[%c0_9, %c0_10] : memref<128x256xf32, #tpu.memory_space<vmem>>, vector<128x256xf32>
      tpu.vector_store %arg5[%c0_9, %c0_10], %9 {strides = array<i32>} : memref<128x256xf32, #tpu.memory_space<vmem>>, vector<128x256xf32>,
    } else {
    }
    %c0 = arith.constant 0 : index
    %c0_1 = arith.constant 0 : index
    %3 = vector.load %arg5[%c0, %c0_1] : memref<128x256xf32, #tpu.memory_space<vmem>>, vector<128x256xf32>
    %c0_2 = arith.constant 0 : index
    %c0_3 = arith.constant 0 : index
    %4 = vector.load %arg3[%c0_2, %c0_3] : memref<128x384xbf16, #tpu.memory_space<vmem>>, vector<128x384xbf16>
    %c0_4 = arith.constant 0 : index
    %c0_5 = arith.constant 0 : index
    %5 = vector.load %arg4[%c0_4, %c0_5] : memref<384x256xbf16, #tpu.memory_space<vmem>>, vector<384x256xbf16>
    %cst = arith.constant dense<0.000000e+00> : vector<128x256xf32>
    %6 = tpu.matmul %4, %5, %cst {dimension_numbers = #tpu.dot_dimension_numbers<[1], [0], [0], [1], [0, 0, 1, 1], [], []>} : vector<128x384xbf16>, vector<384x256xbf16>, vector<128x256xf32> -> vector<128x256xf32>
    %7 = arith.addf %3, %6 : vector<128x256xf32>
    %c0_6 = arith.constant 0 : index
    %c0_7 = arith.constant 0 : index
    %8 = vector.load %arg5[%c0_6, %c0_7] : memref<128x256xf32, #tpu.memory_space<vmem>>, vector<128x256xf32>
    tpu.vector_store %arg5[%c0_6, %c0_7], %7 {strides = array<i32>} : memref<128x256xf32, #tpu.memory_space<vmem>>, vector<128x256xf32>,
    return
  }
  func.func @transform_0(%arg0: i32, %arg1: i32, %arg2: i32) -> (i32, i32) {
    %c0_i32 = arith.constant 0 : i32
    return %arg0, %arg2 : i32, i32
  }
  func.func @transform_1(%arg0: i32, %arg1: i32, %arg2: i32) -> (i32, i32) {
    %c0_i32 = arith.constant 0 : i32
    return %arg2, %arg1 : i32, i32
  }
  func.func @transform_2(%arg0: i32, %arg1: i32, %arg2: i32) -> (i32, i32) {
    %c0_i32 = arith.constant 0 : i32
    return %arg0, %arg1 : i32, i32
  }
}

module attributes {stable_mosaic.version = 11 : i64} {
  func.func @_matmul_kernel(%arg0: i32, %arg1: i32, %arg2: i32, %arg3: memref<32x256xbf16, #tpu.memory_space<vmem>>, %arg4: memref<256x256xbf16, #tpu.memory_space<vmem>>, %arg5: memref<32x256xf32, #tpu.memory_space<vmem>>) attributes {dimension_semantics = [#tpu.dimension_semantics<parallel>, #tpu.dimension_semantics<parallel>, #tpu.dimension_semantics<arbitrary>], iteration_bounds = array<i64: 1, 2, 1>, scalar_prefetch = 0 : i64, scratch_operands = 0 : i64, tpu.core_type = #tpu.core_type<tc>, window_params = [{transform_indices = @transform_0, window_bounds = array<i64: 32, 256>}, {transform_indices = @transform_1, window_bounds = array<i64: 256, 256>}, {transform_indices = @transform_2, window_bounds = array<i64: 32, 256>}]} {
    %c0_i32 = arith.constant 0 : i32
    %0 = arith.cmpi eq, %arg2, %c0_i32 : i32
    %1 = arith.extui %0 : i1 to i32
    %c0_i32_0 = arith.constant 0 : i32
    %2 = arith.cmpi ne, %1, %c0_i32_0 : i32
    scf.if %2 {
      %cst_8 = arith.constant 0.000000e+00 : f32
      %9 = vector.broadcast %cst_8 : f32 to vector<32x256xf32>
      %c0_9 = arith.constant 0 : index
      %c0_10 = arith.constant 0 : index
      %10 = vector.load %arg5[%c0_9, %c0_10] : memref<32x256xf32, #tpu.memory_space<vmem>>, vector<32x256xf32>
      tpu.vector_store %arg5[%c0_9, %c0_10], %9 {strides = array<i32>} : memref<32x256xf32, #tpu.memory_space<vmem>>, vector<32x256xf32>,
    } else {
    }
    %c0 = arith.constant 0 : index
    %c0_1 = arith.constant 0 : index
    %3 = vector.load %arg5[%c0, %c0_1] : memref<32x256xf32, #tpu.memory_space<vmem>>, vector<32x256xf32>
    %c0_2 = arith.constant 0 : index
    %c0_3 = arith.constant 0 : index
    %4 = vector.load %arg3[%c0_2, %c0_3] : memref<32x256xbf16, #tpu.memory_space<vmem>>, vector<32x256xbf16>
    %c0_4 = arith.constant 0 : index
    %c0_5 = arith.constant 0 : index
    %5 = vector.load %arg4[%c0_4, %c0_5] : memref<256x256xbf16, #tpu.memory_space<vmem>>, vector<256x256xbf16>
    %cst = arith.constant dense<0.000000e+00> : vector<32x256xf32>
    %6 = tpu.matmul %4, %5, %cst {dimension_numbers = #tpu.dot_dimension_numbers<[1], [0], [0], [1], [0, 0, 1, 1], [], []>} : vector<32x256xbf16>, vector<256x256xbf16>, vector<32x256xf32> -> vector<32x256xf32>
    %7 = arith.addf %3, %6 : vector<32x256xf32>
    %c0_6 = arith.constant 0 : index
    %c0_7 = arith.constant 0 : index
    %8 = vector.load %arg5[%c0_6, %c0_7] : memref<32x256xf32, #tpu.memory_space<vmem>>, vector<32x256xf32>
    tpu.vector_store %arg5[%c0_6, %c0_7], %7 {strides = array<i32>} : memref<32x256xf32, #tpu.memory_space<vmem>>, vector<32x256xf32>,
    return
  }
  func.func @transform_0(%arg0: i32, %arg1: i32, %arg2: i32) -> (i32, i32) {
    %c0_i32 = arith.constant 0 : i32
    return %arg0, %arg2 : i32, i32
  }
  func.func @transform_1(%arg0: i32, %arg1: i32, %arg2: i32) -> (i32, i32) {
    %c0_i32 = arith.constant 0 : i32
    return %arg2, %arg1 : i32, i32
  }
  func.func @transform_2(%arg0: i32, %arg1: i32, %arg2: i32) -> (i32, i32) {
    %c0_i32 = arith.constant 0 : i32
    return %arg0, %arg1 : i32, i32
  }
}

module attributes {stable_mosaic.version = 11 : i64} {
  func.func @_bn_stats_kernel(%arg0: i32, %arg1: memref<32x512xf32, #tpu.memory_space<vmem>>, %arg2: memref<1x512xf32, #tpu.memory_space<vmem>>, %arg3: memref<1x512xf32, #tpu.memory_space<vmem>>) attributes {dimension_semantics = [#tpu.dimension_semantics<arbitrary>], iteration_bounds = array<i64: 1>, scalar_prefetch = 0 : i64, scratch_operands = 0 : i64, tpu.core_type = #tpu.core_type<tc>, window_params = [{transform_indices = @transform_0, window_bounds = array<i64: 32, 512>}, {pipeline_mode = #tpu.pipeline_mode<synchronous>, transform_indices = @transform_1, window_bounds = array<i64: 1, 512>}, {pipeline_mode = #tpu.pipeline_mode<synchronous>, transform_indices = @transform_2, window_bounds = array<i64: 1, 512>}]} {
    %c0_i32 = arith.constant 0 : i32
    %0 = arith.cmpi eq, %arg0, %c0_i32 : i32
    %1 = arith.extui %0 : i1 to i32
    %c0_i32_0 = arith.constant 0 : i32
    %2 = arith.cmpi ne, %1, %c0_i32_0 : i32
    scf.if %2 {
      %cst_11 = arith.constant 0.000000e+00 : f32
      %15 = vector.broadcast %cst_11 : f32 to vector<1x512xf32>
      %c0_12 = arith.constant 0 : index
      %c0_13 = arith.constant 0 : index
      %16 = vector.load %arg2[%c0_12, %c0_13] : memref<1x512xf32, #tpu.memory_space<vmem>>, vector<1x512xf32>
      tpu.vector_store %arg2[%c0_12, %c0_13], %15 {strides = array<i32>} : memref<1x512xf32, #tpu.memory_space<vmem>>, vector<1x512xf32>,
      %cst_14 = arith.constant 0.000000e+00 : f32
      %17 = vector.broadcast %cst_14 : f32 to vector<1x512xf32>
      %c0_15 = arith.constant 0 : index
      %c0_16 = arith.constant 0 : index
      %18 = vector.load %arg3[%c0_15, %c0_16] : memref<1x512xf32, #tpu.memory_space<vmem>>, vector<1x512xf32>
      tpu.vector_store %arg3[%c0_15, %c0_16], %17 {strides = array<i32>} : memref<1x512xf32, #tpu.memory_space<vmem>>, vector<1x512xf32>,
    } else {
    }
    %c0 = arith.constant 0 : index
    %c0_1 = arith.constant 0 : index
    %3 = vector.load %arg1[%c0, %c0_1] : memref<32x512xf32, #tpu.memory_space<vmem>>, vector<32x512xf32>
    %c0_2 = arith.constant 0 : index
    %c0_3 = arith.constant 0 : index
    %4 = vector.load %arg2[%c0_2, %c0_3] : memref<1x512xf32, #tpu.memory_space<vmem>>, vector<1x512xf32>
    %cst = arith.constant dense<0.000000e+00> : vector<512xf32>
    %5 = vector.multi_reduction <add>, %3, %cst [0] : vector<32x512xf32> to vector<512xf32>
    %6 = vector.shape_cast %5 : vector<512xf32> to vector<1x512xf32>
    %7 = arith.addf %4, %6 : vector<1x512xf32>
    %c0_4 = arith.constant 0 : index
    %c0_5 = arith.constant 0 : index
    %8 = vector.load %arg2[%c0_4, %c0_5] : memref<1x512xf32, #tpu.memory_space<vmem>>, vector<1x512xf32>
    tpu.vector_store %arg2[%c0_4, %c0_5], %7 {strides = array<i32>} : memref<1x512xf32, #tpu.memory_space<vmem>>, vector<1x512xf32>,
    %c0_6 = arith.constant 0 : index
    %c0_7 = arith.constant 0 : index
    %9 = vector.load %arg3[%c0_6, %c0_7] : memref<1x512xf32, #tpu.memory_space<vmem>>, vector<1x512xf32>
    %10 = arith.mulf %3, %3 : vector<32x512xf32>
    %cst_8 = arith.constant dense<0.000000e+00> : vector<512xf32>
    %11 = vector.multi_reduction <add>, %10, %cst_8 [0] : vector<32x512xf32> to vector<512xf32>
    %12 = vector.shape_cast %11 : vector<512xf32> to vector<1x512xf32>
    %13 = arith.addf %9, %12 : vector<1x512xf32>
    %c0_9 = arith.constant 0 : index
    %c0_10 = arith.constant 0 : index
    %14 = vector.load %arg3[%c0_9, %c0_10] : memref<1x512xf32, #tpu.memory_space<vmem>>, vector<1x512xf32>
    tpu.vector_store %arg3[%c0_9, %c0_10], %13 {strides = array<i32>} : memref<1x512xf32, #tpu.memory_space<vmem>>, vector<1x512xf32>,
    return
  }
  func.func @transform_0(%arg0: i32) -> (i32, i32) {
    %c0_i32 = arith.constant 0 : i32
    %c0_i32_0 = arith.constant 0 : i32
    return %arg0, %c0_i32 : i32, i32
  }
  func.func @transform_1(%arg0: i32) -> (i32, i32) {
    %c0_i32 = arith.constant 0 : i32
    %c0_i32_0 = arith.constant 0 : i32
    %c0_i32_1 = arith.constant 0 : i32
    return %c0_i32, %c0_i32_0 : i32, i32
  }
  func.func @transform_2(%arg0: i32) -> (i32, i32) {
    %c0_i32 = arith.constant 0 : i32
    %c0_i32_0 = arith.constant 0 : i32
    %c0_i32_1 = arith.constant 0 : i32
    return %c0_i32, %c0_i32_0 : i32, i32
  }
}

module attributes {stable_mosaic.version = 11 : i64} {
  func.func @kernel(%arg0: i32, %arg1: memref<32x512xf32, #tpu.memory_space<vmem>>, %arg2: memref<1x512xf32, #tpu.memory_space<vmem>>, %arg3: memref<1x512xf32, #tpu.memory_space<vmem>>, %arg4: memref<32x512xf32, #tpu.memory_space<vmem>>) attributes {dimension_semantics = [#tpu.dimension_semantics<parallel>], iteration_bounds = array<i64: 1>, scalar_prefetch = 0 : i64, scratch_operands = 0 : i64, tpu.core_type = #tpu.core_type<tc>, window_params = [{transform_indices = @transform_0, window_bounds = array<i64: 32, 512>}, {pipeline_mode = #tpu.pipeline_mode<synchronous>, transform_indices = @transform_1, window_bounds = array<i64: 1, 512>}, {pipeline_mode = #tpu.pipeline_mode<synchronous>, transform_indices = @transform_2, window_bounds = array<i64: 1, 512>}, {transform_indices = @transform_3, window_bounds = array<i64: 32, 512>}]} {
    %c0 = arith.constant 0 : index
    %c0_0 = arith.constant 0 : index
    %0 = vector.load %arg1[%c0, %c0_0] : memref<32x512xf32, #tpu.memory_space<vmem>>, vector<32x512xf32>
    %c0_1 = arith.constant 0 : index
    %c0_2 = arith.constant 0 : index
    %1 = vector.load %arg2[%c0_1, %c0_2] : memref<1x512xf32, #tpu.memory_space<vmem>>, vector<1x512xf32>
    %2 = vector.broadcast %1 : vector<1x512xf32> to vector<32x512xf32>
    %3 = arith.mulf %0, %2 : vector<32x512xf32>
    %c0_3 = arith.constant 0 : index
    %c0_4 = arith.constant 0 : index
    %4 = vector.load %arg3[%c0_3, %c0_4] : memref<1x512xf32, #tpu.memory_space<vmem>>, vector<1x512xf32>
    %5 = vector.broadcast %4 : vector<1x512xf32> to vector<32x512xf32>
    %6 = arith.addf %3, %5 : vector<32x512xf32>
    %c0_5 = arith.constant 0 : index
    %c0_6 = arith.constant 0 : index
    %7 = vector.load %arg4[%c0_5, %c0_6] : memref<32x512xf32, #tpu.memory_space<vmem>>, vector<32x512xf32>
    tpu.vector_store %arg4[%c0_5, %c0_6], %6 {strides = array<i32>} : memref<32x512xf32, #tpu.memory_space<vmem>>, vector<32x512xf32>,
    return
  }
  func.func @transform_0(%arg0: i32) -> (i32, i32) {
    %c0_i32 = arith.constant 0 : i32
    %c0_i32_0 = arith.constant 0 : i32
    return %arg0, %c0_i32 : i32, i32
  }
  func.func @transform_1(%arg0: i32) -> (i32, i32) {
    %c0_i32 = arith.constant 0 : i32
    %c0_i32_0 = arith.constant 0 : i32
    %c0_i32_1 = arith.constant 0 : i32
    return %c0_i32, %c0_i32_0 : i32, i32
  }
  func.func @transform_2(%arg0: i32) -> (i32, i32) {
    %c0_i32 = arith.constant 0 : i32
    %c0_i32_0 = arith.constant 0 : i32
    %c0_i32_1 = arith.constant 0 : i32
    return %c0_i32, %c0_i32_0 : i32, i32
  }
  func.func @transform_3(%arg0: i32) -> (i32, i32) {
    %c0_i32 = arith.constant 0 : i32
    %c0_i32_0 = arith.constant 0 : i32
    return %arg0, %c0_i32 : i32, i32
  }
}

module attributes {stable_mosaic.version = 11 : i64} {
  func.func @_matmul_kernel(%arg0: i32, %arg1: i32, %arg2: i32, %arg3: memref<32x384xbf16, #tpu.memory_space<vmem>>, %arg4: memref<384x256xbf16, #tpu.memory_space<vmem>>, %arg5: memref<32x256xf32, #tpu.memory_space<vmem>>) attributes {dimension_semantics = [#tpu.dimension_semantics<parallel>, #tpu.dimension_semantics<parallel>, #tpu.dimension_semantics<arbitrary>], iteration_bounds = array<i64: 1, 2, 18>, scalar_prefetch = 0 : i64, scratch_operands = 0 : i64, tpu.core_type = #tpu.core_type<tc>, window_params = [{transform_indices = @transform_0, window_bounds = array<i64: 32, 384>}, {transform_indices = @transform_1, window_bounds = array<i64: 384, 256>}, {transform_indices = @transform_2, window_bounds = array<i64: 32, 256>}]} {
    %c0_i32 = arith.constant 0 : i32
    %0 = arith.cmpi eq, %arg2, %c0_i32 : i32
    %1 = arith.extui %0 : i1 to i32
    %c0_i32_0 = arith.constant 0 : i32
    %2 = arith.cmpi ne, %1, %c0_i32_0 : i32
    scf.if %2 {
      %cst_8 = arith.constant 0.000000e+00 : f32
      %9 = vector.broadcast %cst_8 : f32 to vector<32x256xf32>
      %c0_9 = arith.constant 0 : index
      %c0_10 = arith.constant 0 : index
      %10 = vector.load %arg5[%c0_9, %c0_10] : memref<32x256xf32, #tpu.memory_space<vmem>>, vector<32x256xf32>
      tpu.vector_store %arg5[%c0_9, %c0_10], %9 {strides = array<i32>} : memref<32x256xf32, #tpu.memory_space<vmem>>, vector<32x256xf32>,
    } else {
    }
    %c0 = arith.constant 0 : index
    %c0_1 = arith.constant 0 : index
    %3 = vector.load %arg5[%c0, %c0_1] : memref<32x256xf32, #tpu.memory_space<vmem>>, vector<32x256xf32>
    %c0_2 = arith.constant 0 : index
    %c0_3 = arith.constant 0 : index
    %4 = vector.load %arg3[%c0_2, %c0_3] : memref<32x384xbf16, #tpu.memory_space<vmem>>, vector<32x384xbf16>
    %c0_4 = arith.constant 0 : index
    %c0_5 = arith.constant 0 : index
    %5 = vector.load %arg4[%c0_4, %c0_5] : memref<384x256xbf16, #tpu.memory_space<vmem>>, vector<384x256xbf16>
    %cst = arith.constant dense<0.000000e+00> : vector<32x256xf32>
    %6 = tpu.matmul %4, %5, %cst {dimension_numbers = #tpu.dot_dimension_numbers<[1], [0], [0], [1], [0, 0, 1, 1], [], []>} : vector<32x384xbf16>, vector<384x256xbf16>, vector<32x256xf32> -> vector<32x256xf32>
    %7 = arith.addf %3, %6 : vector<32x256xf32>
    %c0_6 = arith.constant 0 : index
    %c0_7 = arith.constant 0 : index
    %8 = vector.load %arg5[%c0_6, %c0_7] : memref<32x256xf32, #tpu.memory_space<vmem>>, vector<32x256xf32>
    tpu.vector_store %arg5[%c0_6, %c0_7], %7 {strides = array<i32>} : memref<32x256xf32, #tpu.memory_space<vmem>>, vector<32x256xf32>,
    return
  }
  func.func @transform_0(%arg0: i32, %arg1: i32, %arg2: i32) -> (i32, i32) {
    %c0_i32 = arith.constant 0 : i32
    return %arg0, %arg2 : i32, i32
  }
  func.func @transform_1(%arg0: i32, %arg1: i32, %arg2: i32) -> (i32, i32) {
    %c0_i32 = arith.constant 0 : i32
    return %arg2, %arg1 : i32, i32
  }
  func.func @transform_2(%arg0: i32, %arg1: i32, %arg2: i32) -> (i32, i32) {
    %c0_i32 = arith.constant 0 : i32
    return %arg0, %arg1 : i32, i32
  }
}

module attributes {stable_mosaic.version = 11 : i64} {
  func.func @kernel(%arg0: i32, %arg1: memref<32x512xf32, #tpu.memory_space<vmem>>, %arg2: memref<1x512xf32, #tpu.memory_space<vmem>>, %arg3: memref<1x512xf32, #tpu.memory_space<vmem>>, %arg4: memref<32x512xf32, #tpu.memory_space<vmem>>) attributes {dimension_semantics = [#tpu.dimension_semantics<parallel>], iteration_bounds = array<i64: 1>, scalar_prefetch = 0 : i64, scratch_operands = 0 : i64, tpu.core_type = #tpu.core_type<tc>, window_params = [{transform_indices = @transform_0, window_bounds = array<i64: 32, 512>}, {pipeline_mode = #tpu.pipeline_mode<synchronous>, transform_indices = @transform_1, window_bounds = array<i64: 1, 512>}, {pipeline_mode = #tpu.pipeline_mode<synchronous>, transform_indices = @transform_2, window_bounds = array<i64: 1, 512>}, {transform_indices = @transform_3, window_bounds = array<i64: 32, 512>}]} {
    %c0 = arith.constant 0 : index
    %c0_0 = arith.constant 0 : index
    %0 = vector.load %arg1[%c0, %c0_0] : memref<32x512xf32, #tpu.memory_space<vmem>>, vector<32x512xf32>
    %c0_1 = arith.constant 0 : index
    %c0_2 = arith.constant 0 : index
    %1 = vector.load %arg2[%c0_1, %c0_2] : memref<1x512xf32, #tpu.memory_space<vmem>>, vector<1x512xf32>
    %2 = vector.broadcast %1 : vector<1x512xf32> to vector<32x512xf32>
    %3 = arith.mulf %0, %2 : vector<32x512xf32>
    %c0_3 = arith.constant 0 : index
    %c0_4 = arith.constant 0 : index
    %4 = vector.load %arg3[%c0_3, %c0_4] : memref<1x512xf32, #tpu.memory_space<vmem>>, vector<1x512xf32>
    %5 = vector.broadcast %4 : vector<1x512xf32> to vector<32x512xf32>
    %6 = arith.addf %3, %5 : vector<32x512xf32>
    %cst = arith.constant 0.000000e+00 : f32
    %7 = vector.broadcast %cst : f32 to vector<32x512xf32>
    %8 = arith.maximumf %6, %7 : vector<32x512xf32>
    %c0_5 = arith.constant 0 : index
    %c0_6 = arith.constant 0 : index
    %9 = vector.load %arg4[%c0_5, %c0_6] : memref<32x512xf32, #tpu.memory_space<vmem>>, vector<32x512xf32>
    tpu.vector_store %arg4[%c0_5, %c0_6], %8 {strides = array<i32>} : memref<32x512xf32, #tpu.memory_space<vmem>>, vector<32x512xf32>,
    return
  }
  func.func @transform_0(%arg0: i32) -> (i32, i32) {
    %c0_i32 = arith.constant 0 : i32
    %c0_i32_0 = arith.constant 0 : i32
    return %arg0, %c0_i32 : i32, i32
  }
  func.func @transform_1(%arg0: i32) -> (i32, i32) {
    %c0_i32 = arith.constant 0 : i32
    %c0_i32_0 = arith.constant 0 : i32
    %c0_i32_1 = arith.constant 0 : i32
    return %c0_i32, %c0_i32_0 : i32, i32
  }
  func.func @transform_2(%arg0: i32) -> (i32, i32) {
    %c0_i32 = arith.constant 0 : i32
    %c0_i32_0 = arith.constant 0 : i32
    %c0_i32_1 = arith.constant 0 : i32
    return %c0_i32, %c0_i32_0 : i32, i32
  }
  func.func @transform_3(%arg0: i32) -> (i32, i32) {
    %c0_i32 = arith.constant 0 : i32
    %c0_i32_0 = arith.constant 0 : i32
    return %arg0, %c0_i32 : i32, i32
  }
}

module attributes {stable_mosaic.version = 11 : i64} {
  func.func @_matmul_kernel(%arg0: i32, %arg1: i32, %arg2: i32, %arg3: memref<32x512xbf16, #tpu.memory_space<vmem>>, %arg4: memref<512x256xbf16, #tpu.memory_space<vmem>>, %arg5: memref<32x256xf32, #tpu.memory_space<vmem>>) attributes {dimension_semantics = [#tpu.dimension_semantics<parallel>, #tpu.dimension_semantics<parallel>, #tpu.dimension_semantics<arbitrary>], iteration_bounds = array<i64: 1, 2, 27>, scalar_prefetch = 0 : i64, scratch_operands = 0 : i64, tpu.core_type = #tpu.core_type<tc>, window_params = [{transform_indices = @transform_0, window_bounds = array<i64: 32, 512>}, {transform_indices = @transform_1, window_bounds = array<i64: 512, 256>}, {transform_indices = @transform_2, window_bounds = array<i64: 32, 256>}]} {
    %c0_i32 = arith.constant 0 : i32
    %0 = arith.cmpi eq, %arg2, %c0_i32 : i32
    %1 = arith.extui %0 : i1 to i32
    %c0_i32_0 = arith.constant 0 : i32
    %2 = arith.cmpi ne, %1, %c0_i32_0 : i32
    scf.if %2 {
      %cst_8 = arith.constant 0.000000e+00 : f32
      %9 = vector.broadcast %cst_8 : f32 to vector<32x256xf32>
      %c0_9 = arith.constant 0 : index
      %c0_10 = arith.constant 0 : index
      %10 = vector.load %arg5[%c0_9, %c0_10] : memref<32x256xf32, #tpu.memory_space<vmem>>, vector<32x256xf32>
      tpu.vector_store %arg5[%c0_9, %c0_10], %9 {strides = array<i32>} : memref<32x256xf32, #tpu.memory_space<vmem>>, vector<32x256xf32>,
    } else {
    }
    %c0 = arith.constant 0 : index
    %c0_1 = arith.constant 0 : index
    %3 = vector.load %arg5[%c0, %c0_1] : memref<32x256xf32, #tpu.memory_space<vmem>>, vector<32x256xf32>
    %c0_2 = arith.constant 0 : index
    %c0_3 = arith.constant 0 : index
    %4 = vector.load %arg3[%c0_2, %c0_3] : memref<32x512xbf16, #tpu.memory_space<vmem>>, vector<32x512xbf16>
    %c0_4 = arith.constant 0 : index
    %c0_5 = arith.constant 0 : index
    %5 = vector.load %arg4[%c0_4, %c0_5] : memref<512x256xbf16, #tpu.memory_space<vmem>>, vector<512x256xbf16>
    %cst = arith.constant dense<0.000000e+00> : vector<32x256xf32>
    %6 = tpu.matmul %4, %5, %cst {dimension_numbers = #tpu.dot_dimension_numbers<[1], [0], [0], [1], [0, 0, 1, 1], [], []>} : vector<32x512xbf16>, vector<512x256xbf16>, vector<32x256xf32> -> vector<32x256xf32>
    %7 = arith.addf %3, %6 : vector<32x256xf32>
    %c0_6 = arith.constant 0 : index
    %c0_7 = arith.constant 0 : index
    %8 = vector.load %arg5[%c0_6, %c0_7] : memref<32x256xf32, #tpu.memory_space<vmem>>, vector<32x256xf32>
    tpu.vector_store %arg5[%c0_6, %c0_7], %7 {strides = array<i32>} : memref<32x256xf32, #tpu.memory_space<vmem>>, vector<32x256xf32>,
    return
  }
  func.func @transform_0(%arg0: i32, %arg1: i32, %arg2: i32) -> (i32, i32) {
    %c0_i32 = arith.constant 0 : i32
    return %arg0, %arg2 : i32, i32
  }
  func.func @transform_1(%arg0: i32, %arg1: i32, %arg2: i32) -> (i32, i32) {
    %c0_i32 = arith.constant 0 : i32
    return %arg2, %arg1 : i32, i32
  }
  func.func @transform_2(%arg0: i32, %arg1: i32, %arg2: i32) -> (i32, i32) {
    %c0_i32 = arith.constant 0 : i32
    return %arg0, %arg1 : i32, i32
  }
}

module attributes {stable_mosaic.version = 11 : i64} {
  func.func @kernel(%arg0: i32, %arg1: memref<32x512xf32, #tpu.memory_space<vmem>>, %arg2: memref<1x512xf32, #tpu.memory_space<vmem>>, %arg3: memref<1x512xf32, #tpu.memory_space<vmem>>, %arg4: memref<32x512xf32, #tpu.memory_space<vmem>>, %arg5: memref<32x512xf32, #tpu.memory_space<vmem>>) attributes {dimension_semantics = [#tpu.dimension_semantics<parallel>], iteration_bounds = array<i64: 1>, scalar_prefetch = 0 : i64, scratch_operands = 0 : i64, tpu.core_type = #tpu.core_type<tc>, window_params = [{transform_indices = @transform_0, window_bounds = array<i64: 32, 512>}, {pipeline_mode = #tpu.pipeline_mode<synchronous>, transform_indices = @transform_1, window_bounds = array<i64: 1, 512>}, {pipeline_mode = #tpu.pipeline_mode<synchronous>, transform_indices = @transform_2, window_bounds = array<i64: 1, 512>}, {transform_indices = @transform_3, window_bounds = array<i64: 32, 512>}, {transform_indices = @transform_4, window_bounds = array<i64: 32, 512>}]} {
    %c0 = arith.constant 0 : index
    %c0_0 = arith.constant 0 : index
    %0 = vector.load %arg1[%c0, %c0_0] : memref<32x512xf32, #tpu.memory_space<vmem>>, vector<32x512xf32>
    %c0_1 = arith.constant 0 : index
    %c0_2 = arith.constant 0 : index
    %1 = vector.load %arg2[%c0_1, %c0_2] : memref<1x512xf32, #tpu.memory_space<vmem>>, vector<1x512xf32>
    %2 = vector.broadcast %1 : vector<1x512xf32> to vector<32x512xf32>
    %3 = arith.mulf %0, %2 : vector<32x512xf32>
    %c0_3 = arith.constant 0 : index
    %c0_4 = arith.constant 0 : index
    %4 = vector.load %arg3[%c0_3, %c0_4] : memref<1x512xf32, #tpu.memory_space<vmem>>, vector<1x512xf32>
    %5 = vector.broadcast %4 : vector<1x512xf32> to vector<32x512xf32>
    %6 = arith.addf %3, %5 : vector<32x512xf32>
    %c0_5 = arith.constant 0 : index
    %c0_6 = arith.constant 0 : index
    %7 = vector.load %arg4[%c0_5, %c0_6] : memref<32x512xf32, #tpu.memory_space<vmem>>, vector<32x512xf32>
    %8 = arith.addf %6, %7 : vector<32x512xf32>
    %cst = arith.constant 0.000000e+00 : f32
    %9 = vector.broadcast %cst : f32 to vector<32x512xf32>
    %10 = arith.maximumf %8, %9 : vector<32x512xf32>
    %c0_7 = arith.constant 0 : index
    %c0_8 = arith.constant 0 : index
    %11 = vector.load %arg5[%c0_7, %c0_8] : memref<32x512xf32, #tpu.memory_space<vmem>>, vector<32x512xf32>
    tpu.vector_store %arg5[%c0_7, %c0_8], %10 {strides = array<i32>} : memref<32x512xf32, #tpu.memory_space<vmem>>, vector<32x512xf32>,
    return
  }
  func.func @transform_0(%arg0: i32) -> (i32, i32) {
    %c0_i32 = arith.constant 0 : i32
    %c0_i32_0 = arith.constant 0 : i32
    return %arg0, %c0_i32 : i32, i32
  }
  func.func @transform_1(%arg0: i32) -> (i32, i32) {
    %c0_i32 = arith.constant 0 : i32
    %c0_i32_0 = arith.constant 0 : i32
    %c0_i32_1 = arith.constant 0 : i32
    return %c0_i32, %c0_i32_0 : i32, i32
  }
  func.func @transform_2(%arg0: i32) -> (i32, i32) {
    %c0_i32 = arith.constant 0 : i32
    %c0_i32_0 = arith.constant 0 : i32
    %c0_i32_1 = arith.constant 0 : i32
    return %c0_i32, %c0_i32_0 : i32, i32
  }
  func.func @transform_3(%arg0: i32) -> (i32, i32) {
    %c0_i32 = arith.constant 0 : i32
    %c0_i32_0 = arith.constant 0 : i32
    return %arg0, %c0_i32 : i32, i32
  }
  func.func @transform_4(%arg0: i32) -> (i32, i32) {
    %c0_i32 = arith.constant 0 : i32
    %c0_i32_0 = arith.constant 0 : i32
    return %arg0, %c0_i32 : i32, i32
  }
}

module attributes {stable_mosaic.version = 11 : i64} {
  func.func @_matmul_bias_kernel(%arg0: i32, %arg1: i32, %arg2: i32, %arg3: memref<8x512xbf16, #tpu.memory_space<vmem>>, %arg4: memref<512x128xbf16, #tpu.memory_space<vmem>>, %arg5: memref<1x128xf32, #tpu.memory_space<vmem>>, %arg6: memref<8x128xf32, #tpu.memory_space<vmem>>) attributes {dimension_semantics = [#tpu.dimension_semantics<parallel>, #tpu.dimension_semantics<parallel>, #tpu.dimension_semantics<arbitrary>], iteration_bounds = array<i64: 1, 1, 1>, scalar_prefetch = 0 : i64, scratch_operands = 0 : i64, tpu.core_type = #tpu.core_type<tc>, window_params = [{transform_indices = @transform_0, window_bounds = array<i64: 8, 512>}, {transform_indices = @transform_1, window_bounds = array<i64: 512, 128>}, {transform_indices = @transform_2, window_bounds = array<i64: 1, 128>}, {transform_indices = @transform_3, window_bounds = array<i64: 8, 128>}]} {
    %c0_i32 = arith.constant 0 : i32
    %0 = arith.cmpi eq, %arg2, %c0_i32 : i32
    %1 = arith.extui %0 : i1 to i32
    %c0_i32_0 = arith.constant 0 : i32
    %2 = arith.cmpi ne, %1, %c0_i32_0 : i32
    scf.if %2 {
      %c0_8 = arith.constant 0 : index
      %c0_9 = arith.constant 0 : index
      %9 = vector.load %arg5[%c0_8, %c0_9] : memref<1x128xf32, #tpu.memory_space<vmem>>, vector<1x128xf32>
      %10 = vector.shape_cast %9 : vector<1x128xf32> to vector<1x128xf32>
      %11 = vector.broadcast %10 : vector<1x128xf32> to vector<8x128xf32>
      %c0_10 = arith.constant 0 : index
      %c0_11 = arith.constant 0 : index
      %12 = vector.load %arg6[%c0_10, %c0_11] : memref<8x128xf32, #tpu.memory_space<vmem>>, vector<8x128xf32>
      tpu.vector_store %arg6[%c0_10, %c0_11], %11 {strides = array<i32>} : memref<8x128xf32, #tpu.memory_space<vmem>>, vector<8x128xf32>,
    } else {
    }
    %c0 = arith.constant 0 : index
    %c0_1 = arith.constant 0 : index
    %3 = vector.load %arg6[%c0, %c0_1] : memref<8x128xf32, #tpu.memory_space<vmem>>, vector<8x128xf32>
    %c0_2 = arith.constant 0 : index
    %c0_3 = arith.constant 0 : index
    %4 = vector.load %arg3[%c0_2, %c0_3] : memref<8x512xbf16, #tpu.memory_space<vmem>>, vector<8x512xbf16>
    %c0_4 = arith.constant 0 : index
    %c0_5 = arith.constant 0 : index
    %5 = vector.load %arg4[%c0_4, %c0_5] : memref<512x128xbf16, #tpu.memory_space<vmem>>, vector<512x128xbf16>
    %cst = arith.constant dense<0.000000e+00> : vector<8x128xf32>
    %6 = tpu.matmul %4, %5, %cst {dimension_numbers = #tpu.dot_dimension_numbers<[1], [0], [0], [1], [0, 0, 1, 1], [], []>} : vector<8x512xbf16>, vector<512x128xbf16>, vector<8x128xf32> -> vector<8x128xf32>
    %7 = arith.addf %3, %6 : vector<8x128xf32>
    %c0_6 = arith.constant 0 : index
    %c0_7 = arith.constant 0 : index
    %8 = vector.load %arg6[%c0_6, %c0_7] : memref<8x128xf32, #tpu.memory_space<vmem>>, vector<8x128xf32>
    tpu.vector_store %arg6[%c0_6, %c0_7], %7 {strides = array<i32>} : memref<8x128xf32, #tpu.memory_space<vmem>>, vector<8x128xf32>,
    return
  }
  func.func @transform_0(%arg0: i32, %arg1: i32, %arg2: i32) -> (i32, i32) {
    %c0_i32 = arith.constant 0 : i32
    return %arg0, %arg2 : i32, i32
  }
  func.func @transform_1(%arg0: i32, %arg1: i32, %arg2: i32) -> (i32, i32) {
    %c0_i32 = arith.constant 0 : i32
    return %arg2, %arg1 : i32, i32
  }
  func.func @transform_2(%arg0: i32, %arg1: i32, %arg2: i32) -> (i32, i32) {
    %c0_i32 = arith.constant 0 : i32
    %c0_i32_0 = arith.constant 0 : i32
    return %c0_i32, %arg1 : i32, i32
  }
  func.func @transform_3(%arg0: i32, %arg1: i32, %arg2: i32) -> (i32, i32) {
    %c0_i32 = arith.constant 0 : i32
    return %arg0, %arg1 : i32, i32
  }
}

module attributes {stable_mosaic.version = 11 : i64} {
  func.func @_softmax_kernel(%arg0: i32, %arg1: memref<8x128xf32, #tpu.memory_space<vmem>>, %arg2: memref<8x128xf32, #tpu.memory_space<vmem>>) attributes {dimension_semantics = [#tpu.dimension_semantics<arbitrary>], iteration_bounds = array<i64: 1>, scalar_prefetch = 0 : i64, scratch_operands = 0 : i64, tpu.core_type = #tpu.core_type<tc>, window_params = [{pipeline_mode = #tpu.pipeline_mode<synchronous>, transform_indices = @transform_0, window_bounds = array<i64: 8, 128>}, {pipeline_mode = #tpu.pipeline_mode<synchronous>, transform_indices = @transform_1, window_bounds = array<i64: 8, 128>}]} {
    %c0 = arith.constant 0 : index
    %c0_0 = arith.constant 0 : index
    %0 = vector.load %arg1[%c0, %c0_0] : memref<8x128xf32, #tpu.memory_space<vmem>>, vector<8x128xf32>
    %cst = arith.constant dense<0xFF800000> : vector<8xf32>
    %1 = vector.multi_reduction <maximumf>, %0, %cst [1] : vector<8x128xf32> to vector<8xf32>
    %2 = vector.shape_cast %1 : vector<8xf32> to vector<8x1xf32>
    %3 = vector.broadcast %2 : vector<8x1xf32> to vector<8x128xf32>
    %4 = arith.subf %0, %3 : vector<8x128xf32>
    %5 = math.exp %4 : vector<8x128xf32>
    %cst_1 = arith.constant dense<0.000000e+00> : vector<8xf32>
    %6 = vector.multi_reduction <add>, %5, %cst_1 [1] : vector<8x128xf32> to vector<8xf32>
    %7 = vector.shape_cast %6 : vector<8xf32> to vector<8x1xf32>
    %8 = vector.broadcast %7 : vector<8x1xf32> to vector<8x128xf32>
    %9 = arith.divf %5, %8 : vector<8x128xf32>
    %c0_2 = arith.constant 0 : index
    %c0_3 = arith.constant 0 : index
    %10 = vector.load %arg2[%c0_2, %c0_3] : memref<8x128xf32, #tpu.memory_space<vmem>>, vector<8x128xf32>
    tpu.vector_store %arg2[%c0_2, %c0_3], %9 {strides = array<i32>} : memref<8x128xf32, #tpu.memory_space<vmem>>, vector<8x128xf32>,
    return
  }
  func.func @transform_0(%arg0: i32) -> (i32, i32) {
    %c0_i32 = arith.constant 0 : i32
    %c0_i32_0 = arith.constant 0 : i32
    %c0_i32_1 = arith.constant 0 : i32
    return %c0_i32, %c0_i32_0 : i32, i32
  }
  func.func @transform_1(%arg0: i32) -> (i32, i32) {
    %c0_i32 = arith.constant 0 : i32
    %c0_i32_0 = arith.constant 0 : i32
    %c0_i32_1 = arith.constant 0 : i32
    return %c0_i32, %c0_i32_0 : i32, i32
  }
}

</mosaic_0001>

<bundles_post_ra>
// kernel: res3d_forward.61
= control target key start
LH: loop header
LB: loop body
LE: loop exit
PB: predicated region body
PF: predicated region fallthrough
CT: control target
= control target key end

     0   :  { %s1081_s12 = smov 0   ;;  %s1083_s13 = smov 0   ;;  %s1231_s0 = inlined_call_operand.vmem [shape: bf16[1024,128], index: 0, kind: input, shape index: {}]   ;;  %s1232_s1 = inlined_call_operand.vmem [shape: bf16[128,128], index: 1, kind: input, shape index: {}]   ;;  %s1233_s2 = inlined_call_operand.vmem [shape: f32[1,128], index: 2, kind: input, shape index: {}]   ;;  %s1234_s3 = inlined_call_operand.vmem [shape: f32[1024,128], index: 3, kind: output, shape index: {}]  }
   0x1   :  { %s1085_s14 = smov 0  }
   0x2 LB: > { %s32_s15 = sadd.s32 1, %s1055_s13  ;;  %p869_p0 = scmp.ge.s32.totalorder %s1059_s14, 1  ;;  %s1059_s14 = sphi %s1085_s14, %s13_s14   ;;  %s1055_s13 = sphi %s1083_s13, %s1236_s13   ;;  %s1051_s12 = sphi %s1081_s12, %s1235_s12  }
   0x3   : > { %p34_p1 = scmp.ge.s32.totalorder %s32_s15, 4  ;;  %p188_p2 = scmp.lt.s32.totalorder %s1059_s14, 5 }
   0x5   : > { %s1238_s15 = smov (%p34_p1, %s32_s15), 0  ;;  %p189_p3 = pnand %p869_p0, %p188_p2 }
   0x6   : > { %v1013_v0 = vld [vmem:[%s1232_s1] sm:$0xff] (!%p189_p3)   ;;  %s870_s18 = sshll.u32 (!%p189_p3), %s1051_s12, 5  ;;  %v1014_v1 = vld [vmem:[%s1232_s1 + $0x8] sm:$0xff] (!%p189_p3)   ;;  %v1015_v2 = vld [vmem:[%s1232_s1 + $0x10] sm:$0xff] (!%p189_p3)  }
   0x7   : > { %192 = sbr.rel (%p189_p3) target bundleno = 281 (0x119), region = 32  ;;  %p230_p4 = scmp.lt.s32.totalorder (!%p189_p3), %s870_s18, 127  ;;  %925 = vmatprep.subr.bf16.mxu0 (!%p189_p3), %v1013_v0  ;;  %973 = vmatprep.subr.bf16.mxu1 (!%p189_p3), %v1013_v0  ;;  %v1016_v3 = vld [vmem:[%s1232_s1 + $0x18] sm:$0xff] (!%p189_p3)   ;;  %v1017_v6 = vld [vmem:[%s1232_s1 + $0x20] sm:$0xff] (!%p189_p3)   ;;  %v1018_v7 = vld [vmem:[%s1232_s1 + $0x28] sm:$0xff] (!%p189_p3)  }
   0x8   : > { %926 = vmatpush3.bf16.msra.mxu0 (!%p189_p3), %v1013_v0  ;;  %981 = vmatpush3.bf16.msra.mxu1 (!%p189_p3), %v1013_v0  ;;  %v1019_v8 = vld [vmem:[%s1232_s1 + $0x30] sm:$0xff] (!%p189_p3)   ;;  %v1020_v9 = vld [vmem:[%s1232_s1 + $0x38] sm:$0xff] (!%p189_p3)   ;;  %v1151_v24 = vld [vmem:[%s1233_s2] ss:$0 sm:$0xff] (!%p189_p3) }
   0x9   : > { %927 = vmatprep.subr.bf16.mxu0 (!%p189_p3), %v1014_v1  ;;  %974 = vmatprep.subr.bf16.mxu1 (!%p189_p3), %v1014_v1 }
   0xc   : > { %928 = vmatpush3.bf16.msra.mxu0 (!%p189_p3), %v1014_v1  ;;  %982 = vmatpush3.bf16.msra.mxu1 (!%p189_p3), %v1014_v1 }
   0xd   : > { %929 = vmatprep.subr.bf16.mxu0 (!%p189_p3), %v1015_v2  ;;  %975 = vmatprep.subr.bf16.mxu1 (!%p189_p3), %v1015_v2 }
   0xe   : > { %s1240_s18 = smov (!%p230_p4, %s870_s18), 127 }
   0xf   : > { %s871_s23 = sshll.u32 %s1240_s18, 2  ;;  %s873_s10 = sshll.u32 %s1240_s18, 3 }
  0x10   : > { %s1114_s26 = scalar_lea.vmem %s1231_s0, %s871_s23  ;;  %930 = vmatpush3.bf16.msra.mxu0 %v1015_v2  ;;  %983 = vmatpush3.bf16.msra.mxu1 %v1015_v2  ;;  %s1156_s19 = scalar_lea.vmem %s1234_s3, %s873_s10 }
  0x11   : > { %v1021_v4 = vld [vmem:[%s1114_s26] sm:$0xff]   ;;  %931 = vmatprep.subr.bf16.mxu0 %v1016_v3  ;;  %976 = vmatprep.subr.bf16.mxu1 %v1016_v3  ;;  %v1023_v10 = vld [vmem:[%s1114_s26 + $0x8] sm:$0xff]   ;;  %v1025_v12 = vld [vmem:[%s1114_s26 + $0x10] sm:$0xff]  }
  0x12   : > { %v1022_v5 = vld [vmem:[%s1114_s26 + $0x40] sm:$0xff]   ;;  %941 = vmatprep.mubr.bf16.mxu0 %v1021_v4  ;;  %v1024_v11 = vld [vmem:[%s1114_s26 + $0x48] sm:$0xff]   ;;  %v1026_v13 = vld [vmem:[%s1114_s26 + $0x50] sm:$0xff]  }
  0x13   : > { %957 = vmatprep.mubr.bf16.mxu1 %v1022_v5  ;;  %v1027_v14 = vld [vmem:[%s1114_s26 + $0x18] sm:$0xff]   ;;  %v1029_v16 = vld [vmem:[%s1114_s26 + $0x20] sm:$0xff]   ;;  %v1031_v18 = vld [vmem:[%s1114_s26 + $0x28] sm:$0xff]  }
  0x14   : > { %932 = vmatpush3.bf16.msra.mxu0 %v1016_v3  ;;  %984 = vmatpush3.bf16.msra.mxu1 %v1016_v3  ;;  %v1028_v15 = vld [vmem:[%s1114_s26 + $0x58] sm:$0xff]   ;;  %v1030_v17 = vld [vmem:[%s1114_s26 + $0x60] sm:$0xff]   ;;  %v1032_v19 = vld [vmem:[%s1114_s26 + $0x68] sm:$0xff]  }
  0x15   : > { %933 = vmatprep.subr.bf16.mxu0 %v1017_v6  ;;  %977 = vmatprep.subr.bf16.mxu1 %v1017_v6  ;;  %v1033_v20 = vld [vmem:[%s1114_s26 + $0x30] sm:$0xff]   ;;  %v1035_v22 = vld [vmem:[%s1114_s26 + $0x38] sm:$0xff]  }
  0x16   : > { %v1034_v21 = vld [vmem:[%s1114_s26 + $0x70] sm:$0xff]   ;;  %v1036_v23 = vld [vmem:[%s1114_s26 + $0x78] sm:$0xff]  }
  0x18   : > { %934 = vmatpush3.bf16.msra.mxu0 %v1017_v6  ;;  %985 = vmatpush3.bf16.msra.mxu1 %v1017_v6 }
  0x19   : > { %935 = vmatprep.subr.bf16.mxu0 %v1018_v7  ;;  %978 = vmatprep.subr.bf16.mxu1 %v1018_v7 }
  0x1c   : > { %936 = vmatpush3.bf16.msra.mxu0 %v1018_v7  ;;  %986 = vmatpush3.bf16.msra.mxu1 %v1018_v7 }
  0x1d   : > { %937 = vmatprep.subr.bf16.mxu0 %v1019_v8  ;;  %979 = vmatprep.subr.bf16.mxu1 %v1019_v8 }
  0x20   : > { %938 = vmatpush3.bf16.msra.mxu0 %v1019_v8  ;;  %987 = vmatpush3.bf16.msra.mxu1 %v1019_v8 }
  0x21   : > { %939 = vmatprep.subr.bf16.mxu0 %v1020_v9  ;;  %980 = vmatprep.subr.bf16.mxu1 %v1020_v9 }
  0x24   : > { %940 = vmatpush3.bf16.msra.mxu0 %v1020_v9  ;;  %988 = vmatpush3.bf16.msra.mxu1 %v1020_v9 }
  0x27   : > { %942 = vmatmul.mubr.bf16.vlgmr.msra.gmra.mrb[0].mxu0 %v1023_v10  ;;  %958 = vmatmul.mubr.bf16.vlgmr.msra.gmra.mrb[0].mxu1 %v1024_v11 }
  0x28   : > { %945 = vmatprep.mubr.bf16.mxu0 %v1025_v12  ;;  %961 = vmatprep.mubr.bf16.mxu1 %v1026_v13 }
  0x2f   : > { %946 = vmatmul.mubr.bf16.gmra.mrb[4].mxu0 %v1027_v14  ;;  %962 = vmatmul.mubr.bf16.gmra.mrb[4].mxu1 %v1028_v15 }
  0x30   : > { %949 = vmatprep.mubr.bf16.mxu0 %v1029_v16  ;;  %965 = vmatprep.mubr.bf16.mxu1 %v1030_v17 }
  0x37   : > { %950 = vmatmul.mubr.bf16.gmra.mrb[8].mxu0 %v1031_v18  ;;  %966 = vmatmul.mubr.bf16.gmra.mrb[8].mxu1 %v1032_v19 }
  0x38   : > { %953 = vmatprep.mubr.bf16.mxu0 %v1033_v20  ;;  %969 = vmatprep.mubr.bf16.mxu1 %v1034_v21 }
  0x3f   : > { %954 = vmatmul.mubr.bf16.gmra.mrb[12].mxu0 %v1035_v22  ;;  %970 = vmatmul.mubr.bf16.gmra.mrb[12].mxu1 %v1036_v23 }
  0xfa   : > { %v943_v25 = vpop.f32.mrb[0].mxu0  ;;  %v959_v26 = vpop.f32.mrb[0].mxu1 }
  0xfb   : > { %v690_v27 = vadd.f32 %v943_v25, %v1151_v24  ;;  %v706_v28 = vadd.f32 %v959_v26, %v1151_v24  ;;  %v561_v29 = vpop.f32.mrb[1].mxu0  ;;  %v625_v30 = vpop.f32.mrb[1].mxu1 }
  0xfc   : > { %v688_v31 = vadd.f32 %v1151_v24, %v561_v29  ;;  %v704_v32 = vadd.f32 %v1151_v24, %v625_v30  ;;  %v944_v33 = vpop.f32.mrb[2].mxu0  ;;  %v960_v34 = vpop.f32.mrb[2].mxu1 }
  0xfd   : > { %722 = vst [vmem:[%s1156_s19 + $0x10] sm:$0xff] %v690_v27  ;;  %738 = vst [vmem:[%s1156_s19 + $0x90] sm:$0xff] %v706_v28  ;;  %v691_v35 = vadd.f32 %v944_v33, %v1151_v24  ;;  %v707_v36 = vadd.f32 %v960_v34, %v1151_v24  ;;  %v564_v37 = vpop.f32.mrb[3].mxu0  ;;  %v628_v38 = vpop.f32.mrb[3].mxu1 }
  0xfe   : > { %720 = vst [vmem:[%s1156_s19] sm:$0xff] %v688_v31  ;;  %736 = vst [vmem:[%s1156_s19 + $0x80] sm:$0xff] %v704_v32  ;;  %v689_v39 = vadd.f32 %v1151_v24, %v564_v37  ;;  %v705_v40 = vadd.f32 %v1151_v24, %v628_v38 }
  0xff   : > { %723 = vst [vmem:[%s1156_s19 + $0x18] sm:$0xff] %v691_v35  ;;  %739 = vst [vmem:[%s1156_s19 + $0x98] sm:$0xff] %v707_v36 }
 0x100   : > { %721 = vst [vmem:[%s1156_s19 + $0x8] sm:$0xff] %v689_v39  ;;  %737 = vst [vmem:[%s1156_s19 + $0x88] sm:$0xff] %v705_v40 }
 0x102   : > { %v947_v41 = vpop.f32.mrb[4].mxu0  ;;  %v963_v42 = vpop.f32.mrb[4].mxu1 }
 0x103   : > { %v694_v43 = vadd.f32 %v947_v41, %v1151_v24  ;;  %v710_v44 = vadd.f32 %v963_v42, %v1151_v24  ;;  %v577_v45 = vpop.f32.mrb[5].mxu0  ;;  %v641_v46 = vpop.f32.mrb[5].mxu1 }
 0x104   : > { %v692_v47 = vadd.f32 %v1151_v24, %v577_v45  ;;  %v708_v48 = vadd.f32 %v1151_v24, %v641_v46  ;;  %v948_v49 = vpop.f32.mrb[6].mxu0  ;;  %v964_v50 = vpop.f32.mrb[6].mxu1 }
 0x105   : > { %726 = vst [vmem:[%s1156_s19 + $0x30] sm:$0xff] %v694_v43  ;;  %742 = vst [vmem:[%s1156_s19 + $0xb0] sm:$0xff] %v710_v44  ;;  %v695_v51 = vadd.f32 %v948_v49, %v1151_v24  ;;  %v711_v52 = vadd.f32 %v964_v50, %v1151_v24  ;;  %v580_v53 = vpop.f32.mrb[7].mxu0  ;;  %v644_v54 = vpop.f32.mrb[7].mxu1 }
 0x106   : > { %724 = vst [vmem:[%s1156_s19 + $0x20] sm:$0xff] %v692_v47  ;;  %740 = vst [vmem:[%s1156_s19 + $0xa0] sm:$0xff] %v708_v48  ;;  %v693_v55 = vadd.f32 %v1151_v24, %v580_v53  ;;  %v709_v56 = vadd.f32 %v1151_v24, %v644_v54 }
 0x107   : > { %727 = vst [vmem:[%s1156_s19 + $0x38] sm:$0xff] %v695_v51  ;;  %743 = vst [vmem:[%s1156_s19 + $0xb8] sm:$0xff] %v711_v52 }
 0x108   : > { %725 = vst [vmem:[%s1156_s19 + $0x28] sm:$0xff] %v693_v55  ;;  %741 = vst [vmem:[%s1156_s19 + $0xa8] sm:$0xff] %v709_v56 }
 0x10a   : > { %v951_v57 = vpop.f32.mrb[8].mxu0  ;;  %v967_v58 = vpop.f32.mrb[8].mxu1 }
 0x10b   : > { %v698_v59 = vadd.f32 %v951_v57, %v1151_v24  ;;  %v714_v60 = vadd.f32 %v967_v58, %v1151_v24  ;;  %v593_v61 = vpop.f32.mrb[9].mxu0  ;;  %v657_v62 = vpop.f32.mrb[9].mxu1 }
 0x10c   : > { %v696_v63 = vadd.f32 %v1151_v24, %v593_v61  ;;  %v712_v0 = vadd.f32 %v1151_v24, %v657_v62  ;;  %v952_v1 = vpop.f32.mrb[10].mxu0  ;;  %v968_v2 = vpop.f32.mrb[10].mxu1 }
 0x10d   : > { %730 = vst [vmem:[%s1156_s19 + $0x50] sm:$0xff] %v698_v59  ;;  %746 = vst [vmem:[%s1156_s19 + $0xd0] sm:$0xff] %v714_v60  ;;  %v699_v3 = vadd.f32 %v952_v1, %v1151_v24  ;;  %v715_v4 = vadd.f32 %v968_v2, %v1151_v24  ;;  %v596_v5 = vpop.f32.mrb[11].mxu0  ;;  %v660_v6 = vpop.f32.mrb[11].mxu1 }
 0x10e   : > { %728 = vst [vmem:[%s1156_s19 + $0x40] sm:$0xff] %v696_v63  ;;  %744 = vst [vmem:[%s1156_s19 + $0xc0] sm:$0xff] %v712_v0  ;;  %v697_v7 = vadd.f32 %v1151_v24, %v596_v5  ;;  %v713_v8 = vadd.f32 %v1151_v24, %v660_v6 }
 0x10f   : > { %731 = vst [vmem:[%s1156_s19 + $0x58] sm:$0xff] %v699_v3  ;;  %747 = vst [vmem:[%s1156_s19 + $0xd8] sm:$0xff] %v715_v4 }
 0x110   : > { %729 = vst [vmem:[%s1156_s19 + $0x48] sm:$0xff] %v697_v7  ;;  %745 = vst [vmem:[%s1156_s19 + $0xc8] sm:$0xff] %v713_v8 }
 0x112   : > { %v955_v9 = vpop.f32.mrb[12].mxu0  ;;  %v971_v10 = vpop.f32.mrb[12].mxu1 }
 0x113   : > { %v702_v11 = vadd.f32 %v955_v9, %v1151_v24  ;;  %v718_v12 = vadd.f32 %v971_v10, %v1151_v24  ;;  %v609_v13 = vpop.f32.mrb[13].mxu0  ;;  %v673_v14 = vpop.f32.mrb[13].mxu1 }
 0x114   : > { %v700_v15 = vadd.f32 %v1151_v24, %v609_v13  ;;  %v716_v16 = vadd.f32 %v1151_v24, %v673_v14  ;;  %v956_v17 = vpop.f32.mrb[14].mxu0  ;;  %v972_v18 = vpop.f32.mrb[14].mxu1 }
 0x115   : > { %734 = vst [vmem:[%s1156_s19 + $0x70] sm:$0xff] %v702_v11  ;;  %750 = vst [vmem:[%s1156_s19 + $0xf0] sm:$0xff] %v718_v12  ;;  %v703_v19 = vadd.f32 %v956_v17, %v1151_v24  ;;  %v719_v20 = vadd.f32 %v972_v18, %v1151_v24  ;;  %v612_v21 = vpop.f32.mrb[15].mxu0  ;;  %v676_v22 = vpop.f32.mrb[15].mxu1 }
 0x116   : > { %732 = vst [vmem:[%s1156_s19 + $0x60] sm:$0xff] %v700_v15  ;;  %748 = vst [vmem:[%s1156_s19 + $0xe0] sm:$0xff] %v716_v16  ;;  %v701_v23 = vadd.f32 %v1151_v24, %v612_v21  ;;  %v717_v25 = vadd.f32 %v1151_v24, %v676_v22 }
 0x117   : > { %735 = vst [vmem:[%s1156_s19 + $0x78] sm:$0xff] %v703_v19  ;;  %751 = vst [vmem:[%s1156_s19 + $0xf8] sm:$0xff] %v719_v20 }
 0x118   : > { %733 = vst [vmem:[%s1156_s19 + $0x68] sm:$0xff] %v701_v23  ;;  %749 = vst [vmem:[%s1156_s19 + $0xe8] sm:$0xff] %v717_v25 }
 0x119 PF: > { %s13_s14 = sadd.s32 1, %s1059_s14   ;;  %s1235_s12 = smov %s1055_s13 }
 0x11a   : > { %p10_p5 = scmp.ge.s32.totalorder %s13_s14, 6   ;;  %s1236_s13 = smov %s1238_s15 }
 0x11c   :  { %12 = sbr.rel (!%p10_p5) target bundleno = 2 (0x2), region = 72 }

// kernel: res3d_forward.62
= control target key start
LH: loop header
LB: loop body
LE: loop exit
PB: predicated region body
PF: predicated region fallthrough
CT: control target
= control target key end

     0   :  { %s1554_s12 = smov 0   ;;  %s1556_s13 = smov 0   ;;  %s1903_s0 = inlined_call_operand.vmem [shape: bf16[128,2560], index: 0, kind: input, shape index: {}]   ;;  %s1904_s1 = inlined_call_operand.vmem [shape: bf16[2560,128], index: 1, kind: input, shape index: {}]   ;;  %s1905_s2 = inlined_call_operand.vmem [shape: f32[1,128], index: 2, kind: input, shape index: {}]   ;;  %s1906_s3 = inlined_call_operand.vmem [shape: f32[128,128], index: 3, kind: output, shape index: {}]  }
   0x1   :  { %s1558_s14 = smov 0   ;;  %s1560_s15 = smov 0  }
   0x2   :  { %s1562_s16 = smov 0  }
   0x3 LB: > { %s25_s17 = sadd.s32 1, %s1528_s15  ;;  %p48_p1 = scmp.ne.s32.totalorder %s1520_s13, %s1516_s12  ;;  %s1532_s16 = sphi %s1562_s16, %s13_s16   ;;  %s1528_s15 = sphi %s1560_s15, %s1910_s15   ;;  %s1524_s14 = sphi %s1558_s14, %s1909_s14   ;;  %s1520_s13 = sphi %s1556_s13, %s1908_s13   ;;  %s1516_s12 = sphi %s1554_s12, %s1907_s12  }
   0x4   : > { %p26_p0 = scmp.ge.s32.totalorder %s25_s17, 5  ;;  %p49_p2 = scmp.eq.s32.totalorder %s1532_s16, 0 }
   0x5   : > { %s41_s19 = sadd.s32 1, %s1520_s13  ;;  %p1167_p5 = scmp.ge.s32.totalorder %s1532_s16, 5 }
   0x6   : > { %s1912_s17 = smov (%p26_p0, %s25_s17), 0  ;;  %p50_p3 = por %p49_p2, %p48_p1 }
   0x7   : > { %s37_s18 = ssub.s32 %s1528_s15, %s1912_s17  ;;  %162 = sbr.rel (%p1167_p5) target bundleno = 34 (0x22), region = 20 }
   0x8   : > { %p39_p4 = scmp.eq.s32.totalorder %s37_s18, 0 }
   0xa   : > { %s1589_s20 = scalar_select %p39_p4, %s1520_s13, %s41_s19  }
   0xe   : > { %165 = sbr.rel (!%p50_p3) target bundleno = 34 (0x22), region = 24  ;;  %s167_s21 = sand.u32 (%p50_p3), 1, %s1520_s13  }
   0xf   : > { %s1245_s22 = sshll.u32 (%p50_p3), %s1528_s15, 4  ;;  %s1168_s23 = sshll.u32 (%p50_p3), %s167_s21, 8 }
  0x10   : > { %s1597_s26 = scalar_lea.vmem (%p50_p3), %s1903_s0, %s1245_s22  ;;  %s1602_s27 = scalar_lea.vmem (%p50_p3), [#allocation2], %s1168_s23 }
  0x11   : > { %v188_v0 = vld [vmem:[%s1597_s26] sm:$0xff] (%p50_p3)  ;;  %v190_v1 = vld [vmem:[%s1597_s26 + $0x8] sm:$0xff] (%p50_p3)  ;;  %v192_v2 = vld [vmem:[%s1597_s26 + $0x50] sm:$0xff] (%p50_p3) }
  0x12   : > { %189 = vst [vmem:[%s1602_s27] sm:$0xff] (%p50_p3), %v188_v0  ;;  %191 = vst [vmem:[%s1602_s27 + $0x8] sm:$0xff] (%p50_p3), %v190_v1  ;;  %v194_v3 = vld [vmem:[%s1597_s26 + $0x58] sm:$0xff] (%p50_p3)  ;;  %v196_v4 = vld [vmem:[%s1597_s26 + $0xa0] sm:$0xff] (%p50_p3) }
  0x13   : > { %193 = vst [vmem:[%s1602_s27 + $0x10] sm:$0xff] (%p50_p3), %v192_v2  ;;  %v198_v5 = vld [vmem:[%s1597_s26 + $0xa8] sm:$0xff] (%p50_p3)  ;;  %195 = vst [vmem:[%s1602_s27 + $0x18] sm:$0xff] (%p50_p3), %v194_v3  ;;  %v200_v6 = vld [vmem:[%s1597_s26 + $0xf0] sm:$0xff] (%p50_p3) }
  0x14   : > { %197 = vst [vmem:[%s1602_s27 + $0x20] sm:$0xff] (%p50_p3), %v196_v4  ;;  %199 = vst [vmem:[%s1602_s27 + $0x28] sm:$0xff] (%p50_p3), %v198_v5  ;;  %v202_v7 = vld [vmem:[%s1597_s26 + $0xf8] sm:$0xff] (%p50_p3)  ;;  %v204_v8 = vld [vmem:[%s1597_s26 + $0x140] sm:$0xff] (%p50_p3) }
  0x15   : > { %201 = vst [vmem:[%s1602_s27 + $0x30] sm:$0xff] %v200_v6  ;;  %203 = vst [vmem:[%s1602_s27 + $0x38] sm:$0xff] %v202_v7  ;;  %v206_v9 = vld [vmem:[%s1597_s26 + $0x148] sm:$0xff]  ;;  %v208_v10 = vld [vmem:[%s1597_s26 + $0x190] sm:$0xff] }
  0x16   : > { %205 = vst [vmem:[%s1602_s27 + $0x40] sm:$0xff] %v204_v8  ;;  %v210_v11 = vld [vmem:[%s1597_s26 + $0x198] sm:$0xff]  ;;  %207 = vst [vmem:[%s1602_s27 + $0x48] sm:$0xff] %v206_v9  ;;  %v212_v12 = vld [vmem:[%s1597_s26 + $0x1e0] sm:$0xff] }
  0x17   : > { %209 = vst [vmem:[%s1602_s27 + $0x50] sm:$0xff] %v208_v10  ;;  %211 = vst [vmem:[%s1602_s27 + $0x58] sm:$0xff] %v210_v11  ;;  %v214_v13 = vld [vmem:[%s1597_s26 + $0x1e8] sm:$0xff]  ;;  %v216_v14 = vld [vmem:[%s1597_s26 + $0x230] sm:$0xff] }
  0x18   : > { %213 = vst [vmem:[%s1602_s27 + $0x60] sm:$0xff] %v212_v12  ;;  %215 = vst [vmem:[%s1602_s27 + $0x68] sm:$0xff] %v214_v13  ;;  %v218_v15 = vld [vmem:[%s1597_s26 + $0x238] sm:$0xff]  ;;  %v220_v16 = vld [vmem:[%s1597_s26 + $0x280] sm:$0xff] }
  0x19   : > { %217 = vst [vmem:[%s1602_s27 + $0x70] sm:$0xff] %v216_v14  ;;  %v222_v17 = vld [vmem:[%s1597_s26 + $0x288] sm:$0xff]  ;;  %219 = vst [vmem:[%s1602_s27 + $0x78] sm:$0xff] %v218_v15  ;;  %v224_v18 = vld [vmem:[%s1597_s26 + $0x2d0] sm:$0xff] }
  0x1a   : > { %221 = vst [vmem:[%s1602_s27 + $0x80] sm:$0xff] %v220_v16  ;;  %223 = vst [vmem:[%s1602_s27 + $0x88] sm:$0xff] %v222_v17  ;;  %v226_v19 = vld [vmem:[%s1597_s26 + $0x2d8] sm:$0xff]  ;;  %v228_v20 = vld [vmem:[%s1597_s26 + $0x320] sm:$0xff] }
  0x1b   : > { %225 = vst [vmem:[%s1602_s27 + $0x90] sm:$0xff] %v224_v18  ;;  %227 = vst [vmem:[%s1602_s27 + $0x98] sm:$0xff] %v226_v19  ;;  %v230_v21 = vld [vmem:[%s1597_s26 + $0x328] sm:$0xff]  ;;  %v232_v22 = vld [vmem:[%s1597_s26 + $0x370] sm:$0xff] }
  0x1c   : > { %229 = vst [vmem:[%s1602_s27 + $0xa0] sm:$0xff] %v228_v20  ;;  %v234_v23 = vld [vmem:[%s1597_s26 + $0x378] sm:$0xff]  ;;  %231 = vst [vmem:[%s1602_s27 + $0xa8] sm:$0xff] %v230_v21  ;;  %v236_v24 = vld [vmem:[%s1597_s26 + $0x3c0] sm:$0xff] }
  0x1d   : > { %233 = vst [vmem:[%s1602_s27 + $0xb0] sm:$0xff] %v232_v22  ;;  %235 = vst [vmem:[%s1602_s27 + $0xb8] sm:$0xff] %v234_v23  ;;  %v238_v25 = vld [vmem:[%s1597_s26 + $0x3c8] sm:$0xff]  ;;  %v240_v26 = vld [vmem:[%s1597_s26 + $0x410] sm:$0xff] }
  0x1e   : > { %237 = vst [vmem:[%s1602_s27 + $0xc0] sm:$0xff] %v236_v24  ;;  %239 = vst [vmem:[%s1602_s27 + $0xc8] sm:$0xff] %v238_v25  ;;  %v242_v27 = vld [vmem:[%s1597_s26 + $0x418] sm:$0xff]  ;;  %v244_v28 = vld [vmem:[%s1597_s26 + $0x460] sm:$0xff] }
  0x1f   : > { %241 = vst [vmem:[%s1602_s27 + $0xd0] sm:$0xff] %v240_v26  ;;  %v246_v29 = vld [vmem:[%s1597_s26 + $0x468] sm:$0xff]  ;;  %243 = vst [vmem:[%s1602_s27 + $0xd8] sm:$0xff] %v242_v27  ;;  %v248_v30 = vld [vmem:[%s1597_s26 + $0x4b0] sm:$0xff] }
  0x20   : > { %245 = vst [vmem:[%s1602_s27 + $0xe0] sm:$0xff] %v244_v28  ;;  %247 = vst [vmem:[%s1602_s27 + $0xe8] sm:$0xff] %v246_v29  ;;  %v250_v31 = vld [vmem:[%s1597_s26 + $0x4b8] sm:$0xff] }
  0x21   : > { %249 = vst [vmem:[%s1602_s27 + $0xf0] sm:$0xff] %v248_v30  ;;  %251 = vst [vmem:[%s1602_s27 + $0xf8] sm:$0xff] %v250_v31 }
  0x22 PF: > { %p1171_p6 = scmp.ge.s32.totalorder %s1532_s16, 1  ;;  %p268_p7 = scmp.lt.s32.totalorder %s1532_s16, 6 }
  0x24   : > { %p269_p8 = pnand %p1171_p6, %p268_p7 }
  0x25   : > { %s275_s28 = sand.u32 (!%p269_p8), 1, %s1516_s12   ;;  %s1173_s29 = sshll.u32 (!%p269_p8), %s1524_s14, 6 }
  0x26   : > { %272 = sbr.rel (%p269_p8) target bundleno = 368 (0x170), region = 51  ;;  %s1172_s30 = sshll.u32 (!%p269_p8), %s275_s28, 8 }
  0x27   : > { %p315_p9 = scmp.lt.s32.totalorder (!%p269_p8), %s1173_s29, 319  ;;  %s1674_s8 = scalar_lea.vmem (!%p269_p8), [#allocation2], %s1172_s30 }
  0x28   : > { %p1175_p10 = scmp.ne.s32.totalorder (!%p269_p8), %s1524_s14, 0 }
  0x2d   : > { %s1914_s29 = smov (!%p315_p9, %s1173_s29), 319  ;;  %339 = sbr.rel (%p1175_p10) target bundleno = 55 (0x37), region = 59 }
  0x2e   : > { %s1174_s4 = sshll.u32 %s1914_s29, 2  ;;  %v1176_v32 = vld [vmem:[%s1905_s2] ss:$0 sm:$0xff] (!%p1175_p10) }
  0x2f   : > { %s1672_s7 = scalar_lea.vmem %s1904_s1, %s1174_s4  ;;  %347 = vst [vmem:[%s1906_s3] sm:$0xff] (!%p1175_p10), %v1176_v32  ;;  %348 = vst [vmem:[%s1906_s3 + $0x8] sm:$0xff] (!%p1175_p10), %v1176_v32 }
  0x30   : > { %349 = vst [vmem:[%s1906_s3 + $0x10] sm:$0xff] (!%p1175_p10), %v1176_v32  ;;  %350 = vst [vmem:[%s1906_s3 + $0x18] sm:$0xff] (!%p1175_p10), %v1176_v32 }
  0x31   : > { %351 = vst [vmem:[%s1906_s3 + $0x20] sm:$0xff] (!%p1175_p10), %v1176_v32  ;;  %352 = vst [vmem:[%s1906_s3 + $0x28] sm:$0xff] (!%p1175_p10), %v1176_v32 }
  0x32   : > { %353 = vst [vmem:[%s1906_s3 + $0x30] sm:$0xff] (!%p1175_p10), %v1176_v32  ;;  %354 = vst [vmem:[%s1906_s3 + $0x38] sm:$0xff] (!%p1175_p10), %v1176_v32 }
  0x33   : > { %355 = vst [vmem:[%s1906_s3 + $0x40] sm:$0xff] (!%p1175_p10), %v1176_v32  ;;  %356 = vst [vmem:[%s1906_s3 + $0x48] sm:$0xff] (!%p1175_p10), %v1176_v32 }
  0x34   : > { %357 = vst [vmem:[%s1906_s3 + $0x50] sm:$0xff] %v1176_v32  ;;  %358 = vst [vmem:[%s1906_s3 + $0x58] sm:$0xff] %v1176_v32 }
  0x35   : > { %359 = vst [vmem:[%s1906_s3 + $0x60] sm:$0xff] %v1176_v32  ;;  %360 = vst [vmem:[%s1906_s3 + $0x68] sm:$0xff] %v1176_v32 }
  0x36   : > { %361 = vst [vmem:[%s1906_s3 + $0x70] sm:$0xff] %v1176_v32  ;;  %362 = vst [vmem:[%s1906_s3 + $0x78] sm:$0xff] %v1176_v32 }
  0x37 PF: > { %v1414_v33 = vld [vmem:[%s1672_s7 + $0x40] sm:$0xff]   ;;  %v1418_v37 = vld [vmem:[%s1672_s7 + $0x48] sm:$0xff]   ;;  %v1422_v41 = vld [vmem:[%s1672_s7 + $0x50] sm:$0xff]  }
  0x38   : > { %v1415_v34 = vld [vmem:[%s1672_s7 + $0xc0] sm:$0xff]   ;;  %1246 = vmatprep.subr.bf16.mxu0 %v1414_v33  ;;  %v1419_v38 = vld [vmem:[%s1672_s7 + $0xc8] sm:$0xff]   ;;  %v1423_v42 = vld [vmem:[%s1672_s7 + $0xd0] sm:$0xff]  }
  0x39   : > { %v1416_v35 = vld [vmem:[%s1672_s7] sm:$0xff]   ;;  %1310 = vmatprep.subr.bf16.mxu1 %v1415_v34  ;;  %v1420_v39 = vld [vmem:[%s1672_s7 + $0x8] sm:$0xff]   ;;  %v1424_v43 = vld [vmem:[%s1672_s7 + $0x10] sm:$0xff]  }
  0x3a   : > { %v1417_v36 = vld [vmem:[%s1672_s7 + $0x80] sm:$0xff]   ;;  %1247 = vmatpush3.bf16.msra.mxu0 %v1416_v35  ;;  %v1421_v40 = vld [vmem:[%s1672_s7 + $0x88] sm:$0xff]   ;;  %v1425_v44 = vld [vmem:[%s1672_s7 + $0x90] sm:$0xff]  }
  0x3b   : > { %1311 = vmatpush3.bf16.msra.mxu1 %v1417_v36  ;;  %1248 = vmatprep.subr.bf16.mxu0 %v1418_v37  ;;  %v1426_v45 = vld [vmem:[%s1672_s7 + $0x58] sm:$0xff]   ;;  %v1430_v49 = vld [vmem:[%s1672_s7 + $0x60] sm:$0xff]   ;;  %v1434_v53 = vld [vmem:[%s1672_s7 + $0x68] sm:$0xff]  }
  0x3c   : > { %1312 = vmatprep.subr.bf16.mxu1 %v1419_v38  ;;  %v1427_v46 = vld [vmem:[%s1672_s7 + $0xd8] sm:$0xff]   ;;  %v1431_v50 = vld [vmem:[%s1672_s7 + $0xe0] sm:$0xff]   ;;  %v1435_v54 = vld [vmem:[%s1672_s7 + $0xe8] sm:$0xff]  }
  0x3d   : > { %v1428_v47 = vld [vmem:[%s1672_s7 + $0x18] sm:$0xff]   ;;  %v1432_v51 = vld [vmem:[%s1672_s7 + $0x20] sm:$0xff]   ;;  %v1436_v55 = vld [vmem:[%s1672_s7 + $0x28] sm:$0xff]  }
  0x3e   : > { %1249 = vmatpush3.bf16.msra.mxu0 %v1420_v39  ;;  %v1429_v48 = vld [vmem:[%s1672_s7 + $0x98] sm:$0xff]   ;;  %v1433_v52 = vld [vmem:[%s1672_s7 + $0xa0] sm:$0xff]   ;;  %v1437_v56 = vld [vmem:[%s1672_s7 + $0xa8] sm:$0xff]  }
  0x3f   : > { %1313 = vmatpush3.bf16.msra.mxu1 %v1421_v40  ;;  %1250 = vmatprep.subr.bf16.mxu0 %v1422_v41  ;;  %v1438_v57 = vld [vmem:[%s1672_s7 + $0x70] sm:$0xff]   ;;  %v1442_v61 = vld [vmem:[%s1672_s7 + $0x78] sm:$0xff]  }
  0x40   : > { %1314 = vmatprep.subr.bf16.mxu1 %v1423_v42  ;;  %v1439_v58 = vld [vmem:[%s1672_s7 + $0xf0] sm:$0xff]   ;;  %v1443_v62 = vld [vmem:[%s1672_s7 + $0xf8] sm:$0xff]   ;;  %v363_v42 = vld [vmem:[%s1906_s3] sm:$0xff] }
  0x41   : > { %v1440_v59 = vld [vmem:[%s1672_s7 + $0x30] sm:$0xff]   ;;  %v1444_v63 = vld [vmem:[%s1672_s7 + $0x38] sm:$0xff]  }
  0x42   : > { %1251 = vmatpush3.bf16.msra.mxu0 %v1424_v43  ;;  %v1441_v60 = vld [vmem:[%s1672_s7 + $0xb0] sm:$0xff]   ;;  %v1445_v0 = vld [vmem:[%s1672_s7 + $0xb8] sm:$0xff]  }
  0x43   : > { %1315 = vmatpush3.bf16.msra.mxu1 %v1425_v44  ;;  %1252 = vmatprep.subr.bf16.mxu0 %v1426_v45  ;;  %v1446_v1 = vld [vmem:[%s1674_s8] ss:$16 sps:$4 sm:$0xff]   ;;  %v1448_v2 = vld [vmem:[%s1674_s8 + $0x4] ss:$16 sps:$4 sm:$0xff]   ;;  %v1449_v3 = vld [vmem:[%s1674_s8 + $0x8] ss:$16 sps:$4 sm:$0xff]  }
  0x44   : > { %1316 = vmatprep.subr.bf16.mxu1 %v1427_v46  ;;  %v1451_v4 = vld [vmem:[%s1674_s8 + $0xc] ss:$16 sps:$4 sm:$0xff]   ;;  %859 = vmatprep.mubr.bf16.mxu0 %v1448_v2  ;;  %v1452_v5 = vld [vmem:[%s1674_s8 + $0x24] ss:$16 sps:$4 sm:$0xff]   ;;  %v1456_v7 = vld [vmem:[%s1674_s8 + $0x20] ss:$16 sps:$4 sm:$0xff]  }
  0x45   : > { %956 = vmatprep.mubr.bf16.mxu1 %v1451_v4  ;;  %v1454_v6 = vld [vmem:[%s1674_s8 + $0x2c] ss:$16 sps:$4 sm:$0xff]   ;;  %v1457_v8 = vld [vmem:[%s1674_s8 + $0x28] ss:$16 sps:$4 sm:$0xff]   ;;  %v1458_v9 = vld [vmem:[%s1674_s8 + $0x44] ss:$16 sps:$4 sm:$0xff]  }
  0x46   : > { %1253 = vmatpush3.bf16.msra.mxu0 %v1428_v47  ;;  %v1460_v10 = vld [vmem:[%s1674_s8 + $0x4c] ss:$16 sps:$4 sm:$0xff]   ;;  %v1462_v11 = vld [vmem:[%s1674_s8 + $0x40] ss:$16 sps:$4 sm:$0xff]   ;;  %v1463_v12 = vld [vmem:[%s1674_s8 + $0x48] ss:$16 sps:$4 sm:$0xff]  }
  0x47   : > { %1317 = vmatpush3.bf16.msra.mxu1 %v1429_v48  ;;  %1254 = vmatprep.subr.bf16.mxu0 %v1430_v49  ;;  %v1464_v13 = vld [vmem:[%s1674_s8 + $0x64] ss:$16 sps:$4 sm:$0xff]   ;;  %v1466_v14 = vld [vmem:[%s1674_s8 + $0x6c] ss:$16 sps:$4 sm:$0xff]   ;;  %v1468_v15 = vld [vmem:[%s1674_s8 + $0x60] ss:$16 sps:$4 sm:$0xff]  }
  0x48   : > { %1318 = vmatprep.subr.bf16.mxu1 %v1431_v50  ;;  %v1469_v16 = vld [vmem:[%s1674_s8 + $0x68] ss:$16 sps:$4 sm:$0xff]   ;;  %v1470_v17 = vld [vmem:[%s1674_s8 + $0x84] ss:$16 sps:$4 sm:$0xff]   ;;  %v1472_v18 = vld [vmem:[%s1674_s8 + $0x8c] ss:$16 sps:$4 sm:$0xff]  }
  0x49   : > { %v1474_v19 = vld [vmem:[%s1674_s8 + $0x80] ss:$16 sps:$4 sm:$0xff]   ;;  %v1475_v20 = vld [vmem:[%s1674_s8 + $0x88] ss:$16 sps:$4 sm:$0xff]   ;;  %v1476_v21 = vld [vmem:[%s1674_s8 + $0xa4] ss:$16 sps:$4 sm:$0xff]  }
  0x4a   : > { %1255 = vmatpush3.bf16.msra.mxu0 %v1432_v51  ;;  %v1478_v22 = vld [vmem:[%s1674_s8 + $0xac] ss:$16 sps:$4 sm:$0xff]   ;;  %v1480_v23 = vld [vmem:[%s1674_s8 + $0xa0] ss:$16 sps:$4 sm:$0xff]   ;;  %v1481_v24 = vld [vmem:[%s1674_s8 + $0xa8] ss:$16 sps:$4 sm:$0xff]  }
  0x4b   : > { %1319 = vmatpush3.bf16.msra.mxu1 %v1433_v52  ;;  %1256 = vmatprep.subr.bf16.mxu0 %v1434_v53  ;;  %v1482_v25 = vld [vmem:[%s1674_s8 + $0xc4] ss:$16 sps:$4 sm:$0xff]   ;;  %v1484_v26 = vld [vmem:[%s1674_s8 + $0xcc] ss:$16 sps:$4 sm:$0xff]   ;;  %v1486_v27 = vld [vmem:[%s1674_s8 + $0xc0] ss:$16 sps:$4 sm:$0xff]  }
  0x4c   : > { %1320 = vmatprep.subr.bf16.mxu1 %v1435_v54  ;;  %v1487_v28 = vld [vmem:[%s1674_s8 + $0xc8] ss:$16 sps:$4 sm:$0xff]   ;;  %v1488_v29 = vld [vmem:[%s1674_s8 + $0xe4] ss:$16 sps:$4 sm:$0xff]   ;;  %v1490_v30 = vld [vmem:[%s1674_s8 + $0xec] ss:$16 sps:$4 sm:$0xff]  }
  0x4d   : > { %v1492_v31 = vld [vmem:[%s1674_s8 + $0xe0] ss:$16 sps:$4 sm:$0xff]   ;;  %v1493_v32 = vld [vmem:[%s1674_s8 + $0xe8] ss:$16 sps:$4 sm:$0xff]  }
  0x4e   : > { %1257 = vmatpush3.bf16.msra.mxu0 %v1436_v55  ;;  %v364_v47 = vld [vmem:[%s1906_s3 + $0x8] sm:$0xff] }
  0x4f   : > { %1321 = vmatpush3.bf16.msra.mxu1 %v1437_v56  ;;  %1258 = vmatprep.subr.bf16.mxu0 %v1438_v57 }
  0x50   : > { %1322 = vmatprep.subr.bf16.mxu1 %v1439_v58 }
  0x52   : > { %1259 = vmatpush3.bf16.msra.mxu0 %v1440_v59 }
  0x53   : > { %1323 = vmatpush3.bf16.msra.mxu1 %v1441_v60  ;;  %1260 = vmatprep.subr.bf16.mxu0 %v1442_v61  ;;  %v365_v60 = vld [vmem:[%s1906_s3 + $0x10] sm:$0xff] }
  0x54   : > { %1324 = vmatprep.subr.bf16.mxu1 %v1443_v62 }
  0x56   : > { %1261 = vmatpush3.bf16.msra.mxu0 %v1444_v63 }
  0x57   : > { %1325 = vmatpush3.bf16.msra.mxu1 %v1445_v0 }
  0x59   : > { %860 = vmatmul.mubr.bf16.vlgmr.msra.gmra.mrb[0].mxu0 %v1446_v1  ;;  %v366_v1 = vld [vmem:[%s1906_s3 + $0x18] sm:$0xff] }
  0x5a   : > { %957 = vmatmul.mubr.bf16.vlgmr.msra.gmra.mrb[0].mxu1 %v1449_v3  ;;  %867 = vmatprep.mubr.bf16.mxu0 %v1452_v5 }
  0x5b   : > { %964 = vmatprep.mubr.bf16.mxu1 %v1454_v6 }
  0x61   : > { %868 = vmatmul.mubr.bf16.gmra.mrb[4].mxu0 %v1456_v7 }
  0x62   : > { %965 = vmatmul.mubr.bf16.gmra.mrb[4].mxu1 %v1457_v8  ;;  %875 = vmatprep.mubr.bf16.mxu0 %v1458_v9 }
  0x63   : > { %972 = vmatprep.mubr.bf16.mxu1 %v1460_v10 }
  0x69   : > { %876 = vmatmul.mubr.bf16.gmra.mrb[8].mxu0 %v1462_v11 }
  0x6a   : > { %973 = vmatmul.mubr.bf16.gmra.mrb[8].mxu1 %v1463_v12  ;;  %883 = vmatprep.mubr.bf16.mxu0 %v1464_v13 }
  0x6b   : > { %980 = vmatprep.mubr.bf16.mxu1 %v1466_v14  ;;  %v367_v14 = vld [vmem:[%s1906_s3 + $0x20] sm:$0xff] }
  0x71   : > { %884 = vmatmul.mubr.bf16.gmra.mrb[12].mxu0 %v1468_v15 }
  0x72   : > { %981 = vmatmul.mubr.bf16.gmra.mrb[12].mxu1 %v1469_v16  ;;  %891 = vmatprep.mubr.bf16.mxu0 %v1470_v17 }
  0x73   : > { %988 = vmatprep.mubr.bf16.mxu1 %v1472_v18 }
  0x79   : > { %892 = vmatmul.mubr.bf16.gmra.mrb[16].mxu0 %v1474_v19  ;;  %v368_v19 = vld [vmem:[%s1906_s3 + $0x28] sm:$0xff] }
  0x7a   : > { %989 = vmatmul.mubr.bf16.gmra.mrb[16].mxu1 %v1475_v20  ;;  %899 = vmatprep.mubr.bf16.mxu0 %v1476_v21 }
  0x7b   : > { %996 = vmatprep.mubr.bf16.mxu1 %v1478_v22 }
  0x81   : > { %900 = vmatmul.mubr.bf16.gmra.mrb[20].mxu0 %v1480_v23 }
  0x82   : > { %997 = vmatmul.mubr.bf16.gmra.mrb[20].mxu1 %v1481_v24  ;;  %907 = vmatprep.mubr.bf16.mxu0 %v1482_v25 }
  0x83   : > { %1004 = vmatprep.mubr.bf16.mxu1 %v1484_v26 }
  0x89   : > { %908 = vmatmul.mubr.bf16.gmra.mrb[24].mxu0 %v1486_v27 }
  0x8a   : > { %1005 = vmatmul.mubr.bf16.gmra.mrb[24].mxu1 %v1487_v28  ;;  %915 = vmatprep.mubr.bf16.mxu0 %v1488_v29 }
  0x8b   : > { %1012 = vmatprep.mubr.bf16.mxu1 %v1490_v30 }
  0x91   : > { %916 = vmatmul.mubr.bf16.gmra.mrb[28].mxu0 %v1492_v31 }
  0x92   : > { %1013 = vmatmul.mubr.bf16.gmra.mrb[28].mxu1 %v1493_v32  ;;  %v369_v32 = vld [vmem:[%s1906_s3 + $0x30] sm:$0xff] }
 0x12c   : > { %v1262_v33 = vpop.f32.mrb[0].mxu0 }
 0x12d   : > { %v1326_v34 = vpop.f32.mrb[0].mxu1  ;;  %v1263_v35 = vpop.f32.mrb[1].mxu0 }
 0x12e   : > { %v1264_v36 = vadd.f32 %v1263_v35, %v1262_v33  ;;  %v1327_v37 = vpop.f32.mrb[1].mxu1  ;;  %v1265_v38 = vpop.f32.mrb[2].mxu0 }
 0x12f   : > { %v1328_v39 = vadd.f32 %v1327_v37, %v1326_v34  ;;  %v1329_v40 = vpop.f32.mrb[2].mxu1  ;;  %v1266_v41 = vpop.f32.mrb[3].mxu0  ;;  %v370_v37 = vld [vmem:[%s1906_s3 + $0x38] sm:$0xff] }
 0x130   : > { %v1267_v43 = vadd.f32 %v1266_v41, %v1265_v38  ;;  %v1330_v44 = vpop.f32.mrb[3].mxu1 }
 0x131   : > { %v959_v45 = vadd.f32 %v1328_v39, %v1264_v36  ;;  %v1331_v46 = vadd.f32 %v1330_v44, %v1329_v40 }
 0x133   : > { %v1021_v48 = vadd.f32 %v959_v45, %v363_v42  ;;  %v962_v49 = vadd.f32 %v1331_v46, %v1267_v43 }
 0x134   : > { %v1268_v50 = vpop.f32.mrb[4].mxu0 }
 0x135   : > { %1037 = vst [vmem:[%s1906_s3] sm:$0xff] %v1021_v48  ;;  %v1022_v51 = vadd.f32 %v962_v49, %v364_v47  ;;  %v1332_v52 = vpop.f32.mrb[4].mxu1  ;;  %v1269_v53 = vpop.f32.mrb[5].mxu0 }
 0x136   : > { %v1270_v54 = vadd.f32 %v1269_v53, %v1268_v50  ;;  %v1333_v55 = vpop.f32.mrb[5].mxu1  ;;  %v1271_v56 = vpop.f32.mrb[6].mxu0  ;;  %v371_v50 = vld [vmem:[%s1906_s3 + $0x40] sm:$0xff] }
 0x137   : > { %1038 = vst [vmem:[%s1906_s3 + $0x8] sm:$0xff] %v1022_v51  ;;  %v1334_v57 = vadd.f32 %v1333_v55, %v1332_v52  ;;  %v1335_v58 = vpop.f32.mrb[6].mxu1  ;;  %v1272_v59 = vpop.f32.mrb[7].mxu0  ;;  %v372_v55 = vld [vmem:[%s1906_s3 + $0x48] sm:$0xff] }
 0x138   : > { %v1273_v61 = vadd.f32 %v1272_v59, %v1271_v56  ;;  %v1336_v62 = vpop.f32.mrb[7].mxu1 }
 0x139   : > { %v967_v63 = vadd.f32 %v1334_v57, %v1270_v54  ;;  %v1337_v0 = vadd.f32 %v1336_v62, %v1335_v58 }
 0x13b   : > { %v1023_v2 = vadd.f32 %v967_v63, %v365_v60  ;;  %v970_v3 = vadd.f32 %v1337_v0, %v1273_v61 }
 0x13c   : > { %v1274_v4 = vpop.f32.mrb[8].mxu0 }
 0x13d   : > { %1039 = vst [vmem:[%s1906_s3 + $0x10] sm:$0xff] %v1023_v2  ;;  %v1024_v5 = vadd.f32 %v970_v3, %v366_v1  ;;  %v1338_v6 = vpop.f32.mrb[8].mxu1  ;;  %v1275_v7 = vpop.f32.mrb[9].mxu0 }
 0x13e   : > { %v1276_v8 = vadd.f32 %v1275_v7, %v1274_v4  ;;  %v1339_v9 = vpop.f32.mrb[9].mxu1  ;;  %v1277_v10 = vpop.f32.mrb[10].mxu0  ;;  %v373_v4 = vld [vmem:[%s1906_s3 + $0x50] sm:$0xff] }
 0x13f   : > { %1040 = vst [vmem:[%s1906_s3 + $0x18] sm:$0xff] %v1024_v5  ;;  %v1340_v11 = vadd.f32 %v1339_v9, %v1338_v6  ;;  %v1341_v12 = vpop.f32.mrb[10].mxu1  ;;  %v1278_v13 = vpop.f32.mrb[11].mxu0  ;;  %v374_v9 = vld [vmem:[%s1906_s3 + $0x58] sm:$0xff] }
 0x140   : > { %v1279_v15 = vadd.f32 %v1278_v13, %v1277_v10  ;;  %v1342_v16 = vpop.f32.mrb[11].mxu1 }
 0x141   : > { %v975_v17 = vadd.f32 %v1340_v11, %v1276_v8  ;;  %v1343_v18 = vadd.f32 %v1342_v16, %v1341_v12 }
 0x143   : > { %v1025_v20 = vadd.f32 %v975_v17, %v367_v14  ;;  %v978_v21 = vadd.f32 %v1343_v18, %v1279_v15 }
 0x144   : > { %v1280_v22 = vpop.f32.mrb[12].mxu0 }
 0x145   : > { %1041 = vst [vmem:[%s1906_s3 + $0x20] sm:$0xff] %v1025_v20  ;;  %v1026_v23 = vadd.f32 %v978_v21, %v368_v19  ;;  %v1344_v24 = vpop.f32.mrb[12].mxu1  ;;  %v1281_v25 = vpop.f32.mrb[13].mxu0 }
 0x146   : > { %v1282_v26 = vadd.f32 %v1281_v25, %v1280_v22  ;;  %v1345_v27 = vpop.f32.mrb[13].mxu1  ;;  %v1283_v28 = vpop.f32.mrb[14].mxu0  ;;  %v375_v22 = vld [vmem:[%s1906_s3 + $0x60] sm:$0xff] }
 0x147   : > { %1042 = vst [vmem:[%s1906_s3 + $0x28] sm:$0xff] %v1026_v23  ;;  %v1346_v29 = vadd.f32 %v1345_v27, %v1344_v24  ;;  %v1347_v30 = vpop.f32.mrb[14].mxu1  ;;  %v1284_v31 = vpop.f32.mrb[15].mxu0  ;;  %v376_v27 = vld [vmem:[%s1906_s3 + $0x68] sm:$0xff] }
 0x148   : > { %v1285_v33 = vadd.f32 %v1284_v31, %v1283_v28  ;;  %v1348_v34 = vpop.f32.mrb[15].mxu1 }
 0x149   : > { %v983_v35 = vadd.f32 %v1346_v29, %v1282_v26  ;;  %v1349_v36 = vadd.f32 %v1348_v34, %v1347_v30 }
 0x14b   : > { %v1027_v38 = vadd.f32 %v983_v35, %v369_v32  ;;  %v986_v39 = vadd.f32 %v1349_v36, %v1285_v33 }
 0x14c   : > { %v1286_v40 = vpop.f32.mrb[16].mxu0 }
 0x14d   : > { %1043 = vst [vmem:[%s1906_s3 + $0x30] sm:$0xff] %v1027_v38  ;;  %v1028_v41 = vadd.f32 %v986_v39, %v370_v37  ;;  %v1350_v42 = vpop.f32.mrb[16].mxu1  ;;  %v1287_v43 = vpop.f32.mrb[17].mxu0 }
 0x14e   : > { %v1288_v44 = vadd.f32 %v1287_v43, %v1286_v40  ;;  %v1351_v45 = vpop.f32.mrb[17].mxu1  ;;  %v1289_v46 = vpop.f32.mrb[18].mxu0  ;;  %v377_v40 = vld [vmem:[%s1906_s3 + $0x70] sm:$0xff] }
 0x14f   : > { %1044 = vst [vmem:[%s1906_s3 + $0x38] sm:$0xff] %v1028_v41  ;;  %v1352_v47 = vadd.f32 %v1351_v45, %v1350_v42  ;;  %v1353_v48 = vpop.f32.mrb[18].mxu1  ;;  %v1290_v49 = vpop.f32.mrb[19].mxu0  ;;  %v378_v45 = vld [vmem:[%s1906_s3 + $0x78] sm:$0xff] }
 0x150   : > { %v1291_v51 = vadd.f32 %v1290_v49, %v1289_v46  ;;  %v1354_v52 = vpop.f32.mrb[19].mxu1 }
 0x151   : > { %v991_v53 = vadd.f32 %v1352_v47, %v1288_v44  ;;  %v1355_v54 = vadd.f32 %v1354_v52, %v1353_v48 }
 0x153   : > { %v1029_v56 = vadd.f32 %v991_v53, %v371_v50  ;;  %v994_v57 = vadd.f32 %v1355_v54, %v1291_v51 }
 0x154   : > { %v1292_v58 = vpop.f32.mrb[20].mxu0 }
 0x155   : > { %1045 = vst [vmem:[%s1906_s3 + $0x40] sm:$0xff] %v1029_v56  ;;  %v1030_v59 = vadd.f32 %v994_v57, %v372_v55  ;;  %v1356_v60 = vpop.f32.mrb[20].mxu1  ;;  %v1293_v61 = vpop.f32.mrb[21].mxu0 }
 0x156   : > { %v1294_v62 = vadd.f32 %v1293_v61, %v1292_v58  ;;  %v1357_v63 = vpop.f32.mrb[21].mxu1  ;;  %v1295_v0 = vpop.f32.mrb[22].mxu0 }
 0x157   : > { %1046 = vst [vmem:[%s1906_s3 + $0x48] sm:$0xff] %v1030_v59  ;;  %v1358_v1 = vadd.f32 %v1357_v63, %v1356_v60  ;;  %v1359_v2 = vpop.f32.mrb[22].mxu1  ;;  %v1296_v3 = vpop.f32.mrb[23].mxu0 }
 0x158   : > { %v1297_v5 = vadd.f32 %v1296_v3, %v1295_v0  ;;  %v1360_v6 = vpop.f32.mrb[23].mxu1 }
 0x159   : > { %v999_v7 = vadd.f32 %v1358_v1, %v1294_v62  ;;  %v1361_v8 = vadd.f32 %v1360_v6, %v1359_v2 }
 0x15b   : > { %v1031_v10 = vadd.f32 %v999_v7, %v373_v4  ;;  %v1002_v11 = vadd.f32 %v1361_v8, %v1297_v5 }
 0x15c   : > { %v1298_v12 = vpop.f32.mrb[24].mxu0 }
 0x15d   : > { %1047 = vst [vmem:[%s1906_s3 + $0x50] sm:$0xff] %v1031_v10  ;;  %v1032_v13 = vadd.f32 %v1002_v11, %v374_v9  ;;  %v1362_v14 = vpop.f32.mrb[24].mxu1  ;;  %v1299_v15 = vpop.f32.mrb[25].mxu0 }
 0x15e   : > { %v1300_v16 = vadd.f32 %v1299_v15, %v1298_v12  ;;  %v1363_v17 = vpop.f32.mrb[25].mxu1  ;;  %v1301_v18 = vpop.f32.mrb[26].mxu0 }
 0x15f   : > { %1048 = vst [vmem:[%s1906_s3 + $0x58] sm:$0xff] %v1032_v13  ;;  %v1364_v19 = vadd.f32 %v1363_v17, %v1362_v14  ;;  %v1365_v20 = vpop.f32.mrb[26].mxu1  ;;  %v1302_v21 = vpop.f32.mrb[27].mxu0 }
 0x160   : > { %v1303_v23 = vadd.f32 %v1302_v21, %v1301_v18  ;;  %v1366_v24 = vpop.f32.mrb[27].mxu1 }
 0x161   : > { %v1007_v25 = vadd.f32 %v1364_v19, %v1300_v16  ;;  %v1367_v26 = vadd.f32 %v1366_v24, %v1365_v20 }
 0x163   : > { %v1033_v28 = vadd.f32 %v1007_v25, %v375_v22  ;;  %v1010_v29 = vadd.f32 %v1367_v26, %v1303_v23 }
 0x164   : > { %v1304_v30 = vpop.f32.mrb[28].mxu0 }
 0x165   : > { %1049 = vst [vmem:[%s1906_s3 + $0x60] sm:$0xff] %v1033_v28  ;;  %v1034_v31 = vadd.f32 %v1010_v29, %v376_v27  ;;  %v1368_v32 = vpop.f32.mrb[28].mxu1  ;;  %v1305_v33 = vpop.f32.mrb[29].mxu0 }
 0x166   : > { %v1306_v34 = vadd.f32 %v1305_v33, %v1304_v30  ;;  %v1369_v35 = vpop.f32.mrb[29].mxu1  ;;  %v1307_v36 = vpop.f32.mrb[30].mxu0 }
 0x167   : > { %1050 = vst [vmem:[%s1906_s3 + $0x68] sm:$0xff] %v1034_v31  ;;  %v1370_v37 = vadd.f32 %v1369_v35, %v1368_v32  ;;  %v1371_v38 = vpop.f32.mrb[30].mxu1  ;;  %v1308_v39 = vpop.f32.mrb[31].mxu0 }
 0x168   : > { %v1309_v41 = vadd.f32 %v1308_v39, %v1307_v36  ;;  %v1372_v42 = vpop.f32.mrb[31].mxu1 }
 0x169   : > { %v1015_v43 = vadd.f32 %v1370_v37, %v1306_v34  ;;  %v1373_v44 = vadd.f32 %v1372_v42, %v1371_v38 }
 0x16b   : > { %v1035_v46 = vadd.f32 %v1015_v43, %v377_v40  ;;  %v1018_v47 = vadd.f32 %v1373_v44, %v1309_v41 }
 0x16d   : > { %1051 = vst [vmem:[%s1906_s3 + $0x70] sm:$0xff] %v1035_v46  ;;  %v1036_v48 = vadd.f32 %v1018_v47, %v378_v45 }
 0x16f   : > { %1052 = vst [vmem:[%s1906_s3 + $0x78] sm:$0xff] %v1036_v48 }
 0x170 PF: > { %s13_s16 = sadd.s32 1, %s1532_s16   ;;  %s1907_s12 = smov %s1520_s13 }
 0x171   : > { %p10_p11 = scmp.ge.s32.totalorder %s13_s16, 7   ;;  %s1908_s13 = smov %s1589_s20 }
 0x172   : > { %s1909_s14 = smov %s1528_s15  ;;  %s1910_s15 = smov %s1912_s17 }
 0x173   :  { %12 = sbr.rel (!%p10_p11) target bundleno = 3 (0x3), region = 100 }

// kernel: res3d_forward.63
= control target key start
LH: loop header
LB: loop body
LE: loop exit
PB: predicated region body
PF: predicated region fallthrough
CT: control target
= control target key end

     0   :  { %s1061_s9 = smov 0   ;;  %s1063_s10 = smov 0   ;;  %s1325_s0 = inlined_call_operand.vmem [shape: bf16[128,1792], index: 0, kind: input, shape index: {}]   ;;  %s1326_s1 = inlined_call_operand.vmem [shape: bf16[1792,128], index: 1, kind: input, shape index: {}]   ;;  %s1327_s2 = inlined_call_operand.vmem [shape: f32[128,128], index: 2, kind: output, shape index: {}]  }
   0x1   :  { %s1065_s11 = smov 0   ;;  %s1067_s12 = smov 0  }
   0x2   :  { %s1069_s13 = smov 0  }
   0x3 LB: > { %s24_s14 = sadd.s32 1, %s1039_s12  ;;  %p47_p1 = scmp.ne.s32.totalorder %s1031_s10, %s1027_s9  ;;  %s1043_s13 = sphi %s1069_s13, %s12_s13   ;;  %s1039_s12 = sphi %s1067_s12, %s1331_s12   ;;  %s1035_s11 = sphi %s1065_s11, %s1330_s11   ;;  %s1031_s10 = sphi %s1063_s10, %s1329_s10   ;;  %s1027_s9 = sphi %s1061_s9, %s1328_s9  }
   0x4   : > { %p25_p0 = scmp.ge.s32.totalorder %s24_s14, 7  ;;  %p48_p2 = scmp.eq.s32.totalorder %s1043_s13, 0 }
   0x5   : > { %s40_s16 = sadd.s32 1, %s1031_s10  ;;  %p798_p5 = scmp.ge.s32.totalorder %s1043_s13, 7 }
   0x6   : > { %s1333_s14 = smov (%p25_p0, %s24_s14), 0  ;;  %p49_p3 = por %p48_p2, %p47_p1 }
   0x7   : > { %s36_s15 = ssub.s32 %s1039_s12, %s1333_s14  ;;  %129 = sbr.rel (%p798_p5) target bundleno = 26 (0x1a), region = 16 }
   0x8   : > { %p38_p4 = scmp.eq.s32.totalorder %s36_s15, 0 }
   0xa   : > { %s1096_s17 = scalar_select %p38_p4, %s1031_s10, %s40_s16  }
   0xe   : > { %132 = sbr.rel (!%p49_p3) target bundleno = 26 (0x1a), region = 20  ;;  %s134_s18 = sand.u32 (%p49_p3), 1, %s1031_s10  }
   0xf   : > { %s843_s19 = sshll.u32 (%p49_p3), %s1039_s12, 3  ;;  %s799_s20 = sshll.u32 (%p49_p3), %s134_s18, 7 }
  0x10   : > { %s1104_s23 = scalar_lea.vmem (%p49_p3), %s1325_s0, %s843_s19  ;;  %s136_s24 = scalar_lea.vmem (%p49_p3), [#allocation2], %s799_s20 }
  0x11   : > { %v200_v0 = vld [vmem:[%s1104_s23] sm:$0xff] (%p49_p3)  ;;  %v202_v1 = vld [vmem:[%s1104_s23 + $0x38] sm:$0xff] (%p49_p3)  ;;  %v204_v2 = vld [vmem:[%s1104_s23 + $0x70] sm:$0xff] (%p49_p3) }
  0x12   : > { %201 = vst [vmem:[%s136_s24] sm:$0xff] (%p49_p3), %v200_v0  ;;  %203 = vst [vmem:[%s136_s24 + $0x8] sm:$0xff] (%p49_p3), %v202_v1  ;;  %v206_v3 = vld [vmem:[%s1104_s23 + $0xa8] sm:$0xff] (%p49_p3)  ;;  %v208_v4 = vld [vmem:[%s1104_s23 + $0xe0] sm:$0xff] (%p49_p3) }
  0x13   : > { %205 = vst [vmem:[%s136_s24 + $0x10] sm:$0xff] (%p49_p3), %v204_v2  ;;  %v210_v5 = vld [vmem:[%s1104_s23 + $0x118] sm:$0xff] (%p49_p3)  ;;  %207 = vst [vmem:[%s136_s24 + $0x18] sm:$0xff] (%p49_p3), %v206_v3  ;;  %v212_v6 = vld [vmem:[%s1104_s23 + $0x150] sm:$0xff] (%p49_p3) }
  0x14   : > { %209 = vst [vmem:[%s136_s24 + $0x20] sm:$0xff] (%p49_p3), %v208_v4  ;;  %211 = vst [vmem:[%s136_s24 + $0x28] sm:$0xff] (%p49_p3), %v210_v5  ;;  %v214_v7 = vld [vmem:[%s1104_s23 + $0x188] sm:$0xff] (%p49_p3)  ;;  %v216_v8 = vld [vmem:[%s1104_s23 + $0x1c0] sm:$0xff] (%p49_p3) }
  0x15   : > { %213 = vst [vmem:[%s136_s24 + $0x30] sm:$0xff] %v212_v6  ;;  %215 = vst [vmem:[%s136_s24 + $0x38] sm:$0xff] %v214_v7  ;;  %v218_v9 = vld [vmem:[%s1104_s23 + $0x1f8] sm:$0xff]  ;;  %v220_v10 = vld [vmem:[%s1104_s23 + $0x230] sm:$0xff] }
  0x16   : > { %217 = vst [vmem:[%s136_s24 + $0x40] sm:$0xff] %v216_v8  ;;  %v222_v11 = vld [vmem:[%s1104_s23 + $0x268] sm:$0xff]  ;;  %219 = vst [vmem:[%s136_s24 + $0x48] sm:$0xff] %v218_v9  ;;  %v224_v12 = vld [vmem:[%s1104_s23 + $0x2a0] sm:$0xff] }
  0x17   : > { %221 = vst [vmem:[%s136_s24 + $0x50] sm:$0xff] %v220_v10  ;;  %223 = vst [vmem:[%s136_s24 + $0x58] sm:$0xff] %v222_v11  ;;  %v226_v13 = vld [vmem:[%s1104_s23 + $0x2d8] sm:$0xff]  ;;  %v228_v14 = vld [vmem:[%s1104_s23 + $0x310] sm:$0xff] }
  0x18   : > { %225 = vst [vmem:[%s136_s24 + $0x60] sm:$0xff] %v224_v12  ;;  %227 = vst [vmem:[%s136_s24 + $0x68] sm:$0xff] %v226_v13  ;;  %v230_v15 = vld [vmem:[%s1104_s23 + $0x348] sm:$0xff] }
  0x19   : > { %229 = vst [vmem:[%s136_s24 + $0x70] sm:$0xff] %v228_v14  ;;  %231 = vst [vmem:[%s136_s24 + $0x78] sm:$0xff] %v230_v15 }
  0x1a PF: > { %p802_p6 = scmp.ge.s32.totalorder %s1043_s13, 1  ;;  %p248_p7 = scmp.lt.s32.totalorder %s1043_s13, 8 }
  0x1c   : > { %p249_p8 = pnand %p802_p6, %p248_p7 }
  0x1d   : > { %s255_s25 = sand.u32 (!%p249_p8), 1, %s1027_s9   ;;  %s804_s26 = sshll.u32 (!%p249_p8), %s1035_s11, 5 }
  0x1e   : > { %252 = sbr.rel (%p249_p8) target bundleno = 324 (0x144), region = 62  ;;  %s803_s27 = sshll.u32 (!%p249_p8), %s255_s25, 7 }
  0x1f   : > { %p290_p9 = scmp.lt.s32.totalorder (!%p249_p8), %s804_s26, 223  ;;  %s1131_s4 = scalar_lea.vmem (!%p249_p8), [#allocation2], %s803_s27 }
  0x20   : > { %p806_p10 = scmp.ne.s32.totalorder (!%p249_p8), %s1035_s11, 0 }
  0x25   : > { %s1335_s26 = smov (!%p290_p9, %s804_s26), 223  ;;  %311 = sbr.rel (%p806_p10) target bundleno = 47 (0x2f), region = 70 }
  0x26   : > { %s805_s28 = sshll.u32 %s1335_s26, 2  ;;  %v1045_v16 = vmov (!%p806_p10), 0.0  }
  0x27   : > { %s1129_s3 = scalar_lea.vmem %s1326_s1, %s805_s28  ;;  %312 = vst [vmem:[%s1327_s2] sm:$0xff] (!%p806_p10), %v1045_v16  ;;  %313 = vst [vmem:[%s1327_s2 + $0x8] sm:$0xff] (!%p806_p10), %v1045_v16 }
  0x28   : > { %314 = vst [vmem:[%s1327_s2 + $0x10] sm:$0xff] (!%p806_p10), %v1045_v16  ;;  %315 = vst [vmem:[%s1327_s2 + $0x18] sm:$0xff] (!%p806_p10), %v1045_v16 }
  0x29   : > { %316 = vst [vmem:[%s1327_s2 + $0x20] sm:$0xff] (!%p806_p10), %v1045_v16  ;;  %317 = vst [vmem:[%s1327_s2 + $0x28] sm:$0xff] (!%p806_p10), %v1045_v16 }
  0x2a   : > { %318 = vst [vmem:[%s1327_s2 + $0x30] sm:$0xff] (!%p806_p10), %v1045_v16  ;;  %319 = vst [vmem:[%s1327_s2 + $0x38] sm:$0xff] (!%p806_p10), %v1045_v16 }
  0x2b   : > { %320 = vst [vmem:[%s1327_s2 + $0x40] sm:$0xff] (!%p806_p10), %v1045_v16  ;;  %321 = vst [vmem:[%s1327_s2 + $0x48] sm:$0xff] (!%p806_p10), %v1045_v16 }
  0x2c   : > { %322 = vst [vmem:[%s1327_s2 + $0x50] sm:$0xff] %v1045_v16  ;;  %323 = vst [vmem:[%s1327_s2 + $0x58] sm:$0xff] %v1045_v16 }
  0x2d   : > { %324 = vst [vmem:[%s1327_s2 + $0x60] sm:$0xff] %v1045_v16  ;;  %325 = vst [vmem:[%s1327_s2 + $0x68] sm:$0xff] %v1045_v16 }
  0x2e   : > { %326 = vst [vmem:[%s1327_s2 + $0x70] sm:$0xff] %v1045_v16  ;;  %327 = vst [vmem:[%s1327_s2 + $0x78] sm:$0xff] %v1045_v16 }
  0x2f PF: > { %v965_v17 = vld [vmem:[%s1129_s3 + $0x40] sm:$0xff]   ;;  %v967_v19 = vld [vmem:[%s1129_s3 + $0x48] sm:$0xff]   ;;  %v969_v21 = vld [vmem:[%s1129_s3 + $0x50] sm:$0xff]  }
  0x30   : > { %v966_v18 = vld [vmem:[%s1129_s3] sm:$0xff]   ;;  %844 = vmatprep.subr.bf16.mxu0 %v965_v17  ;;  %908 = vmatprep.subr.bf16.mxu1 %v965_v17  ;;  %v968_v20 = vld [vmem:[%s1129_s3 + $0x8] sm:$0xff]   ;;  %v970_v22 = vld [vmem:[%s1129_s3 + $0x10] sm:$0xff]  }
  0x31   : > { %845 = vmatpush3.bf16.msra.mxu0 %v966_v18  ;;  %916 = vmatpush3.bf16.msra.mxu1 %v966_v18  ;;  %v971_v23 = vld [vmem:[%s1129_s3 + $0x58] sm:$0xff]   ;;  %v973_v25 = vld [vmem:[%s1129_s3 + $0x60] sm:$0xff]   ;;  %v975_v27 = vld [vmem:[%s1129_s3 + $0x68] sm:$0xff]  }
  0x32   : > { %846 = vmatprep.subr.bf16.mxu0 %v967_v19  ;;  %909 = vmatprep.subr.bf16.mxu1 %v967_v19  ;;  %v972_v24 = vld [vmem:[%s1129_s3 + $0x18] sm:$0xff]   ;;  %v974_v26 = vld [vmem:[%s1129_s3 + $0x20] sm:$0xff]   ;;  %v976_v30 = vld [vmem:[%s1129_s3 + $0x28] sm:$0xff]  }
  0x33   : > { %v983_v28 = vld [vmem:[%s1131_s4 + $0x4] ss:$8 sps:$4 sm:$0xff]   ;;  %v977_v31 = vld [vmem:[%s1129_s3 + $0x70] sm:$0xff]   ;;  %v979_v33 = vld [vmem:[%s1129_s3 + $0x78] sm:$0xff]  }
  0x34   : > { %v986_v29 = vld [vmem:[%s1131_s4 + $0x44] ss:$8 sps:$4 sm:$0xff]   ;;  %600 = vmatprep.mubr.bf16.mxu0 %v983_v28  ;;  %v978_v32 = vld [vmem:[%s1129_s3 + $0x30] sm:$0xff]   ;;  %v980_v34 = vld [vmem:[%s1129_s3 + $0x38] sm:$0xff]  }
  0x35   : > { %847 = vmatpush3.bf16.msra.mxu0 %v968_v20  ;;  %917 = vmatpush3.bf16.msra.mxu1 %v968_v20  ;;  %v981_v35 = vld [vmem:[%s1131_s4] ss:$8 sps:$4 sm:$0xff]   ;;  %v987_v37 = vld [vmem:[%s1131_s4 + $0x14] ss:$8 sps:$4 sm:$0xff]   ;;  %v991_v39 = vld [vmem:[%s1131_s4 + $0x10] ss:$8 sps:$4 sm:$0xff]  }
  0x36   : > { %848 = vmatprep.subr.bf16.mxu0 %v969_v21  ;;  %910 = vmatprep.subr.bf16.mxu1 %v969_v21  ;;  %v984_v36 = vld [vmem:[%s1131_s4 + $0x40] ss:$8 sps:$4 sm:$0xff]   ;;  %v989_v38 = vld [vmem:[%s1131_s4 + $0x54] ss:$8 sps:$4 sm:$0xff]   ;;  %v992_v40 = vld [vmem:[%s1131_s4 + $0x50] ss:$8 sps:$4 sm:$0xff]  }
  0x37   : > { %632 = vmatprep.mubr.bf16.mxu1 %v986_v29  ;;  %v993_v41 = vld [vmem:[%s1131_s4 + $0x24] ss:$8 sps:$4 sm:$0xff]   ;;  %v997_v43 = vld [vmem:[%s1131_s4 + $0x20] ss:$8 sps:$4 sm:$0xff]   ;;  %v999_v45 = vld [vmem:[%s1131_s4 + $0x34] ss:$8 sps:$4 sm:$0xff]  }
  0x38   : > { %v995_v42 = vld [vmem:[%s1131_s4 + $0x64] ss:$8 sps:$4 sm:$0xff]   ;;  %v998_v44 = vld [vmem:[%s1131_s4 + $0x60] ss:$8 sps:$4 sm:$0xff]   ;;  %v1001_v46 = vld [vmem:[%s1131_s4 + $0x74] ss:$8 sps:$4 sm:$0xff]  }
  0x39   : > { %849 = vmatpush3.bf16.msra.mxu0 %v970_v22  ;;  %918 = vmatpush3.bf16.msra.mxu1 %v970_v22  ;;  %v1003_v47 = vld [vmem:[%s1131_s4 + $0x30] ss:$8 sps:$4 sm:$0xff]   ;;  %v328_v51 = vld [vmem:[%s1327_s2] sm:$0xff]  ;;  %v329_v59 = vld [vmem:[%s1327_s2 + $0x8] sm:$0xff] }
  0x3a   : > { %850 = vmatprep.subr.bf16.mxu0 %v971_v23  ;;  %911 = vmatprep.subr.bf16.mxu1 %v971_v23  ;;  %v1004_v48 = vld [vmem:[%s1131_s4 + $0x70] ss:$8 sps:$4 sm:$0xff]   ;;  %v336_v53 = vld [vmem:[%s1327_s2 + $0x40] sm:$0xff]  ;;  %v337_v61 = vld [vmem:[%s1327_s2 + $0x48] sm:$0xff] }
  0x3b   : > { %v330_v7 = vld [vmem:[%s1327_s2 + $0x10] sm:$0xff]  ;;  %v331_v15 = vld [vmem:[%s1327_s2 + $0x18] sm:$0xff]  ;;  %v340_v29 = vld [vmem:[%s1327_s2 + $0x60] sm:$0xff] }
  0x3c   : > { %v338_v9 = vld [vmem:[%s1327_s2 + $0x50] sm:$0xff]  ;;  %v339_v17 = vld [vmem:[%s1327_s2 + $0x58] sm:$0xff] }
  0x3d   : > { %851 = vmatpush3.bf16.msra.mxu0 %v972_v24  ;;  %919 = vmatpush3.bf16.msra.mxu1 %v972_v24 }
  0x3e   : > { %852 = vmatprep.subr.bf16.mxu0 %v973_v25  ;;  %912 = vmatprep.subr.bf16.mxu1 %v973_v25 }
  0x41   : > { %853 = vmatpush3.bf16.msra.mxu0 %v974_v26  ;;  %920 = vmatpush3.bf16.msra.mxu1 %v974_v26 }
  0x42   : > { %854 = vmatprep.subr.bf16.mxu0 %v975_v27  ;;  %913 = vmatprep.subr.bf16.mxu1 %v975_v27  ;;  %v332_v27 = vld [vmem:[%s1327_s2 + $0x20] sm:$0xff] }
  0x45   : > { %855 = vmatpush3.bf16.msra.mxu0 %v976_v30  ;;  %921 = vmatpush3.bf16.msra.mxu1 %v976_v30 }
  0x46   : > { %856 = vmatprep.subr.bf16.mxu0 %v977_v31  ;;  %914 = vmatprep.subr.bf16.mxu1 %v977_v31 }
  0x49   : > { %857 = vmatpush3.bf16.msra.mxu0 %v978_v32  ;;  %922 = vmatpush3.bf16.msra.mxu1 %v978_v32 }
  0x4a   : > { %858 = vmatprep.subr.bf16.mxu0 %v979_v33  ;;  %915 = vmatprep.subr.bf16.mxu1 %v979_v33 }
  0x4d   : > { %859 = vmatpush3.bf16.msra.mxu0 %v980_v34  ;;  %923 = vmatpush3.bf16.msra.mxu1 %v980_v34 }
  0x50   : > { %601 = vmatmul.mubr.bf16.vlgmr.msra.gmra.mrb[0].mxu0 %v981_v35  ;;  %633 = vmatmul.mubr.bf16.vlgmr.msra.gmra.mrb[0].mxu1 %v984_v36  ;;  %v333_v35 = vld [vmem:[%s1327_s2 + $0x28] sm:$0xff] }
  0x51   : > { %608 = vmatprep.mubr.bf16.mxu0 %v987_v37  ;;  %640 = vmatprep.mubr.bf16.mxu1 %v989_v38  ;;  %v341_v37 = vld [vmem:[%s1327_s2 + $0x68] sm:$0xff] }
  0x58   : > { %609 = vmatmul.mubr.bf16.gmra.mrb[4].mxu0 %v991_v39  ;;  %641 = vmatmul.mubr.bf16.gmra.mrb[4].mxu1 %v992_v40 }
  0x59   : > { %616 = vmatprep.mubr.bf16.mxu0 %v993_v41  ;;  %648 = vmatprep.mubr.bf16.mxu1 %v995_v42 }
  0x60   : > { %617 = vmatmul.mubr.bf16.gmra.mrb[8].mxu0 %v997_v43  ;;  %649 = vmatmul.mubr.bf16.gmra.mrb[8].mxu1 %v998_v44 }
  0x61   : > { %624 = vmatprep.mubr.bf16.mxu0 %v999_v45  ;;  %656 = vmatprep.mubr.bf16.mxu1 %v1001_v46 }
  0x68   : > { %625 = vmatmul.mubr.bf16.gmra.mrb[12].mxu0 %v1003_v47  ;;  %657 = vmatmul.mubr.bf16.gmra.mrb[12].mxu1 %v1004_v48  ;;  %v334_v47 = vld [vmem:[%s1327_s2 + $0x30] sm:$0xff] }
 0x123   : > { %v860_v49 = vpop.f32.mrb[0].mxu0  ;;  %v884_v50 = vpop.f32.mrb[0].mxu1 }
 0x124   : > { %v861_v52 = vpop.f32.mrb[1].mxu0  ;;  %v885_v54 = vpop.f32.mrb[1].mxu1 }
 0x125   : > { %v862_v55 = vadd.f32 %v861_v52, %v860_v49  ;;  %v886_v56 = vadd.f32 %v885_v54, %v884_v50  ;;  %v863_v57 = vpop.f32.mrb[2].mxu0  ;;  %v887_v58 = vpop.f32.mrb[2].mxu1  ;;  %v342_v49 = vld [vmem:[%s1327_s2 + $0x70] sm:$0xff] }
 0x126   : > { %v864_v60 = vpop.f32.mrb[3].mxu0  ;;  %v888_v62 = vpop.f32.mrb[3].mxu1 }
 0x127   : > { %v665_v63 = vadd.f32 %v862_v55, %v328_v51  ;;  %v673_v0 = vadd.f32 %v886_v56, %v336_v53  ;;  %v865_v1 = vadd.f32 %v864_v60, %v863_v57  ;;  %v889_v2 = vadd.f32 %v888_v62, %v887_v58  ;;  %v335_v55 = vld [vmem:[%s1327_s2 + $0x38] sm:$0xff] }
 0x128   : > { %v343_v57 = vld [vmem:[%s1327_s2 + $0x78] sm:$0xff] }
 0x129   : > { %681 = vst [vmem:[%s1327_s2] sm:$0xff] %v665_v63  ;;  %689 = vst [vmem:[%s1327_s2 + $0x40] sm:$0xff] %v673_v0  ;;  %v666_v3 = vadd.f32 %v865_v1, %v329_v59  ;;  %v674_v4 = vadd.f32 %v889_v2, %v337_v61 }
 0x12b   : > { %682 = vst [vmem:[%s1327_s2 + $0x8] sm:$0xff] %v666_v3  ;;  %690 = vst [vmem:[%s1327_s2 + $0x48] sm:$0xff] %v674_v4  ;;  %v866_v5 = vpop.f32.mrb[4].mxu0  ;;  %v890_v6 = vpop.f32.mrb[4].mxu1 }
 0x12c   : > { %v867_v8 = vpop.f32.mrb[5].mxu0  ;;  %v891_v10 = vpop.f32.mrb[5].mxu1 }
 0x12d   : > { %v868_v11 = vadd.f32 %v867_v8, %v866_v5  ;;  %v892_v12 = vadd.f32 %v891_v10, %v890_v6  ;;  %v869_v13 = vpop.f32.mrb[6].mxu0  ;;  %v893_v14 = vpop.f32.mrb[6].mxu1 }
 0x12e   : > { %v870_v16 = vpop.f32.mrb[7].mxu0  ;;  %v894_v18 = vpop.f32.mrb[7].mxu1 }
 0x12f   : > { %v667_v19 = vadd.f32 %v868_v11, %v330_v7  ;;  %v675_v20 = vadd.f32 %v892_v12, %v338_v9  ;;  %v871_v21 = vadd.f32 %v870_v16, %v869_v13  ;;  %v895_v22 = vadd.f32 %v894_v18, %v893_v14 }
 0x131   : > { %683 = vst [vmem:[%s1327_s2 + $0x10] sm:$0xff] %v667_v19  ;;  %691 = vst [vmem:[%s1327_s2 + $0x50] sm:$0xff] %v675_v20  ;;  %v668_v23 = vadd.f32 %v871_v21, %v331_v15  ;;  %v676_v24 = vadd.f32 %v895_v22, %v339_v17 }
 0x133   : > { %684 = vst [vmem:[%s1327_s2 + $0x18] sm:$0xff] %v668_v23  ;;  %692 = vst [vmem:[%s1327_s2 + $0x58] sm:$0xff] %v676_v24  ;;  %v872_v25 = vpop.f32.mrb[8].mxu0  ;;  %v896_v26 = vpop.f32.mrb[8].mxu1 }
 0x134   : > { %v873_v28 = vpop.f32.mrb[9].mxu0  ;;  %v897_v30 = vpop.f32.mrb[9].mxu1 }
 0x135   : > { %v874_v31 = vadd.f32 %v873_v28, %v872_v25  ;;  %v898_v32 = vadd.f32 %v897_v30, %v896_v26  ;;  %v875_v33 = vpop.f32.mrb[10].mxu0  ;;  %v899_v34 = vpop.f32.mrb[10].mxu1 }
 0x136   : > { %v876_v36 = vpop.f32.mrb[11].mxu0  ;;  %v900_v38 = vpop.f32.mrb[11].mxu1 }
 0x137   : > { %v669_v39 = vadd.f32 %v874_v31, %v332_v27  ;;  %v677_v40 = vadd.f32 %v898_v32, %v340_v29  ;;  %v877_v41 = vadd.f32 %v876_v36, %v875_v33  ;;  %v901_v42 = vadd.f32 %v900_v38, %v899_v34 }
 0x139   : > { %685 = vst [vmem:[%s1327_s2 + $0x20] sm:$0xff] %v669_v39  ;;  %693 = vst [vmem:[%s1327_s2 + $0x60] sm:$0xff] %v677_v40  ;;  %v670_v43 = vadd.f32 %v877_v41, %v333_v35  ;;  %v678_v44 = vadd.f32 %v901_v42, %v341_v37 }
 0x13b   : > { %686 = vst [vmem:[%s1327_s2 + $0x28] sm:$0xff] %v670_v43  ;;  %694 = vst [vmem:[%s1327_s2 + $0x68] sm:$0xff] %v678_v44  ;;  %v878_v45 = vpop.f32.mrb[12].mxu0  ;;  %v902_v46 = vpop.f32.mrb[12].mxu1 }
 0x13c   : > { %v879_v48 = vpop.f32.mrb[13].mxu0  ;;  %v903_v50 = vpop.f32.mrb[13].mxu1 }
 0x13d   : > { %v880_v51 = vadd.f32 %v879_v48, %v878_v45  ;;  %v904_v52 = vadd.f32 %v903_v50, %v902_v46  ;;  %v881_v53 = vpop.f32.mrb[14].mxu0  ;;  %v905_v54 = vpop.f32.mrb[14].mxu1 }
 0x13e   : > { %v882_v56 = vpop.f32.mrb[15].mxu0  ;;  %v906_v58 = vpop.f32.mrb[15].mxu1 }
 0x13f   : > { %v671_v59 = vadd.f32 %v880_v51, %v334_v47  ;;  %v679_v60 = vadd.f32 %v904_v52, %v342_v49  ;;  %v883_v61 = vadd.f32 %v882_v56, %v881_v53  ;;  %v907_v62 = vadd.f32 %v906_v58, %v905_v54 }
 0x141   : > { %687 = vst [vmem:[%s1327_s2 + $0x30] sm:$0xff] %v671_v59  ;;  %695 = vst [vmem:[%s1327_s2 + $0x70] sm:$0xff] %v679_v60  ;;  %v672_v63 = vadd.f32 %v883_v61, %v335_v55  ;;  %v680_v0 = vadd.f32 %v907_v62, %v343_v57 }
 0x143   : > { %688 = vst [vmem:[%s1327_s2 + $0x38] sm:$0xff] %v672_v63  ;;  %696 = vst [vmem:[%s1327_s2 + $0x78] sm:$0xff] %v680_v0 }
 0x144 PF: > { %s12_s13 = sadd.s32 1, %s1043_s13   ;;  %s1328_s9 = smov %s1031_s10 }
 0x145   : > { %p9_p11 = scmp.ge.s32.totalorder %s12_s13, 9   ;;  %s1329_s10 = smov %s1096_s17 }
 0x146   : > { %s1330_s11 = smov %s1039_s12  ;;  %s1331_s12 = smov %s1333_s14 }
 0x147   :  { %11 = sbr.rel (!%p9_p11) target bundleno = 3 (0x3), region = 108 }

// kernel: res3d_forward.64
= control target key start
LH: loop header
LB: loop body
LE: loop exit
PB: predicated region body
PF: predicated region fallthrough
CT: control target
= control target key end

     0   :  { %v105_v0 = vmov 0.0   ;;  %s187_s1 = inlined_call_operand.vmem [shape: f32[1,128], index: 1, kind: output, shape index: {0}]   ;;  %s188_s2 = inlined_call_operand.vmem [shape: f32[1,128], index: 2, kind: output, shape index: {1}]   ;;  %s189_s0 = inlined_call_operand.vmem [shape: f32[128,128], index: 0, kind: input, shape index: {}]  }
   0x1   :  { %14 = vst [vmem:[%s187_s1] sm:$0x1] %v105_v0  ;;  %15 = vst [vmem:[%s188_s2] sm:$0x1] %v105_v0  ;;  %v16_v1 = vld [vmem:[%s189_s0] sm:$0xff]  ;;  %v17_v2 = vld [vmem:[%s189_s0 + $0x8] sm:$0xff] }
   0x2   :  { %v18_v3 = vld [vmem:[%s189_s0 + $0x10] sm:$0xff]  ;;  %v19_v4 = vld [vmem:[%s189_s0 + $0x18] sm:$0xff]  ;;  %v33_v5 = vadd.f32 %v17_v2, %v16_v1  ;;  %v57_v6 = vmul.f32 %v16_v1, %v16_v1  ;;  %v58_v7 = vmul.f32 %v17_v2, %v17_v2  ;;  %v20_v9 = vld [vmem:[%s189_s0 + $0x20] sm:$0xff] }
   0x3   :  { %v59_v8 = vmul.f32 %v18_v3, %v18_v3  ;;  %v60_v11 = vmul.f32 %v19_v4, %v19_v4  ;;  %v21_v13 = vld [vmem:[%s189_s0 + $0x28] sm:$0xff]  ;;  %v61_v15 = vmul.f32 %v20_v9, %v20_v9  ;;  %v22_v17 = vld [vmem:[%s189_s0 + $0x30] sm:$0xff]  ;;  %v23_v21 = vld [vmem:[%s189_s0 + $0x38] sm:$0xff] }
   0x4   :  { %v34_v10 = vadd.f32 %v33_v5, %v18_v3  ;;  %v73_v12 = vadd.f32 %v58_v7, %v57_v6  ;;  %v62_v19 = vmul.f32 %v21_v13, %v21_v13  ;;  %v63_v23 = vmul.f32 %v22_v17, %v22_v17  ;;  %v24_v25 = vld [vmem:[%s189_s0 + $0x40] sm:$0xff]  ;;  %v25_v29 = vld [vmem:[%s189_s0 + $0x48] sm:$0xff]  ;;  %v26_v33 = vld [vmem:[%s189_s0 + $0x50] sm:$0xff] }
   0x5   :  { %v64_v27 = vmul.f32 %v23_v21, %v23_v21  ;;  %v65_v31 = vmul.f32 %v24_v25, %v24_v25  ;;  %v66_v35 = vmul.f32 %v25_v29, %v25_v29  ;;  %v27_v37 = vld [vmem:[%s189_s0 + $0x58] sm:$0xff]  ;;  %v67_v39 = vmul.f32 %v26_v33, %v26_v33  ;;  %v28_v41 = vld [vmem:[%s189_s0 + $0x60] sm:$0xff]  ;;  %v29_v45 = vld [vmem:[%s189_s0 + $0x68] sm:$0xff] }
   0x6   :  { %v35_v14 = vadd.f32 %v34_v10, %v19_v4  ;;  %v74_v16 = vadd.f32 %v73_v12, %v59_v8  ;;  %v68_v43 = vmul.f32 %v27_v37, %v27_v37  ;;  %v69_v47 = vmul.f32 %v28_v41, %v28_v41  ;;  %v30_v49 = vld [vmem:[%s189_s0 + $0x70] sm:$0xff]  ;;  %v31_v53 = vld [vmem:[%s189_s0 + $0x78] sm:$0xff] }
   0x7   :  { %v70_v51 = vmul.f32 %v29_v45, %v29_v45  ;;  %v71_v55 = vmul.f32 %v30_v49, %v30_v49  ;;  %v72_v58 = vmul.f32 %v31_v53, %v31_v53 }
   0x8   :  { %v36_v18 = vadd.f32 %v35_v14, %v20_v9  ;;  %v75_v20 = vadd.f32 %v74_v16, %v60_v11  ;;  %v32_v7 = vld [vmem:[%s187_s1] sm:$0x1] }
   0x9   :  { %v56_v12 = vld [vmem:[%s188_s2] sm:$0x1] }
   0xa   :  { %v37_v22 = vadd.f32 %v36_v18, %v21_v13  ;;  %v76_v24 = vadd.f32 %v75_v20, %v61_v15 }
   0xc   :  { %v38_v26 = vadd.f32 %v37_v22, %v22_v17  ;;  %v77_v28 = vadd.f32 %v76_v24, %v62_v19 }
   0xe   :  { %v39_v30 = vadd.f32 %v38_v26, %v23_v21  ;;  %v78_v32 = vadd.f32 %v77_v28, %v63_v23 }
  0x10   :  { %v40_v34 = vadd.f32 %v39_v30, %v24_v25  ;;  %v79_v36 = vadd.f32 %v78_v32, %v64_v27 }
  0x12   :  { %v41_v38 = vadd.f32 %v40_v34, %v25_v29  ;;  %v80_v40 = vadd.f32 %v79_v36, %v65_v31 }
  0x14   :  { %v42_v42 = vadd.f32 %v41_v38, %v26_v33  ;;  %v81_v44 = vadd.f32 %v80_v40, %v66_v35 }
  0x16   :  { %v43_v46 = vadd.f32 %v42_v42, %v27_v37  ;;  %v82_v48 = vadd.f32 %v81_v44, %v67_v39 }
  0x18   :  { %v44_v50 = vadd.f32 %v43_v46, %v28_v41  ;;  %v83_v52 = vadd.f32 %v82_v48, %v68_v43 }
  0x1a   :  { %v45_v54 = vadd.f32 %v44_v50, %v29_v45  ;;  %v84_v56 = vadd.f32 %v83_v52, %v69_v47 }
  0x1c   :  { %v46_v57 = vadd.f32 %v45_v54, %v30_v49  ;;  %v85_v59 = vadd.f32 %v84_v56, %v70_v51 }
  0x1e   :  { %v47_v60 = vadd.f32 %v46_v57, %v31_v53  ;;  %v86_v61 = vadd.f32 %v85_v59, %v71_v55 }
  0x20   :  { %v48_v62 = vrot.slane %v47_v60, 4  ;;  %v87_v63 = vadd.f32 %v86_v61, %v72_v58 }
  0x22   :  { %v49_v0 = vadd.f32 %v48_v62, %v47_v60  ;;  %v88_v1 = vrot.slane %v87_v63, 4 }
  0x24   :  { %v50_v2 = vrot.slane %v49_v0, 2  ;;  %v89_v3 = vadd.f32 %v88_v1, %v87_v63 }
  0x26   :  { %v51_v4 = vadd.f32 %v50_v2, %v49_v0  ;;  %v90_v5 = vrot.slane %v89_v3, 2 }
  0x28   :  { %v52_v6 = vrot.slane %v51_v4, 1  ;;  %v91_v8 = vadd.f32 %v90_v5, %v89_v3 }
  0x2a   :  { %v53_v9 = vadd.f32 %v52_v6, %v51_v4  ;;  %v92_v10 = vrot.slane %v91_v8, 1 }
  0x2c   :  { %v54_v11 = vadd.f32 %v53_v9, %v32_v7  ;;  %v93_v13 = vadd.f32 %v92_v10, %v91_v8 }
  0x2e   :  { %55 = vst [vmem:[%s187_s1] sm:$0x1] %v54_v11  ;;  %v94_v14 = vadd.f32 %v93_v13, %v56_v12 }
  0x30   :  { %95 = vst [vmem:[%s188_s2] sm:$0x1] %v94_v14 }

// kernel: res3d_forward.65
= control target key start
LH: loop header
LB: loop body
LE: loop exit
PB: predicated region body
PF: predicated region fallthrough
CT: control target
= control target key end

     0   :  { %s254_s0 = inlined_call_operand.vmem [shape: f32[128,128], index: 0, kind: input, shape index: {}]   ;;  %s255_s1 = inlined_call_operand.vmem [shape: f32[1,128], index: 1, kind: input, shape index: {}]   ;;  %s256_s2 = inlined_call_operand.vmem [shape: f32[1,128], index: 2, kind: input, shape index: {}]   ;;  %s257_s3 = inlined_call_operand.vmem [shape: f32[128,128], index: 3, kind: output, shape index: {}]  }
   0x1   :  { %v14_v0 = vld [vmem:[%s254_s0] sm:$0xff]  ;;  %v15_v4 = vld [vmem:[%s254_s0 + $0x8] sm:$0xff]  ;;  %v16_v5 = vld [vmem:[%s254_s0 + $0x10] sm:$0xff] }
   0x2   :  { %v112_v1 = vld [vmem:[%s255_s1] ss:$0 sm:$0xff]  ;;  %v17_v6 = vld [vmem:[%s254_s0 + $0x18] sm:$0xff]  ;;  %v19_v11 = vld [vmem:[%s254_s0 + $0x28] sm:$0xff] }
   0x3   :  { %v143_v2 = vld [vmem:[%s256_s2] ss:$0 sm:$0xff]  ;;  %v37_v3 = vmul.f32 %v112_v1, %v14_v0  ;;  %v38_v7 = vmul.f32 %v112_v1, %v15_v4  ;;  %v39_v8 = vmul.f32 %v112_v1, %v16_v5  ;;  %v40_v9 = vmul.f32 %v112_v1, %v17_v6  ;;  %v20_v12 = vld [vmem:[%s254_s0 + $0x30] sm:$0xff]  ;;  %v21_v17 = vld [vmem:[%s254_s0 + $0x38] sm:$0xff] }
   0x4   :  { %v18_v10 = vld [vmem:[%s254_s0 + $0x20] sm:$0xff]  ;;  %v42_v15 = vmul.f32 %v112_v1, %v19_v11  ;;  %v43_v16 = vmul.f32 %v112_v1, %v20_v12  ;;  %v44_v21 = vmul.f32 %v112_v1, %v21_v17  ;;  %v23_v27 = vld [vmem:[%s254_s0 + $0x48] sm:$0xff]  ;;  %v24_v28 = vld [vmem:[%s254_s0 + $0x50] sm:$0xff] }
   0x5   :  { %v60_v13 = vadd.f32 %v143_v2, %v37_v3  ;;  %v41_v14 = vmul.f32 %v112_v1, %v18_v10  ;;  %v61_v18 = vadd.f32 %v143_v2, %v38_v7  ;;  %v62_v19 = vadd.f32 %v143_v2, %v39_v8  ;;  %v22_v22 = vld [vmem:[%s254_s0 + $0x40] sm:$0xff]  ;;  %v25_v29 = vld [vmem:[%s254_s0 + $0x58] sm:$0xff]  ;;  %v27_v35 = vld [vmem:[%s254_s0 + $0x68] sm:$0xff] }
   0x6   :  { %v63_v20 = vadd.f32 %v143_v2, %v40_v9  ;;  %v65_v25 = vadd.f32 %v143_v2, %v42_v15  ;;  %v66_v26 = vadd.f32 %v143_v2, %v43_v16  ;;  %v67_v33 = vadd.f32 %v143_v2, %v44_v21  ;;  %v26_v34 = vld [vmem:[%s254_s0 + $0x60] sm:$0xff]  ;;  %v28_v36 = vld [vmem:[%s254_s0 + $0x70] sm:$0xff]  ;;  %v29_v41 = vld [vmem:[%s254_s0 + $0x78] sm:$0xff] }
   0x7   :  { %v76_v23 = vmax.f32 %v60_v13, 0.0  ;;  %v64_v24 = vadd.f32 %v143_v2, %v41_v14  ;;  %v77_v30 = vmax.f32 %v61_v18, 0.0  ;;  %v78_v31 = vmax.f32 %v62_v19, 0.0 }
   0x8   :  { %v79_v32 = vmax.f32 %v63_v20, 0.0  ;;  %v81_v38 = vmax.f32 %v65_v25, 0.0  ;;  %v82_v39 = vmax.f32 %v66_v26, 0.0  ;;  %v45_v40 = vmul.f32 %v112_v1, %v22_v22 }
   0x9   :  { %92 = vst [vmem:[%s257_s3] sm:$0xff] %v76_v23  ;;  %v80_v37 = vmax.f32 %v64_v24, 0.0  ;;  %93 = vst [vmem:[%s257_s3 + $0x8] sm:$0xff] %v77_v30  ;;  %v83_v42 = vmax.f32 %v67_v33, 0.0  ;;  %v46_v43 = vmul.f32 %v112_v1, %v23_v27  ;;  %v47_v44 = vmul.f32 %v112_v1, %v24_v28 }
   0xa   :  { %94 = vst [vmem:[%s257_s3 + $0x10] sm:$0xff] %v78_v31  ;;  %95 = vst [vmem:[%s257_s3 + $0x18] sm:$0xff] %v79_v32  ;;  %v48_v45 = vmul.f32 %v112_v1, %v25_v29  ;;  %v68_v46 = vadd.f32 %v143_v2, %v45_v40  ;;  %v49_v47 = vmul.f32 %v112_v1, %v26_v34 }
   0xb   :  { %96 = vst [vmem:[%s257_s3 + $0x20] sm:$0xff] %v80_v37  ;;  %97 = vst [vmem:[%s257_s3 + $0x28] sm:$0xff] %v81_v38  ;;  %v50_v48 = vmul.f32 %v112_v1, %v27_v35  ;;  %v51_v49 = vmul.f32 %v112_v1, %v28_v36  ;;  %v69_v50 = vadd.f32 %v143_v2, %v46_v43 }
   0xc   :  { %98 = vst [vmem:[%s257_s3 + $0x30] sm:$0xff] %v82_v39  ;;  %99 = vst [vmem:[%s257_s3 + $0x38] sm:$0xff] %v83_v42  ;;  %v70_v51 = vadd.f32 %v143_v2, %v47_v44  ;;  %v71_v52 = vadd.f32 %v143_v2, %v48_v45  ;;  %v52_v53 = vmul.f32 %v112_v1, %v29_v41  ;;  %v84_v54 = vmax.f32 %v68_v46, 0.0 }
   0xd   :  { %v72_v55 = vadd.f32 %v143_v2, %v49_v47  ;;  %v73_v56 = vadd.f32 %v143_v2, %v50_v48  ;;  %v74_v57 = vadd.f32 %v143_v2, %v51_v49  ;;  %v85_v58 = vmax.f32 %v69_v50, 0.0 }
   0xe   :  { %v86_v59 = vmax.f32 %v70_v51, 0.0  ;;  %v87_v60 = vmax.f32 %v71_v52, 0.0  ;;  %v75_v61 = vadd.f32 %v143_v2, %v52_v53  ;;  %100 = vst [vmem:[%s257_s3 + $0x40] sm:$0xff] %v84_v54 }
   0xf   :  { %v88_v62 = vmax.f32 %v72_v55, 0.0  ;;  %v89_v63 = vmax.f32 %v73_v56, 0.0  ;;  %v90_v0 = vmax.f32 %v74_v57, 0.0  ;;  %101 = vst [vmem:[%s257_s3 + $0x48] sm:$0xff] %v85_v58 }
  0x10   :  { %102 = vst [vmem:[%s257_s3 + $0x50] sm:$0xff] %v86_v59  ;;  %103 = vst [vmem:[%s257_s3 + $0x58] sm:$0xff] %v87_v60  ;;  %v91_v1 = vmax.f32 %v75_v61, 0.0 }
  0x11   :  { %104 = vst [vmem:[%s257_s3 + $0x60] sm:$0xff] %v88_v62  ;;  %105 = vst [vmem:[%s257_s3 + $0x68] sm:$0xff] %v89_v63 }
  0x12   :  { %106 = vst [vmem:[%s257_s3 + $0x70] sm:$0xff] %v90_v0  ;;  %107 = vst [vmem:[%s257_s3 + $0x78] sm:$0xff] %v91_v1 }

// kernel: res3d_forward.68
= control target key start
LH: loop header
LB: loop body
LE: loop exit
PB: predicated region body
PF: predicated region fallthrough
CT: control target
= control target key end

     0   :  { %s360_s0 = inlined_call_operand.vmem [shape: f32[128,128], index: 0, kind: input, shape index: {}]   ;;  %s361_s1 = inlined_call_operand.vmem [shape: f32[1,128], index: 1, kind: input, shape index: {}]   ;;  %s362_s2 = inlined_call_operand.vmem [shape: f32[1,128], index: 2, kind: input, shape index: {}]   ;;  %s363_s3 = inlined_call_operand.vmem [shape: f32[128,128], index: 3, kind: input, shape index: {}]   ;;  %s364_s4 = inlined_call_operand.vmem [shape: f32[128,128], index: 4, kind: output, shape index: {}]  }
   0x1   :  { %v17_v0 = vld [vmem:[%s360_s0] sm:$0xff]  ;;  %v18_v4 = vld [vmem:[%s360_s0 + $0x8] sm:$0xff]  ;;  %v19_v7 = vld [vmem:[%s360_s0 + $0x10] sm:$0xff] }
   0x2   :  { %v180_v1 = vld [vmem:[%s361_s1] ss:$0 sm:$0xff]  ;;  %v20_v8 = vld [vmem:[%s360_s0 + $0x18] sm:$0xff]  ;;  %v80_v10 = vld [vmem:[%s363_s3 + $0x8] sm:$0xff] }
   0x3   :  { %v185_v2 = vld [vmem:[%s362_s2] ss:$0 sm:$0xff]  ;;  %v40_v3 = vmul.f32 %v180_v1, %v17_v0  ;;  %v41_v6 = vmul.f32 %v180_v1, %v18_v4  ;;  %v42_v11 = vmul.f32 %v180_v1, %v19_v7  ;;  %v81_v12 = vld [vmem:[%s363_s3 + $0x10] sm:$0xff]  ;;  %v43_v13 = vmul.f32 %v180_v1, %v20_v8  ;;  %v82_v16 = vld [vmem:[%s363_s3 + $0x18] sm:$0xff] }
   0x4   :  { %v79_v5 = vld [vmem:[%s363_s3] sm:$0xff]  ;;  %v22_v18 = vld [vmem:[%s360_s0 + $0x28] sm:$0xff]  ;;  %v23_v19 = vld [vmem:[%s360_s0 + $0x30] sm:$0xff] }
   0x5   :  { %v63_v9 = vadd.f32 %v185_v2, %v40_v3  ;;  %v21_v14 = vld [vmem:[%s360_s0 + $0x20] sm:$0xff]  ;;  %v64_v15 = vadd.f32 %v185_v2, %v41_v6  ;;  %v65_v21 = vadd.f32 %v185_v2, %v42_v11  ;;  %v66_v22 = vadd.f32 %v185_v2, %v43_v13  ;;  %v24_v25 = vld [vmem:[%s360_s0 + $0x38] sm:$0xff]  ;;  %v84_v28 = vld [vmem:[%s363_s3 + $0x28] sm:$0xff] }
   0x6   :  { %v44_v17 = vmul.f32 %v180_v1, %v21_v14  ;;  %v83_v23 = vld [vmem:[%s363_s3 + $0x20] sm:$0xff]  ;;  %v45_v24 = vmul.f32 %v180_v1, %v22_v18  ;;  %v46_v29 = vmul.f32 %v180_v1, %v23_v19  ;;  %v47_v30 = vmul.f32 %v180_v1, %v24_v25  ;;  %v85_v36 = vld [vmem:[%s363_s3 + $0x30] sm:$0xff]  ;;  %v86_v37 = vld [vmem:[%s363_s3 + $0x38] sm:$0xff] }
   0x7   :  { %v95_v20 = vadd.f32 %v79_v5, %v63_v9  ;;  %v96_v26 = vadd.f32 %v80_v10, %v64_v15  ;;  %v25_v31 = vld [vmem:[%s360_s0 + $0x40] sm:$0xff]  ;;  %v97_v33 = vadd.f32 %v81_v12, %v65_v21  ;;  %v98_v34 = vadd.f32 %v82_v16, %v66_v22  ;;  %v26_v38 = vld [vmem:[%s360_s0 + $0x48] sm:$0xff]  ;;  %v27_v43 = vld [vmem:[%s360_s0 + $0x50] sm:$0xff] }
   0x8   :  { %v67_v27 = vadd.f32 %v185_v2, %v44_v17  ;;  %v68_v35 = vadd.f32 %v185_v2, %v45_v24  ;;  %v69_v41 = vadd.f32 %v185_v2, %v46_v29  ;;  %v70_v42 = vadd.f32 %v185_v2, %v47_v30  ;;  %v28_v44 = vld [vmem:[%s360_s0 + $0x58] sm:$0xff]  ;;  %v29_v49 = vld [vmem:[%s360_s0 + $0x60] sm:$0xff]  ;;  %v30_v55 = vld [vmem:[%s360_s0 + $0x68] sm:$0xff] }
   0x9   :  { %v111_v32 = vmax.f32 %v95_v20, 0.0  ;;  %v112_v39 = vmax.f32 %v96_v26, 0.0  ;;  %v113_v45 = vmax.f32 %v97_v33, 0.0  ;;  %v114_v46 = vmax.f32 %v98_v34, 0.0  ;;  %v87_v53 = vld [vmem:[%s363_s3 + $0x40] sm:$0xff]  ;;  %v88_v58 = vld [vmem:[%s363_s3 + $0x48] sm:$0xff] }
   0xa   :  { %v99_v40 = vadd.f32 %v83_v23, %v67_v27  ;;  %v100_v47 = vadd.f32 %v84_v28, %v68_v35  ;;  %v48_v48 = vmul.f32 %v180_v1, %v25_v31  ;;  %v101_v51 = vadd.f32 %v85_v36, %v69_v41  ;;  %v31_v61 = vld [vmem:[%s360_s0 + $0x70] sm:$0xff]  ;;  %v32_v62 = vld [vmem:[%s360_s0 + $0x78] sm:$0xff]  ;;  %v91_v10 = vld [vmem:[%s363_s3 + $0x60] sm:$0xff] }
   0xb   :  { %127 = vst [vmem:[%s364_s4] sm:$0xff] %v111_v32  ;;  %128 = vst [vmem:[%s364_s4 + $0x8] sm:$0xff] %v112_v39  ;;  %v102_v52 = vadd.f32 %v86_v37, %v70_v42  ;;  %v49_v54 = vmul.f32 %v180_v1, %v26_v38  ;;  %v50_v59 = vmul.f32 %v180_v1, %v27_v43  ;;  %v89_v4 = vld [vmem:[%s363_s3 + $0x50] sm:$0xff]  ;;  %v90_v5 = vld [vmem:[%s363_s3 + $0x58] sm:$0xff] }
   0xc   :  { %v115_v50 = vmax.f32 %v99_v40, 0.0  ;;  %129 = vst [vmem:[%s364_s4 + $0x10] sm:$0xff] %v113_v45  ;;  %130 = vst [vmem:[%s364_s4 + $0x18] sm:$0xff] %v114_v46  ;;  %v116_v56 = vmax.f32 %v100_v47, 0.0  ;;  %v71_v57 = vadd.f32 %v185_v2, %v48_v48  ;;  %v51_v60 = vmul.f32 %v180_v1, %v28_v44  ;;  %v92_v14 = vld [vmem:[%s363_s3 + $0x68] sm:$0xff]  ;;  %v93_v21 = vld [vmem:[%s363_s3 + $0x70] sm:$0xff] }
   0xd   :  { %v117_v63 = vmax.f32 %v101_v51, 0.0  ;;  %v118_v0 = vmax.f32 %v102_v52, 0.0  ;;  %v72_v3 = vadd.f32 %v185_v2, %v49_v54  ;;  %v52_v6 = vmul.f32 %v180_v1, %v29_v49  ;;  %v94_v22 = vld [vmem:[%s363_s3 + $0x78] sm:$0xff] }
   0xe   :  { %131 = vst [vmem:[%s364_s4 + $0x20] sm:$0xff] %v115_v50  ;;  %132 = vst [vmem:[%s364_s4 + $0x28] sm:$0xff] %v116_v56  ;;  %v103_v7 = vadd.f32 %v87_v53, %v71_v57  ;;  %v73_v8 = vadd.f32 %v185_v2, %v50_v59  ;;  %v74_v9 = vadd.f32 %v185_v2, %v51_v60 }
   0xf   :  { %v53_v11 = vmul.f32 %v180_v1, %v30_v55  ;;  %133 = vst [vmem:[%s364_s4 + $0x30] sm:$0xff] %v117_v63  ;;  %134 = vst [vmem:[%s364_s4 + $0x38] sm:$0xff] %v118_v0  ;;  %v104_v12 = vadd.f32 %v88_v58, %v72_v3  ;;  %v75_v13 = vadd.f32 %v185_v2, %v52_v6 }
  0x10   :  { %v54_v15 = vmul.f32 %v180_v1, %v31_v61  ;;  %v55_v16 = vmul.f32 %v180_v1, %v32_v62  ;;  %v119_v17 = vmax.f32 %v103_v7, 0.0  ;;  %v105_v18 = vadd.f32 %v89_v4, %v73_v8 }
  0x11   :  { %v106_v19 = vadd.f32 %v90_v5, %v74_v9  ;;  %v76_v20 = vadd.f32 %v185_v2, %v53_v11  ;;  %v120_v23 = vmax.f32 %v104_v12, 0.0  ;;  %v107_v24 = vadd.f32 %v91_v10, %v75_v13 }
  0x12   :  { %v77_v25 = vadd.f32 %v185_v2, %v54_v15  ;;  %v78_v26 = vadd.f32 %v185_v2, %v55_v16  ;;  %135 = vst [vmem:[%s364_s4 + $0x40] sm:$0xff] %v119_v17  ;;  %v121_v1 = vmax.f32 %v105_v18, 0.0 }
  0x13   :  { %v122_v27 = vmax.f32 %v106_v19, 0.0  ;;  %v108_v28 = vadd.f32 %v92_v14, %v76_v20  ;;  %136 = vst [vmem:[%s364_s4 + $0x48] sm:$0xff] %v120_v23  ;;  %v123_v29 = vmax.f32 %v107_v24, 0.0 }
  0x14   :  { %v109_v30 = vadd.f32 %v93_v21, %v77_v25  ;;  %v110_v31 = vadd.f32 %v94_v22, %v78_v26  ;;  %137 = vst [vmem:[%s364_s4 + $0x50] sm:$0xff] %v121_v1 }
  0x15   :  { %138 = vst [vmem:[%s364_s4 + $0x58] sm:$0xff] %v122_v27  ;;  %v124_v2 = vmax.f32 %v108_v28, 0.0  ;;  %139 = vst [vmem:[%s364_s4 + $0x60] sm:$0xff] %v123_v29 }
  0x16   :  { %v125_v32 = vmax.f32 %v109_v30, 0.0  ;;  %v126_v33 = vmax.f32 %v110_v31, 0.0 }
  0x17   :  { %140 = vst [vmem:[%s364_s4 + $0x68] sm:$0xff] %v124_v2 }
  0x18   :  { %141 = vst [vmem:[%s364_s4 + $0x70] sm:$0xff] %v125_v32  ;;  %142 = vst [vmem:[%s364_s4 + $0x78] sm:$0xff] %v126_v33 }

// kernel: res3d_forward.81
= control target key start
LH: loop header
LB: loop body
LE: loop exit
PB: predicated region body
PF: predicated region fallthrough
CT: control target
= control target key end

     0   :  { %s220_s0 = inlined_call_operand.vmem [shape: f32[128,128], index: 0, kind: input, shape index: {}]   ;;  %s221_s1 = inlined_call_operand.vmem [shape: f32[1,128], index: 1, kind: input, shape index: {}]   ;;  %s222_s2 = inlined_call_operand.vmem [shape: f32[1,128], index: 2, kind: input, shape index: {}]   ;;  %s223_s3 = inlined_call_operand.vmem [shape: f32[128,128], index: 3, kind: output, shape index: {}]  }
   0x1   :  { %v14_v0 = vld [vmem:[%s220_s0] sm:$0xff]  ;;  %v15_v4 = vld [vmem:[%s220_s0 + $0x8] sm:$0xff]  ;;  %v16_v5 = vld [vmem:[%s220_s0 + $0x10] sm:$0xff] }
   0x2   :  { %v96_v1 = vld [vmem:[%s221_s1] ss:$0 sm:$0xff]  ;;  %v17_v6 = vld [vmem:[%s220_s0 + $0x18] sm:$0xff]  ;;  %v19_v11 = vld [vmem:[%s220_s0 + $0x28] sm:$0xff] }
   0x3   :  { %v97_v2 = vld [vmem:[%s222_s2] ss:$0 sm:$0xff]  ;;  %v37_v3 = vmul.f32 %v96_v1, %v14_v0  ;;  %v38_v7 = vmul.f32 %v96_v1, %v15_v4  ;;  %v39_v8 = vmul.f32 %v96_v1, %v16_v5  ;;  %v40_v9 = vmul.f32 %v96_v1, %v17_v6  ;;  %v20_v12 = vld [vmem:[%s220_s0 + $0x30] sm:$0xff]  ;;  %v21_v17 = vld [vmem:[%s220_s0 + $0x38] sm:$0xff] }
   0x4   :  { %v18_v10 = vld [vmem:[%s220_s0 + $0x20] sm:$0xff]  ;;  %v42_v15 = vmul.f32 %v96_v1, %v19_v11  ;;  %v43_v16 = vmul.f32 %v96_v1, %v20_v12  ;;  %v23_v19 = vld [vmem:[%s220_s0 + $0x48] sm:$0xff]  ;;  %v44_v23 = vmul.f32 %v96_v1, %v21_v17  ;;  %v24_v24 = vld [vmem:[%s220_s0 + $0x50] sm:$0xff] }
   0x5   :  { %v60_v13 = vadd.f32 %v97_v2, %v37_v3  ;;  %v41_v14 = vmul.f32 %v96_v1, %v18_v10  ;;  %v22_v18 = vld [vmem:[%s220_s0 + $0x40] sm:$0xff]  ;;  %v61_v20 = vadd.f32 %v97_v2, %v38_v7  ;;  %v62_v21 = vadd.f32 %v97_v2, %v39_v8  ;;  %v25_v25 = vld [vmem:[%s220_s0 + $0x58] sm:$0xff]  ;;  %v27_v31 = vld [vmem:[%s220_s0 + $0x68] sm:$0xff] }
   0x6   :  { %v63_v22 = vadd.f32 %v97_v2, %v40_v9  ;;  %v26_v26 = vld [vmem:[%s220_s0 + $0x60] sm:$0xff]  ;;  %v65_v28 = vadd.f32 %v97_v2, %v42_v15  ;;  %v66_v29 = vadd.f32 %v97_v2, %v43_v16  ;;  %v45_v30 = vmul.f32 %v96_v1, %v22_v18  ;;  %v28_v32 = vld [vmem:[%s220_s0 + $0x70] sm:$0xff]  ;;  %v29_v33 = vld [vmem:[%s220_s0 + $0x78] sm:$0xff] }
   0x7   :  { %76 = vst [vmem:[%s223_s3] sm:$0xff] %v60_v13  ;;  %v64_v27 = vadd.f32 %v97_v2, %v41_v14  ;;  %77 = vst [vmem:[%s223_s3 + $0x8] sm:$0xff] %v61_v20  ;;  %v67_v34 = vadd.f32 %v97_v2, %v44_v23  ;;  %v46_v35 = vmul.f32 %v96_v1, %v23_v19 }
   0x8   :  { %78 = vst [vmem:[%s223_s3 + $0x10] sm:$0xff] %v62_v21  ;;  %79 = vst [vmem:[%s223_s3 + $0x18] sm:$0xff] %v63_v22  ;;  %v47_v36 = vmul.f32 %v96_v1, %v24_v24  ;;  %v48_v37 = vmul.f32 %v96_v1, %v25_v25  ;;  %v68_v38 = vadd.f32 %v97_v2, %v45_v30 }
   0x9   :  { %80 = vst [vmem:[%s223_s3 + $0x20] sm:$0xff] %v64_v27  ;;  %81 = vst [vmem:[%s223_s3 + $0x28] sm:$0xff] %v65_v28  ;;  %v49_v39 = vmul.f32 %v96_v1, %v26_v26  ;;  %v50_v40 = vmul.f32 %v96_v1, %v27_v31  ;;  %v51_v41 = vmul.f32 %v96_v1, %v28_v32 }
   0xa   :  { %82 = vst [vmem:[%s223_s3 + $0x30] sm:$0xff] %v66_v29  ;;  %83 = vst [vmem:[%s223_s3 + $0x38] sm:$0xff] %v67_v34  ;;  %v69_v42 = vadd.f32 %v97_v2, %v46_v35  ;;  %v70_v43 = vadd.f32 %v97_v2, %v47_v36  ;;  %v71_v44 = vadd.f32 %v97_v2, %v48_v37 }
   0xb   :  { %v52_v45 = vmul.f32 %v96_v1, %v29_v33  ;;  %84 = vst [vmem:[%s223_s3 + $0x40] sm:$0xff] %v68_v38  ;;  %v72_v46 = vadd.f32 %v97_v2, %v49_v39  ;;  %v73_v47 = vadd.f32 %v97_v2, %v50_v40  ;;  %v74_v48 = vadd.f32 %v97_v2, %v51_v41 }
   0xc   :  { %85 = vst [vmem:[%s223_s3 + $0x48] sm:$0xff] %v69_v42  ;;  %86 = vst [vmem:[%s223_s3 + $0x50] sm:$0xff] %v70_v43 }
   0xd   :  { %87 = vst [vmem:[%s223_s3 + $0x58] sm:$0xff] %v71_v44  ;;  %v75_v49 = vadd.f32 %v97_v2, %v52_v45  ;;  %88 = vst [vmem:[%s223_s3 + $0x60] sm:$0xff] %v72_v46 }
   0xe   :  { %89 = vst [vmem:[%s223_s3 + $0x68] sm:$0xff] %v73_v47  ;;  %90 = vst [vmem:[%s223_s3 + $0x70] sm:$0xff] %v74_v48 }
   0xf   :  { %91 = vst [vmem:[%s223_s3 + $0x78] sm:$0xff] %v75_v49 }

// kernel: res3d_forward.79
= control target key start
LH: loop header
LB: loop body
LE: loop exit
PB: predicated region body
PF: predicated region fallthrough
CT: control target
= control target key end

     0   :  { %s517_s1 = inlined_call_operand.vmem [shape: bf16[128,128], index: 1, kind: input, shape index: {}]   ;;  %s518_s0 = inlined_call_operand.vmem [shape: bf16[128,128], index: 0, kind: input, shape index: {}]   ;;  %s519_s2 = inlined_call_operand.vmem [shape: f32[128,128], index: 2, kind: output, shape index: {}]  }
   0x1   :  { %v390_v0 = vld [vmem:[%s517_s1] sm:$0xff]   ;;  %v391_v1 = vld [vmem:[%s517_s1 + $0x8] sm:$0xff]   ;;  %v392_v2 = vld [vmem:[%s517_s1 + $0x10] sm:$0xff]  }
   0x2   :  { %341 = vmatprep.subr.bf16.mxu0 %v390_v0  ;;  %373 = vmatprep.subr.bf16.mxu1 %v390_v0  ;;  %v393_v3 = vld [vmem:[%s517_s1 + $0x18] sm:$0xff]   ;;  %v398_v4 = vld [vmem:[%s518_s0] sm:$0xff]   ;;  %v395_v7 = vld [vmem:[%s517_s1 + $0x28] sm:$0xff]  }
   0x3   :  { %342 = vmatpush3.bf16.msra.mxu0 %v390_v0  ;;  %381 = vmatpush3.bf16.msra.mxu1 %v390_v0  ;;  %v399_v5 = vld [vmem:[%s518_s0 + $0x20] sm:$0xff]   ;;  %v396_v8 = vld [vmem:[%s517_s1 + $0x30] sm:$0xff]   ;;  %v397_v9 = vld [vmem:[%s517_s1 + $0x38] sm:$0xff]  }
   0x4   :  { %343 = vmatprep.subr.bf16.mxu0 %v391_v1  ;;  %374 = vmatprep.subr.bf16.mxu1 %v391_v1  ;;  %v394_v6 = vld [vmem:[%s517_s1 + $0x20] sm:$0xff]   ;;  %v400_v10 = vld [vmem:[%s518_s0 + $0x8] sm:$0xff]   ;;  %v402_v12 = vld [vmem:[%s518_s0 + $0x10] sm:$0xff]  }
   0x5   :  { %357 = vmatprep.mubr.bf16.mxu0 %v398_v4  ;;  %365 = vmatprep.mubr.bf16.mxu1 %v399_v5  ;;  %v401_v11 = vld [vmem:[%s518_s0 + $0x28] sm:$0xff]   ;;  %v403_v13 = vld [vmem:[%s518_s0 + $0x30] sm:$0xff]   ;;  %v404_v14 = vld [vmem:[%s518_s0 + $0x18] sm:$0xff]  }
   0x6   :  { %v405_v15 = vld [vmem:[%s518_s0 + $0x38] sm:$0xff]  }
   0x7   :  { %344 = vmatpush3.bf16.msra.mxu0 %v391_v1  ;;  %382 = vmatpush3.bf16.msra.mxu1 %v391_v1 }
   0x8   :  { %345 = vmatprep.subr.bf16.mxu0 %v392_v2  ;;  %375 = vmatprep.subr.bf16.mxu1 %v392_v2 }
   0xb   :  { %346 = vmatpush3.bf16.msra.mxu0 %v392_v2  ;;  %383 = vmatpush3.bf16.msra.mxu1 %v392_v2 }
   0xc   :  { %347 = vmatprep.subr.bf16.mxu0 %v393_v3  ;;  %376 = vmatprep.subr.bf16.mxu1 %v393_v3 }
   0xf   :  { %348 = vmatpush3.bf16.msra.mxu0 %v393_v3  ;;  %384 = vmatpush3.bf16.msra.mxu1 %v393_v3 }
  0x10   :  { %349 = vmatprep.subr.bf16.mxu0 %v394_v6  ;;  %377 = vmatprep.subr.bf16.mxu1 %v394_v6 }
  0x13   :  { %350 = vmatpush3.bf16.msra.mxu0 %v394_v6  ;;  %385 = vmatpush3.bf16.msra.mxu1 %v394_v6 }
  0x14   :  { %351 = vmatprep.subr.bf16.mxu0 %v395_v7  ;;  %378 = vmatprep.subr.bf16.mxu1 %v395_v7 }
  0x17   :  { %352 = vmatpush3.bf16.msra.mxu0 %v395_v7  ;;  %386 = vmatpush3.bf16.msra.mxu1 %v395_v7 }
  0x18   :  { %353 = vmatprep.subr.bf16.mxu0 %v396_v8  ;;  %379 = vmatprep.subr.bf16.mxu1 %v396_v8 }
  0x1b   :  { %354 = vmatpush3.bf16.msra.mxu0 %v396_v8  ;;  %387 = vmatpush3.bf16.msra.mxu1 %v396_v8 }
  0x1c   :  { %355 = vmatprep.subr.bf16.mxu0 %v397_v9  ;;  %380 = vmatprep.subr.bf16.mxu1 %v397_v9 }
  0x1f   :  { %356 = vmatpush3.bf16.msra.mxu0 %v397_v9  ;;  %388 = vmatpush3.bf16.msra.mxu1 %v397_v9 }
  0x22   :  { %358 = vmatmul.mubr.bf16.vlgmr.msra.gmra.mrb[0].mxu0 %v400_v10  ;;  %366 = vmatmul.mubr.bf16.vlgmr.msra.gmra.mrb[0].mxu1 %v401_v11 }
  0x23   :  { %361 = vmatprep.mubr.bf16.mxu0 %v402_v12  ;;  %369 = vmatprep.mubr.bf16.mxu1 %v403_v13 }
  0x2a   :  { %362 = vmatmul.mubr.bf16.gmra.mrb[4].mxu0 %v404_v14  ;;  %370 = vmatmul.mubr.bf16.gmra.mrb[4].mxu1 %v405_v15 }
  0xf5   :  { %v359_v16 = vpop.f32.mrb[0].mxu0  ;;  %v367_v17 = vpop.f32.mrb[0].mxu1 }
  0xf6   :  { %v210_v18 = vpop.f32.mrb[1].mxu0  ;;  %v242_v19 = vpop.f32.mrb[1].mxu1  ;;  %291 = vst [vmem:[%s519_s2 + $0x10] sm:$0xff] %v359_v16  ;;  %299 = vst [vmem:[%s519_s2 + $0x50] sm:$0xff] %v367_v17 }
  0xf7   :  { %v360_v20 = vpop.f32.mrb[2].mxu0  ;;  %v368_v21 = vpop.f32.mrb[2].mxu1  ;;  %289 = vst [vmem:[%s519_s2] sm:$0xff] %v210_v18  ;;  %297 = vst [vmem:[%s519_s2 + $0x40] sm:$0xff] %v242_v19 }
  0xf8   :  { %v213_v22 = vpop.f32.mrb[3].mxu0  ;;  %v245_v23 = vpop.f32.mrb[3].mxu1  ;;  %292 = vst [vmem:[%s519_s2 + $0x18] sm:$0xff] %v360_v20  ;;  %300 = vst [vmem:[%s519_s2 + $0x58] sm:$0xff] %v368_v21 }
  0xf9   :  { %290 = vst [vmem:[%s519_s2 + $0x8] sm:$0xff] %v213_v22  ;;  %298 = vst [vmem:[%s519_s2 + $0x48] sm:$0xff] %v245_v23 }
  0xfd   :  { %v363_v24 = vpop.f32.mrb[4].mxu0  ;;  %v371_v25 = vpop.f32.mrb[4].mxu1 }
  0xfe   :  { %v226_v26 = vpop.f32.mrb[5].mxu0  ;;  %v258_v27 = vpop.f32.mrb[5].mxu1  ;;  %295 = vst [vmem:[%s519_s2 + $0x30] sm:$0xff] %v363_v24  ;;  %303 = vst [vmem:[%s519_s2 + $0x70] sm:$0xff] %v371_v25 }
  0xff   :  { %v364_v28 = vpop.f32.mrb[6].mxu0  ;;  %v372_v29 = vpop.f32.mrb[6].mxu1  ;;  %293 = vst [vmem:[%s519_s2 + $0x20] sm:$0xff] %v226_v26  ;;  %301 = vst [vmem:[%s519_s2 + $0x60] sm:$0xff] %v258_v27 }
 0x100   :  { %v229_v30 = vpop.f32.mrb[7].mxu0  ;;  %v261_v31 = vpop.f32.mrb[7].mxu1  ;;  %296 = vst [vmem:[%s519_s2 + $0x38] sm:$0xff] %v364_v28  ;;  %304 = vst [vmem:[%s519_s2 + $0x78] sm:$0xff] %v372_v29 }
 0x101   :  { %294 = vst [vmem:[%s519_s2 + $0x28] sm:$0xff] %v229_v30  ;;  %302 = vst [vmem:[%s519_s2 + $0x68] sm:$0xff] %v261_v31 }

// kernel: res3d_forward.95
= control target key start
LH: loop header
LB: loop body
LE: loop exit
PB: predicated region body
PF: predicated region fallthrough
CT: control target
= control target key end

     0   :  { %v14_v0 = vlaneseq  ;;  %v224_v7 = vmov 0.0   ;;  %s369_s0 = inlined_call_operand.vmem [shape: f32[128,256], index: 0, kind: input, shape index: {}]   ;;  %s370_s1 = inlined_call_operand.vmem [shape: f32[1,256], index: 1, kind: output, shape index: {0}]   ;;  %s371_s2 = inlined_call_operand.vmem [shape: f32[1,256], index: 2, kind: output, shape index: {1}]  }
   0x1   :  { %v20_v1 = vld [vmem:[%s369_s0] sm:$0xff]  ;;  %v22_v2 = vld [vmem:[%s369_s0 + $0x10] sm:$0xff]  ;;  %v21_v4 = vld [vmem:[%s369_s0 + $0x8] sm:$0xff] }
   0x2   :  { %vm248_vm0 = vcmp.lt.s32.totalorder %v14_v0, 256  ;;  %v23_v5 = vld [vmem:[%s369_s0 + $0x18] sm:$0xff]  ;;  %v53_v6 = vadd.f32 %v22_v2, %v20_v1  ;;  %v24_v8 = vld [vmem:[%s369_s0 + $0x20] sm:$0xff]  ;;  %v25_v10 = vld [vmem:[%s369_s0 + $0x28] sm:$0xff]  ;;  %v120_v22 = vmul.f32 %v20_v1, %v20_v1  ;;  %v121_v25 = vmul.f32 %v21_v4, %v21_v4 }
   0x3   :  { %18 = vst.msk [vmem:[%s370_s1] sm:$0x3] %vm248_vm0, %v224_v7  ;;  %v74_v9 = vadd.f32 %v23_v5, %v21_v4  ;;  %19 = vst.msk [vmem:[%s371_s2] sm:$0x3] %vm248_vm0, %v224_v7  ;;  %v26_v12 = vld [vmem:[%s369_s0 + $0x30] sm:$0xff]  ;;  %v27_v14 = vld [vmem:[%s369_s0 + $0x38] sm:$0xff]  ;;  %v122_v26 = vmul.f32 %v22_v2, %v22_v2  ;;  %v123_v27 = vmul.f32 %v23_v5, %v23_v5 }
   0x4   :  { %v54_v11 = vadd.f32 %v53_v6, %v24_v8  ;;  %v28_v16 = vld [vmem:[%s369_s0 + $0x40] sm:$0xff]  ;;  %v29_v18 = vld [vmem:[%s369_s0 + $0x48] sm:$0xff]  ;;  %v30_v20 = vld [vmem:[%s369_s0 + $0x50] sm:$0xff]  ;;  %v124_v32 = vmul.f32 %v24_v8, %v24_v8  ;;  %v125_v33 = vmul.f32 %v25_v10, %v25_v10  ;;  %v126_v36 = vmul.f32 %v26_v12, %v26_v12 }
   0x5   :  { %v75_v13 = vadd.f32 %v74_v9, %v25_v10  ;;  %v31_v23 = vld [vmem:[%s369_s0 + $0x58] sm:$0xff]  ;;  %v32_v28 = vld [vmem:[%s369_s0 + $0x60] sm:$0xff]  ;;  %v33_v30 = vld [vmem:[%s369_s0 + $0x68] sm:$0xff]  ;;  %v127_v39 = vmul.f32 %v27_v14, %v27_v14  ;;  %v152_v40 = vadd.f32 %v122_v26, %v120_v22  ;;  %v173_v41 = vadd.f32 %v123_v27, %v121_v25 }
   0x6   :  { %v55_v15 = vadd.f32 %v54_v11, %v26_v12  ;;  %v34_v34 = vld [vmem:[%s369_s0 + $0x70] sm:$0xff]  ;;  %v35_v37 = vld [vmem:[%s369_s0 + $0x78] sm:$0xff]  ;;  %v36_v42 = vld [vmem:[%s369_s0 + $0x80] sm:$0xff]  ;;  %v128_v44 = vmul.f32 %v28_v16, %v28_v16  ;;  %v129_v47 = vmul.f32 %v29_v18, %v29_v18  ;;  %v130_v52 = vmul.f32 %v30_v20, %v30_v20 }
   0x7   :  { %v76_v17 = vadd.f32 %v75_v13, %v27_v14  ;;  %v37_v45 = vld [vmem:[%s369_s0 + $0x88] sm:$0xff]  ;;  %v153_v48 = vadd.f32 %v152_v40, %v124_v32  ;;  %v174_v49 = vadd.f32 %v173_v41, %v125_v33  ;;  %v38_v50 = vld [vmem:[%s369_s0 + $0x90] sm:$0xff]  ;;  %v39_v53 = vld [vmem:[%s369_s0 + $0x98] sm:$0xff]  ;;  %v131_v55 = vmul.f32 %v31_v23, %v31_v23 }
   0x8   :  { %v56_v19 = vadd.f32 %v55_v15, %v28_v16  ;;  %v40_v58 = vld [vmem:[%s369_s0 + $0xa0] sm:$0xff]  ;;  %v132_v60 = vmul.f32 %v32_v28, %v32_v28  ;;  %v41_v61 = vld [vmem:[%s369_s0 + $0xa8] sm:$0xff]  ;;  %v133_v63 = vmul.f32 %v33_v30, %v33_v30  ;;  %v42_v4 = vld [vmem:[%s369_s0 + $0xb0] sm:$0xff]  ;;  %v134_v6 = vmul.f32 %v34_v34, %v34_v34 }
   0x9   :  { %v77_v21 = vadd.f32 %v76_v17, %v29_v18  ;;  %v154_v56 = vadd.f32 %v153_v48, %v126_v36  ;;  %v175_v57 = vadd.f32 %v174_v49, %v127_v39  ;;  %v43_v7 = vld [vmem:[%s369_s0 + $0xb8] sm:$0xff]  ;;  %v135_v9 = vmul.f32 %v35_v37, %v35_v37  ;;  %v44_v12 = vld [vmem:[%s369_s0 + $0xc0] sm:$0xff]  ;;  %v45_v15 = vld [vmem:[%s369_s0 + $0xc8] sm:$0xff] }
   0xa   :  { %v57_v24 = vadd.f32 %v56_v19, %v30_v20  ;;  %v136_v14 = vmul.f32 %v36_v42, %v36_v42  ;;  %v137_v17 = vmul.f32 %v37_v45, %v37_v45  ;;  %v46_v20 = vld [vmem:[%s369_s0 + $0xd0] sm:$0xff]  ;;  %v138_v22 = vmul.f32 %v38_v50, %v38_v50  ;;  %v51_v39 = vld [vmem:[%s369_s0 + $0xf8] sm:$0xff] }
   0xb   :  { %v78_v29 = vadd.f32 %v77_v21, %v31_v23  ;;  %v155_v1 = vadd.f32 %v154_v56, %v128_v44  ;;  %v176_v2 = vadd.f32 %v175_v57, %v129_v47  ;;  %v47_v23 = vld [vmem:[%s369_s0 + $0xd8] sm:$0xff]  ;;  %v139_v25 = vmul.f32 %v39_v53, %v39_v53  ;;  %v50_v36 = vld [vmem:[%s369_s0 + $0xf0] sm:$0xff] }
   0xc   :  { %v58_v31 = vadd.f32 %v57_v24, %v32_v28  ;;  %v48_v28 = vld [vmem:[%s369_s0 + $0xe0] sm:$0xff]  ;;  %v141_v33 = vmul.f32 %v41_v61, %v41_v61  ;;  %v143_v41 = vmul.f32 %v43_v7, %v43_v7  ;;  %v145_v47 = vmul.f32 %v45_v15, %v45_v15 }
   0xd   :  { %v79_v35 = vadd.f32 %v78_v29, %v33_v30  ;;  %v156_v10 = vadd.f32 %v155_v1, %v130_v52  ;;  %v177_v11 = vadd.f32 %v176_v2, %v131_v55  ;;  %v140_v30 = vmul.f32 %v40_v58, %v40_v58 }
   0xe   :  { %v59_v38 = vadd.f32 %v58_v31, %v34_v34  ;;  %v49_v31 = vld [vmem:[%s369_s0 + $0xe8] sm:$0xff]  ;;  %v225_v57 = vmov 1966171168   ;;  %v150_v2 = vmul.f32 %v50_v36, %v50_v36 }
   0xf   :  { %v80_v43 = vadd.f32 %v79_v35, %v35_v37  ;;  %v157_v18 = vadd.f32 %v156_v10, %v132_v60  ;;  %v178_v19 = vadd.f32 %v177_v11, %v133_v63  ;;  %v102_v10 = vshrl.u32 %v14_v0, 7 }
  0x10   :  { %v60_v46 = vadd.f32 %v59_v38, %v36_v42  ;;  %v142_v38 = vmul.f32 %v42_v4, %v42_v4 }
  0x11   :  { %v81_v51 = vadd.f32 %v80_v43, %v37_v45  ;;  %v158_v26 = vadd.f32 %v157_v18, %v134_v6  ;;  %v179_v27 = vadd.f32 %v178_v19, %v135_v9  ;;  %v144_v45 = vmul.f32 %v44_v12, %v44_v12 }
  0x12   :  { %v61_v54 = vadd.f32 %v60_v46, %v38_v50 }
  0x13   :  { %v82_v59 = vadd.f32 %v81_v51, %v39_v53  ;;  %v159_v34 = vadd.f32 %v158_v26, %v136_v14  ;;  %v180_v35 = vadd.f32 %v179_v27, %v137_v17  ;;  %v146_v51 = vmul.f32 %v46_v20, %v46_v20  ;;  %v52_v26 = vld [vmem:[%s370_s1] sm:$0x3] }
  0x14   :  { %v62_v62 = vadd.f32 %v61_v54, %v40_v58  ;;  %v147_v53 = vmul.f32 %v47_v23, %v47_v23  ;;  %v99_v58 = vunpack.c.l.s4 %v225_v57 }
  0x15   :  { %v83_v5 = vadd.f32 %v82_v59, %v41_v61  ;;  %v160_v42 = vadd.f32 %v159_v34, %v138_v22  ;;  %v181_v43 = vadd.f32 %v180_v35, %v139_v25  ;;  %v148_v59 = vmul.f32 %v48_v28, %v48_v28 }
  0x16   :  { %v63_v8 = vadd.f32 %v62_v62, %v42_v4  ;;  %v149_v61 = vmul.f32 %v49_v31, %v49_v31  ;;  %v100_v9 = vunpack.c.0.s8 %v99_v58 }
  0x17   :  { %v84_v13 = vadd.f32 %v83_v5, %v43_v7  ;;  %v161_v48 = vadd.f32 %v160_v42, %v140_v30  ;;  %v182_v49 = vadd.f32 %v181_v43, %v141_v33  ;;  %v151_v5 = vmul.f32 %v51_v39, %v51_v39 }
  0x18   :  { %v64_v16 = vadd.f32 %v63_v8, %v44_v12  ;;  %v103_v19 = vsub.s32 %v100_v9, %v102_v10 }
  0x19   :  { %v85_v21 = vadd.f32 %v84_v13, %v45_v15  ;;  %v162_v54 = vadd.f32 %v161_v48, %v142_v38  ;;  %v183_v55 = vadd.f32 %v182_v49, %v143_v41  ;;  %v119_v38 = vld [vmem:[%s371_s2] sm:$0x3] }
  0x1a   :  { %v65_v24 = vadd.f32 %v64_v16, %v46_v20 }
  0x1b   :  { %v86_v29 = vadd.f32 %v85_v21, %v47_v23  ;;  %v163_v62 = vadd.f32 %v162_v54, %v144_v45  ;;  %v184_v63 = vadd.f32 %v183_v55, %v145_v47 }
  0x1c   :  { %v66_v32 = vadd.f32 %v65_v24, %v48_v28 }
  0x1d   :  { %v87_v37 = vadd.f32 %v86_v29, %v49_v31  ;;  %v164_v6 = vadd.f32 %v163_v62, %v146_v51  ;;  %v185_v7 = vadd.f32 %v184_v63, %v147_v53 }
  0x1e   :  { %v67_v40 = vadd.f32 %v66_v32, %v50_v36 }
  0x1f   :  { %v88_v44 = vadd.f32 %v87_v37, %v51_v39  ;;  %v165_v12 = vadd.f32 %v164_v6, %v148_v59  ;;  %v186_v13 = vadd.f32 %v185_v7, %v149_v61 }
  0x20   :  { %v68_v46 = vrot.slane %v67_v40, 4 }
  0x21   :  { %v89_v50 = vrot.slane %v88_v44, 4  ;;  %v166_v16 = vadd.f32 %v165_v12, %v150_v2  ;;  %v187_v17 = vadd.f32 %v186_v13, %v151_v5 }
  0x22   :  { %v69_v52 = vadd.f32 %v68_v46, %v67_v40 }
  0x23   :  { %v90_v56 = vadd.f32 %v89_v50, %v88_v44  ;;  %v167_v20 = vrot.slane %v166_v16, 4  ;;  %v188_v21 = vrot.slane %v187_v17, 4 }
  0x24   :  { %v70_v60 = vrot.slane %v69_v52, 2 }
  0x25   :  { %v91_v1 = vrot.slane %v90_v56, 2  ;;  %v168_v23 = vadd.f32 %v167_v20, %v166_v16  ;;  %v189_v24 = vadd.f32 %v188_v21, %v187_v17 }
  0x26   :  { %v71_v4 = vadd.f32 %v70_v60, %v69_v52 }
  0x27   :  { %v92_v8 = vadd.f32 %v91_v1, %v90_v56  ;;  %v169_v0 = vrot.slane %v168_v23, 2  ;;  %v190_v27 = vrot.slane %v189_v24, 2 }
  0x28   :  { %v72_v11 = vrot.slane %v71_v4, 1 }
  0x29   :  { %v93_v14 = vrot.slane %v92_v8, 1  ;;  %v170_v29 = vadd.f32 %v169_v0, %v168_v23  ;;  %v191_v30 = vadd.f32 %v190_v27, %v189_v24 }
  0x2a   :  { %v73_v15 = vadd.f32 %v72_v11, %v71_v4 }
  0x2b   :  { %v94_v18 = vadd.f32 %v93_v14, %v92_v8  ;;  %v171_v32 = vrot.slane %v170_v29, 1  ;;  %v192_v33 = vrot.slane %v191_v30, 1 }
  0x2d   :  { %v97_v22 = vcombine.low %v73_v15, %v94_v18  ;;  %v172_v34 = vadd.f32 %v171_v32, %v170_v29  ;;  %v193_v35 = vadd.f32 %v192_v33, %v191_v30 }
  0x2f   :  { %v104_v25 = vrot.slane %v97_v22, %v103_v19  ;;  %v196_v36 = vcombine.low %v172_v34, %v193_v35 }
  0x31   :  { %v111_v28 = vrot.slane %v104_v25, %v103_v19  ;;  %v203_v37 = vrot.slane %v196_v36, %v103_v19 }
  0x33   :  { %v113_v31 = vadd.f32 %v111_v28, %v52_v26  ;;  %v210_v39 = vrot.slane %v203_v37, %v103_v19 }
  0x35   :  { %118 = vst.msk [vmem:[%s370_s1] sm:$0x3] %vm248_vm0, %v113_v31  ;;  %v212_v40 = vadd.f32 %v210_v39, %v119_v38 }
  0x37   :  { %213 = vst.msk [vmem:[%s371_s2] sm:$0x3] %vm248_vm0, %v212_v40 }

// kernel: res3d_forward.94
= control target key start
LH: loop header
LB: loop body
LE: loop exit
PB: predicated region body
PF: predicated region fallthrough
CT: control target
= control target key end

     0   :  { %v495_v1 = vmov 0   ;;  %s687_s1 = inlined_call_operand.vmem [shape: bf16[128,256], index: 1, kind: input, shape index: {}]   ;;  %s688_s0 = inlined_call_operand.vmem [shape: bf16[128,128], index: 0, kind: input, shape index: {}]   ;;  %s689_s2 = inlined_call_operand.vmem [shape: f32[128,256], index: 2, kind: output, shape index: {}]  }
   0x1   :  { %v463_v0 = vld [vmem:[%s687_s1 + $0x4] ss:$8 sps:$4 sm:$0xff]   ;;  %272 = vmatprep.mubr.bf16.mxu0 %v495_v1  ;;  %312 = vmatprep.mubr.bf16.mxu1 %v495_v1  ;;  %v465_v2 = vld [vmem:[%s687_s1] ss:$8 sps:$4 sm:$0xff]   ;;  %v466_v3 = vld [vmem:[%s687_s1 + $0x14] ss:$8 sps:$4 sm:$0xff]  }
   0x2   :  { %240 = vmatprep.subr.bf16.mxu0 %v463_v0  ;;  %445 = vmatprep.subr.bf16.mxu1 %v463_v0  ;;  %v468_v4 = vld [vmem:[%s687_s1 + $0x10] ss:$8 sps:$4 sm:$0xff]   ;;  %v469_v5 = vld [vmem:[%s687_s1 + $0x24] ss:$8 sps:$4 sm:$0xff]   ;;  %v471_v6 = vld [vmem:[%s687_s1 + $0x20] ss:$8 sps:$4 sm:$0xff]  }
   0x3   :  { %241 = vmatpush1.bf16.msra.mxu0 %v465_v2  ;;  %453 = vmatpush1.bf16.msra.mxu1 %v465_v2  ;;  %v472_v7 = vld [vmem:[%s687_s1 + $0x34] ss:$8 sps:$4 sm:$0xff]   ;;  %v474_v8 = vld [vmem:[%s687_s1 + $0x30] ss:$8 sps:$4 sm:$0xff]   ;;  %v475_v9 = vld [vmem:[%s687_s1 + $0x44] ss:$8 sps:$4 sm:$0xff]  }
   0x4   :  { %242 = vmatprep.subr.bf16.mxu0 %v466_v3  ;;  %446 = vmatprep.subr.bf16.mxu1 %v466_v3  ;;  %v477_v10 = vld [vmem:[%s687_s1 + $0x40] ss:$8 sps:$4 sm:$0xff]   ;;  %v478_v11 = vld [vmem:[%s687_s1 + $0x54] ss:$8 sps:$4 sm:$0xff]   ;;  %v480_v12 = vld [vmem:[%s687_s1 + $0x50] ss:$8 sps:$4 sm:$0xff]  }
   0x5   :  { %v481_v13 = vld [vmem:[%s687_s1 + $0x64] ss:$8 sps:$4 sm:$0xff]   ;;  %v483_v14 = vld [vmem:[%s687_s1 + $0x60] ss:$8 sps:$4 sm:$0xff]   ;;  %v484_v15 = vld [vmem:[%s687_s1 + $0x74] ss:$8 sps:$4 sm:$0xff]  }
   0x6   :  { %v486_v16 = vld [vmem:[%s687_s1 + $0x70] ss:$8 sps:$4 sm:$0xff]   ;;  %v487_v17 = vld [vmem:[%s688_s0] sm:$0xff]   ;;  %v489_v19 = vld [vmem:[%s688_s0 + $0x8] sm:$0xff]  }
   0x7   :  { %243 = vmatpush1.bf16.msra.mxu0 %v468_v4  ;;  %454 = vmatpush1.bf16.msra.mxu1 %v468_v4  ;;  %v488_v18 = vld [vmem:[%s688_s0 + $0x20] sm:$0xff]   ;;  %v490_v20 = vld [vmem:[%s688_s0 + $0x28] sm:$0xff]   ;;  %v491_v21 = vld [vmem:[%s688_s0 + $0x10] sm:$0xff]  }
   0x8   :  { %244 = vmatprep.subr.bf16.mxu0 %v469_v5  ;;  %447 = vmatprep.subr.bf16.mxu1 %v469_v5  ;;  %v492_v22 = vld [vmem:[%s688_s0 + $0x30] sm:$0xff]   ;;  %v493_v23 = vld [vmem:[%s688_s0 + $0x18] sm:$0xff]  }
   0x9   :  { %v494_v24 = vld [vmem:[%s688_s0 + $0x38] sm:$0xff]  }
   0xb   :  { %245 = vmatpush1.bf16.msra.mxu0 %v471_v6  ;;  %455 = vmatpush1.bf16.msra.mxu1 %v471_v6 }
   0xc   :  { %246 = vmatprep.subr.bf16.mxu0 %v472_v7  ;;  %448 = vmatprep.subr.bf16.mxu1 %v472_v7 }
   0xf   :  { %247 = vmatpush1.bf16.msra.mxu0 %v474_v8  ;;  %456 = vmatpush1.bf16.msra.mxu1 %v474_v8 }
  0x10   :  { %248 = vmatprep.subr.bf16.mxu0 %v475_v9  ;;  %449 = vmatprep.subr.bf16.mxu1 %v475_v9 }
  0x13   :  { %249 = vmatpush1.bf16.msra.mxu0 %v477_v10  ;;  %457 = vmatpush1.bf16.msra.mxu1 %v477_v10 }
  0x14   :  { %250 = vmatprep.subr.bf16.mxu0 %v478_v11  ;;  %450 = vmatprep.subr.bf16.mxu1 %v478_v11 }
  0x17   :  { %251 = vmatpush1.bf16.msra.mxu0 %v480_v12  ;;  %458 = vmatpush1.bf16.msra.mxu1 %v480_v12 }
  0x18   :  { %252 = vmatprep.subr.bf16.mxu0 %v481_v13  ;;  %451 = vmatprep.subr.bf16.mxu1 %v481_v13 }
  0x1b   :  { %253 = vmatpush1.bf16.msra.mxu0 %v483_v14  ;;  %459 = vmatpush1.bf16.msra.mxu1 %v483_v14 }
  0x1c   :  { %254 = vmatprep.subr.bf16.mxu0 %v484_v15  ;;  %452 = vmatprep.subr.bf16.mxu1 %v484_v15 }
  0x1f   :  { %255 = vmatpush1.bf16.msra.mxu0 %v486_v16  ;;  %460 = vmatpush1.bf16.msra.mxu1 %v486_v16 }
  0x22   :  { %273 = vmatmul.mubr.bf16.vlgmr.msra.gmra.mrb[0].mxu0 %v487_v17  ;;  %313 = vmatmul.mubr.bf16.vlgmr.msra.gmra.mrb[0].mxu1 %v488_v18 }
  0x23   :  { %282 = vmatprep.mubr.bf16.mxu0 %v495_v1  ;;  %322 = vmatprep.mubr.bf16.mxu1 %v495_v1 }
  0x2a   :  { %283 = vmatmul.mubr.bf16.gmra.mrb[4].mxu0 %v489_v19  ;;  %323 = vmatmul.mubr.bf16.gmra.mrb[4].mxu1 %v490_v20 }
  0x2b   :  { %292 = vmatprep.mubr.bf16.mxu0 %v495_v1  ;;  %332 = vmatprep.mubr.bf16.mxu1 %v495_v1 }
  0x32   :  { %293 = vmatmul.mubr.bf16.gmra.mrb[8].mxu0 %v491_v21  ;;  %333 = vmatmul.mubr.bf16.gmra.mrb[8].mxu1 %v492_v22 }
  0x33   :  { %302 = vmatprep.mubr.bf16.mxu0 %v495_v1  ;;  %342 = vmatprep.mubr.bf16.mxu1 %v495_v1 }
  0x3a   :  { %303 = vmatmul.mubr.bf16.gmra.mrb[12].mxu0 %v493_v23  ;;  %343 = vmatmul.mubr.bf16.gmra.mrb[12].mxu1 %v494_v24 }
  0xf5   :  { %v274_v25 = vpop.f32.mrb[0].mxu0  ;;  %v314_v26 = vpop.f32.mrb[0].mxu1 }
  0xf6   :  { %v276_v27 = vpop.f32.mrb[1].mxu0  ;;  %v316_v28 = vpop.f32.mrb[1].mxu1  ;;  %385 = vst [vmem:[%s689_s2] sm:$0xff] %v274_v25  ;;  %401 = vst [vmem:[%s689_s2 + $0x80] sm:$0xff] %v314_v26 }
  0xf7   :  { %v278_v29 = vpop.f32.mrb[2].mxu0  ;;  %v318_v30 = vpop.f32.mrb[2].mxu1  ;;  %386 = vst [vmem:[%s689_s2 + $0x8] sm:$0xff] %v276_v27  ;;  %402 = vst [vmem:[%s689_s2 + $0x88] sm:$0xff] %v316_v28 }
  0xf8   :  { %v280_v31 = vpop.f32.mrb[3].mxu0  ;;  %v320_v32 = vpop.f32.mrb[3].mxu1  ;;  %387 = vst [vmem:[%s689_s2 + $0x10] sm:$0xff] %v278_v29  ;;  %403 = vst [vmem:[%s689_s2 + $0x90] sm:$0xff] %v318_v30 }
  0xf9   :  { %388 = vst [vmem:[%s689_s2 + $0x18] sm:$0xff] %v280_v31  ;;  %404 = vst [vmem:[%s689_s2 + $0x98] sm:$0xff] %v320_v32 }
  0xfd   :  { %v284_v33 = vpop.f32.mrb[4].mxu0  ;;  %v324_v34 = vpop.f32.mrb[4].mxu1 }
  0xfe   :  { %v286_v35 = vpop.f32.mrb[5].mxu0  ;;  %v326_v36 = vpop.f32.mrb[5].mxu1  ;;  %389 = vst [vmem:[%s689_s2 + $0x20] sm:$0xff] %v284_v33  ;;  %405 = vst [vmem:[%s689_s2 + $0xa0] sm:$0xff] %v324_v34 }
  0xff   :  { %v288_v37 = vpop.f32.mrb[6].mxu0  ;;  %v328_v38 = vpop.f32.mrb[6].mxu1  ;;  %390 = vst [vmem:[%s689_s2 + $0x28] sm:$0xff] %v286_v35  ;;  %406 = vst [vmem:[%s689_s2 + $0xa8] sm:$0xff] %v326_v36 }
 0x100   :  { %v290_v39 = vpop.f32.mrb[7].mxu0  ;;  %v330_v40 = vpop.f32.mrb[7].mxu1  ;;  %391 = vst [vmem:[%s689_s2 + $0x30] sm:$0xff] %v288_v37  ;;  %407 = vst [vmem:[%s689_s2 + $0xb0] sm:$0xff] %v328_v38 }
 0x101   :  { %392 = vst [vmem:[%s689_s2 + $0x38] sm:$0xff] %v290_v39  ;;  %408 = vst [vmem:[%s689_s2 + $0xb8] sm:$0xff] %v330_v40 }
 0x105   :  { %v294_v41 = vpop.f32.mrb[8].mxu0  ;;  %v334_v42 = vpop.f32.mrb[8].mxu1 }
 0x106   :  { %v296_v43 = vpop.f32.mrb[9].mxu0  ;;  %v336_v44 = vpop.f32.mrb[9].mxu1  ;;  %393 = vst [vmem:[%s689_s2 + $0x40] sm:$0xff] %v294_v41  ;;  %409 = vst [vmem:[%s689_s2 + $0xc0] sm:$0xff] %v334_v42 }
 0x107   :  { %v298_v45 = vpop.f32.mrb[10].mxu0  ;;  %v338_v46 = vpop.f32.mrb[10].mxu1  ;;  %394 = vst [vmem:[%s689_s2 + $0x48] sm:$0xff] %v296_v43  ;;  %410 = vst [vmem:[%s689_s2 + $0xc8] sm:$0xff] %v336_v44 }
 0x108   :  { %v300_v47 = vpop.f32.mrb[11].mxu0  ;;  %v340_v48 = vpop.f32.mrb[11].mxu1  ;;  %395 = vst [vmem:[%s689_s2 + $0x50] sm:$0xff] %v298_v45  ;;  %411 = vst [vmem:[%s689_s2 + $0xd0] sm:$0xff] %v338_v46 }
 0x109   :  { %396 = vst [vmem:[%s689_s2 + $0x58] sm:$0xff] %v300_v47  ;;  %412 = vst [vmem:[%s689_s2 + $0xd8] sm:$0xff] %v340_v48 }
 0x10d   :  { %v304_v49 = vpop.f32.mrb[12].mxu0  ;;  %v344_v50 = vpop.f32.mrb[12].mxu1 }
 0x10e   :  { %v306_v51 = vpop.f32.mrb[13].mxu0  ;;  %v346_v52 = vpop.f32.mrb[13].mxu1  ;;  %397 = vst [vmem:[%s689_s2 + $0x60] sm:$0xff] %v304_v49  ;;  %413 = vst [vmem:[%s689_s2 + $0xe0] sm:$0xff] %v344_v50 }
 0x10f   :  { %v308_v53 = vpop.f32.mrb[14].mxu0  ;;  %v348_v54 = vpop.f32.mrb[14].mxu1  ;;  %398 = vst [vmem:[%s689_s2 + $0x68] sm:$0xff] %v306_v51  ;;  %414 = vst [vmem:[%s689_s2 + $0xe8] sm:$0xff] %v346_v52 }
 0x110   :  { %v310_v55 = vpop.f32.mrb[15].mxu0  ;;  %v350_v56 = vpop.f32.mrb[15].mxu1  ;;  %399 = vst [vmem:[%s689_s2 + $0x70] sm:$0xff] %v308_v53  ;;  %415 = vst [vmem:[%s689_s2 + $0xf0] sm:$0xff] %v348_v54 }
 0x111   :  { %400 = vst [vmem:[%s689_s2 + $0x78] sm:$0xff] %v310_v55  ;;  %416 = vst [vmem:[%s689_s2 + $0xf8] sm:$0xff] %v350_v56 }

// kernel: res3d_forward.78
= control target key start
LH: loop header
LB: loop body
LE: loop exit
PB: predicated region body
PF: predicated region fallthrough
CT: control target
= control target key end

     0   :  { %s1380_s9 = smov 0   ;;  %s1382_s10 = smov 0   ;;  %s1710_s0 = inlined_call_operand.vmem [shape: bf16[128,3456], index: 0, kind: input, shape index: {}]   ;;  %s1711_s1 = inlined_call_operand.vmem [shape: bf16[3456,128], index: 1, kind: input, shape index: {}]   ;;  %s1712_s2 = inlined_call_operand.vmem [shape: f32[128,128], index: 2, kind: output, shape index: {}]  }
   0x1   :  { %s1384_s11 = smov 0   ;;  %s1386_s12 = smov 0  }
   0x2   :  { %s1388_s13 = smov 0  }
   0x3 LB: > { %s24_s14 = sadd.s32 1, %s1358_s12  ;;  %p47_p1 = scmp.ne.s32.totalorder %s1350_s10, %s1346_s9  ;;  %s1362_s13 = sphi %s1388_s13, %s12_s13   ;;  %s1358_s12 = sphi %s1386_s12, %s1716_s12   ;;  %s1354_s11 = sphi %s1384_s11, %s1715_s11   ;;  %s1350_s10 = sphi %s1382_s10, %s1714_s10   ;;  %s1346_s9 = sphi %s1380_s9, %s1713_s9  }
   0x4   : > { %p25_p0 = scmp.ge.s32.totalorder %s24_s14, 9  ;;  %p48_p2 = scmp.eq.s32.totalorder %s1362_s13, 0 }
   0x5   : > { %s40_s16 = sadd.s32 1, %s1350_s10  ;;  %p1023_p5 = scmp.ge.s32.totalorder %s1362_s13, 9 }
   0x6   : > { %s1718_s14 = smov (%p25_p0, %s24_s14), 0  ;;  %p49_p3 = por %p48_p2, %p47_p1 }
   0x7   : > { %s36_s15 = ssub.s32 %s1358_s12, %s1718_s14  ;;  %129 = sbr.rel (%p1023_p5) target bundleno = 37 (0x25), region = 16 }
   0x8   : > { %p38_p4 = scmp.eq.s32.totalorder %s36_s15, 0 }
   0xa   : > { %s1415_s17 = scalar_select %p38_p4, %s1350_s10, %s40_s16  }
   0xe   : > { %132 = sbr.rel (!%p49_p3) target bundleno = 37 (0x25), region = 20  ;;  %s134_s18 = sand.u32 (%p49_p3), 1, %s1350_s10  }
   0xf   : > { %s1112_s19 = smul.u32 (%p49_p3), 12, %s1358_s12 }
  0x10   : > { %s1225_s20 = smul.u32 (%p49_p3), 192, %s134_s18 }
  0x11   : > { %s1423_s23 = scalar_lea.vmem (%p49_p3), %s1710_s0, %s1112_s19 }
  0x12   : > { %v157_v0 = vld [vmem:[%s1423_s23] sm:$0xff] (%p49_p3)  ;;  %v159_v1 = vld [vmem:[%s1423_s23 + $0x6c] sm:$0xff] (%p49_p3)  ;;  %v161_v2 = vld [vmem:[%s1423_s23 + $0xd8] sm:$0xff] (%p49_p3)  ;;  %s1428_s24 = scalar_lea.vmem (%p49_p3), [#allocation2], %s1225_s20 }
  0x13   : > { %158 = vst [vmem:[%s1428_s24] sm:$0xff] (%p49_p3), %v157_v0  ;;  %160 = vst [vmem:[%s1428_s24 + $0xc] sm:$0xff] (%p49_p3), %v159_v1  ;;  %v163_v3 = vld [vmem:[%s1423_s23 + $0x144] sm:$0xff] (%p49_p3)  ;;  %v165_v4 = vld [vmem:[%s1423_s23 + $0x1b0] sm:$0xff] (%p49_p3) }
  0x14   : > { %162 = vst [vmem:[%s1428_s24 + $0x18] sm:$0xff] (%p49_p3), %v161_v2  ;;  %v167_v5 = vld [vmem:[%s1423_s23 + $0x21c] sm:$0xff] (%p49_p3)  ;;  %164 = vst [vmem:[%s1428_s24 + $0x24] sm:$0xff] (%p49_p3), %v163_v3  ;;  %v169_v6 = vld [vmem:[%s1423_s23 + $0x288] sm:$0xff] (%p49_p3) }
  0x15   : > { %166 = vst [vmem:[%s1428_s24 + $0x30] sm:$0xff] %v165_v4  ;;  %168 = vst [vmem:[%s1428_s24 + $0x3c] sm:$0xff] %v167_v5  ;;  %v171_v7 = vld [vmem:[%s1423_s23 + $0x2f4] sm:$0xff]  ;;  %v173_v8 = vld [vmem:[%s1423_s23 + $0x360] sm:$0xff] }
  0x16   : > { %170 = vst [vmem:[%s1428_s24 + $0x48] sm:$0xff] %v169_v6  ;;  %172 = vst [vmem:[%s1428_s24 + $0x54] sm:$0xff] %v171_v7  ;;  %v175_v9 = vld [vmem:[%s1423_s23 + $0x3cc] sm:$0xff]  ;;  %v177_v10 = vld [vmem:[%s1423_s23 + $0x438] sm:$0xff] }
  0x17   : > { %174 = vst [vmem:[%s1428_s24 + $0x60] sm:$0xff] %v173_v8  ;;  %v179_v11 = vld [vmem:[%s1423_s23 + $0x4a4] sm:$0xff]  ;;  %176 = vst [vmem:[%s1428_s24 + $0x6c] sm:$0xff] %v175_v9  ;;  %v181_v12 = vld [vmem:[%s1423_s23 + $0x510] sm:$0xff] }
  0x18   : > { %178 = vst [vmem:[%s1428_s24 + $0x78] sm:$0xff] %v177_v10  ;;  %180 = vst [vmem:[%s1428_s24 + $0x84] sm:$0xff] %v179_v11  ;;  %v183_v13 = vld [vmem:[%s1423_s23 + $0x57c] sm:$0xff]  ;;  %v185_v14 = vld [vmem:[%s1423_s23 + $0x5e8] sm:$0xff] }
  0x19   : > { %182 = vst [vmem:[%s1428_s24 + $0x90] sm:$0xff] %v181_v12  ;;  %184 = vst [vmem:[%s1428_s24 + $0x9c] sm:$0xff] %v183_v13  ;;  %v187_v15 = vld [vmem:[%s1423_s23 + $0x654] sm:$0xff]  ;;  %v1025_v16 = vld [vmem:[%s1423_s23 + $0x8] sm:$0xf] }
  0x1a   : > { %186 = vst [vmem:[%s1428_s24 + $0xa8] sm:$0xff] %v185_v14  ;;  %v1027_v17 = vld [vmem:[%s1423_s23 + $0x74] sm:$0xf]  ;;  %188 = vst [vmem:[%s1428_s24 + $0xb4] sm:$0xff] %v187_v15  ;;  %v1029_v18 = vld [vmem:[%s1423_s23 + $0xe0] sm:$0xf] }
  0x1b   : > { %1026 = vst [vmem:[%s1428_s24 + $0x8] sm:$0xf] %v1025_v16  ;;  %1028 = vst [vmem:[%s1428_s24 + $0x14] sm:$0xf] %v1027_v17  ;;  %v1031_v19 = vld [vmem:[%s1423_s23 + $0x14c] sm:$0xf] }
  0x1c   : > { %v1033_v20 = vld [vmem:[%s1423_s23 + $0x1b8] sm:$0xf]  ;;  %1030 = vst [vmem:[%s1428_s24 + $0x20] sm:$0xf] %v1029_v18  ;;  %1032 = vst [vmem:[%s1428_s24 + $0x2c] sm:$0xf] %v1031_v19 }
  0x1d   : > { %1034 = vst [vmem:[%s1428_s24 + $0x38] sm:$0xf] %v1033_v20  ;;  %v1035_v21 = vld [vmem:[%s1423_s23 + $0x224] sm:$0xf]  ;;  %v1037_v22 = vld [vmem:[%s1423_s23 + $0x290] sm:$0xf] }
  0x1e   : > { %v1039_v23 = vld [vmem:[%s1423_s23 + $0x2fc] sm:$0xf]  ;;  %1036 = vst [vmem:[%s1428_s24 + $0x44] sm:$0xf] %v1035_v21  ;;  %1038 = vst [vmem:[%s1428_s24 + $0x50] sm:$0xf] %v1037_v22 }
  0x1f   : > { %1040 = vst [vmem:[%s1428_s24 + $0x5c] sm:$0xf] %v1039_v23  ;;  %v1041_v24 = vld [vmem:[%s1423_s23 + $0x368] sm:$0xf]  ;;  %v1043_v25 = vld [vmem:[%s1423_s23 + $0x3d4] sm:$0xf] }
  0x20   : > { %v1045_v26 = vld [vmem:[%s1423_s23 + $0x440] sm:$0xf]  ;;  %1042 = vst [vmem:[%s1428_s24 + $0x68] sm:$0xf] %v1041_v24  ;;  %1044 = vst [vmem:[%s1428_s24 + $0x74] sm:$0xf] %v1043_v25 }
  0x21   : > { %1046 = vst [vmem:[%s1428_s24 + $0x80] sm:$0xf] %v1045_v26  ;;  %v1047_v27 = vld [vmem:[%s1423_s23 + $0x4ac] sm:$0xf]  ;;  %v1049_v28 = vld [vmem:[%s1423_s23 + $0x518] sm:$0xf] }
  0x22   : > { %v1051_v29 = vld [vmem:[%s1423_s23 + $0x584] sm:$0xf]  ;;  %1048 = vst [vmem:[%s1428_s24 + $0x8c] sm:$0xf] %v1047_v27  ;;  %1050 = vst [vmem:[%s1428_s24 + $0x98] sm:$0xf] %v1049_v28 }
  0x23   : > { %1052 = vst [vmem:[%s1428_s24 + $0xa4] sm:$0xf] %v1051_v29  ;;  %v1053_v30 = vld [vmem:[%s1423_s23 + $0x5f0] sm:$0xf]  ;;  %v1055_v31 = vld [vmem:[%s1423_s23 + $0x65c] sm:$0xf] }
  0x24   : > { %1054 = vst [vmem:[%s1428_s24 + $0xb0] sm:$0xf] %v1053_v30  ;;  %1056 = vst [vmem:[%s1428_s24 + $0xbc] sm:$0xf] %v1055_v31 }
  0x25 PF: > { %p1057_p6 = scmp.ge.s32.totalorder %s1362_s13, 1  ;;  %p244_p7 = scmp.lt.s32.totalorder %s1362_s13, 10 }
  0x27   : > { %p245_p8 = pnand %p1057_p6, %p244_p7 }
  0x28   : > { %s251_s25 = sand.u32 (!%p245_p8), 1, %s1346_s9   ;;  %s285_s26 = smul.u32 (!%p245_p8), 48, %s1354_s11 }
  0x29   : > { %248 = sbr.rel (%p245_p8) target bundleno = 369 (0x171), region = 50  ;;  %p1059_p10 = scmp.ne.s32.totalorder (!%p245_p8), %s1354_s11, 0 }
  0x2a   : > { %s1226_s27 = smul.u32 (!%p245_p8), 192, %s251_s25  ;;  %p286_p9 = scmp.lt.s32.totalorder (!%p245_p8), %s285_s26, 431 }
  0x2c   : > { %s1500_s4 = scalar_lea.vmem (!%p245_p8), [#allocation2], %s1226_s27 }
  0x30   : > { %s1720_s26 = smov (!%p286_p9, %s285_s26), 431  ;;  %307 = sbr.rel (%p1059_p10) target bundleno = 58 (0x3a), region = 58 }
  0x31   : > { %s1058_s28 = sshll.u32 %s1720_s26, 2  ;;  %v1364_v32 = vmov (!%p1059_p10), 0.0  }
  0x32   : > { %s1498_s3 = scalar_lea.vmem %s1711_s1, %s1058_s28  ;;  %308 = vst [vmem:[%s1712_s2] sm:$0xff] (!%p1059_p10), %v1364_v32  ;;  %309 = vst [vmem:[%s1712_s2 + $0x8] sm:$0xff] (!%p1059_p10), %v1364_v32 }
  0x33   : > { %310 = vst [vmem:[%s1712_s2 + $0x10] sm:$0xff] (!%p1059_p10), %v1364_v32  ;;  %311 = vst [vmem:[%s1712_s2 + $0x18] sm:$0xff] (!%p1059_p10), %v1364_v32 }
  0x34   : > { %312 = vst [vmem:[%s1712_s2 + $0x20] sm:$0xff] (!%p1059_p10), %v1364_v32  ;;  %313 = vst [vmem:[%s1712_s2 + $0x28] sm:$0xff] (!%p1059_p10), %v1364_v32 }
  0x35   : > { %314 = vst [vmem:[%s1712_s2 + $0x30] sm:$0xff] (!%p1059_p10), %v1364_v32  ;;  %315 = vst [vmem:[%s1712_s2 + $0x38] sm:$0xff] (!%p1059_p10), %v1364_v32 }
  0x36   : > { %316 = vst [vmem:[%s1712_s2 + $0x40] sm:$0xff] (!%p1059_p10), %v1364_v32  ;;  %317 = vst [vmem:[%s1712_s2 + $0x48] sm:$0xff] (!%p1059_p10), %v1364_v32 }
  0x37   : > { %318 = vst [vmem:[%s1712_s2 + $0x50] sm:$0xff] %v1364_v32  ;;  %319 = vst [vmem:[%s1712_s2 + $0x58] sm:$0xff] %v1364_v32 }
  0x38   : > { %320 = vst [vmem:[%s1712_s2 + $0x60] sm:$0xff] %v1364_v32  ;;  %321 = vst [vmem:[%s1712_s2 + $0x68] sm:$0xff] %v1364_v32 }
  0x39   : > { %322 = vst [vmem:[%s1712_s2 + $0x70] sm:$0xff] %v1364_v32  ;;  %323 = vst [vmem:[%s1712_s2 + $0x78] sm:$0xff] %v1364_v32 }
  0x3a PF: > { %v1268_v33 = vld [vmem:[%s1498_s3 + $0x40] sm:$0xff]   ;;  %v1271_v36 = vld [vmem:[%s1498_s3 + $0x48] sm:$0xff]   ;;  %v1274_v39 = vld [vmem:[%s1498_s3 + $0x50] sm:$0xff]  }
  0x3b   : > { %v1269_v34 = vld [vmem:[%s1498_s3] sm:$0xff]   ;;  %1113 = vmatprep.subr.bf16.mxu0 %v1268_v33  ;;  %v1272_v37 = vld [vmem:[%s1498_s3 + $0x8] sm:$0xff]   ;;  %v1275_v40 = vld [vmem:[%s1498_s3 + $0x10] sm:$0xff]  }
  0x3c   : > { %v1270_v35 = vld [vmem:[%s1498_s3 + $0x80] sm:$0xff]   ;;  %1114 = vmatpush3.bf16.msra.mxu0 %v1269_v34  ;;  %v1273_v38 = vld [vmem:[%s1498_s3 + $0x88] sm:$0xff]   ;;  %v1276_v41 = vld [vmem:[%s1498_s3 + $0x90] sm:$0xff]  }
  0x3d   : > { %1193 = vmatprep.subr.bf16.mxu1 %v1270_v35  ;;  %1115 = vmatprep.subr.bf16.mxu0 %v1271_v36  ;;  %v1277_v42 = vld [vmem:[%s1498_s3 + $0x58] sm:$0xff]   ;;  %v1280_v45 = vld [vmem:[%s1498_s3 + $0x60] sm:$0xff]   ;;  %v1283_v48 = vld [vmem:[%s1498_s3 + $0x68] sm:$0xff]  }
  0x3e   : > { %1194 = vmatpush3.bf16.msra.mxu1 %v1270_v35  ;;  %v1278_v43 = vld [vmem:[%s1498_s3 + $0x18] sm:$0xff]   ;;  %v1282_v46 = vld [vmem:[%s1498_s3 + $0xa0] sm:$0xff]   ;;  %v1285_v49 = vld [vmem:[%s1498_s3 + $0xa8] sm:$0xff]  }
  0x3f   : > { %1195 = vmatprep.subr.bf16.mxu1 %v1273_v38  ;;  %v1279_v44 = vld [vmem:[%s1498_s3 + $0x98] sm:$0xff]   ;;  %v1281_v47 = vld [vmem:[%s1498_s3 + $0x20] sm:$0xff]   ;;  %v1284_v50 = vld [vmem:[%s1498_s3 + $0x28] sm:$0xff]  }
  0x40   : > { %1116 = vmatpush3.bf16.msra.mxu0 %v1272_v37  ;;  %v1286_v51 = vld [vmem:[%s1498_s3 + $0x70] sm:$0xff]   ;;  %v1289_v54 = vld [vmem:[%s1498_s3 + $0x78] sm:$0xff]   ;;  %v1292_v59 = vld [vmem:[%s1500_s4] ss:$12 sps:$4 sm:$0xff]  }
  0x41   : > { %1117 = vmatprep.subr.bf16.mxu0 %v1274_v39  ;;  %v1287_v52 = vld [vmem:[%s1498_s3 + $0x30] sm:$0xff]   ;;  %v1291_v55 = vld [vmem:[%s1498_s3 + $0xb8] sm:$0xff]   ;;  %v1296_v61 = vld [vmem:[%s1500_s4 + $0x20] ss:$12 sps:$4 sm:$0xff]  }
  0x42   : > { %1196 = vmatpush3.bf16.msra.mxu1 %v1273_v38  ;;  %v1288_v53 = vld [vmem:[%s1498_s3 + $0xb0] sm:$0xff]   ;;  %v1290_v58 = vld [vmem:[%s1498_s3 + $0x38] sm:$0xff]   ;;  %v1312_v5 = vld [vmem:[%s1500_s4 + $0x80] ss:$12 sps:$4 sm:$0xff]  }
  0x43   : > { %1197 = vmatprep.subr.bf16.mxu1 %v1276_v41  ;;  %v1294_v56 = vld [vmem:[%s1500_s4 + $0x4] ss:$12 sps:$4 sm:$0xff]   ;;  %v1295_v57 = vld [vmem:[%s1500_s4 + $0x8] ss:$12 sps:$4 sm:$0xff]   ;;  %v1305_v4 = vld [vmem:[%s1500_s4 + $0x4c] ss:$12 sps:$4 sm:$0xff]  }
  0x44   : > { %1118 = vmatpush3.bf16.msra.mxu0 %v1275_v40  ;;  %724 = vmatprep.mubr.bf16.mxu0 %v1294_v56  ;;  %v1297_v60 = vld [vmem:[%s1500_s4 + $0x1c] ss:$12 sps:$4 sm:$0xff]   ;;  %v1303_v62 = vld [vmem:[%s1500_s4 + $0x38] ss:$12 sps:$4 sm:$0xff]   ;;  %v1300_v0 = vld [vmem:[%s1500_s4 + $0x34] ss:$12 sps:$4 sm:$0xff]  }
  0x45   : > { %1119 = vmatprep.subr.bf16.mxu0 %v1277_v42  ;;  %1209 = vmatprep.mubr.bf16.mxu1 %v1295_v57  ;;  %v1299_v63 = vld [vmem:[%s1500_s4 + $0x18] ss:$12 sps:$4 sm:$0xff]   ;;  %v1304_v1 = vld [vmem:[%s1500_s4 + $0x50] ss:$12 sps:$4 sm:$0xff]   ;;  %v1311_v2 = vld [vmem:[%s1500_s4 + $0x68] ss:$12 sps:$4 sm:$0xff]  }
  0x46   : > { %1198 = vmatpush3.bf16.msra.mxu1 %v1276_v41  ;;  %v1302_v3 = vld [vmem:[%s1500_s4 + $0x30] ss:$12 sps:$4 sm:$0xff]   ;;  %v1319_v6 = vld [vmem:[%s1500_s4 + $0x98] ss:$12 sps:$4 sm:$0xff]   ;;  %v1307_v7 = vld [vmem:[%s1500_s4 + $0x48] ss:$12 sps:$4 sm:$0xff]  }
  0x47   : > { %1199 = vmatprep.subr.bf16.mxu1 %v1279_v44  ;;  %v1308_v8 = vld [vmem:[%s1500_s4 + $0x64] ss:$12 sps:$4 sm:$0xff]   ;;  %v1310_v10 = vld [vmem:[%s1500_s4 + $0x60] ss:$12 sps:$4 sm:$0xff]   ;;  %v1313_v11 = vld [vmem:[%s1500_s4 + $0x7c] ss:$12 sps:$4 sm:$0xff]  }
  0x48   : > { %1120 = vmatpush3.bf16.msra.mxu0 %v1278_v43  ;;  %v1320_v9 = vld [vmem:[%s1500_s4 + $0xb0] ss:$12 sps:$4 sm:$0xff]   ;;  %v1315_v12 = vld [vmem:[%s1500_s4 + $0x78] ss:$12 sps:$4 sm:$0xff]   ;;  %v1316_v13 = vld [vmem:[%s1500_s4 + $0x94] ss:$12 sps:$4 sm:$0xff]  }
  0x49   : > { %1121 = vmatprep.subr.bf16.mxu0 %v1280_v45  ;;  %v1318_v14 = vld [vmem:[%s1500_s4 + $0x90] ss:$12 sps:$4 sm:$0xff]   ;;  %v1321_v15 = vld [vmem:[%s1500_s4 + $0xac] ss:$12 sps:$4 sm:$0xff]   ;;  %v1323_v16 = vld [vmem:[%s1500_s4 + $0xa8] ss:$12 sps:$4 sm:$0xff]  }
  0x4a   : > { %1200 = vmatpush3.bf16.msra.mxu1 %v1279_v44  ;;  %v324_v23 = vld [vmem:[%s1712_s2] sm:$0xff]  ;;  %v325_v28 = vld [vmem:[%s1712_s2 + $0x8] sm:$0xff]  ;;  %v326_v38 = vld [vmem:[%s1712_s2 + $0x10] sm:$0xff] }
  0x4b   : > { %1201 = vmatprep.subr.bf16.mxu1 %v1282_v46  ;;  %v327_v44 = vld [vmem:[%s1712_s2 + $0x18] sm:$0xff] }
  0x4c   : > { %1122 = vmatpush3.bf16.msra.mxu0 %v1281_v47 }
  0x4d   : > { %1123 = vmatprep.subr.bf16.mxu0 %v1283_v48 }
  0x4e   : > { %1202 = vmatpush3.bf16.msra.mxu1 %v1282_v46 }
  0x4f   : > { %1203 = vmatprep.subr.bf16.mxu1 %v1285_v49 }
  0x50   : > { %1124 = vmatpush3.bf16.msra.mxu0 %v1284_v50 }
  0x51   : > { %1125 = vmatprep.subr.bf16.mxu0 %v1286_v51 }
  0x52   : > { %1204 = vmatpush3.bf16.msra.mxu1 %v1285_v49 }
  0x53   : > { %1205 = vmatprep.subr.bf16.mxu1 %v1288_v53 }
  0x54   : > { %1126 = vmatpush3.bf16.msra.mxu0 %v1287_v52 }
  0x55   : > { %1127 = vmatprep.subr.bf16.mxu0 %v1289_v54 }
  0x56   : > { %1206 = vmatpush3.bf16.msra.mxu1 %v1288_v53 }
  0x57   : > { %1207 = vmatprep.subr.bf16.mxu1 %v1291_v55 }
  0x58   : > { %1128 = vmatpush3.bf16.msra.mxu0 %v1290_v58 }
  0x5a   : > { %1208 = vmatpush3.bf16.msra.mxu1 %v1291_v55  ;;  %v328_v55 = vld [vmem:[%s1712_s2 + $0x20] sm:$0xff] }
  0x5b   : > { %725 = vmatmul.mubr.bf16.vlgmr.msra.gmra.mrb[0].mxu0 %v1292_v59 }
  0x5c   : > { %732 = vmatprep.mubr.bf16.mxu0 %v1297_v60  ;;  %v329_v60 = vld [vmem:[%s1712_s2 + $0x28] sm:$0xff] }
  0x5d   : > { %1210 = vmatmul.mubr.bf16.vlgmr.msra.gmra.mrb[0].mxu1 %v1296_v61 }
  0x5e   : > { %1213 = vmatprep.mubr.bf16.mxu1 %v1303_v62 }
  0x63   : > { %733 = vmatmul.mubr.bf16.gmra.mrb[4].mxu0 %v1299_v63 }
  0x64   : > { %740 = vmatprep.mubr.bf16.mxu0 %v1300_v0 }
  0x65   : > { %1214 = vmatmul.mubr.bf16.gmra.mrb[4].mxu1 %v1304_v1 }
  0x66   : > { %1217 = vmatprep.mubr.bf16.mxu1 %v1311_v2 }
  0x6b   : > { %741 = vmatmul.mubr.bf16.gmra.mrb[8].mxu0 %v1302_v3 }
  0x6c   : > { %748 = vmatprep.mubr.bf16.mxu0 %v1305_v4 }
  0x6d   : > { %1218 = vmatmul.mubr.bf16.gmra.mrb[8].mxu1 %v1312_v5 }
  0x6e   : > { %1221 = vmatprep.mubr.bf16.mxu1 %v1319_v6  ;;  %v330_v6 = vld [vmem:[%s1712_s2 + $0x30] sm:$0xff] }
  0x73   : > { %749 = vmatmul.mubr.bf16.gmra.mrb[12].mxu0 %v1307_v7 }
  0x74   : > { %756 = vmatprep.mubr.bf16.mxu0 %v1308_v8 }
  0x75   : > { %1222 = vmatmul.mubr.bf16.gmra.mrb[12].mxu1 %v1320_v9 }
  0x7b   : > { %757 = vmatmul.mubr.bf16.gmra.mrb[16].mxu0 %v1310_v10 }
  0x7c   : > { %764 = vmatprep.mubr.bf16.mxu0 %v1313_v11 }
  0x83   : > { %765 = vmatmul.mubr.bf16.gmra.mrb[20].mxu0 %v1315_v12  ;;  %v331_v12 = vld [vmem:[%s1712_s2 + $0x38] sm:$0xff] }
  0x84   : > { %772 = vmatprep.mubr.bf16.mxu0 %v1316_v13 }
  0x8b   : > { %773 = vmatmul.mubr.bf16.gmra.mrb[24].mxu0 %v1318_v14 }
  0x8c   : > { %780 = vmatprep.mubr.bf16.mxu0 %v1321_v15 }
  0x93   : > { %781 = vmatmul.mubr.bf16.gmra.mrb[28].mxu0 %v1323_v16 }
 0x12e   : > { %v1129_v17 = vpop.f32.mrb[0].mxu0 }
 0x12f   : > { %v1130_v18 = vpop.f32.mrb[1].mxu0 }
 0x130   : > { %v1131_v19 = vadd.f32 %v1130_v18, %v1129_v17  ;;  %v1132_v20 = vpop.f32.mrb[2].mxu0  ;;  %v1211_v21 = vpop.f32.mrb[0].mxu1 }
 0x131   : > { %v1133_v22 = vpop.f32.mrb[3].mxu0  ;;  %v823_v24 = vpop.f32.mrb[1].mxu1 }
 0x132   : > { %v1134_v25 = vadd.f32 %v1133_v22, %v1132_v20  ;;  %v824_v26 = vadd.f32 %v1131_v19, %v823_v24  ;;  %v1212_v27 = vpop.f32.mrb[2].mxu1  ;;  %v332_v22 = vld [vmem:[%s1712_s2 + $0x40] sm:$0xff] }
 0x133   : > { %v826_v29 = vpop.f32.mrb[3].mxu1 }
 0x134   : > { %v886_v30 = vadd.f32 %v824_v26, %v324_v23  ;;  %v827_v31 = vadd.f32 %v1134_v25, %v826_v29  ;;  %v333_v25 = vld [vmem:[%s1712_s2 + $0x48] sm:$0xff] }
 0x136   : > { %902 = vst [vmem:[%s1712_s2] sm:$0xff] %v886_v30  ;;  %v887_v32 = vadd.f32 %v827_v31, %v325_v28  ;;  %v1135_v33 = vpop.f32.mrb[4].mxu0 }
 0x137   : > { %v1136_v34 = vpop.f32.mrb[5].mxu0 }
 0x138   : > { %903 = vst [vmem:[%s1712_s2 + $0x8] sm:$0xff] %v887_v32  ;;  %v1137_v35 = vadd.f32 %v1136_v34, %v1135_v33  ;;  %v1138_v36 = vpop.f32.mrb[6].mxu0  ;;  %v1215_v37 = vpop.f32.mrb[4].mxu1  ;;  %v334_v33 = vld [vmem:[%s1712_s2 + $0x50] sm:$0xff] }
 0x139   : > { %v1139_v39 = vpop.f32.mrb[7].mxu0  ;;  %v839_v40 = vpop.f32.mrb[5].mxu1 }
 0x13a   : > { %v832_v41 = vadd.f32 %v1211_v21, %v1137_v35  ;;  %v1140_v42 = vadd.f32 %v1139_v39, %v1138_v36  ;;  %v1216_v43 = vpop.f32.mrb[6].mxu1 }
 0x13b   : > { %v842_v45 = vpop.f32.mrb[7].mxu1 }
 0x13c   : > { %v888_v46 = vadd.f32 %v832_v41, %v326_v38  ;;  %v835_v47 = vadd.f32 %v1212_v27, %v1140_v42 }
 0x13e   : > { %904 = vst [vmem:[%s1712_s2 + $0x10] sm:$0xff] %v888_v46  ;;  %v889_v48 = vadd.f32 %v835_v47, %v327_v44  ;;  %v1141_v49 = vpop.f32.mrb[8].mxu0  ;;  %v336_v46 = vld [vmem:[%s1712_s2 + $0x60] sm:$0xff] }
 0x13f   : > { %v1142_v50 = vpop.f32.mrb[9].mxu0 }
 0x140   : > { %905 = vst [vmem:[%s1712_s2 + $0x18] sm:$0xff] %v889_v48  ;;  %v1143_v51 = vadd.f32 %v1142_v50, %v1141_v49  ;;  %v1144_v52 = vpop.f32.mrb[10].mxu0  ;;  %v1219_v53 = vpop.f32.mrb[8].mxu1  ;;  %v337_v49 = vld [vmem:[%s1712_s2 + $0x68] sm:$0xff] }
 0x141   : > { %v1145_v54 = vpop.f32.mrb[11].mxu0  ;;  %v855_v56 = vpop.f32.mrb[9].mxu1 }
 0x142   : > { %v1146_v57 = vadd.f32 %v1145_v54, %v1144_v52  ;;  %v840_v58 = vadd.f32 %v1143_v51, %v839_v40  ;;  %v1220_v59 = vpop.f32.mrb[10].mxu1 }
 0x143   : > { %v858_v61 = vpop.f32.mrb[11].mxu1 }
 0x144   : > { %v890_v62 = vadd.f32 %v840_v58, %v328_v55  ;;  %v843_v63 = vadd.f32 %v1146_v57, %v842_v45  ;;  %v338_v57 = vld [vmem:[%s1712_s2 + $0x70] sm:$0xff] }
 0x146   : > { %906 = vst [vmem:[%s1712_s2 + $0x20] sm:$0xff] %v890_v62  ;;  %v891_v0 = vadd.f32 %v843_v63, %v329_v60  ;;  %v1147_v1 = vpop.f32.mrb[12].mxu0 }
 0x147   : > { %v1148_v2 = vpop.f32.mrb[13].mxu0 }
 0x148   : > { %907 = vst [vmem:[%s1712_s2 + $0x28] sm:$0xff] %v891_v0  ;;  %v1149_v3 = vadd.f32 %v1148_v2, %v1147_v1  ;;  %v1150_v4 = vpop.f32.mrb[14].mxu0  ;;  %v1223_v5 = vpop.f32.mrb[12].mxu1 }
 0x149   : > { %v1151_v7 = vpop.f32.mrb[15].mxu0  ;;  %v871_v8 = vpop.f32.mrb[13].mxu1 }
 0x14a   : > { %v848_v9 = vadd.f32 %v1215_v37, %v1149_v3  ;;  %v1152_v10 = vadd.f32 %v1151_v7, %v1150_v4  ;;  %v1224_v11 = vpop.f32.mrb[14].mxu1  ;;  %v335_v37 = vld [vmem:[%s1712_s2 + $0x58] sm:$0xff] }
 0x14b   : > { %v874_v13 = vpop.f32.mrb[15].mxu1 }
 0x14c   : > { %v892_v14 = vadd.f32 %v848_v9, %v330_v6  ;;  %v851_v15 = vadd.f32 %v1216_v43, %v1152_v10 }
 0x14e   : > { %908 = vst [vmem:[%s1712_s2 + $0x30] sm:$0xff] %v892_v14  ;;  %v893_v16 = vadd.f32 %v851_v15, %v331_v12  ;;  %v1153_v17 = vpop.f32.mrb[16].mxu0 }
 0x14f   : > { %v1154_v18 = vpop.f32.mrb[17].mxu0 }
 0x150   : > { %909 = vst [vmem:[%s1712_s2 + $0x38] sm:$0xff] %v893_v16  ;;  %v1155_v19 = vadd.f32 %v1154_v18, %v1153_v17  ;;  %v1156_v20 = vpop.f32.mrb[18].mxu0 }
 0x151   : > { %v1157_v21 = vpop.f32.mrb[19].mxu0 }
 0x152   : > { %v1158_v23 = vadd.f32 %v1157_v21, %v1156_v20  ;;  %v856_v24 = vadd.f32 %v1155_v19, %v855_v56 }
 0x154   : > { %v894_v26 = vadd.f32 %v856_v24, %v332_v22  ;;  %v859_v27 = vadd.f32 %v1158_v23, %v858_v61  ;;  %v339_v61 = vld [vmem:[%s1712_s2 + $0x78] sm:$0xff] }
 0x156   : > { %910 = vst [vmem:[%s1712_s2 + $0x40] sm:$0xff] %v894_v26  ;;  %v895_v28 = vadd.f32 %v859_v27, %v333_v25  ;;  %v1159_v29 = vpop.f32.mrb[20].mxu0 }
 0x157   : > { %v1160_v30 = vpop.f32.mrb[21].mxu0 }
 0x158   : > { %911 = vst [vmem:[%s1712_s2 + $0x48] sm:$0xff] %v895_v28  ;;  %v1161_v31 = vadd.f32 %v1160_v30, %v1159_v29  ;;  %v1162_v32 = vpop.f32.mrb[22].mxu0 }
 0x159   : > { %v1163_v34 = vpop.f32.mrb[23].mxu0 }
 0x15a   : > { %v864_v35 = vadd.f32 %v1219_v53, %v1161_v31  ;;  %v1164_v36 = vadd.f32 %v1163_v34, %v1162_v32 }
 0x15c   : > { %v896_v38 = vadd.f32 %v864_v35, %v334_v33  ;;  %v867_v39 = vadd.f32 %v1220_v59, %v1164_v36 }
 0x15e   : > { %912 = vst [vmem:[%s1712_s2 + $0x50] sm:$0xff] %v896_v38  ;;  %v897_v40 = vadd.f32 %v867_v39, %v335_v37  ;;  %v1165_v41 = vpop.f32.mrb[24].mxu0 }
 0x15f   : > { %v1166_v42 = vpop.f32.mrb[25].mxu0 }
 0x160   : > { %913 = vst [vmem:[%s1712_s2 + $0x58] sm:$0xff] %v897_v40  ;;  %v1167_v43 = vadd.f32 %v1166_v42, %v1165_v41  ;;  %v1168_v44 = vpop.f32.mrb[26].mxu0 }
 0x161   : > { %v1169_v45 = vpop.f32.mrb[27].mxu0 }
 0x162   : > { %v1170_v47 = vadd.f32 %v1169_v45, %v1168_v44  ;;  %v872_v48 = vadd.f32 %v1167_v43, %v871_v8 }
 0x164   : > { %v898_v50 = vadd.f32 %v872_v48, %v336_v46  ;;  %v875_v51 = vadd.f32 %v1170_v47, %v874_v13 }
 0x166   : > { %914 = vst [vmem:[%s1712_s2 + $0x60] sm:$0xff] %v898_v50  ;;  %v899_v52 = vadd.f32 %v875_v51, %v337_v49  ;;  %v1171_v53 = vpop.f32.mrb[28].mxu0 }
 0x167   : > { %v1172_v54 = vpop.f32.mrb[29].mxu0 }
 0x168   : > { %915 = vst [vmem:[%s1712_s2 + $0x68] sm:$0xff] %v899_v52  ;;  %v1173_v55 = vadd.f32 %v1172_v54, %v1171_v53  ;;  %v1174_v56 = vpop.f32.mrb[30].mxu0 }
 0x169   : > { %v1175_v58 = vpop.f32.mrb[31].mxu0 }
 0x16a   : > { %v880_v59 = vadd.f32 %v1223_v5, %v1173_v55  ;;  %v1176_v60 = vadd.f32 %v1175_v58, %v1174_v56 }
 0x16c   : > { %v900_v62 = vadd.f32 %v880_v59, %v338_v57  ;;  %v883_v63 = vadd.f32 %v1224_v11, %v1176_v60 }
 0x16e   : > { %916 = vst [vmem:[%s1712_s2 + $0x70] sm:$0xff] %v900_v62  ;;  %v901_v0 = vadd.f32 %v883_v63, %v339_v61 }
 0x170   : > { %917 = vst [vmem:[%s1712_s2 + $0x78] sm:$0xff] %v901_v0 }
 0x171 PF: > { %s12_s13 = sadd.s32 1, %s1362_s13   ;;  %s1713_s9 = smov %s1350_s10 }
 0x172   : > { %p9_p11 = scmp.ge.s32.totalorder %s12_s13, 11   ;;  %s1714_s10 = smov %s1415_s17 }
 0x173   : > { %s1715_s11 = smov %s1358_s12  ;;  %s1716_s12 = smov %s1718_s14 }
 0x174   :  { %11 = sbr.rel (!%p9_p11) target bundleno = 3 (0x3), region = 102 }

// kernel: res3d_forward.96
= control target key start
LH: loop header
LB: loop body
LE: loop exit
PB: predicated region body
PF: predicated region fallthrough
CT: control target
= control target key end

     0   :  { %v48_v0 = vlaneseq  ;;  %s460_s1 = inlined_call_operand.vmem [shape: f32[1,256], index: 1, kind: input, shape index: {}]   ;;  %s461_s2 = inlined_call_operand.vmem [shape: f32[1,256], index: 2, kind: input, shape index: {}]   ;;  %s462_s0 = inlined_call_operand.vmem [shape: f32[128,256], index: 0, kind: input, shape index: {}]   ;;  %s463_s3 = inlined_call_operand.vmem [shape: f32[128,256], index: 3, kind: output, shape index: {}]  }
   0x1   :  { %v46_v2 = vld [vmem:[%s460_s1] sm:$0x3]  ;;  %v15_v6 = vld [vmem:[%s462_s0 + $0x8] sm:$0xff]  ;;  %v16_v8 = vld [vmem:[%s462_s0 + $0x10] sm:$0xff] }
   0x2   :  { %v49_v1 = vshrl.u32 %v48_v0, 7  ;;  %v90_v3 = vld [vmem:[%s461_s2] sm:$0x3]  ;;  %v17_v9 = vld [vmem:[%s462_s0 + $0x18] sm:$0xff]  ;;  %v19_v15 = vld [vmem:[%s462_s0 + $0x28] sm:$0xff] }
   0x3   :  { %v14_v4 = vld [vmem:[%s462_s0] sm:$0xff]  ;;  %v20_v16 = vld [vmem:[%s462_s0 + $0x30] sm:$0xff]  ;;  %v21_v17 = vld [vmem:[%s462_s0 + $0x38] sm:$0xff] }
   0x4   :  { %v50_v5 = vsub.s32 0, %v49_v1  ;;  %v54_v7 = vsub.s32 1, %v49_v1  ;;  %v18_v10 = vld [vmem:[%s462_s0 + $0x20] sm:$0xff]  ;;  %v23_v23 = vld [vmem:[%s462_s0 + $0x48] sm:$0xff]  ;;  %v24_v28 = vld [vmem:[%s462_s0 + $0x50] sm:$0xff] }
   0x5   :  { %v22_v22 = vld [vmem:[%s462_s0 + $0x40] sm:$0xff]  ;;  %v25_v29 = vld [vmem:[%s462_s0 + $0x58] sm:$0xff]  ;;  %v27_v35 = vld [vmem:[%s462_s0 + $0x68] sm:$0xff] }
   0x6   :  { %v211_v11 = vrot.slane %v46_v2, %v50_v5  ;;  %v213_v12 = vrot.slane %v90_v3, %v50_v5  ;;  %v215_v13 = vrot.slane %v46_v2, %v54_v7  ;;  %v217_v14 = vrot.slane %v90_v3, %v54_v7  ;;  %v26_v30 = vld [vmem:[%s462_s0 + $0x60] sm:$0xff]  ;;  %v28_v36 = vld [vmem:[%s462_s0 + $0x70] sm:$0xff]  ;;  %v29_v37 = vld [vmem:[%s462_s0 + $0x78] sm:$0xff] }
   0x7   :  { %v30_v46 = vld [vmem:[%s462_s0 + $0x80] sm:$0xff]  ;;  %v31_v47 = vld [vmem:[%s462_s0 + $0x88] sm:$0xff]  ;;  %v32_v52 = vld [vmem:[%s462_s0 + $0x90] sm:$0xff] }
   0x8   :  { %v58_v18 = vmul.f32 %v211_v11, %v14_v4  ;;  %v59_v19 = vmul.f32 %v215_v13, %v15_v6  ;;  %v60_v20 = vmul.f32 %v211_v11, %v16_v8  ;;  %v61_v21 = vmul.f32 %v215_v13, %v17_v9  ;;  %v33_v53 = vld [vmem:[%s462_s0 + $0x98] sm:$0xff]  ;;  %v34_v54 = vld [vmem:[%s462_s0 + $0xa0] sm:$0xff]  ;;  %v35_v59 = vld [vmem:[%s462_s0 + $0xa8] sm:$0xff] }
   0x9   :  { %v62_v24 = vmul.f32 %v211_v11, %v18_v10  ;;  %v63_v25 = vmul.f32 %v215_v13, %v19_v15  ;;  %v64_v26 = vmul.f32 %v211_v11, %v20_v16  ;;  %v65_v27 = vmul.f32 %v215_v13, %v21_v17  ;;  %v36_v60 = vld [vmem:[%s462_s0 + $0xb0] sm:$0xff]  ;;  %v37_v61 = vld [vmem:[%s462_s0 + $0xb8] sm:$0xff]  ;;  %v38_v6 = vld [vmem:[%s462_s0 + $0xc0] sm:$0xff] }
   0xa   :  { %v102_v31 = vadd.f32 %v213_v12, %v58_v18  ;;  %v103_v32 = vadd.f32 %v217_v14, %v59_v19  ;;  %v104_v33 = vadd.f32 %v213_v12, %v60_v20  ;;  %v105_v34 = vadd.f32 %v217_v14, %v61_v21  ;;  %v39_v7 = vld [vmem:[%s462_s0 + $0xc8] sm:$0xff]  ;;  %v40_v16 = vld [vmem:[%s462_s0 + $0xd0] sm:$0xff]  ;;  %v41_v17 = vld [vmem:[%s462_s0 + $0xd8] sm:$0xff] }
   0xb   :  { %v106_v38 = vadd.f32 %v213_v12, %v62_v24  ;;  %v107_v39 = vadd.f32 %v217_v14, %v63_v25  ;;  %v108_v40 = vadd.f32 %v213_v12, %v64_v26  ;;  %v109_v41 = vadd.f32 %v217_v14, %v65_v27  ;;  %v42_v18 = vld [vmem:[%s462_s0 + $0xe0] sm:$0xff]  ;;  %v44_v24 = vld [vmem:[%s462_s0 + $0xf0] sm:$0xff]  ;;  %v45_v25 = vld [vmem:[%s462_s0 + $0xf8] sm:$0xff] }
   0xc   :  { %134 = vst [vmem:[%s463_s3] sm:$0xff] %v102_v31  ;;  %135 = vst [vmem:[%s463_s3 + $0x8] sm:$0xff] %v103_v32  ;;  %v66_v42 = vmul.f32 %v211_v11, %v22_v22  ;;  %v67_v43 = vmul.f32 %v215_v13, %v23_v23  ;;  %v68_v44 = vmul.f32 %v211_v11, %v24_v28  ;;  %v43_v23 = vld [vmem:[%s462_s0 + $0xe8] sm:$0xff] }
   0xd   :  { %136 = vst [vmem:[%s463_s3 + $0x10] sm:$0xff] %v104_v33  ;;  %137 = vst [vmem:[%s463_s3 + $0x18] sm:$0xff] %v105_v34  ;;  %v69_v45 = vmul.f32 %v215_v13, %v25_v29  ;;  %v70_v48 = vmul.f32 %v211_v11, %v26_v30  ;;  %v71_v49 = vmul.f32 %v215_v13, %v27_v35 }
   0xe   :  { %138 = vst [vmem:[%s463_s3 + $0x20] sm:$0xff] %v106_v38  ;;  %139 = vst [vmem:[%s463_s3 + $0x28] sm:$0xff] %v107_v39  ;;  %v72_v50 = vmul.f32 %v211_v11, %v28_v36  ;;  %v73_v51 = vmul.f32 %v215_v13, %v29_v37  ;;  %v110_v55 = vadd.f32 %v213_v12, %v66_v42 }
   0xf   :  { %140 = vst [vmem:[%s463_s3 + $0x30] sm:$0xff] %v108_v40  ;;  %141 = vst [vmem:[%s463_s3 + $0x38] sm:$0xff] %v109_v41  ;;  %v111_v56 = vadd.f32 %v217_v14, %v67_v43  ;;  %v112_v57 = vadd.f32 %v213_v12, %v68_v44  ;;  %v113_v58 = vadd.f32 %v217_v14, %v69_v45 }
  0x10   :  { %v114_v62 = vadd.f32 %v213_v12, %v70_v48  ;;  %v115_v63 = vadd.f32 %v217_v14, %v71_v49  ;;  %v116_v0 = vadd.f32 %v213_v12, %v72_v50  ;;  %v117_v1 = vadd.f32 %v217_v14, %v73_v51  ;;  %142 = vst [vmem:[%s463_s3 + $0x40] sm:$0xff] %v110_v55 }
  0x11   :  { %143 = vst [vmem:[%s463_s3 + $0x48] sm:$0xff] %v111_v56  ;;  %144 = vst [vmem:[%s463_s3 + $0x50] sm:$0xff] %v112_v57  ;;  %v74_v2 = vmul.f32 %v211_v11, %v30_v46  ;;  %v75_v3 = vmul.f32 %v215_v13, %v31_v47  ;;  %v76_v4 = vmul.f32 %v211_v11, %v32_v52 }
  0x12   :  { %145 = vst [vmem:[%s463_s3 + $0x58] sm:$0xff] %v113_v58  ;;  %v77_v5 = vmul.f32 %v215_v13, %v33_v53  ;;  %146 = vst [vmem:[%s463_s3 + $0x60] sm:$0xff] %v114_v62  ;;  %v78_v8 = vmul.f32 %v211_v11, %v34_v54  ;;  %v79_v9 = vmul.f32 %v215_v13, %v35_v59 }
  0x13   :  { %147 = vst [vmem:[%s463_s3 + $0x68] sm:$0xff] %v115_v63  ;;  %148 = vst [vmem:[%s463_s3 + $0x70] sm:$0xff] %v116_v0  ;;  %v80_v10 = vmul.f32 %v211_v11, %v36_v60  ;;  %v81_v15 = vmul.f32 %v215_v13, %v37_v61  ;;  %v118_v19 = vadd.f32 %v213_v12, %v74_v2 }
  0x14   :  { %149 = vst [vmem:[%s463_s3 + $0x78] sm:$0xff] %v117_v1  ;;  %v119_v20 = vadd.f32 %v217_v14, %v75_v3  ;;  %v120_v21 = vadd.f32 %v213_v12, %v76_v4  ;;  %v121_v22 = vadd.f32 %v217_v14, %v77_v5  ;;  %v122_v26 = vadd.f32 %v213_v12, %v78_v8 }
  0x15   :  { %v123_v27 = vadd.f32 %v217_v14, %v79_v9  ;;  %v124_v28 = vadd.f32 %v213_v12, %v80_v10  ;;  %v125_v29 = vadd.f32 %v217_v14, %v81_v15  ;;  %150 = vst [vmem:[%s463_s3 + $0x80] sm:$0xff] %v118_v19  ;;  %v82_v30 = vmul.f32 %v211_v11, %v38_v6 }
  0x16   :  { %151 = vst [vmem:[%s463_s3 + $0x88] sm:$0xff] %v119_v20  ;;  %152 = vst [vmem:[%s463_s3 + $0x90] sm:$0xff] %v120_v21  ;;  %v83_v31 = vmul.f32 %v215_v13, %v39_v7  ;;  %v84_v32 = vmul.f32 %v211_v11, %v40_v16  ;;  %v85_v33 = vmul.f32 %v215_v13, %v41_v17 }
  0x17   :  { %153 = vst [vmem:[%s463_s3 + $0x98] sm:$0xff] %v121_v22  ;;  %154 = vst [vmem:[%s463_s3 + $0xa0] sm:$0xff] %v122_v26  ;;  %v86_v34 = vmul.f32 %v211_v11, %v42_v18  ;;  %v87_v35 = vmul.f32 %v215_v13, %v43_v23  ;;  %v88_v36 = vmul.f32 %v211_v11, %v44_v24 }
  0x18   :  { %155 = vst [vmem:[%s463_s3 + $0xa8] sm:$0xff] %v123_v27  ;;  %156 = vst [vmem:[%s463_s3 + $0xb0] sm:$0xff] %v124_v28  ;;  %v89_v37 = vmul.f32 %v215_v13, %v45_v25  ;;  %v126_v38 = vadd.f32 %v213_v12, %v82_v30  ;;  %v127_v39 = vadd.f32 %v217_v14, %v83_v31 }
  0x19   :  { %157 = vst [vmem:[%s463_s3 + $0xb8] sm:$0xff] %v125_v29  ;;  %v128_v40 = vadd.f32 %v213_v12, %v84_v32  ;;  %v129_v41 = vadd.f32 %v217_v14, %v85_v33  ;;  %v130_v42 = vadd.f32 %v213_v12, %v86_v34  ;;  %v131_v43 = vadd.f32 %v217_v14, %v87_v35 }
  0x1a   :  { %v132_v44 = vadd.f32 %v213_v12, %v88_v36  ;;  %v133_v45 = vadd.f32 %v217_v14, %v89_v37  ;;  %158 = vst [vmem:[%s463_s3 + $0xc0] sm:$0xff] %v126_v38  ;;  %159 = vst [vmem:[%s463_s3 + $0xc8] sm:$0xff] %v127_v39 }
  0x1b   :  { %160 = vst [vmem:[%s463_s3 + $0xd0] sm:$0xff] %v128_v40  ;;  %161 = vst [vmem:[%s463_s3 + $0xd8] sm:$0xff] %v129_v41 }
  0x1c   :  { %162 = vst [vmem:[%s463_s3 + $0xe0] sm:$0xff] %v130_v42  ;;  %163 = vst [vmem:[%s463_s3 + $0xe8] sm:$0xff] %v131_v43 }
  0x1d   :  { %164 = vst [vmem:[%s463_s3 + $0xf0] sm:$0xff] %v132_v44  ;;  %165 = vst [vmem:[%s463_s3 + $0xf8] sm:$0xff] %v133_v45 }

// kernel: res3d_forward.92
= control target key start
LH: loop header
LB: loop body
LE: loop exit
PB: predicated region body
PF: predicated region fallthrough
CT: control target
= control target key end

     0   :  { %v48_v0 = vlaneseq  ;;  %s492_s1 = inlined_call_operand.vmem [shape: f32[1,256], index: 1, kind: input, shape index: {}]   ;;  %s493_s2 = inlined_call_operand.vmem [shape: f32[1,256], index: 2, kind: input, shape index: {}]   ;;  %s494_s0 = inlined_call_operand.vmem [shape: f32[128,256], index: 0, kind: input, shape index: {}]   ;;  %s495_s3 = inlined_call_operand.vmem [shape: f32[128,256], index: 3, kind: output, shape index: {}]  }
   0x1   :  { %v46_v2 = vld [vmem:[%s492_s1] sm:$0x3]  ;;  %v15_v6 = vld [vmem:[%s494_s0 + $0x8] sm:$0xff]  ;;  %v16_v8 = vld [vmem:[%s494_s0 + $0x10] sm:$0xff] }
   0x2   :  { %v49_v1 = vshrl.u32 %v48_v0, 7  ;;  %v90_v3 = vld [vmem:[%s493_s2] sm:$0x3]  ;;  %v17_v9 = vld [vmem:[%s494_s0 + $0x18] sm:$0xff]  ;;  %v19_v15 = vld [vmem:[%s494_s0 + $0x28] sm:$0xff] }
   0x3   :  { %v14_v4 = vld [vmem:[%s494_s0] sm:$0xff]  ;;  %v20_v16 = vld [vmem:[%s494_s0 + $0x30] sm:$0xff]  ;;  %v21_v17 = vld [vmem:[%s494_s0 + $0x38] sm:$0xff] }
   0x4   :  { %v50_v5 = vsub.s32 0, %v49_v1  ;;  %v54_v7 = vsub.s32 1, %v49_v1  ;;  %v18_v10 = vld [vmem:[%s494_s0 + $0x20] sm:$0xff]  ;;  %v23_v31 = vld [vmem:[%s494_s0 + $0x48] sm:$0xff]  ;;  %v24_v32 = vld [vmem:[%s494_s0 + $0x50] sm:$0xff] }
   0x5   :  { %v22_v30 = vld [vmem:[%s494_s0 + $0x40] sm:$0xff]  ;;  %v25_v37 = vld [vmem:[%s494_s0 + $0x58] sm:$0xff]  ;;  %v27_v39 = vld [vmem:[%s494_s0 + $0x68] sm:$0xff] }
   0x6   :  { %v243_v11 = vrot.slane %v46_v2, %v50_v5  ;;  %v245_v12 = vrot.slane %v90_v3, %v50_v5  ;;  %v247_v13 = vrot.slane %v46_v2, %v54_v7  ;;  %v249_v14 = vrot.slane %v90_v3, %v54_v7  ;;  %v26_v38 = vld [vmem:[%s494_s0 + $0x60] sm:$0xff]  ;;  %v28_v44 = vld [vmem:[%s494_s0 + $0x70] sm:$0xff]  ;;  %v29_v45 = vld [vmem:[%s494_s0 + $0x78] sm:$0xff] }
   0x7   :  { %v30_v62 = vld [vmem:[%s494_s0 + $0x80] sm:$0xff]  ;;  %v31_v63 = vld [vmem:[%s494_s0 + $0x88] sm:$0xff]  ;;  %v32_v0 = vld [vmem:[%s494_s0 + $0x90] sm:$0xff] }
   0x8   :  { %v58_v18 = vmul.f32 %v243_v11, %v14_v4  ;;  %v59_v19 = vmul.f32 %v247_v13, %v15_v6  ;;  %v60_v20 = vmul.f32 %v243_v11, %v16_v8  ;;  %v61_v21 = vmul.f32 %v247_v13, %v17_v9  ;;  %v33_v5 = vld [vmem:[%s494_s0 + $0x98] sm:$0xff]  ;;  %v34_v6 = vld [vmem:[%s494_s0 + $0xa0] sm:$0xff]  ;;  %v35_v7 = vld [vmem:[%s494_s0 + $0xa8] sm:$0xff] }
   0x9   :  { %v62_v22 = vmul.f32 %v243_v11, %v18_v10  ;;  %v63_v23 = vmul.f32 %v247_v13, %v19_v15  ;;  %v64_v24 = vmul.f32 %v243_v11, %v20_v16  ;;  %v65_v25 = vmul.f32 %v247_v13, %v21_v17  ;;  %v36_v16 = vld [vmem:[%s494_s0 + $0xb0] sm:$0xff]  ;;  %v37_v17 = vld [vmem:[%s494_s0 + $0xb8] sm:$0xff] }
   0xa   :  { %v102_v26 = vadd.f32 %v245_v12, %v58_v18  ;;  %v103_v27 = vadd.f32 %v249_v14, %v59_v19  ;;  %v104_v28 = vadd.f32 %v245_v12, %v60_v20  ;;  %v105_v29 = vadd.f32 %v249_v14, %v61_v21 }
   0xb   :  { %v106_v33 = vadd.f32 %v245_v12, %v62_v22  ;;  %v107_v34 = vadd.f32 %v249_v14, %v63_v23  ;;  %v108_v35 = vadd.f32 %v245_v12, %v64_v24  ;;  %v109_v36 = vadd.f32 %v249_v14, %v65_v25 }
   0xc   :  { %v134_v40 = vmax.f32 %v102_v26, 0.0  ;;  %v135_v41 = vmax.f32 %v103_v27, 0.0  ;;  %v136_v42 = vmax.f32 %v104_v28, 0.0  ;;  %v137_v43 = vmax.f32 %v105_v29, 0.0 }
   0xd   :  { %v138_v46 = vmax.f32 %v106_v33, 0.0  ;;  %v139_v47 = vmax.f32 %v107_v34, 0.0  ;;  %v140_v48 = vmax.f32 %v108_v35, 0.0  ;;  %v141_v49 = vmax.f32 %v109_v36, 0.0  ;;  %v38_v34 = vld [vmem:[%s494_s0 + $0xc0] sm:$0xff]  ;;  %v39_v35 = vld [vmem:[%s494_s0 + $0xc8] sm:$0xff] }
   0xe   :  { %166 = vst [vmem:[%s495_s3] sm:$0xff] %v134_v40  ;;  %167 = vst [vmem:[%s495_s3 + $0x8] sm:$0xff] %v135_v41  ;;  %v66_v50 = vmul.f32 %v243_v11, %v22_v30  ;;  %v67_v51 = vmul.f32 %v247_v13, %v23_v31  ;;  %v68_v52 = vmul.f32 %v243_v11, %v24_v32  ;;  %v40_v36 = vld [vmem:[%s494_s0 + $0xd0] sm:$0xff]  ;;  %v41_v41 = vld [vmem:[%s494_s0 + $0xd8] sm:$0xff] }
   0xf   :  { %168 = vst [vmem:[%s495_s3 + $0x10] sm:$0xff] %v136_v42  ;;  %169 = vst [vmem:[%s495_s3 + $0x18] sm:$0xff] %v137_v43  ;;  %v69_v53 = vmul.f32 %v247_v13, %v25_v37  ;;  %v70_v54 = vmul.f32 %v243_v11, %v26_v38  ;;  %v71_v55 = vmul.f32 %v247_v13, %v27_v39  ;;  %v42_v42 = vld [vmem:[%s494_s0 + $0xe0] sm:$0xff]  ;;  %v43_v43 = vld [vmem:[%s494_s0 + $0xe8] sm:$0xff] }
  0x10   :  { %170 = vst [vmem:[%s495_s3 + $0x20] sm:$0xff] %v138_v46  ;;  %171 = vst [vmem:[%s495_s3 + $0x28] sm:$0xff] %v139_v47  ;;  %v72_v56 = vmul.f32 %v243_v11, %v28_v44  ;;  %v73_v57 = vmul.f32 %v247_v13, %v29_v45  ;;  %v110_v58 = vadd.f32 %v245_v12, %v66_v50 }
  0x11   :  { %172 = vst [vmem:[%s495_s3 + $0x30] sm:$0xff] %v140_v48  ;;  %173 = vst [vmem:[%s495_s3 + $0x38] sm:$0xff] %v141_v49  ;;  %v111_v59 = vadd.f32 %v249_v14, %v67_v51  ;;  %v112_v60 = vadd.f32 %v245_v12, %v68_v52  ;;  %v113_v61 = vadd.f32 %v249_v14, %v69_v53  ;;  %v44_v48 = vld [vmem:[%s494_s0 + $0xf0] sm:$0xff]  ;;  %v45_v49 = vld [vmem:[%s494_s0 + $0xf8] sm:$0xff] }
  0x12   :  { %v114_v1 = vadd.f32 %v245_v12, %v70_v54  ;;  %v115_v2 = vadd.f32 %v249_v14, %v71_v55  ;;  %v116_v3 = vadd.f32 %v245_v12, %v72_v56  ;;  %v117_v4 = vadd.f32 %v249_v14, %v73_v57 }
  0x13   :  { %v142_v8 = vmax.f32 %v110_v58, 0.0  ;;  %v143_v9 = vmax.f32 %v111_v59, 0.0  ;;  %v144_v10 = vmax.f32 %v112_v60, 0.0  ;;  %v145_v15 = vmax.f32 %v113_v61, 0.0 }
  0x14   :  { %v146_v18 = vmax.f32 %v114_v1, 0.0  ;;  %v147_v19 = vmax.f32 %v115_v2, 0.0  ;;  %v148_v20 = vmax.f32 %v116_v3, 0.0  ;;  %v149_v21 = vmax.f32 %v117_v4, 0.0 }
  0x15   :  { %174 = vst [vmem:[%s495_s3 + $0x40] sm:$0xff] %v142_v8  ;;  %175 = vst [vmem:[%s495_s3 + $0x48] sm:$0xff] %v143_v9  ;;  %v74_v22 = vmul.f32 %v243_v11, %v30_v62  ;;  %v75_v23 = vmul.f32 %v247_v13, %v31_v63  ;;  %v76_v24 = vmul.f32 %v243_v11, %v32_v0 }
  0x16   :  { %176 = vst [vmem:[%s495_s3 + $0x50] sm:$0xff] %v144_v10  ;;  %177 = vst [vmem:[%s495_s3 + $0x58] sm:$0xff] %v145_v15  ;;  %v77_v25 = vmul.f32 %v247_v13, %v33_v5  ;;  %v78_v26 = vmul.f32 %v243_v11, %v34_v6  ;;  %v79_v27 = vmul.f32 %v247_v13, %v35_v7 }
  0x17   :  { %178 = vst [vmem:[%s495_s3 + $0x60] sm:$0xff] %v146_v18  ;;  %179 = vst [vmem:[%s495_s3 + $0x68] sm:$0xff] %v147_v19  ;;  %v80_v28 = vmul.f32 %v243_v11, %v36_v16  ;;  %v81_v29 = vmul.f32 %v247_v13, %v37_v17  ;;  %v118_v30 = vadd.f32 %v245_v12, %v74_v22 }
  0x18   :  { %180 = vst [vmem:[%s495_s3 + $0x70] sm:$0xff] %v148_v20  ;;  %181 = vst [vmem:[%s495_s3 + $0x78] sm:$0xff] %v149_v21  ;;  %v119_v31 = vadd.f32 %v249_v14, %v75_v23  ;;  %v120_v32 = vadd.f32 %v245_v12, %v76_v24  ;;  %v121_v33 = vadd.f32 %v249_v14, %v77_v25 }
  0x19   :  { %v122_v37 = vadd.f32 %v245_v12, %v78_v26  ;;  %v123_v38 = vadd.f32 %v249_v14, %v79_v27  ;;  %v124_v39 = vadd.f32 %v245_v12, %v80_v28  ;;  %v125_v40 = vadd.f32 %v249_v14, %v81_v29 }
  0x1a   :  { %v150_v44 = vmax.f32 %v118_v30, 0.0  ;;  %v151_v45 = vmax.f32 %v119_v31, 0.0  ;;  %v152_v46 = vmax.f32 %v120_v32, 0.0  ;;  %v153_v47 = vmax.f32 %v121_v33, 0.0 }
  0x1b   :  { %v154_v50 = vmax.f32 %v122_v37, 0.0  ;;  %v155_v51 = vmax.f32 %v123_v38, 0.0  ;;  %v156_v52 = vmax.f32 %v124_v39, 0.0  ;;  %v157_v53 = vmax.f32 %v125_v40, 0.0 }
  0x1c   :  { %182 = vst [vmem:[%s495_s3 + $0x80] sm:$0xff] %v150_v44  ;;  %183 = vst [vmem:[%s495_s3 + $0x88] sm:$0xff] %v151_v45  ;;  %v82_v54 = vmul.f32 %v243_v11, %v38_v34  ;;  %v83_v55 = vmul.f32 %v247_v13, %v39_v35  ;;  %v84_v56 = vmul.f32 %v243_v11, %v40_v36 }
  0x1d   :  { %184 = vst [vmem:[%s495_s3 + $0x90] sm:$0xff] %v152_v46  ;;  %185 = vst [vmem:[%s495_s3 + $0x98] sm:$0xff] %v153_v47  ;;  %v85_v57 = vmul.f32 %v247_v13, %v41_v41  ;;  %v86_v58 = vmul.f32 %v243_v11, %v42_v42  ;;  %v87_v59 = vmul.f32 %v247_v13, %v43_v43 }
  0x1e   :  { %186 = vst [vmem:[%s495_s3 + $0xa0] sm:$0xff] %v154_v50  ;;  %187 = vst [vmem:[%s495_s3 + $0xa8] sm:$0xff] %v155_v51  ;;  %v88_v60 = vmul.f32 %v243_v11, %v44_v48  ;;  %v89_v61 = vmul.f32 %v247_v13, %v45_v49  ;;  %v126_v62 = vadd.f32 %v245_v12, %v82_v54 }
  0x1f   :  { %188 = vst [vmem:[%s495_s3 + $0xb0] sm:$0xff] %v156_v52  ;;  %189 = vst [vmem:[%s495_s3 + $0xb8] sm:$0xff] %v157_v53  ;;  %v127_v63 = vadd.f32 %v249_v14, %v83_v55  ;;  %v128_v0 = vadd.f32 %v245_v12, %v84_v56  ;;  %v129_v1 = vadd.f32 %v249_v14, %v85_v57 }
  0x20   :  { %v130_v2 = vadd.f32 %v245_v12, %v86_v58  ;;  %v131_v3 = vadd.f32 %v249_v14, %v87_v59  ;;  %v132_v4 = vadd.f32 %v245_v12, %v88_v60  ;;  %v133_v5 = vadd.f32 %v249_v14, %v89_v61 }
  0x21   :  { %v158_v6 = vmax.f32 %v126_v62, 0.0  ;;  %v159_v11 = vmax.f32 %v127_v63, 0.0  ;;  %v160_v7 = vmax.f32 %v128_v0, 0.0  ;;  %v161_v13 = vmax.f32 %v129_v1, 0.0 }
  0x22   :  { %v162_v8 = vmax.f32 %v130_v2, 0.0  ;;  %v163_v9 = vmax.f32 %v131_v3, 0.0  ;;  %v164_v10 = vmax.f32 %v132_v4, 0.0  ;;  %v165_v15 = vmax.f32 %v133_v5, 0.0 }
  0x23   :  { %190 = vst [vmem:[%s495_s3 + $0xc0] sm:$0xff] %v158_v6  ;;  %191 = vst [vmem:[%s495_s3 + $0xc8] sm:$0xff] %v159_v11 }
  0x24   :  { %192 = vst [vmem:[%s495_s3 + $0xd0] sm:$0xff] %v160_v7  ;;  %193 = vst [vmem:[%s495_s3 + $0xd8] sm:$0xff] %v161_v13 }
  0x25   :  { %194 = vst [vmem:[%s495_s3 + $0xe0] sm:$0xff] %v162_v8  ;;  %195 = vst [vmem:[%s495_s3 + $0xe8] sm:$0xff] %v163_v9 }
  0x26   :  { %196 = vst [vmem:[%s495_s3 + $0xf0] sm:$0xff] %v164_v10  ;;  %197 = vst [vmem:[%s495_s3 + $0xf8] sm:$0xff] %v165_v15 }

// kernel: res3d_forward.90
= control target key start
LH: loop header
LB: loop body
LE: loop exit
PB: predicated region body
PF: predicated region fallthrough
CT: control target
= control target key end

     0   :  { %s1593_s9 = smov 0   ;;  %s1595_s10 = smov 0   ;;  %s2120_s0 = inlined_call_operand.vmem [shape: bf16[128,3456], index: 0, kind: input, shape index: {}]   ;;  %s2121_s1 = inlined_call_operand.vmem [shape: bf16[3456,256], index: 1, kind: input, shape index: {}]   ;;  %s2122_s2 = inlined_call_operand.vmem [shape: f32[128,256], index: 2, kind: output, shape index: {}]  }
   0x1   :  { %s1597_s11 = smov 0   ;;  %s1599_s12 = smov 0  }
   0x2   :  { %s1601_s13 = smov 0  }
   0x3 LB: > { %s24_s14 = sadd.s32 1, %s1570_s12  ;;  %p47_p1 = scmp.ne.s32.totalorder %s1562_s10, %s1558_s9  ;;  %s1574_s13 = sphi %s1601_s13, %s12_s13   ;;  %s1570_s12 = sphi %s1599_s12, %s2126_s12   ;;  %s1566_s11 = sphi %s1597_s11, %s2125_s11   ;;  %s1562_s10 = sphi %s1595_s10, %s2124_s10   ;;  %s1558_s9 = sphi %s1593_s9, %s2123_s9  }
   0x4   : > { %p25_p0 = scmp.ge.s32.totalorder %s24_s14, 9  ;;  %p48_p2 = scmp.eq.s32.totalorder %s1574_s13, 0 }
   0x5   : > { %s40_s16 = sadd.s32 1, %s1562_s10  ;;  %p1240_p5 = scmp.ge.s32.totalorder %s1574_s13, 9 }
   0x6   : > { %s2128_s14 = smov (%p25_p0, %s24_s14), 0  ;;  %p49_p3 = por %p48_p2, %p47_p1 }
   0x7   : > { %s36_s15 = ssub.s32 %s1570_s12, %s2128_s14  ;;  %129 = sbr.rel (%p1240_p5) target bundleno = 37 (0x25), region = 16 }
   0x8   : > { %p38_p4 = scmp.eq.s32.totalorder %s36_s15, 0 }
   0xa   : > { %s1628_s17 = scalar_select %p38_p4, %s1562_s10, %s40_s16  }
   0xe   : > { %132 = sbr.rel (!%p49_p3) target bundleno = 37 (0x25), region = 20  ;;  %s134_s18 = sand.u32 (%p49_p3), 1, %s1562_s10  }
   0xf   : > { %s1354_s19 = smul.u32 (%p49_p3), 12, %s1570_s12 }
  0x10   : > { %s1388_s20 = smul.u32 (%p49_p3), 192, %s134_s18 }
  0x11   : > { %s1636_s23 = scalar_lea.vmem (%p49_p3), %s2120_s0, %s1354_s19 }
  0x12   : > { %v157_v0 = vld [vmem:[%s1636_s23] sm:$0xff] (%p49_p3)  ;;  %v159_v1 = vld [vmem:[%s1636_s23 + $0x6c] sm:$0xff] (%p49_p3)  ;;  %v161_v2 = vld [vmem:[%s1636_s23 + $0xd8] sm:$0xff] (%p49_p3)  ;;  %s1641_s24 = scalar_lea.vmem (%p49_p3), [#allocation2], %s1388_s20 }
  0x13   : > { %158 = vst [vmem:[%s1641_s24] sm:$0xff] (%p49_p3), %v157_v0  ;;  %160 = vst [vmem:[%s1641_s24 + $0xc] sm:$0xff] (%p49_p3), %v159_v1  ;;  %v163_v3 = vld [vmem:[%s1636_s23 + $0x144] sm:$0xff] (%p49_p3)  ;;  %v165_v4 = vld [vmem:[%s1636_s23 + $0x1b0] sm:$0xff] (%p49_p3) }
  0x14   : > { %162 = vst [vmem:[%s1641_s24 + $0x18] sm:$0xff] (%p49_p3), %v161_v2  ;;  %v167_v5 = vld [vmem:[%s1636_s23 + $0x21c] sm:$0xff] (%p49_p3)  ;;  %164 = vst [vmem:[%s1641_s24 + $0x24] sm:$0xff] (%p49_p3), %v163_v3  ;;  %v169_v6 = vld [vmem:[%s1636_s23 + $0x288] sm:$0xff] (%p49_p3) }
  0x15   : > { %166 = vst [vmem:[%s1641_s24 + $0x30] sm:$0xff] %v165_v4  ;;  %168 = vst [vmem:[%s1641_s24 + $0x3c] sm:$0xff] %v167_v5  ;;  %v171_v7 = vld [vmem:[%s1636_s23 + $0x2f4] sm:$0xff]  ;;  %v173_v8 = vld [vmem:[%s1636_s23 + $0x360] sm:$0xff] }
  0x16   : > { %170 = vst [vmem:[%s1641_s24 + $0x48] sm:$0xff] %v169_v6  ;;  %172 = vst [vmem:[%s1641_s24 + $0x54] sm:$0xff] %v171_v7  ;;  %v175_v9 = vld [vmem:[%s1636_s23 + $0x3cc] sm:$0xff]  ;;  %v177_v10 = vld [vmem:[%s1636_s23 + $0x438] sm:$0xff] }
  0x17   : > { %174 = vst [vmem:[%s1641_s24 + $0x60] sm:$0xff] %v173_v8  ;;  %v179_v11 = vld [vmem:[%s1636_s23 + $0x4a4] sm:$0xff]  ;;  %176 = vst [vmem:[%s1641_s24 + $0x6c] sm:$0xff] %v175_v9  ;;  %v181_v12 = vld [vmem:[%s1636_s23 + $0x510] sm:$0xff] }
  0x18   : > { %178 = vst [vmem:[%s1641_s24 + $0x78] sm:$0xff] %v177_v10  ;;  %180 = vst [vmem:[%s1641_s24 + $0x84] sm:$0xff] %v179_v11  ;;  %v183_v13 = vld [vmem:[%s1636_s23 + $0x57c] sm:$0xff]  ;;  %v185_v14 = vld [vmem:[%s1636_s23 + $0x5e8] sm:$0xff] }
  0x19   : > { %182 = vst [vmem:[%s1641_s24 + $0x90] sm:$0xff] %v181_v12  ;;  %184 = vst [vmem:[%s1641_s24 + $0x9c] sm:$0xff] %v183_v13  ;;  %v187_v15 = vld [vmem:[%s1636_s23 + $0x654] sm:$0xff]  ;;  %v1242_v16 = vld [vmem:[%s1636_s23 + $0x8] sm:$0xf] }
  0x1a   : > { %186 = vst [vmem:[%s1641_s24 + $0xa8] sm:$0xff] %v185_v14  ;;  %v1244_v17 = vld [vmem:[%s1636_s23 + $0x74] sm:$0xf]  ;;  %188 = vst [vmem:[%s1641_s24 + $0xb4] sm:$0xff] %v187_v15  ;;  %v1246_v18 = vld [vmem:[%s1636_s23 + $0xe0] sm:$0xf] }
  0x1b   : > { %1243 = vst [vmem:[%s1641_s24 + $0x8] sm:$0xf] %v1242_v16  ;;  %1245 = vst [vmem:[%s1641_s24 + $0x14] sm:$0xf] %v1244_v17  ;;  %v1248_v19 = vld [vmem:[%s1636_s23 + $0x14c] sm:$0xf] }
  0x1c   : > { %v1250_v20 = vld [vmem:[%s1636_s23 + $0x1b8] sm:$0xf]  ;;  %1247 = vst [vmem:[%s1641_s24 + $0x20] sm:$0xf] %v1246_v18  ;;  %1249 = vst [vmem:[%s1641_s24 + $0x2c] sm:$0xf] %v1248_v19 }
  0x1d   : > { %1251 = vst [vmem:[%s1641_s24 + $0x38] sm:$0xf] %v1250_v20  ;;  %v1252_v21 = vld [vmem:[%s1636_s23 + $0x224] sm:$0xf]  ;;  %v1254_v22 = vld [vmem:[%s1636_s23 + $0x290] sm:$0xf] }
  0x1e   : > { %v1256_v23 = vld [vmem:[%s1636_s23 + $0x2fc] sm:$0xf]  ;;  %1253 = vst [vmem:[%s1641_s24 + $0x44] sm:$0xf] %v1252_v21  ;;  %1255 = vst [vmem:[%s1641_s24 + $0x50] sm:$0xf] %v1254_v22 }
  0x1f   : > { %1257 = vst [vmem:[%s1641_s24 + $0x5c] sm:$0xf] %v1256_v23  ;;  %v1258_v24 = vld [vmem:[%s1636_s23 + $0x368] sm:$0xf]  ;;  %v1260_v25 = vld [vmem:[%s1636_s23 + $0x3d4] sm:$0xf] }
  0x20   : > { %v1262_v26 = vld [vmem:[%s1636_s23 + $0x440] sm:$0xf]  ;;  %1259 = vst [vmem:[%s1641_s24 + $0x68] sm:$0xf] %v1258_v24  ;;  %1261 = vst [vmem:[%s1641_s24 + $0x74] sm:$0xf] %v1260_v25 }
  0x21   : > { %1263 = vst [vmem:[%s1641_s24 + $0x80] sm:$0xf] %v1262_v26  ;;  %v1264_v27 = vld [vmem:[%s1636_s23 + $0x4ac] sm:$0xf]  ;;  %v1266_v28 = vld [vmem:[%s1636_s23 + $0x518] sm:$0xf] }
  0x22   : > { %v1268_v29 = vld [vmem:[%s1636_s23 + $0x584] sm:$0xf]  ;;  %1265 = vst [vmem:[%s1641_s24 + $0x8c] sm:$0xf] %v1264_v27  ;;  %1267 = vst [vmem:[%s1641_s24 + $0x98] sm:$0xf] %v1266_v28 }
  0x23   : > { %1269 = vst [vmem:[%s1641_s24 + $0xa4] sm:$0xf] %v1268_v29  ;;  %v1270_v30 = vld [vmem:[%s1636_s23 + $0x5f0] sm:$0xf]  ;;  %v1272_v31 = vld [vmem:[%s1636_s23 + $0x65c] sm:$0xf] }
  0x24   : > { %1271 = vst [vmem:[%s1641_s24 + $0xb0] sm:$0xf] %v1270_v30  ;;  %1273 = vst [vmem:[%s1641_s24 + $0xbc] sm:$0xf] %v1272_v31 }
  0x25 PF: > { %p1274_p6 = scmp.ge.s32.totalorder %s1574_s13, 1  ;;  %p247_p7 = scmp.lt.s32.totalorder %s1574_s13, 10 }
  0x27   : > { %p248_p8 = pnand %p1274_p6, %p247_p7 }
  0x28   : > { %s254_s25 = sand.u32 (!%p248_p8), 1, %s1558_s9   ;;  %s292_s26 = smul.u32 (!%p248_p8), 48, %s1566_s11 }
  0x29   : > { %251 = sbr.rel (%p248_p8) target bundleno = 407 (0x197), region = 50  ;;  %p1277_p10 = scmp.ne.s32.totalorder (!%p248_p8), %s1566_s11, 0 }
  0x2a   : > { %s1389_s27 = smul.u32 (!%p248_p8), 192, %s254_s25  ;;  %p294_p9 = scmp.lt.s32.totalorder (!%p248_p8), %s292_s26, 431 }
  0x2c   : > { %s1713_s4 = scalar_lea.vmem (!%p248_p8), [#allocation2], %s1389_s27 }
  0x30   : > { %s2130_s26 = smov (!%p294_p9, %s292_s26), 431  ;;  %320 = sbr.rel (%p1277_p10) target bundleno = 66 (0x42), region = 58 }
  0x31   : > { %s1355_s28 = sshll.u32 %s2130_s26, 3  ;;  %v1576_v32 = vmov (!%p1277_p10), 0.0  }
  0x32   : > { %s1711_s3 = scalar_lea.vmem %s2121_s1, %s1355_s28  ;;  %321 = vst [vmem:[%s2122_s2] sm:$0xff] (!%p1277_p10), %v1576_v32  ;;  %322 = vst [vmem:[%s2122_s2 + $0x8] sm:$0xff] (!%p1277_p10), %v1576_v32 }
  0x33   : > { %323 = vst [vmem:[%s2122_s2 + $0x10] sm:$0xff] (!%p1277_p10), %v1576_v32  ;;  %324 = vst [vmem:[%s2122_s2 + $0x18] sm:$0xff] (!%p1277_p10), %v1576_v32 }
  0x34   : > { %325 = vst [vmem:[%s2122_s2 + $0x20] sm:$0xff] (!%p1277_p10), %v1576_v32  ;;  %326 = vst [vmem:[%s2122_s2 + $0x28] sm:$0xff] (!%p1277_p10), %v1576_v32 }
  0x35   : > { %327 = vst [vmem:[%s2122_s2 + $0x30] sm:$0xff] (!%p1277_p10), %v1576_v32  ;;  %328 = vst [vmem:[%s2122_s2 + $0x38] sm:$0xff] (!%p1277_p10), %v1576_v32 }
  0x36   : > { %329 = vst [vmem:[%s2122_s2 + $0x40] sm:$0xff] (!%p1277_p10), %v1576_v32  ;;  %330 = vst [vmem:[%s2122_s2 + $0x48] sm:$0xff] (!%p1277_p10), %v1576_v32 }
  0x37   : > { %331 = vst [vmem:[%s2122_s2 + $0x50] sm:$0xff] %v1576_v32  ;;  %332 = vst [vmem:[%s2122_s2 + $0x58] sm:$0xff] %v1576_v32 }
  0x38   : > { %333 = vst [vmem:[%s2122_s2 + $0x60] sm:$0xff] %v1576_v32  ;;  %334 = vst [vmem:[%s2122_s2 + $0x68] sm:$0xff] %v1576_v32 }
  0x39   : > { %335 = vst [vmem:[%s2122_s2 + $0x70] sm:$0xff] %v1576_v32  ;;  %336 = vst [vmem:[%s2122_s2 + $0x78] sm:$0xff] %v1576_v32 }
  0x3a   : > { %337 = vst [vmem:[%s2122_s2 + $0x80] sm:$0xff] %v1576_v32  ;;  %338 = vst [vmem:[%s2122_s2 + $0x88] sm:$0xff] %v1576_v32 }
  0x3b   : > { %339 = vst [vmem:[%s2122_s2 + $0x90] sm:$0xff] %v1576_v32  ;;  %340 = vst [vmem:[%s2122_s2 + $0x98] sm:$0xff] %v1576_v32 }
  0x3c   : > { %341 = vst [vmem:[%s2122_s2 + $0xa0] sm:$0xff] %v1576_v32  ;;  %342 = vst [vmem:[%s2122_s2 + $0xa8] sm:$0xff] %v1576_v32 }
  0x3d   : > { %343 = vst [vmem:[%s2122_s2 + $0xb0] sm:$0xff] %v1576_v32  ;;  %344 = vst [vmem:[%s2122_s2 + $0xb8] sm:$0xff] %v1576_v32 }
  0x3e   : > { %345 = vst [vmem:[%s2122_s2 + $0xc0] sm:$0xff] %v1576_v32  ;;  %346 = vst [vmem:[%s2122_s2 + $0xc8] sm:$0xff] %v1576_v32 }
  0x3f   : > { %347 = vst [vmem:[%s2122_s2 + $0xd0] sm:$0xff] %v1576_v32  ;;  %348 = vst [vmem:[%s2122_s2 + $0xd8] sm:$0xff] %v1576_v32 }
  0x40   : > { %349 = vst [vmem:[%s2122_s2 + $0xe0] sm:$0xff] %v1576_v32  ;;  %350 = vst [vmem:[%s2122_s2 + $0xe8] sm:$0xff] %v1576_v32 }
  0x41   : > { %351 = vst [vmem:[%s2122_s2 + $0xf0] sm:$0xff] %v1576_v32  ;;  %352 = vst [vmem:[%s2122_s2 + $0xf8] sm:$0xff] %v1576_v32 }
  0x42 PF: > { %v1432_v33 = vld [vmem:[%s1711_s3 + $0x4] ss:$8 sps:$4 sm:$0xff]   ;;  %v1434_v34 = vld [vmem:[%s1711_s3] ss:$8 sps:$4 sm:$0xff]   ;;  %v1577_v35 = vmov 0  }
  0x43   : > { %978 = vmatprep.mubr.bf16.mxu0 %v1577_v35  ;;  %833 = vmatprep.subr.bf16.mxu1 %v1432_v33  ;;  %v1435_v36 = vld [vmem:[%s1711_s3 + $0x14] ss:$8 sps:$4 sm:$0xff]   ;;  %v1437_v37 = vld [vmem:[%s1711_s3 + $0x10] ss:$8 sps:$4 sm:$0xff]   ;;  %v1438_v38 = vld [vmem:[%s1711_s3 + $0x24] ss:$8 sps:$4 sm:$0xff]  }
  0x44   : > { %834 = vmatpush1.bf16.msra.mxu1 %v1434_v34  ;;  %v1440_v39 = vld [vmem:[%s1711_s3 + $0x20] ss:$8 sps:$4 sm:$0xff]   ;;  %v1441_v40 = vld [vmem:[%s1711_s3 + $0x34] ss:$8 sps:$4 sm:$0xff]   ;;  %v1443_v41 = vld [vmem:[%s1711_s3 + $0x30] ss:$8 sps:$4 sm:$0xff]  }
  0x45   : > { %835 = vmatprep.subr.bf16.mxu1 %v1435_v36  ;;  %v1456_v42 = vld [vmem:[%s1711_s3 + $0x104] ss:$8 sps:$4 sm:$0xff]   ;;  %v1458_v43 = vld [vmem:[%s1711_s3 + $0x100] ss:$8 sps:$4 sm:$0xff]   ;;  %v1462_v45 = vld [vmem:[%s1711_s3 + $0x114] ss:$8 sps:$4 sm:$0xff]  }
  0x46   : > { %v1444_v44 = vld [vmem:[%s1711_s3 + $0x44] ss:$8 sps:$4 sm:$0xff]   ;;  %946 = vmatprep.subr.bf16.mxu0 %v1456_v42  ;;  %v1464_v46 = vld [vmem:[%s1711_s3 + $0x110] ss:$8 sps:$4 sm:$0xff]   ;;  %v1446_v47 = vld [vmem:[%s1711_s3 + $0x40] ss:$8 sps:$4 sm:$0xff]  }
  0x47   : > { %947 = vmatpush1.bf16.msra.mxu0 %v1458_v43  ;;  %v1447_v48 = vld [vmem:[%s1711_s3 + $0x54] ss:$8 sps:$4 sm:$0xff]   ;;  %v1468_v49 = vld [vmem:[%s1711_s3 + $0x124] ss:$8 sps:$4 sm:$0xff]   ;;  %v1470_v50 = vld [vmem:[%s1711_s3 + $0x120] ss:$8 sps:$4 sm:$0xff]  }
  0x48   : > { %836 = vmatpush1.bf16.msra.mxu1 %v1437_v37  ;;  %948 = vmatprep.subr.bf16.mxu0 %v1462_v45  ;;  %v1449_v51 = vld [vmem:[%s1711_s3 + $0x50] ss:$8 sps:$4 sm:$0xff]   ;;  %v1474_v52 = vld [vmem:[%s1711_s3 + $0x134] ss:$8 sps:$4 sm:$0xff]   ;;  %v1450_v53 = vld [vmem:[%s1711_s3 + $0x64] ss:$8 sps:$4 sm:$0xff]  }
  0x49   : > { %837 = vmatprep.subr.bf16.mxu1 %v1438_v38  ;;  %v1476_v54 = vld [vmem:[%s1711_s3 + $0x130] ss:$8 sps:$4 sm:$0xff]   ;;  %v1452_v55 = vld [vmem:[%s1711_s3 + $0x60] ss:$8 sps:$4 sm:$0xff]   ;;  %v1480_v56 = vld [vmem:[%s1711_s3 + $0x144] ss:$8 sps:$4 sm:$0xff]  }
  0x4a   : > { %v1453_v57 = vld [vmem:[%s1711_s3 + $0x74] ss:$8 sps:$4 sm:$0xff]   ;;  %v1482_v58 = vld [vmem:[%s1711_s3 + $0x140] ss:$8 sps:$4 sm:$0xff]   ;;  %v1455_v59 = vld [vmem:[%s1711_s3 + $0x70] ss:$8 sps:$4 sm:$0xff]  }
  0x4b   : > { %949 = vmatpush1.bf16.msra.mxu0 %v1464_v46  ;;  %v1486_v60 = vld [vmem:[%s1711_s3 + $0x154] ss:$8 sps:$4 sm:$0xff]   ;;  %v1459_v61 = vld [vmem:[%s1711_s3 + $0x84] ss:$8 sps:$4 sm:$0xff]   ;;  %v1488_v62 = vld [vmem:[%s1711_s3 + $0x150] ss:$8 sps:$4 sm:$0xff]  }
  0x4c   : > { %838 = vmatpush1.bf16.msra.mxu1 %v1440_v39  ;;  %950 = vmatprep.subr.bf16.mxu0 %v1468_v49  ;;  %v1461_v63 = vld [vmem:[%s1711_s3 + $0x80] ss:$8 sps:$4 sm:$0xff]   ;;  %v1492_v0 = vld [vmem:[%s1711_s3 + $0x164] ss:$8 sps:$4 sm:$0xff]   ;;  %v1465_v1 = vld [vmem:[%s1711_s3 + $0x94] ss:$8 sps:$4 sm:$0xff]  }
  0x4d   : > { %839 = vmatprep.subr.bf16.mxu1 %v1441_v40  ;;  %v1467_v2 = vld [vmem:[%s1711_s3 + $0x90] ss:$8 sps:$4 sm:$0xff]   ;;  %v1494_v3 = vld [vmem:[%s1711_s3 + $0x160] ss:$8 sps:$4 sm:$0xff]   ;;  %v1498_v5 = vld [vmem:[%s1711_s3 + $0x174] ss:$8 sps:$4 sm:$0xff]  }
  0x4e   : > { %v1507_v4 = vld [vmem:[%s1713_s4 + $0x4] ss:$12 sps:$4 sm:$0xff]   ;;  %v1473_v8 = vld [vmem:[%s1711_s3 + $0xa0] ss:$8 sps:$4 sm:$0xff]   ;;  %v1477_v9 = vld [vmem:[%s1711_s3 + $0xb4] ss:$8 sps:$4 sm:$0xff]  }
  0x4f   : > { %951 = vmatpush1.bf16.msra.mxu0 %v1470_v50  ;;  %v1471_v6 = vld [vmem:[%s1711_s3 + $0xa4] ss:$8 sps:$4 sm:$0xff]   ;;  %865 = vmatprep.mubr.bf16.mxu1 %v1507_v4  ;;  %v1500_v7 = vld [vmem:[%s1711_s3 + $0x170] ss:$8 sps:$4 sm:$0xff]   ;;  %v1504_v10 = vld [vmem:[%s1713_s4 + $0x8] ss:$12 sps:$4 sm:$0xff]  }
  0x50   : > { %840 = vmatpush1.bf16.msra.mxu1 %v1443_v41  ;;  %952 = vmatprep.subr.bf16.mxu0 %v1474_v52  ;;  %v1479_v11 = vld [vmem:[%s1711_s3 + $0xb0] ss:$8 sps:$4 sm:$0xff]   ;;  %v1483_v12 = vld [vmem:[%s1711_s3 + $0xc4] ss:$8 sps:$4 sm:$0xff]   ;;  %v1485_v13 = vld [vmem:[%s1711_s3 + $0xc0] ss:$8 sps:$4 sm:$0xff]  }
  0x51   : > { %841 = vmatprep.subr.bf16.mxu1 %v1444_v44  ;;  %v1489_v14 = vld [vmem:[%s1711_s3 + $0xd4] ss:$8 sps:$4 sm:$0xff]   ;;  %v1508_v15 = vld [vmem:[%s1713_s4 + $0x20] ss:$12 sps:$4 sm:$0xff]   ;;  %v1491_v16 = vld [vmem:[%s1711_s3 + $0xd0] ss:$8 sps:$4 sm:$0xff]  }
  0x52   : > { %v1495_v17 = vld [vmem:[%s1711_s3 + $0xe4] ss:$8 sps:$4 sm:$0xff]   ;;  %v1497_v18 = vld [vmem:[%s1711_s3 + $0xe0] ss:$8 sps:$4 sm:$0xff]   ;;  %v1501_v19 = vld [vmem:[%s1711_s3 + $0xf4] ss:$8 sps:$4 sm:$0xff]  }
  0x53   : > { %953 = vmatpush1.bf16.msra.mxu0 %v1476_v54  ;;  %v1512_v20 = vld [vmem:[%s1713_s4 + $0x38] ss:$12 sps:$4 sm:$0xff]   ;;  %v1505_v22 = vld [vmem:[%s1713_s4] ss:$12 sps:$4 sm:$0xff]   ;;  %v1509_v23 = vld [vmem:[%s1713_s4 + $0x1c] ss:$12 sps:$4 sm:$0xff]  }
  0x54   : > { %842 = vmatpush1.bf16.msra.mxu1 %v1446_v47  ;;  %954 = vmatprep.subr.bf16.mxu0 %v1480_v56  ;;  %v1503_v21 = vld [vmem:[%s1711_s3 + $0xf0] ss:$8 sps:$4 sm:$0xff]   ;;  %v1513_v26 = vld [vmem:[%s1713_s4 + $0x34] ss:$12 sps:$4 sm:$0xff]   ;;  %v1525_v36 = vld [vmem:[%s1713_s4 + $0x7c] ss:$12 sps:$4 sm:$0xff]  }
  0x55   : > { %843 = vmatprep.subr.bf16.mxu1 %v1447_v48  ;;  %v1516_v24 = vld [vmem:[%s1713_s4 + $0x50] ss:$12 sps:$4 sm:$0xff]   ;;  %v1511_v25 = vld [vmem:[%s1713_s4 + $0x18] ss:$12 sps:$4 sm:$0xff]   ;;  %v1520_v27 = vld [vmem:[%s1713_s4 + $0x68] ss:$12 sps:$4 sm:$0xff]  }
  0x56   : > { %v1515_v28 = vld [vmem:[%s1713_s4 + $0x30] ss:$12 sps:$4 sm:$0xff]   ;;  %v1517_v29 = vld [vmem:[%s1713_s4 + $0x4c] ss:$12 sps:$4 sm:$0xff]   ;;  %v1519_v31 = vld [vmem:[%s1713_s4 + $0x48] ss:$12 sps:$4 sm:$0xff]  }
  0x57   : > { %955 = vmatpush1.bf16.msra.mxu0 %v1482_v58  ;;  %v1524_v30 = vld [vmem:[%s1713_s4 + $0x80] ss:$12 sps:$4 sm:$0xff]   ;;  %v1521_v32 = vld [vmem:[%s1713_s4 + $0x64] ss:$12 sps:$4 sm:$0xff]   ;;  %v1535_v42 = vld [vmem:[%s1713_s4 + $0xa8] ss:$12 sps:$4 sm:$0xff]  }
  0x58   : > { %844 = vmatpush1.bf16.msra.mxu1 %v1449_v51  ;;  %956 = vmatprep.subr.bf16.mxu0 %v1486_v60  ;;  %v1528_v33 = vld [vmem:[%s1713_s4 + $0x98] ss:$12 sps:$4 sm:$0xff]   ;;  %v1523_v34 = vld [vmem:[%s1713_s4 + $0x60] ss:$12 sps:$4 sm:$0xff]   ;;  %v1532_v37 = vld [vmem:[%s1713_s4 + $0xb0] ss:$12 sps:$4 sm:$0xff]  }
  0x59   : > { %845 = vmatprep.subr.bf16.mxu1 %v1450_v53  ;;  %v1527_v38 = vld [vmem:[%s1713_s4 + $0x78] ss:$12 sps:$4 sm:$0xff]   ;;  %v1529_v39 = vld [vmem:[%s1713_s4 + $0x94] ss:$12 sps:$4 sm:$0xff]   ;;  %v1531_v40 = vld [vmem:[%s1713_s4 + $0x90] ss:$12 sps:$4 sm:$0xff]  }
  0x5a   : > { %v1533_v41 = vld [vmem:[%s1713_s4 + $0xac] ss:$12 sps:$4 sm:$0xff]   ;;  %v353_v54 = vld [vmem:[%s2122_s2] sm:$0xff]  ;;  %v355_v60 = vld [vmem:[%s2122_s2 + $0x10] sm:$0xff] }
  0x5b   : > { %957 = vmatpush1.bf16.msra.mxu0 %v1488_v62 }
  0x5c   : > { %846 = vmatpush1.bf16.msra.mxu1 %v1452_v55  ;;  %958 = vmatprep.subr.bf16.mxu0 %v1492_v0  ;;  %v356_v0 = vld [vmem:[%s2122_s2 + $0x18] sm:$0xff] }
  0x5d   : > { %847 = vmatprep.subr.bf16.mxu1 %v1453_v57  ;;  %v354_v57 = vld [vmem:[%s2122_s2 + $0x8] sm:$0xff] }
  0x5f   : > { %959 = vmatpush1.bf16.msra.mxu0 %v1494_v3 }
  0x60   : > { %848 = vmatpush1.bf16.msra.mxu1 %v1455_v59  ;;  %960 = vmatprep.subr.bf16.mxu0 %v1498_v5 }
  0x61   : > { %849 = vmatprep.subr.bf16.mxu1 %v1459_v61 }
  0x63   : > { %961 = vmatpush1.bf16.msra.mxu0 %v1500_v7 }
  0x64   : > { %850 = vmatpush1.bf16.msra.mxu1 %v1461_v63 }
  0x65   : > { %851 = vmatprep.subr.bf16.mxu1 %v1465_v1 }
  0x66   : > { %979 = vmatmul.mubr.bf16.vlgmr.msra.gmra.mrb[0].mxu0 %v1504_v10  ;;  %v357_v10 = vld [vmem:[%s2122_s2 + $0x20] sm:$0xff] }
  0x67   : > { %988 = vmatprep.mubr.bf16.mxu0 %v1577_v35 }
  0x68   : > { %852 = vmatpush1.bf16.msra.mxu1 %v1467_v2 }
  0x69   : > { %853 = vmatprep.subr.bf16.mxu1 %v1471_v6 }
  0x6c   : > { %854 = vmatpush1.bf16.msra.mxu1 %v1473_v8 }
  0x6d   : > { %855 = vmatprep.subr.bf16.mxu1 %v1477_v9 }
  0x6e   : > { %989 = vmatmul.mubr.bf16.gmra.mrb[4].mxu0 %v1508_v15 }
  0x6f   : > { %998 = vmatprep.mubr.bf16.mxu0 %v1577_v35 }
  0x70   : > { %856 = vmatpush1.bf16.msra.mxu1 %v1479_v11 }
  0x71   : > { %857 = vmatprep.subr.bf16.mxu1 %v1483_v12 }
  0x74   : > { %858 = vmatpush1.bf16.msra.mxu1 %v1485_v13  ;;  %v358_v13 = vld [vmem:[%s2122_s2 + $0x28] sm:$0xff] }
  0x75   : > { %859 = vmatprep.subr.bf16.mxu1 %v1489_v14 }
  0x76   : > { %999 = vmatmul.mubr.bf16.gmra.mrb[8].mxu0 %v1512_v20  ;;  %v360_v20 = vld [vmem:[%s2122_s2 + $0x38] sm:$0xff] }
  0x77   : > { %1008 = vmatprep.mubr.bf16.mxu0 %v1577_v35 }
  0x78   : > { %860 = vmatpush1.bf16.msra.mxu1 %v1491_v16  ;;  %v359_v16 = vld [vmem:[%s2122_s2 + $0x30] sm:$0xff] }
  0x79   : > { %861 = vmatprep.subr.bf16.mxu1 %v1495_v17 }
  0x7c   : > { %862 = vmatpush1.bf16.msra.mxu1 %v1497_v18 }
  0x7d   : > { %863 = vmatprep.subr.bf16.mxu1 %v1501_v19 }
  0x7e   : > { %1009 = vmatmul.mubr.bf16.gmra.mrb[12].mxu0 %v1516_v24 }
  0x7f   : > { %1018 = vmatprep.mubr.bf16.mxu0 %v1577_v35 }
  0x80   : > { %864 = vmatpush1.bf16.msra.mxu1 %v1503_v21 }
  0x83   : > { %866 = vmatmul.mubr.bf16.vlgmr.msra.gmra.mrb[0].mxu1 %v1505_v22 }
  0x84   : > { %875 = vmatprep.mubr.bf16.mxu1 %v1509_v23 }
  0x86   : > { %1019 = vmatmul.mubr.bf16.gmra.mrb[16].mxu0 %v1520_v27 }
  0x87   : > { %1028 = vmatprep.mubr.bf16.mxu0 %v1577_v35 }
  0x8b   : > { %876 = vmatmul.mubr.bf16.gmra.mrb[4].mxu1 %v1511_v25 }
  0x8c   : > { %885 = vmatprep.mubr.bf16.mxu1 %v1513_v26 }
  0x8e   : > { %1029 = vmatmul.mubr.bf16.gmra.mrb[20].mxu0 %v1524_v30  ;;  %v361_v30 = vld [vmem:[%s2122_s2 + $0x40] sm:$0xff] }
  0x8f   : > { %1038 = vmatprep.mubr.bf16.mxu0 %v1577_v35 }
  0x93   : > { %886 = vmatmul.mubr.bf16.gmra.mrb[8].mxu1 %v1515_v28 }
  0x94   : > { %895 = vmatprep.mubr.bf16.mxu1 %v1517_v29 }
  0x96   : > { %1039 = vmatmul.mubr.bf16.gmra.mrb[24].mxu0 %v1528_v33  ;;  %v362_v33 = vld [vmem:[%s2122_s2 + $0x48] sm:$0xff] }
  0x97   : > { %1048 = vmatprep.mubr.bf16.mxu0 %v1577_v35 }
  0x9b   : > { %896 = vmatmul.mubr.bf16.gmra.mrb[12].mxu1 %v1519_v31 }
  0x9c   : > { %905 = vmatprep.mubr.bf16.mxu1 %v1521_v32 }
  0x9e   : > { %1049 = vmatmul.mubr.bf16.gmra.mrb[28].mxu0 %v1532_v37  ;;  %v363_v37 = vld [vmem:[%s2122_s2 + $0x50] sm:$0xff] }
  0xa3   : > { %906 = vmatmul.mubr.bf16.gmra.mrb[16].mxu1 %v1523_v34 }
  0xa4   : > { %915 = vmatprep.mubr.bf16.mxu1 %v1525_v36 }
  0xab   : > { %916 = vmatmul.mubr.bf16.gmra.mrb[20].mxu1 %v1527_v38 }
  0xac   : > { %925 = vmatprep.mubr.bf16.mxu1 %v1529_v39 }
  0xb3   : > { %926 = vmatmul.mubr.bf16.gmra.mrb[24].mxu1 %v1531_v40 }
  0xb4   : > { %935 = vmatprep.mubr.bf16.mxu1 %v1533_v41  ;;  %v364_v41 = vld [vmem:[%s2122_s2 + $0x58] sm:$0xff] }
  0xbb   : > { %936 = vmatmul.mubr.bf16.gmra.mrb[28].mxu1 %v1535_v42 }
 0x139   : > { %v980_v43 = vpop.f32.mrb[0].mxu0 }
 0x13a   : > { %v982_v44 = vpop.f32.mrb[1].mxu0 }
 0x13b   : > { %v984_v45 = vpop.f32.mrb[2].mxu0 }
 0x13c   : > { %v986_v46 = vpop.f32.mrb[3].mxu0 }
 0x141   : > { %v990_v35 = vpop.f32.mrb[4].mxu0 }
 0x142   : > { %v992_v47 = vpop.f32.mrb[5].mxu0 }
 0x143   : > { %v994_v48 = vpop.f32.mrb[6].mxu0 }
 0x144   : > { %v996_v49 = vpop.f32.mrb[7].mxu0 }
 0x149   : > { %v1000_v50 = vpop.f32.mrb[8].mxu0 }
 0x14a   : > { %v1002_v51 = vpop.f32.mrb[9].mxu0 }
 0x14b   : > { %v1004_v52 = vpop.f32.mrb[10].mxu0 }
 0x14c   : > { %v1892_v53 = vpop.f32.mrb[11].mxu0 }
 0x151   : > { %v1010_v2 = vpop.f32.mrb[12].mxu0 }
 0x152   : > { %v1012_v5 = vpop.f32.mrb[13].mxu0 }
 0x153   : > { %v1909_v7 = vpop.f32.mrb[14].mxu0 }
 0x154   : > { %v1914_v9 = vpop.f32.mrb[15].mxu0 }
 0x156   : > { %v867_v55 = vpop.f32.mrb[0].mxu1 }
 0x157   : > { %v981_v56 = vadd.f32 %v980_v43, %v867_v55  ;;  %v869_v58 = vpop.f32.mrb[1].mxu1 }
 0x158   : > { %v983_v59 = vadd.f32 %v982_v44, %v869_v58  ;;  %v871_v61 = vpop.f32.mrb[2].mxu1 }
 0x159   : > { %v1059_v62 = vadd.f32 %v981_v56, %v353_v54  ;;  %v985_v63 = vadd.f32 %v984_v45, %v871_v61  ;;  %v873_v1 = vpop.f32.mrb[3].mxu1  ;;  %v1020_v22 = vpop.f32.mrb[16].mxu0  ;;  %v367_v56 = vld [vmem:[%s2122_s2 + $0x70] sm:$0xff] }
 0x15a   : > { %v1060_v3 = vadd.f32 %v983_v59, %v354_v57  ;;  %v987_v4 = vadd.f32 %v986_v46, %v873_v1  ;;  %v1022_v25 = vpop.f32.mrb[17].mxu0 }
 0x15b   : > { %1091 = vst [vmem:[%s2122_s2] sm:$0xff] %v1059_v62  ;;  %v1061_v6 = vadd.f32 %v985_v63, %v355_v60  ;;  %v1937_v27 = vpop.f32.mrb[18].mxu0  ;;  %v368_v60 = vld [vmem:[%s2122_s2 + $0x78] sm:$0xff] }
 0x15c   : > { %1092 = vst [vmem:[%s2122_s2 + $0x8] sm:$0xff] %v1060_v3  ;;  %v1062_v8 = vadd.f32 %v987_v4, %v356_v0  ;;  %v1942_v29 = vpop.f32.mrb[19].mxu0 }
 0x15d   : > { %1093 = vst [vmem:[%s2122_s2 + $0x10] sm:$0xff] %v1061_v6  ;;  %v369_v6 = vld [vmem:[%s2122_s2 + $0x80] sm:$0xff] }
 0x15e   : > { %1094 = vst [vmem:[%s2122_s2 + $0x18] sm:$0xff] %v1062_v8  ;;  %v877_v11 = vpop.f32.mrb[4].mxu1 }
 0x15f   : > { %v991_v12 = vadd.f32 %v990_v35, %v877_v11  ;;  %v879_v14 = vpop.f32.mrb[5].mxu1 }
 0x160   : > { %v993_v15 = vadd.f32 %v992_v47, %v879_v14  ;;  %v881_v17 = vpop.f32.mrb[6].mxu1 }
 0x161   : > { %v1063_v18 = vadd.f32 %v991_v12, %v357_v10  ;;  %v995_v19 = vadd.f32 %v994_v48, %v881_v17  ;;  %v883_v21 = vpop.f32.mrb[7].mxu1  ;;  %v1030_v43 = vpop.f32.mrb[20].mxu0  ;;  %v371_v12 = vld [vmem:[%s2122_s2 + $0x90] sm:$0xff] }
 0x162   : > { %v1064_v23 = vadd.f32 %v993_v15, %v358_v13  ;;  %v997_v24 = vadd.f32 %v996_v49, %v883_v21  ;;  %v1032_v46 = vpop.f32.mrb[21].mxu0 }
 0x163   : > { %1095 = vst [vmem:[%s2122_s2 + $0x20] sm:$0xff] %v1063_v18  ;;  %v1065_v26 = vadd.f32 %v995_v19, %v359_v16  ;;  %v1966_v47 = vpop.f32.mrb[22].mxu0  ;;  %v372_v16 = vld [vmem:[%s2122_s2 + $0x98] sm:$0xff] }
 0x164   : > { %1096 = vst [vmem:[%s2122_s2 + $0x28] sm:$0xff] %v1064_v23  ;;  %v1066_v28 = vadd.f32 %v997_v24, %v360_v20  ;;  %v1971_v49 = vpop.f32.mrb[23].mxu0 }
 0x165   : > { %1097 = vst [vmem:[%s2122_s2 + $0x30] sm:$0xff] %v1065_v26  ;;  %v373_v26 = vld [vmem:[%s2122_s2 + $0xa0] sm:$0xff] }
 0x166   : > { %1098 = vst [vmem:[%s2122_s2 + $0x38] sm:$0xff] %v1066_v28  ;;  %v887_v31 = vpop.f32.mrb[8].mxu1 }
 0x167   : > { %v1001_v32 = vadd.f32 %v1000_v50, %v887_v31  ;;  %v889_v34 = vpop.f32.mrb[9].mxu1  ;;  %v365_v50 = vld [vmem:[%s2122_s2 + $0x60] sm:$0xff] }
 0x168   : > { %v1003_v36 = vadd.f32 %v1002_v51, %v889_v34  ;;  %v891_v38 = vpop.f32.mrb[10].mxu1 }
 0x169   : > { %v1067_v39 = vadd.f32 %v1001_v32, %v361_v30  ;;  %v1005_v40 = vadd.f32 %v1004_v52, %v891_v38  ;;  %v893_v42 = vpop.f32.mrb[11].mxu1  ;;  %v1040_v62 = vpop.f32.mrb[24].mxu0  ;;  %v375_v32 = vld [vmem:[%s2122_s2 + $0xb0] sm:$0xff] }
 0x16a   : > { %v1068_v44 = vadd.f32 %v1003_v36, %v362_v33  ;;  %v1007_v45 = vadd.f32 %v1892_v53, %v893_v42  ;;  %v366_v53 = vld [vmem:[%s2122_s2 + $0x68] sm:$0xff]  ;;  %v1042_v1 = vpop.f32.mrb[25].mxu0 }
 0x16b   : > { %1099 = vst [vmem:[%s2122_s2 + $0x40] sm:$0xff] %v1067_v39  ;;  %v1069_v35 = vadd.f32 %v1005_v40, %v363_v37  ;;  %v1044_v3 = vpop.f32.mrb[26].mxu0  ;;  %v376_v37 = vld [vmem:[%s2122_s2 + $0xb8] sm:$0xff] }
 0x16c   : > { %1100 = vst [vmem:[%s2122_s2 + $0x48] sm:$0xff] %v1068_v44  ;;  %v1070_v48 = vadd.f32 %v1007_v45, %v364_v41 }
 0x16d   : > { %1101 = vst [vmem:[%s2122_s2 + $0x50] sm:$0xff] %v1069_v35 }
 0x16e   : > { %1102 = vst [vmem:[%s2122_s2 + $0x58] sm:$0xff] %v1070_v48  ;;  %v897_v51 = vpop.f32.mrb[12].mxu1  ;;  %v379_v48 = vld [vmem:[%s2122_s2 + $0xd0] sm:$0xff] }
 0x16f   : > { %v1011_v52 = vadd.f32 %v1010_v2, %v897_v51  ;;  %v899_v54 = vpop.f32.mrb[13].mxu1 }
 0x170   : > { %v1013_v55 = vadd.f32 %v1012_v5, %v899_v54  ;;  %v901_v57 = vpop.f32.mrb[14].mxu1  ;;  %v1046_v5 = vpop.f32.mrb[27].mxu0 }
 0x171   : > { %v1071_v58 = vadd.f32 %v1011_v52, %v365_v50  ;;  %v1015_v59 = vadd.f32 %v1909_v7, %v901_v57  ;;  %v903_v61 = vpop.f32.mrb[15].mxu1  ;;  %v1050_v18 = vpop.f32.mrb[28].mxu0  ;;  %v380_v52 = vld [vmem:[%s2122_s2 + $0xd8] sm:$0xff] }
 0x172   : > { %v1072_v63 = vadd.f32 %v1013_v55, %v366_v53  ;;  %v1017_v0 = vadd.f32 %v1914_v9, %v903_v61  ;;  %v370_v9 = vld [vmem:[%s2122_s2 + $0x88] sm:$0xff]  ;;  %v1052_v21 = vpop.f32.mrb[29].mxu0 }
 0x173   : > { %1103 = vst [vmem:[%s2122_s2 + $0x60] sm:$0xff] %v1071_v58  ;;  %v1073_v2 = vadd.f32 %v1015_v59, %v367_v56  ;;  %v1054_v23 = vpop.f32.mrb[30].mxu0  ;;  %v381_v58 = vld [vmem:[%s2122_s2 + $0xe0] sm:$0xff]  ;;  %v382_v61 = vld [vmem:[%s2122_s2 + $0xe8] sm:$0xff] }
 0x174   : > { %1104 = vst [vmem:[%s2122_s2 + $0x68] sm:$0xff] %v1072_v63  ;;  %v1074_v4 = vadd.f32 %v1017_v0, %v368_v60  ;;  %v383_v0 = vld [vmem:[%s2122_s2 + $0xf0] sm:$0xff] }
 0x175   : > { %1105 = vst [vmem:[%s2122_s2 + $0x70] sm:$0xff] %v1073_v2 }
 0x176   : > { %1106 = vst [vmem:[%s2122_s2 + $0x78] sm:$0xff] %v1074_v4  ;;  %v907_v7 = vpop.f32.mrb[16].mxu1  ;;  %v384_v4 = vld [vmem:[%s2122_s2 + $0xf8] sm:$0xff] }
 0x177   : > { %v1021_v8 = vadd.f32 %v1020_v22, %v907_v7  ;;  %v909_v10 = vpop.f32.mrb[17].mxu1 }
 0x178   : > { %v1023_v11 = vadd.f32 %v1022_v25, %v909_v10  ;;  %v911_v13 = vpop.f32.mrb[18].mxu1  ;;  %v1056_v25 = vpop.f32.mrb[31].mxu0 }
 0x179   : > { %v1075_v14 = vadd.f32 %v1021_v8, %v369_v6  ;;  %v1025_v15 = vadd.f32 %v1937_v27, %v911_v13  ;;  %v913_v17 = vpop.f32.mrb[19].mxu1 }
 0x17a   : > { %v1076_v19 = vadd.f32 %v1023_v11, %v370_v9  ;;  %v1027_v20 = vadd.f32 %v1942_v29, %v913_v17  ;;  %v374_v29 = vld [vmem:[%s2122_s2 + $0xa8] sm:$0xff] }
 0x17b   : > { %1107 = vst [vmem:[%s2122_s2 + $0x80] sm:$0xff] %v1075_v14  ;;  %v1077_v22 = vadd.f32 %v1025_v15, %v371_v12 }
 0x17c   : > { %1108 = vst [vmem:[%s2122_s2 + $0x88] sm:$0xff] %v1076_v19  ;;  %v1078_v24 = vadd.f32 %v1027_v20, %v372_v16 }
 0x17d   : > { %1109 = vst [vmem:[%s2122_s2 + $0x90] sm:$0xff] %v1077_v22 }
 0x17e   : > { %1110 = vst [vmem:[%s2122_s2 + $0x98] sm:$0xff] %v1078_v24  ;;  %v917_v27 = vpop.f32.mrb[20].mxu1 }
 0x17f   : > { %v1031_v28 = vadd.f32 %v1030_v43, %v917_v27  ;;  %v919_v30 = vpop.f32.mrb[21].mxu1  ;;  %v377_v43 = vld [vmem:[%s2122_s2 + $0xc0] sm:$0xff] }
 0x180   : > { %v1033_v31 = vadd.f32 %v1032_v46, %v919_v30  ;;  %v921_v33 = vpop.f32.mrb[22].mxu1  ;;  %v378_v46 = vld [vmem:[%s2122_s2 + $0xc8] sm:$0xff] }
 0x181   : > { %v1079_v34 = vadd.f32 %v1031_v28, %v373_v26  ;;  %v1035_v36 = vadd.f32 %v1966_v47, %v921_v33  ;;  %v923_v38 = vpop.f32.mrb[23].mxu1 }
 0x182   : > { %v1080_v39 = vadd.f32 %v1033_v31, %v374_v29  ;;  %v1037_v40 = vadd.f32 %v1971_v49, %v923_v38 }
 0x183   : > { %1111 = vst [vmem:[%s2122_s2 + $0xa0] sm:$0xff] %v1079_v34  ;;  %v1081_v41 = vadd.f32 %v1035_v36, %v375_v32 }
 0x184   : > { %1112 = vst [vmem:[%s2122_s2 + $0xa8] sm:$0xff] %v1080_v39  ;;  %v1082_v42 = vadd.f32 %v1037_v40, %v376_v37 }
 0x185   : > { %1113 = vst [vmem:[%s2122_s2 + $0xb0] sm:$0xff] %v1081_v41 }
 0x186   : > { %1114 = vst [vmem:[%s2122_s2 + $0xb8] sm:$0xff] %v1082_v42  ;;  %v927_v44 = vpop.f32.mrb[24].mxu1 }
 0x187   : > { %v1041_v45 = vadd.f32 %v1040_v62, %v927_v44  ;;  %v929_v35 = vpop.f32.mrb[25].mxu1 }
 0x188   : > { %v1043_v47 = vadd.f32 %v1042_v1, %v929_v35  ;;  %v931_v49 = vpop.f32.mrb[26].mxu1 }
 0x189   : > { %v1083_v50 = vadd.f32 %v1041_v45, %v377_v43  ;;  %v1045_v51 = vadd.f32 %v1044_v3, %v931_v49  ;;  %v933_v53 = vpop.f32.mrb[27].mxu1 }
 0x18a   : > { %v1084_v54 = vadd.f32 %v1043_v47, %v378_v46  ;;  %v1047_v55 = vadd.f32 %v1046_v5, %v933_v53 }
 0x18b   : > { %1115 = vst [vmem:[%s2122_s2 + $0xc0] sm:$0xff] %v1083_v50  ;;  %v1085_v56 = vadd.f32 %v1045_v51, %v379_v48 }
 0x18c   : > { %1116 = vst [vmem:[%s2122_s2 + $0xc8] sm:$0xff] %v1084_v54  ;;  %v1086_v57 = vadd.f32 %v1047_v55, %v380_v52 }
 0x18d   : > { %1117 = vst [vmem:[%s2122_s2 + $0xd0] sm:$0xff] %v1085_v56 }
 0x18e   : > { %1118 = vst [vmem:[%s2122_s2 + $0xd8] sm:$0xff] %v1086_v57  ;;  %v937_v59 = vpop.f32.mrb[28].mxu1 }
 0x18f   : > { %v1051_v60 = vadd.f32 %v1050_v18, %v937_v59  ;;  %v939_v62 = vpop.f32.mrb[29].mxu1 }
 0x190   : > { %v1053_v63 = vadd.f32 %v1052_v21, %v939_v62  ;;  %v941_v1 = vpop.f32.mrb[30].mxu1 }
 0x191   : > { %v1087_v2 = vadd.f32 %v1051_v60, %v381_v58  ;;  %v1055_v3 = vadd.f32 %v1054_v23, %v941_v1  ;;  %v943_v5 = vpop.f32.mrb[31].mxu1 }
 0x192   : > { %v1088_v6 = vadd.f32 %v1053_v63, %v382_v61  ;;  %v1057_v7 = vadd.f32 %v1056_v25, %v943_v5 }
 0x193   : > { %1119 = vst [vmem:[%s2122_s2 + $0xe0] sm:$0xff] %v1087_v2  ;;  %v1089_v8 = vadd.f32 %v1055_v3, %v383_v0 }
 0x194   : > { %1120 = vst [vmem:[%s2122_s2 + $0xe8] sm:$0xff] %v1088_v6  ;;  %v1090_v9 = vadd.f32 %v1057_v7, %v384_v4 }
 0x195   : > { %1121 = vst [vmem:[%s2122_s2 + $0xf0] sm:$0xff] %v1089_v8 }
 0x196   : > { %1122 = vst [vmem:[%s2122_s2 + $0xf8] sm:$0xff] %v1090_v9 }
 0x197 PF: > { %s12_s13 = sadd.s32 1, %s1574_s13   ;;  %s2123_s9 = smov %s1562_s10 }
 0x198   : > { %p9_p11 = scmp.ge.s32.totalorder %s12_s13, 11   ;;  %s2124_s10 = smov %s1628_s17 }
 0x199   : > { %s2125_s11 = smov %s1570_s12  ;;  %s2126_s12 = smov %s2128_s14 }
 0x19a   :  { %11 = sbr.rel (!%p9_p11) target bundleno = 3 (0x3), region = 102 }

// kernel: res3d_forward.98
= control target key start
LH: loop header
LB: loop body
LE: loop exit
PB: predicated region body
PF: predicated region fallthrough
CT: control target
= control target key end

     0   :  { %v51_v0 = vlaneseq  ;;  %s660_s1 = inlined_call_operand.vmem [shape: f32[1,256], index: 1, kind: input, shape index: {}]   ;;  %s661_s2 = inlined_call_operand.vmem [shape: f32[1,256], index: 2, kind: input, shape index: {}]   ;;  %s662_s0 = inlined_call_operand.vmem [shape: f32[128,256], index: 0, kind: input, shape index: {}]   ;;  %s663_s3 = inlined_call_operand.vmem [shape: f32[128,256], index: 3, kind: input, shape index: {}]   ;;  %s664_s4 = inlined_call_operand.vmem [shape: f32[128,256], index: 4, kind: output, shape index: {}]  }
   0x1   :  { %v49_v2 = vld [vmem:[%s660_s1] sm:$0x3]  ;;  %v18_v6 = vld [vmem:[%s662_s0 + $0x8] sm:$0xff]  ;;  %v19_v8 = vld [vmem:[%s662_s0 + $0x10] sm:$0xff] }
   0x2   :  { %v52_v1 = vshrl.u32 %v51_v0, 7  ;;  %v93_v3 = vld [vmem:[%s661_s2] sm:$0x3]  ;;  %v20_v9 = vld [vmem:[%s662_s0 + $0x18] sm:$0xff]  ;;  %v22_v15 = vld [vmem:[%s662_s0 + $0x28] sm:$0xff] }
   0x3   :  { %v17_v4 = vld [vmem:[%s662_s0] sm:$0xff]  ;;  %v23_v16 = vld [vmem:[%s662_s0 + $0x30] sm:$0xff]  ;;  %v24_v17 = vld [vmem:[%s662_s0 + $0x38] sm:$0xff] }
   0x4   :  { %v53_v5 = vsub.s32 0, %v52_v1  ;;  %v57_v7 = vsub.s32 1, %v52_v1  ;;  %v21_v10 = vld [vmem:[%s662_s0 + $0x20] sm:$0xff]  ;;  %v138_v21 = vld [vmem:[%s663_s3 + $0x8] sm:$0xff]  ;;  %v139_v24 = vld [vmem:[%s663_s3 + $0x10] sm:$0xff] }
   0x5   :  { %v137_v19 = vld [vmem:[%s663_s3] sm:$0xff]  ;;  %v140_v25 = vld [vmem:[%s663_s3 + $0x18] sm:$0xff]  ;;  %v142_v35 = vld [vmem:[%s663_s3 + $0x28] sm:$0xff] }
   0x6   :  { %v315_v11 = vrot.slane %v49_v2, %v53_v5  ;;  %v317_v12 = vrot.slane %v93_v3, %v53_v5  ;;  %v319_v13 = vrot.slane %v49_v2, %v57_v7  ;;  %v321_v14 = vrot.slane %v93_v3, %v57_v7  ;;  %v141_v27 = vld [vmem:[%s663_s3 + $0x20] sm:$0xff]  ;;  %v143_v36 = vld [vmem:[%s663_s3 + $0x30] sm:$0xff]  ;;  %v144_v37 = vld [vmem:[%s663_s3 + $0x38] sm:$0xff] }
   0x7   :  { %v25_v46 = vld [vmem:[%s662_s0 + $0x40] sm:$0xff]  ;;  %v26_v47 = vld [vmem:[%s662_s0 + $0x48] sm:$0xff]  ;;  %v27_v48 = vld [vmem:[%s662_s0 + $0x50] sm:$0xff] }
   0x8   :  { %v61_v18 = vmul.f32 %v315_v11, %v17_v4  ;;  %v62_v20 = vmul.f32 %v319_v13, %v18_v6  ;;  %v63_v22 = vmul.f32 %v315_v11, %v19_v8  ;;  %v64_v23 = vmul.f32 %v319_v13, %v20_v9  ;;  %v28_v53 = vld [vmem:[%s662_s0 + $0x58] sm:$0xff]  ;;  %v29_v54 = vld [vmem:[%s662_s0 + $0x60] sm:$0xff]  ;;  %v30_v55 = vld [vmem:[%s662_s0 + $0x68] sm:$0xff] }
   0x9   :  { %v65_v26 = vmul.f32 %v315_v11, %v21_v10  ;;  %v66_v28 = vmul.f32 %v319_v13, %v22_v15  ;;  %v67_v29 = vmul.f32 %v315_v11, %v23_v16  ;;  %v68_v30 = vmul.f32 %v319_v13, %v24_v17  ;;  %v31_v60 = vld [vmem:[%s662_s0 + $0x70] sm:$0xff]  ;;  %v32_v61 = vld [vmem:[%s662_s0 + $0x78] sm:$0xff]  ;;  %v145_v3 = vld [vmem:[%s663_s3 + $0x40] sm:$0xff] }
   0xa   :  { %v105_v31 = vadd.f32 %v317_v12, %v61_v18  ;;  %v106_v32 = vadd.f32 %v321_v14, %v62_v20  ;;  %v107_v33 = vadd.f32 %v317_v12, %v63_v22  ;;  %v108_v34 = vadd.f32 %v321_v14, %v64_v23  ;;  %v146_v5 = vld [vmem:[%s663_s3 + $0x48] sm:$0xff]  ;;  %v147_v8 = vld [vmem:[%s663_s3 + $0x50] sm:$0xff]  ;;  %v148_v9 = vld [vmem:[%s663_s3 + $0x58] sm:$0xff] }
   0xb   :  { %v109_v38 = vadd.f32 %v317_v12, %v65_v26  ;;  %v110_v39 = vadd.f32 %v321_v14, %v66_v28  ;;  %v111_v40 = vadd.f32 %v317_v12, %v67_v29  ;;  %v112_v41 = vadd.f32 %v321_v14, %v68_v30  ;;  %v149_v15 = vld [vmem:[%s663_s3 + $0x60] sm:$0xff]  ;;  %v150_v23 = vld [vmem:[%s663_s3 + $0x68] sm:$0xff] }
   0xc   :  { %v169_v42 = vadd.f32 %v137_v19, %v105_v31  ;;  %v170_v43 = vadd.f32 %v138_v21, %v106_v32  ;;  %v171_v44 = vadd.f32 %v139_v24, %v107_v33  ;;  %v172_v45 = vadd.f32 %v140_v25, %v108_v34  ;;  %v151_v24 = vld [vmem:[%s663_s3 + $0x70] sm:$0xff]  ;;  %v152_v25 = vld [vmem:[%s663_s3 + $0x78] sm:$0xff]  ;;  %v33_v34 = vld [vmem:[%s662_s0 + $0x80] sm:$0xff] }
   0xd   :  { %v173_v49 = vadd.f32 %v141_v27, %v109_v38  ;;  %v174_v50 = vadd.f32 %v142_v35, %v110_v39  ;;  %v175_v51 = vadd.f32 %v143_v36, %v111_v40  ;;  %v176_v52 = vadd.f32 %v144_v37, %v112_v41  ;;  %v34_v35 = vld [vmem:[%s662_s0 + $0x88] sm:$0xff]  ;;  %v35_v36 = vld [vmem:[%s662_s0 + $0x90] sm:$0xff]  ;;  %v36_v41 = vld [vmem:[%s662_s0 + $0x98] sm:$0xff] }
   0xe   :  { %v201_v56 = vmax.f32 %v169_v42, 0.0  ;;  %v202_v57 = vmax.f32 %v170_v43, 0.0  ;;  %v203_v58 = vmax.f32 %v171_v44, 0.0  ;;  %v204_v59 = vmax.f32 %v172_v45, 0.0  ;;  %v37_v42 = vld [vmem:[%s662_s0 + $0xa0] sm:$0xff]  ;;  %v38_v43 = vld [vmem:[%s662_s0 + $0xa8] sm:$0xff] }
   0xf   :  { %v205_v62 = vmax.f32 %v173_v49, 0.0  ;;  %v206_v63 = vmax.f32 %v174_v50, 0.0  ;;  %v207_v0 = vmax.f32 %v175_v51, 0.0  ;;  %v208_v1 = vmax.f32 %v176_v52, 0.0  ;;  %v40_v49 = vld [vmem:[%s662_s0 + $0xb8] sm:$0xff] }
  0x10   :  { %233 = vst [vmem:[%s664_s4] sm:$0xff] %v201_v56  ;;  %234 = vst [vmem:[%s664_s4 + $0x8] sm:$0xff] %v202_v57  ;;  %v69_v2 = vmul.f32 %v315_v11, %v25_v46  ;;  %v70_v4 = vmul.f32 %v319_v13, %v26_v47  ;;  %v71_v6 = vmul.f32 %v315_v11, %v27_v48  ;;  %v39_v48 = vld [vmem:[%s662_s0 + $0xb0] sm:$0xff]  ;;  %v154_v57 = vld [vmem:[%s663_s3 + $0x88] sm:$0xff] }
  0x11   :  { %235 = vst [vmem:[%s664_s4 + $0x10] sm:$0xff] %v203_v58  ;;  %236 = vst [vmem:[%s664_s4 + $0x18] sm:$0xff] %v204_v59  ;;  %v72_v7 = vmul.f32 %v319_v13, %v28_v53  ;;  %v73_v10 = vmul.f32 %v315_v11, %v29_v54  ;;  %v74_v16 = vmul.f32 %v319_v13, %v30_v55  ;;  %v153_v55 = vld [vmem:[%s663_s3 + $0x80] sm:$0xff] }
  0x12   :  { %237 = vst [vmem:[%s664_s4 + $0x20] sm:$0xff] %v205_v62  ;;  %238 = vst [vmem:[%s664_s4 + $0x28] sm:$0xff] %v206_v63  ;;  %v75_v17 = vmul.f32 %v315_v11, %v31_v60  ;;  %v76_v18 = vmul.f32 %v319_v13, %v32_v61  ;;  %v113_v19 = vadd.f32 %v317_v12, %v69_v2  ;;  %v155_v60 = vld [vmem:[%s663_s3 + $0x90] sm:$0xff]  ;;  %v156_v61 = vld [vmem:[%s663_s3 + $0x98] sm:$0xff] }
  0x13   :  { %239 = vst [vmem:[%s664_s4 + $0x30] sm:$0xff] %v207_v0  ;;  %240 = vst [vmem:[%s664_s4 + $0x38] sm:$0xff] %v208_v1  ;;  %v114_v20 = vadd.f32 %v321_v14, %v70_v4  ;;  %v115_v21 = vadd.f32 %v317_v12, %v71_v6  ;;  %v116_v22 = vadd.f32 %v321_v14, %v72_v7  ;;  %v157_v63 = vld [vmem:[%s663_s3 + $0xa0] sm:$0xff]  ;;  %v158_v7 = vld [vmem:[%s663_s3 + $0xa8] sm:$0xff] }
  0x14   :  { %v117_v26 = vadd.f32 %v317_v12, %v73_v10  ;;  %v118_v27 = vadd.f32 %v321_v14, %v74_v16  ;;  %v119_v28 = vadd.f32 %v317_v12, %v75_v17  ;;  %v120_v29 = vadd.f32 %v321_v14, %v76_v18 }
  0x15   :  { %v177_v30 = vadd.f32 %v145_v3, %v113_v19  ;;  %v178_v31 = vadd.f32 %v146_v5, %v114_v20  ;;  %v179_v32 = vadd.f32 %v147_v8, %v115_v21  ;;  %v180_v33 = vadd.f32 %v148_v9, %v116_v22  ;;  %v159_v8 = vld [vmem:[%s663_s3 + $0xb0] sm:$0xff]  ;;  %v160_v9 = vld [vmem:[%s663_s3 + $0xb8] sm:$0xff]  ;;  %v41_v22 = vld [vmem:[%s662_s0 + $0xc0] sm:$0xff] }
  0x16   :  { %v181_v37 = vadd.f32 %v149_v15, %v117_v26  ;;  %v182_v38 = vadd.f32 %v150_v23, %v118_v27  ;;  %v183_v39 = vadd.f32 %v151_v24, %v119_v28  ;;  %v184_v40 = vadd.f32 %v152_v25, %v120_v29  ;;  %v42_v23 = vld [vmem:[%s662_s0 + $0xc8] sm:$0xff]  ;;  %v43_v24 = vld [vmem:[%s662_s0 + $0xd0] sm:$0xff]  ;;  %v44_v29 = vld [vmem:[%s662_s0 + $0xd8] sm:$0xff] }
  0x17   :  { %v209_v44 = vmax.f32 %v177_v30, 0.0  ;;  %v210_v45 = vmax.f32 %v178_v31, 0.0  ;;  %v211_v46 = vmax.f32 %v179_v32, 0.0  ;;  %v212_v47 = vmax.f32 %v180_v33, 0.0  ;;  %v45_v30 = vld [vmem:[%s662_s0 + $0xe0] sm:$0xff]  ;;  %v46_v31 = vld [vmem:[%s662_s0 + $0xe8] sm:$0xff] }
  0x18   :  { %v213_v50 = vmax.f32 %v181_v37, 0.0  ;;  %v214_v51 = vmax.f32 %v182_v38, 0.0  ;;  %v215_v52 = vmax.f32 %v183_v39, 0.0  ;;  %v216_v53 = vmax.f32 %v184_v40, 0.0  ;;  %v48_v37 = vld [vmem:[%s662_s0 + $0xf8] sm:$0xff] }
  0x19   :  { %241 = vst [vmem:[%s664_s4 + $0x40] sm:$0xff] %v209_v44  ;;  %242 = vst [vmem:[%s664_s4 + $0x48] sm:$0xff] %v210_v45  ;;  %v77_v54 = vmul.f32 %v315_v11, %v33_v34  ;;  %v78_v56 = vmul.f32 %v319_v13, %v34_v35  ;;  %v79_v58 = vmul.f32 %v315_v11, %v35_v36  ;;  %v47_v36 = vld [vmem:[%s662_s0 + $0xf0] sm:$0xff]  ;;  %v162_v45 = vld [vmem:[%s663_s3 + $0xc8] sm:$0xff] }
  0x1a   :  { %243 = vst [vmem:[%s664_s4 + $0x50] sm:$0xff] %v211_v46  ;;  %244 = vst [vmem:[%s664_s4 + $0x58] sm:$0xff] %v212_v47  ;;  %v80_v59 = vmul.f32 %v319_v13, %v36_v41  ;;  %v81_v62 = vmul.f32 %v315_v11, %v37_v42  ;;  %v82_v0 = vmul.f32 %v319_v13, %v38_v43  ;;  %v161_v43 = vld [vmem:[%s663_s3 + $0xc0] sm:$0xff] }
  0x1b   :  { %245 = vst [vmem:[%s664_s4 + $0x60] sm:$0xff] %v213_v50  ;;  %246 = vst [vmem:[%s664_s4 + $0x68] sm:$0xff] %v214_v51  ;;  %v83_v1 = vmul.f32 %v315_v11, %v39_v48  ;;  %v84_v2 = vmul.f32 %v319_v13, %v40_v49  ;;  %v121_v3 = vadd.f32 %v317_v12, %v77_v54  ;;  %v163_v48 = vld [vmem:[%s663_s3 + $0xd0] sm:$0xff]  ;;  %v164_v49 = vld [vmem:[%s663_s3 + $0xd8] sm:$0xff] }
  0x1c   :  { %247 = vst [vmem:[%s664_s4 + $0x70] sm:$0xff] %v215_v52  ;;  %248 = vst [vmem:[%s664_s4 + $0x78] sm:$0xff] %v216_v53  ;;  %v122_v4 = vadd.f32 %v321_v14, %v78_v56  ;;  %v123_v5 = vadd.f32 %v317_v12, %v79_v58  ;;  %v124_v6 = vadd.f32 %v321_v14, %v80_v59  ;;  %v165_v51 = vld [vmem:[%s663_s3 + $0xe0] sm:$0xff]  ;;  %v166_v59 = vld [vmem:[%s663_s3 + $0xe8] sm:$0xff] }
  0x1d   :  { %v125_v10 = vadd.f32 %v317_v12, %v81_v62  ;;  %v126_v15 = vadd.f32 %v321_v14, %v82_v0  ;;  %v127_v16 = vadd.f32 %v317_v12, %v83_v1  ;;  %v128_v17 = vadd.f32 %v321_v14, %v84_v2 }
  0x1e   :  { %v185_v18 = vadd.f32 %v153_v55, %v121_v3  ;;  %v186_v19 = vadd.f32 %v154_v57, %v122_v4  ;;  %v187_v20 = vadd.f32 %v155_v60, %v123_v5  ;;  %v188_v21 = vadd.f32 %v156_v61, %v124_v6  ;;  %v167_v60 = vld [vmem:[%s663_s3 + $0xf0] sm:$0xff] }
  0x1f   :  { %v189_v25 = vadd.f32 %v157_v63, %v125_v10  ;;  %v190_v26 = vadd.f32 %v158_v7, %v126_v15  ;;  %v191_v27 = vadd.f32 %v159_v8, %v127_v16  ;;  %v192_v28 = vadd.f32 %v160_v9, %v128_v17 }
  0x20   :  { %v217_v32 = vmax.f32 %v185_v18, 0.0  ;;  %v218_v33 = vmax.f32 %v186_v19, 0.0  ;;  %v219_v34 = vmax.f32 %v187_v20, 0.0  ;;  %v220_v35 = vmax.f32 %v188_v21, 0.0 }
  0x21   :  { %v221_v38 = vmax.f32 %v189_v25, 0.0  ;;  %v222_v39 = vmax.f32 %v190_v26, 0.0  ;;  %v223_v40 = vmax.f32 %v191_v27, 0.0  ;;  %v224_v41 = vmax.f32 %v192_v28, 0.0 }
  0x22   :  { %249 = vst [vmem:[%s664_s4 + $0x80] sm:$0xff] %v217_v32  ;;  %250 = vst [vmem:[%s664_s4 + $0x88] sm:$0xff] %v218_v33  ;;  %v85_v42 = vmul.f32 %v315_v11, %v41_v22  ;;  %v86_v44 = vmul.f32 %v319_v13, %v42_v23  ;;  %v87_v46 = vmul.f32 %v315_v11, %v43_v24 }
  0x23   :  { %251 = vst [vmem:[%s664_s4 + $0x90] sm:$0xff] %v219_v34  ;;  %252 = vst [vmem:[%s664_s4 + $0x98] sm:$0xff] %v220_v35  ;;  %v88_v47 = vmul.f32 %v319_v13, %v44_v29  ;;  %v89_v50 = vmul.f32 %v315_v11, %v45_v30  ;;  %v90_v52 = vmul.f32 %v319_v13, %v46_v31 }
  0x24   :  { %253 = vst [vmem:[%s664_s4 + $0xa0] sm:$0xff] %v221_v38  ;;  %254 = vst [vmem:[%s664_s4 + $0xa8] sm:$0xff] %v222_v39  ;;  %v91_v53 = vmul.f32 %v315_v11, %v47_v36  ;;  %v92_v54 = vmul.f32 %v319_v13, %v48_v37  ;;  %v129_v55 = vadd.f32 %v317_v12, %v85_v42  ;;  %v168_v11 = vld [vmem:[%s663_s3 + $0xf8] sm:$0xff] }
  0x25   :  { %255 = vst [vmem:[%s664_s4 + $0xb0] sm:$0xff] %v223_v40  ;;  %256 = vst [vmem:[%s664_s4 + $0xb8] sm:$0xff] %v224_v41  ;;  %v130_v56 = vadd.f32 %v321_v14, %v86_v44  ;;  %v131_v57 = vadd.f32 %v317_v12, %v87_v46  ;;  %v132_v58 = vadd.f32 %v321_v14, %v88_v47 }
  0x26   :  { %v133_v13 = vadd.f32 %v317_v12, %v89_v50  ;;  %v134_v61 = vadd.f32 %v321_v14, %v90_v52  ;;  %v135_v62 = vadd.f32 %v317_v12, %v91_v53  ;;  %v136_v63 = vadd.f32 %v321_v14, %v92_v54 }
  0x27   :  { %v193_v0 = vadd.f32 %v161_v43, %v129_v55  ;;  %v194_v1 = vadd.f32 %v162_v45, %v130_v56  ;;  %v195_v2 = vadd.f32 %v163_v48, %v131_v57  ;;  %v196_v3 = vadd.f32 %v164_v49, %v132_v58 }
  0x28   :  { %v197_v4 = vadd.f32 %v165_v51, %v133_v13  ;;  %v198_v5 = vadd.f32 %v166_v59, %v134_v61  ;;  %v199_v6 = vadd.f32 %v167_v60, %v135_v62  ;;  %v200_v7 = vadd.f32 %v168_v11, %v136_v63 }
  0x29   :  { %v225_v8 = vmax.f32 %v193_v0, 0.0  ;;  %v226_v9 = vmax.f32 %v194_v1, 0.0  ;;  %v227_v10 = vmax.f32 %v195_v2, 0.0  ;;  %v228_v15 = vmax.f32 %v196_v3, 0.0 }
  0x2a   :  { %v229_v16 = vmax.f32 %v197_v4, 0.0  ;;  %v230_v17 = vmax.f32 %v198_v5, 0.0  ;;  %v231_v18 = vmax.f32 %v199_v6, 0.0  ;;  %v232_v19 = vmax.f32 %v200_v7, 0.0 }
  0x2b   :  { %257 = vst [vmem:[%s664_s4 + $0xc0] sm:$0xff] %v225_v8  ;;  %258 = vst [vmem:[%s664_s4 + $0xc8] sm:$0xff] %v226_v9 }
  0x2c   :  { %259 = vst [vmem:[%s664_s4 + $0xd0] sm:$0xff] %v227_v10  ;;  %260 = vst [vmem:[%s664_s4 + $0xd8] sm:$0xff] %v228_v15 }
  0x2d   :  { %261 = vst [vmem:[%s664_s4 + $0xe0] sm:$0xff] %v229_v16  ;;  %262 = vst [vmem:[%s664_s4 + $0xe8] sm:$0xff] %v230_v17 }
  0x2e   :  { %263 = vst [vmem:[%s664_s4 + $0xf0] sm:$0xff] %v231_v18  ;;  %264 = vst [vmem:[%s664_s4 + $0xf8] sm:$0xff] %v232_v19 }

// kernel: res3d_forward.93
= control target key start
LH: loop header
LB: loop body
LE: loop exit
PB: predicated region body
PF: predicated region fallthrough
CT: control target
= control target key end

     0   :  { %s1593_s9 = smov 0   ;;  %s1595_s10 = smov 0   ;;  %s2120_s0 = inlined_call_operand.vmem [shape: bf16[128,6912], index: 0, kind: input, shape index: {}]   ;;  %s2121_s1 = inlined_call_operand.vmem [shape: bf16[6912,256], index: 1, kind: input, shape index: {}]   ;;  %s2122_s2 = inlined_call_operand.vmem [shape: f32[128,256], index: 2, kind: output, shape index: {}]  }
   0x1   :  { %s1597_s11 = smov 0   ;;  %s1599_s12 = smov 0  }
   0x2   :  { %s1601_s13 = smov 0  }
   0x3 LB: > { %s24_s14 = sadd.s32 1, %s1570_s12  ;;  %p47_p1 = scmp.ne.s32.totalorder %s1562_s10, %s1558_s9  ;;  %s1574_s13 = sphi %s1601_s13, %s12_s13   ;;  %s1570_s12 = sphi %s1599_s12, %s2126_s12   ;;  %s1566_s11 = sphi %s1597_s11, %s2125_s11   ;;  %s1562_s10 = sphi %s1595_s10, %s2124_s10   ;;  %s1558_s9 = sphi %s1593_s9, %s2123_s9  }
   0x4   : > { %p25_p0 = scmp.ge.s32.totalorder %s24_s14, 18  ;;  %p48_p2 = scmp.eq.s32.totalorder %s1574_s13, 0 }
   0x5   : > { %s40_s16 = sadd.s32 1, %s1562_s10  ;;  %p1240_p5 = scmp.ge.s32.totalorder %s1574_s13, 18 }
   0x6   : > { %s2128_s14 = smov (%p25_p0, %s24_s14), 0  ;;  %p49_p3 = por %p48_p2, %p47_p1 }
   0x7   : > { %s36_s15 = ssub.s32 %s1570_s12, %s2128_s14  ;;  %129 = sbr.rel (%p1240_p5) target bundleno = 37 (0x25), region = 16 }
   0x8   : > { %p38_p4 = scmp.eq.s32.totalorder %s36_s15, 0 }
   0xa   : > { %s1628_s17 = scalar_select %p38_p4, %s1562_s10, %s40_s16  }
   0xe   : > { %132 = sbr.rel (!%p49_p3) target bundleno = 37 (0x25), region = 20  ;;  %s134_s18 = sand.u32 (%p49_p3), 1, %s1562_s10  }
   0xf   : > { %s1354_s19 = smul.u32 (%p49_p3), 12, %s1570_s12 }
  0x10   : > { %s1388_s20 = smul.u32 (%p49_p3), 192, %s134_s18 }
  0x11   : > { %s1636_s23 = scalar_lea.vmem (%p49_p3), %s2120_s0, %s1354_s19 }
  0x12   : > { %v157_v0 = vld [vmem:[%s1636_s23] sm:$0xff] (%p49_p3)  ;;  %v159_v1 = vld [vmem:[%s1636_s23 + $0xd8] sm:$0xff] (%p49_p3)  ;;  %v161_v2 = vld [vmem:[%s1636_s23 + $0x1b0] sm:$0xff] (%p49_p3)  ;;  %s1641_s24 = scalar_lea.vmem (%p49_p3), [#allocation2], %s1388_s20 }
  0x13   : > { %158 = vst [vmem:[%s1641_s24] sm:$0xff] (%p49_p3), %v157_v0  ;;  %160 = vst [vmem:[%s1641_s24 + $0xc] sm:$0xff] (%p49_p3), %v159_v1  ;;  %v163_v3 = vld [vmem:[%s1636_s23 + $0x288] sm:$0xff] (%p49_p3)  ;;  %v165_v4 = vld [vmem:[%s1636_s23 + $0x360] sm:$0xff] (%p49_p3) }
  0x14   : > { %162 = vst [vmem:[%s1641_s24 + $0x18] sm:$0xff] (%p49_p3), %v161_v2  ;;  %v167_v5 = vld [vmem:[%s1636_s23 + $0x438] sm:$0xff] (%p49_p3)  ;;  %164 = vst [vmem:[%s1641_s24 + $0x24] sm:$0xff] (%p49_p3), %v163_v3  ;;  %v169_v6 = vld [vmem:[%s1636_s23 + $0x510] sm:$0xff] (%p49_p3) }
  0x15   : > { %166 = vst [vmem:[%s1641_s24 + $0x30] sm:$0xff] %v165_v4  ;;  %168 = vst [vmem:[%s1641_s24 + $0x3c] sm:$0xff] %v167_v5  ;;  %v171_v7 = vld [vmem:[%s1636_s23 + $0x5e8] sm:$0xff]  ;;  %v173_v8 = vld [vmem:[%s1636_s23 + $0x6c0] sm:$0xff] }
  0x16   : > { %170 = vst [vmem:[%s1641_s24 + $0x48] sm:$0xff] %v169_v6  ;;  %172 = vst [vmem:[%s1641_s24 + $0x54] sm:$0xff] %v171_v7  ;;  %v175_v9 = vld [vmem:[%s1636_s23 + $0x798] sm:$0xff]  ;;  %v177_v10 = vld [vmem:[%s1636_s23 + $0x870] sm:$0xff] }
  0x17   : > { %174 = vst [vmem:[%s1641_s24 + $0x60] sm:$0xff] %v173_v8  ;;  %v179_v11 = vld [vmem:[%s1636_s23 + $0x948] sm:$0xff]  ;;  %176 = vst [vmem:[%s1641_s24 + $0x6c] sm:$0xff] %v175_v9  ;;  %v181_v12 = vld [vmem:[%s1636_s23 + $0xa20] sm:$0xff] }
  0x18   : > { %178 = vst [vmem:[%s1641_s24 + $0x78] sm:$0xff] %v177_v10  ;;  %180 = vst [vmem:[%s1641_s24 + $0x84] sm:$0xff] %v179_v11  ;;  %v183_v13 = vld [vmem:[%s1636_s23 + $0xaf8] sm:$0xff]  ;;  %v185_v14 = vld [vmem:[%s1636_s23 + $0xbd0] sm:$0xff] }
  0x19   : > { %182 = vst [vmem:[%s1641_s24 + $0x90] sm:$0xff] %v181_v12  ;;  %184 = vst [vmem:[%s1641_s24 + $0x9c] sm:$0xff] %v183_v13  ;;  %v187_v15 = vld [vmem:[%s1636_s23 + $0xca8] sm:$0xff]  ;;  %v1244_v17 = vld [vmem:[%s1636_s23 + $0xe0] sm:$0xf] }
  0x1a   : > { %186 = vst [vmem:[%s1641_s24 + $0xa8] sm:$0xff] %v185_v14  ;;  %v1242_v16 = vld [vmem:[%s1636_s23 + $0x8] sm:$0xf]  ;;  %188 = vst [vmem:[%s1641_s24 + $0xb4] sm:$0xff] %v187_v15  ;;  %v1246_v18 = vld [vmem:[%s1636_s23 + $0x1b8] sm:$0xf] }
  0x1b   : > { %1243 = vst [vmem:[%s1641_s24 + $0x8] sm:$0xf] %v1242_v16  ;;  %1245 = vst [vmem:[%s1641_s24 + $0x14] sm:$0xf] %v1244_v17  ;;  %v1248_v19 = vld [vmem:[%s1636_s23 + $0x290] sm:$0xf] }
  0x1c   : > { %v1250_v20 = vld [vmem:[%s1636_s23 + $0x368] sm:$0xf]  ;;  %1247 = vst [vmem:[%s1641_s24 + $0x20] sm:$0xf] %v1246_v18  ;;  %1249 = vst [vmem:[%s1641_s24 + $0x2c] sm:$0xf] %v1248_v19 }
  0x1d   : > { %1251 = vst [vmem:[%s1641_s24 + $0x38] sm:$0xf] %v1250_v20  ;;  %v1252_v21 = vld [vmem:[%s1636_s23 + $0x440] sm:$0xf]  ;;  %v1254_v22 = vld [vmem:[%s1636_s23 + $0x518] sm:$0xf] }
  0x1e   : > { %v1256_v23 = vld [vmem:[%s1636_s23 + $0x5f0] sm:$0xf]  ;;  %1253 = vst [vmem:[%s1641_s24 + $0x44] sm:$0xf] %v1252_v21  ;;  %1255 = vst [vmem:[%s1641_s24 + $0x50] sm:$0xf] %v1254_v22 }
  0x1f   : > { %1257 = vst [vmem:[%s1641_s24 + $0x5c] sm:$0xf] %v1256_v23  ;;  %v1258_v24 = vld [vmem:[%s1636_s23 + $0x6c8] sm:$0xf]  ;;  %v1260_v25 = vld [vmem:[%s1636_s23 + $0x7a0] sm:$0xf] }
  0x20   : > { %v1262_v26 = vld [vmem:[%s1636_s23 + $0x878] sm:$0xf]  ;;  %1259 = vst [vmem:[%s1641_s24 + $0x68] sm:$0xf] %v1258_v24  ;;  %1261 = vst [vmem:[%s1641_s24 + $0x74] sm:$0xf] %v1260_v25 }
  0x21   : > { %1263 = vst [vmem:[%s1641_s24 + $0x80] sm:$0xf] %v1262_v26  ;;  %v1264_v27 = vld [vmem:[%s1636_s23 + $0x950] sm:$0xf]  ;;  %v1266_v28 = vld [vmem:[%s1636_s23 + $0xa28] sm:$0xf] }
  0x22   : > { %v1268_v29 = vld [vmem:[%s1636_s23 + $0xb00] sm:$0xf]  ;;  %1265 = vst [vmem:[%s1641_s24 + $0x8c] sm:$0xf] %v1264_v27  ;;  %1267 = vst [vmem:[%s1641_s24 + $0x98] sm:$0xf] %v1266_v28 }
  0x23   : > { %1269 = vst [vmem:[%s1641_s24 + $0xa4] sm:$0xf] %v1268_v29  ;;  %v1270_v30 = vld [vmem:[%s1636_s23 + $0xbd8] sm:$0xf]  ;;  %v1272_v31 = vld [vmem:[%s1636_s23 + $0xcb0] sm:$0xf] }
  0x24   : > { %1271 = vst [vmem:[%s1641_s24 + $0xb0] sm:$0xf] %v1270_v30  ;;  %1273 = vst [vmem:[%s1641_s24 + $0xbc] sm:$0xf] %v1272_v31 }
  0x25 PF: > { %p1274_p6 = scmp.ge.s32.totalorder %s1574_s13, 1  ;;  %p247_p7 = scmp.lt.s32.totalorder %s1574_s13, 19 }
  0x27   : > { %p248_p8 = pnand %p1274_p6, %p247_p7 }
  0x28   : > { %s254_s25 = sand.u32 (!%p248_p8), 1, %s1558_s9   ;;  %s292_s26 = smul.u32 (!%p248_p8), 48, %s1566_s11 }
  0x29   : > { %251 = sbr.rel (%p248_p8) target bundleno = 407 (0x197), region = 50  ;;  %p1277_p10 = scmp.ne.s32.totalorder (!%p248_p8), %s1566_s11, 0 }
  0x2a   : > { %s1389_s27 = smul.u32 (!%p248_p8), 192, %s254_s25  ;;  %p294_p9 = scmp.lt.s32.totalorder (!%p248_p8), %s292_s26, 863 }
  0x2c   : > { %s1713_s4 = scalar_lea.vmem (!%p248_p8), [#allocation2], %s1389_s27 }
  0x30   : > { %s2130_s26 = smov (!%p294_p9, %s292_s26), 863  ;;  %320 = sbr.rel (%p1277_p10) target bundleno = 66 (0x42), region = 58 }
  0x31   : > { %s1355_s28 = sshll.u32 %s2130_s26, 3  ;;  %v1576_v32 = vmov (!%p1277_p10), 0.0  }
  0x32   : > { %s1711_s3 = scalar_lea.vmem %s2121_s1, %s1355_s28  ;;  %321 = vst [vmem:[%s2122_s2] sm:$0xff] (!%p1277_p10), %v1576_v32  ;;  %322 = vst [vmem:[%s2122_s2 + $0x8] sm:$0xff] (!%p1277_p10), %v1576_v32 }
  0x33   : > { %323 = vst [vmem:[%s2122_s2 + $0x10] sm:$0xff] (!%p1277_p10), %v1576_v32  ;;  %324 = vst [vmem:[%s2122_s2 + $0x18] sm:$0xff] (!%p1277_p10), %v1576_v32 }
  0x34   : > { %325 = vst [vmem:[%s2122_s2 + $0x20] sm:$0xff] (!%p1277_p10), %v1576_v32  ;;  %326 = vst [vmem:[%s2122_s2 + $0x28] sm:$0xff] (!%p1277_p10), %v1576_v32 }
  0x35   : > { %327 = vst [vmem:[%s2122_s2 + $0x30] sm:$0xff] (!%p1277_p10), %v1576_v32  ;;  %328 = vst [vmem:[%s2122_s2 + $0x38] sm:$0xff] (!%p1277_p10), %v1576_v32 }
  0x36   : > { %329 = vst [vmem:[%s2122_s2 + $0x40] sm:$0xff] (!%p1277_p10), %v1576_v32  ;;  %330 = vst [vmem:[%s2122_s2 + $0x48] sm:$0xff] (!%p1277_p10), %v1576_v32 }
  0x37   : > { %331 = vst [vmem:[%s2122_s2 + $0x50] sm:$0xff] %v1576_v32  ;;  %332 = vst [vmem:[%s2122_s2 + $0x58] sm:$0xff] %v1576_v32 }
  0x38   : > { %333 = vst [vmem:[%s2122_s2 + $0x60] sm:$0xff] %v1576_v32  ;;  %334 = vst [vmem:[%s2122_s2 + $0x68] sm:$0xff] %v1576_v32 }
  0x39   : > { %335 = vst [vmem:[%s2122_s2 + $0x70] sm:$0xff] %v1576_v32  ;;  %336 = vst [vmem:[%s2122_s2 + $0x78] sm:$0xff] %v1576_v32 }
  0x3a   : > { %337 = vst [vmem:[%s2122_s2 + $0x80] sm:$0xff] %v1576_v32  ;;  %338 = vst [vmem:[%s2122_s2 + $0x88] sm:$0xff] %v1576_v32 }
  0x3b   : > { %339 = vst [vmem:[%s2122_s2 + $0x90] sm:$0xff] %v1576_v32  ;;  %340 = vst [vmem:[%s2122_s2 + $0x98] sm:$0xff] %v1576_v32 }
  0x3c   : > { %341 = vst [vmem:[%s2122_s2 + $0xa0] sm:$0xff] %v1576_v32  ;;  %342 = vst [vmem:[%s2122_s2 + $0xa8] sm:$0xff] %v1576_v32 }
  0x3d   : > { %343 = vst [vmem:[%s2122_s2 + $0xb0] sm:$0xff] %v1576_v32  ;;  %344 = vst [vmem:[%s2122_s2 + $0xb8] sm:$0xff] %v1576_v32 }
  0x3e   : > { %345 = vst [vmem:[%s2122_s2 + $0xc0] sm:$0xff] %v1576_v32  ;;  %346 = vst [vmem:[%s2122_s2 + $0xc8] sm:$0xff] %v1576_v32 }
  0x3f   : > { %347 = vst [vmem:[%s2122_s2 + $0xd0] sm:$0xff] %v1576_v32  ;;  %348 = vst [vmem:[%s2122_s2 + $0xd8] sm:$0xff] %v1576_v32 }
  0x40   : > { %349 = vst [vmem:[%s2122_s2 + $0xe0] sm:$0xff] %v1576_v32  ;;  %350 = vst [vmem:[%s2122_s2 + $0xe8] sm:$0xff] %v1576_v32 }
  0x41   : > { %351 = vst [vmem:[%s2122_s2 + $0xf0] sm:$0xff] %v1576_v32  ;;  %352 = vst [vmem:[%s2122_s2 + $0xf8] sm:$0xff] %v1576_v32 }
  0x42 PF: > { %v1432_v33 = vld [vmem:[%s1711_s3 + $0x4] ss:$8 sps:$4 sm:$0xff]   ;;  %v1434_v34 = vld [vmem:[%s1711_s3] ss:$8 sps:$4 sm:$0xff]   ;;  %v1577_v35 = vmov 0  }
  0x43   : > { %978 = vmatprep.mubr.bf16.mxu0 %v1577_v35  ;;  %833 = vmatprep.subr.bf16.mxu1 %v1432_v33  ;;  %v1435_v36 = vld [vmem:[%s1711_s3 + $0x14] ss:$8 sps:$4 sm:$0xff]   ;;  %v1437_v37 = vld [vmem:[%s1711_s3 + $0x10] ss:$8 sps:$4 sm:$0xff]   ;;  %v1438_v38 = vld [vmem:[%s1711_s3 + $0x24] ss:$8 sps:$4 sm:$0xff]  }
  0x44   : > { %834 = vmatpush1.bf16.msra.mxu1 %v1434_v34  ;;  %v1440_v39 = vld [vmem:[%s1711_s3 + $0x20] ss:$8 sps:$4 sm:$0xff]   ;;  %v1441_v40 = vld [vmem:[%s1711_s3 + $0x34] ss:$8 sps:$4 sm:$0xff]   ;;  %v1443_v41 = vld [vmem:[%s1711_s3 + $0x30] ss:$8 sps:$4 sm:$0xff]  }
  0x45   : > { %835 = vmatprep.subr.bf16.mxu1 %v1435_v36  ;;  %v1456_v42 = vld [vmem:[%s1711_s3 + $0x104] ss:$8 sps:$4 sm:$0xff]   ;;  %v1458_v43 = vld [vmem:[%s1711_s3 + $0x100] ss:$8 sps:$4 sm:$0xff]   ;;  %v1462_v45 = vld [vmem:[%s1711_s3 + $0x114] ss:$8 sps:$4 sm:$0xff]  }
  0x46   : > { %v1444_v44 = vld [vmem:[%s1711_s3 + $0x44] ss:$8 sps:$4 sm:$0xff]   ;;  %946 = vmatprep.subr.bf16.mxu0 %v1456_v42  ;;  %v1464_v46 = vld [vmem:[%s1711_s3 + $0x110] ss:$8 sps:$4 sm:$0xff]   ;;  %v1446_v47 = vld [vmem:[%s1711_s3 + $0x40] ss:$8 sps:$4 sm:$0xff]  }
  0x47   : > { %947 = vmatpush1.bf16.msra.mxu0 %v1458_v43  ;;  %v1447_v48 = vld [vmem:[%s1711_s3 + $0x54] ss:$8 sps:$4 sm:$0xff]   ;;  %v1468_v49 = vld [vmem:[%s1711_s3 + $0x124] ss:$8 sps:$4 sm:$0xff]   ;;  %v1470_v50 = vld [vmem:[%s1711_s3 + $0x120] ss:$8 sps:$4 sm:$0xff]  }
  0x48   : > { %836 = vmatpush1.bf16.msra.mxu1 %v1437_v37  ;;  %948 = vmatprep.subr.bf16.mxu0 %v1462_v45  ;;  %v1449_v51 = vld [vmem:[%s1711_s3 + $0x50] ss:$8 sps:$4 sm:$0xff]   ;;  %v1474_v52 = vld [vmem:[%s1711_s3 + $0x134] ss:$8 sps:$4 sm:$0xff]   ;;  %v1450_v53 = vld [vmem:[%s1711_s3 + $0x64] ss:$8 sps:$4 sm:$0xff]  }
  0x49   : > { %837 = vmatprep.subr.bf16.mxu1 %v1438_v38  ;;  %v1476_v54 = vld [vmem:[%s1711_s3 + $0x130] ss:$8 sps:$4 sm:$0xff]   ;;  %v1452_v55 = vld [vmem:[%s1711_s3 + $0x60] ss:$8 sps:$4 sm:$0xff]   ;;  %v1480_v56 = vld [vmem:[%s1711_s3 + $0x144] ss:$8 sps:$4 sm:$0xff]  }
  0x4a   : > { %v1453_v57 = vld [vmem:[%s1711_s3 + $0x74] ss:$8 sps:$4 sm:$0xff]   ;;  %v1482_v58 = vld [vmem:[%s1711_s3 + $0x140] ss:$8 sps:$4 sm:$0xff]   ;;  %v1455_v59 = vld [vmem:[%s1711_s3 + $0x70] ss:$8 sps:$4 sm:$0xff]  }
  0x4b   : > { %949 = vmatpush1.bf16.msra.mxu0 %v1464_v46  ;;  %v1486_v60 = vld [vmem:[%s1711_s3 + $0x154] ss:$8 sps:$4 sm:$0xff]   ;;  %v1459_v61 = vld [vmem:[%s1711_s3 + $0x84] ss:$8 sps:$4 sm:$0xff]   ;;  %v1488_v62 = vld [vmem:[%s1711_s3 + $0x150] ss:$8 sps:$4 sm:$0xff]  }
  0x4c   : > { %838 = vmatpush1.bf16.msra.mxu1 %v1440_v39  ;;  %950 = vmatprep.subr.bf16.mxu0 %v1468_v49  ;;  %v1461_v63 = vld [vmem:[%s1711_s3 + $0x80] ss:$8 sps:$4 sm:$0xff]   ;;  %v1492_v0 = vld [vmem:[%s1711_s3 + $0x164] ss:$8 sps:$4 sm:$0xff]   ;;  %v1465_v1 = vld [vmem:[%s1711_s3 + $0x94] ss:$8 sps:$4 sm:$0xff]  }
  0x4d   : > { %839 = vmatprep.subr.bf16.mxu1 %v1441_v40  ;;  %v1467_v2 = vld [vmem:[%s1711_s3 + $0x90] ss:$8 sps:$4 sm:$0xff]   ;;  %v1494_v3 = vld [vmem:[%s1711_s3 + $0x160] ss:$8 sps:$4 sm:$0xff]   ;;  %v1498_v5 = vld [vmem:[%s1711_s3 + $0x174] ss:$8 sps:$4 sm:$0xff]  }
  0x4e   : > { %v1507_v4 = vld [vmem:[%s1713_s4 + $0x4] ss:$12 sps:$4 sm:$0xff]   ;;  %v1473_v8 = vld [vmem:[%s1711_s3 + $0xa0] ss:$8 sps:$4 sm:$0xff]   ;;  %v1477_v9 = vld [vmem:[%s1711_s3 + $0xb4] ss:$8 sps:$4 sm:$0xff]  }
  0x4f   : > { %951 = vmatpush1.bf16.msra.mxu0 %v1470_v50  ;;  %v1471_v6 = vld [vmem:[%s1711_s3 + $0xa4] ss:$8 sps:$4 sm:$0xff]   ;;  %865 = vmatprep.mubr.bf16.mxu1 %v1507_v4  ;;  %v1500_v7 = vld [vmem:[%s1711_s3 + $0x170] ss:$8 sps:$4 sm:$0xff]   ;;  %v1504_v10 = vld [vmem:[%s1713_s4 + $0x8] ss:$12 sps:$4 sm:$0xff]  }
  0x50   : > { %840 = vmatpush1.bf16.msra.mxu1 %v1443_v41  ;;  %952 = vmatprep.subr.bf16.mxu0 %v1474_v52  ;;  %v1479_v11 = vld [vmem:[%s1711_s3 + $0xb0] ss:$8 sps:$4 sm:$0xff]   ;;  %v1483_v12 = vld [vmem:[%s1711_s3 + $0xc4] ss:$8 sps:$4 sm:$0xff]   ;;  %v1485_v13 = vld [vmem:[%s1711_s3 + $0xc0] ss:$8 sps:$4 sm:$0xff]  }
  0x51   : > { %841 = vmatprep.subr.bf16.mxu1 %v1444_v44  ;;  %v1489_v14 = vld [vmem:[%s1711_s3 + $0xd4] ss:$8 sps:$4 sm:$0xff]   ;;  %v1508_v15 = vld [vmem:[%s1713_s4 + $0x20] ss:$12 sps:$4 sm:$0xff]   ;;  %v1491_v16 = vld [vmem:[%s1711_s3 + $0xd0] ss:$8 sps:$4 sm:$0xff]  }
  0x52   : > { %v1495_v17 = vld [vmem:[%s1711_s3 + $0xe4] ss:$8 sps:$4 sm:$0xff]   ;;  %v1497_v18 = vld [vmem:[%s1711_s3 + $0xe0] ss:$8 sps:$4 sm:$0xff]   ;;  %v1501_v19 = vld [vmem:[%s1711_s3 + $0xf4] ss:$8 sps:$4 sm:$0xff]  }
  0x53   : > { %953 = vmatpush1.bf16.msra.mxu0 %v1476_v54  ;;  %v1512_v20 = vld [vmem:[%s1713_s4 + $0x38] ss:$12 sps:$4 sm:$0xff]   ;;  %v1505_v22 = vld [vmem:[%s1713_s4] ss:$12 sps:$4 sm:$0xff]   ;;  %v1509_v23 = vld [vmem:[%s1713_s4 + $0x1c] ss:$12 sps:$4 sm:$0xff]  }
  0x54   : > { %842 = vmatpush1.bf16.msra.mxu1 %v1446_v47  ;;  %954 = vmatprep.subr.bf16.mxu0 %v1480_v56  ;;  %v1503_v21 = vld [vmem:[%s1711_s3 + $0xf0] ss:$8 sps:$4 sm:$0xff]   ;;  %v1513_v26 = vld [vmem:[%s1713_s4 + $0x34] ss:$12 sps:$4 sm:$0xff]   ;;  %v1525_v36 = vld [vmem:[%s1713_s4 + $0x7c] ss:$12 sps:$4 sm:$0xff]  }
  0x55   : > { %843 = vmatprep.subr.bf16.mxu1 %v1447_v48  ;;  %v1516_v24 = vld [vmem:[%s1713_s4 + $0x50] ss:$12 sps:$4 sm:$0xff]   ;;  %v1511_v25 = vld [vmem:[%s1713_s4 + $0x18] ss:$12 sps:$4 sm:$0xff]   ;;  %v1520_v27 = vld [vmem:[%s1713_s4 + $0x68] ss:$12 sps:$4 sm:$0xff]  }
  0x56   : > { %v1515_v28 = vld [vmem:[%s1713_s4 + $0x30] ss:$12 sps:$4 sm:$0xff]   ;;  %v1517_v29 = vld [vmem:[%s1713_s4 + $0x4c] ss:$12 sps:$4 sm:$0xff]   ;;  %v1519_v31 = vld [vmem:[%s1713_s4 + $0x48] ss:$12 sps:$4 sm:$0xff]  }
  0x57   : > { %955 = vmatpush1.bf16.msra.mxu0 %v1482_v58  ;;  %v1524_v30 = vld [vmem:[%s1713_s4 + $0x80] ss:$12 sps:$4 sm:$0xff]   ;;  %v1521_v32 = vld [vmem:[%s1713_s4 + $0x64] ss:$12 sps:$4 sm:$0xff]   ;;  %v1535_v42 = vld [vmem:[%s1713_s4 + $0xa8] ss:$12 sps:$4 sm:$0xff]  }
  0x58   : > { %844 = vmatpush1.bf16.msra.mxu1 %v1449_v51  ;;  %956 = vmatprep.subr.bf16.mxu0 %v1486_v60  ;;  %v1528_v33 = vld [vmem:[%s1713_s4 + $0x98] ss:$12 sps:$4 sm:$0xff]   ;;  %v1523_v34 = vld [vmem:[%s1713_s4 + $0x60] ss:$12 sps:$4 sm:$0xff]   ;;  %v1532_v37 = vld [vmem:[%s1713_s4 + $0xb0] ss:$12 sps:$4 sm:$0xff]  }
  0x59   : > { %845 = vmatprep.subr.bf16.mxu1 %v1450_v53  ;;  %v1527_v38 = vld [vmem:[%s1713_s4 + $0x78] ss:$12 sps:$4 sm:$0xff]   ;;  %v1529_v39 = vld [vmem:[%s1713_s4 + $0x94] ss:$12 sps:$4 sm:$0xff]   ;;  %v1531_v40 = vld [vmem:[%s1713_s4 + $0x90] ss:$12 sps:$4 sm:$0xff]  }
  0x5a   : > { %v1533_v41 = vld [vmem:[%s1713_s4 + $0xac] ss:$12 sps:$4 sm:$0xff]   ;;  %v353_v54 = vld [vmem:[%s2122_s2] sm:$0xff]  ;;  %v355_v60 = vld [vmem:[%s2122_s2 + $0x10] sm:$0xff] }
  0x5b   : > { %957 = vmatpush1.bf16.msra.mxu0 %v1488_v62 }
  0x5c   : > { %846 = vmatpush1.bf16.msra.mxu1 %v1452_v55  ;;  %958 = vmatprep.subr.bf16.mxu0 %v1492_v0  ;;  %v356_v0 = vld [vmem:[%s2122_s2 + $0x18] sm:$0xff] }
  0x5d   : > { %847 = vmatprep.subr.bf16.mxu1 %v1453_v57  ;;  %v354_v57 = vld [vmem:[%s2122_s2 + $0x8] sm:$0xff] }
  0x5f   : > { %959 = vmatpush1.bf16.msra.mxu0 %v1494_v3 }
  0x60   : > { %848 = vmatpush1.bf16.msra.mxu1 %v1455_v59  ;;  %960 = vmatprep.subr.bf16.mxu0 %v1498_v5 }
  0x61   : > { %849 = vmatprep.subr.bf16.mxu1 %v1459_v61 }
  0x63   : > { %961 = vmatpush1.bf16.msra.mxu0 %v1500_v7 }
  0x64   : > { %850 = vmatpush1.bf16.msra.mxu1 %v1461_v63 }
  0x65   : > { %851 = vmatprep.subr.bf16.mxu1 %v1465_v1 }
  0x66   : > { %979 = vmatmul.mubr.bf16.vlgmr.msra.gmra.mrb[0].mxu0 %v1504_v10  ;;  %v357_v10 = vld [vmem:[%s2122_s2 + $0x20] sm:$0xff] }
  0x67   : > { %988 = vmatprep.mubr.bf16.mxu0 %v1577_v35 }
  0x68   : > { %852 = vmatpush1.bf16.msra.mxu1 %v1467_v2 }
  0x69   : > { %853 = vmatprep.subr.bf16.mxu1 %v1471_v6 }
  0x6c   : > { %854 = vmatpush1.bf16.msra.mxu1 %v1473_v8 }
  0x6d   : > { %855 = vmatprep.subr.bf16.mxu1 %v1477_v9 }
  0x6e   : > { %989 = vmatmul.mubr.bf16.gmra.mrb[4].mxu0 %v1508_v15 }
  0x6f   : > { %998 = vmatprep.mubr.bf16.mxu0 %v1577_v35 }
  0x70   : > { %856 = vmatpush1.bf16.msra.mxu1 %v1479_v11 }
  0x71   : > { %857 = vmatprep.subr.bf16.mxu1 %v1483_v12 }
  0x74   : > { %858 = vmatpush1.bf16.msra.mxu1 %v1485_v13  ;;  %v358_v13 = vld [vmem:[%s2122_s2 + $0x28] sm:$0xff] }
  0x75   : > { %859 = vmatprep.subr.bf16.mxu1 %v1489_v14 }
  0x76   : > { %999 = vmatmul.mubr.bf16.gmra.mrb[8].mxu0 %v1512_v20  ;;  %v360_v20 = vld [vmem:[%s2122_s2 + $0x38] sm:$0xff] }
  0x77   : > { %1008 = vmatprep.mubr.bf16.mxu0 %v1577_v35 }
  0x78   : > { %860 = vmatpush1.bf16.msra.mxu1 %v1491_v16  ;;  %v359_v16 = vld [vmem:[%s2122_s2 + $0x30] sm:$0xff] }
  0x79   : > { %861 = vmatprep.subr.bf16.mxu1 %v1495_v17 }
  0x7c   : > { %862 = vmatpush1.bf16.msra.mxu1 %v1497_v18 }
  0x7d   : > { %863 = vmatprep.subr.bf16.mxu1 %v1501_v19 }
  0x7e   : > { %1009 = vmatmul.mubr.bf16.gmra.mrb[12].mxu0 %v1516_v24 }
  0x7f   : > { %1018 = vmatprep.mubr.bf16.mxu0 %v1577_v35 }
  0x80   : > { %864 = vmatpush1.bf16.msra.mxu1 %v1503_v21 }
  0x83   : > { %866 = vmatmul.mubr.bf16.vlgmr.msra.gmra.mrb[0].mxu1 %v1505_v22 }
  0x84   : > { %875 = vmatprep.mubr.bf16.mxu1 %v1509_v23 }
  0x86   : > { %1019 = vmatmul.mubr.bf16.gmra.mrb[16].mxu0 %v1520_v27 }
  0x87   : > { %1028 = vmatprep.mubr.bf16.mxu0 %v1577_v35 }
  0x8b   : > { %876 = vmatmul.mubr.bf16.gmra.mrb[4].mxu1 %v1511_v25 }
  0x8c   : > { %885 = vmatprep.mubr.bf16.mxu1 %v1513_v26 }
  0x8e   : > { %1029 = vmatmul.mubr.bf16.gmra.mrb[20].mxu0 %v1524_v30  ;;  %v361_v30 = vld [vmem:[%s2122_s2 + $0x40] sm:$0xff] }
  0x8f   : > { %1038 = vmatprep.mubr.bf16.mxu0 %v1577_v35 }
  0x93   : > { %886 = vmatmul.mubr.bf16.gmra.mrb[8].mxu1 %v1515_v28 }
  0x94   : > { %895 = vmatprep.mubr.bf16.mxu1 %v1517_v29 }
  0x96   : > { %1039 = vmatmul.mubr.bf16.gmra.mrb[24].mxu0 %v1528_v33  ;;  %v362_v33 = vld [vmem:[%s2122_s2 + $0x48] sm:$0xff] }
  0x97   : > { %1048 = vmatprep.mubr.bf16.mxu0 %v1577_v35 }
  0x9b   : > { %896 = vmatmul.mubr.bf16.gmra.mrb[12].mxu1 %v1519_v31 }
  0x9c   : > { %905 = vmatprep.mubr.bf16.mxu1 %v1521_v32 }
  0x9e   : > { %1049 = vmatmul.mubr.bf16.gmra.mrb[28].mxu0 %v1532_v37  ;;  %v363_v37 = vld [vmem:[%s2122_s2 + $0x50] sm:$0xff] }
  0xa3   : > { %906 = vmatmul.mubr.bf16.gmra.mrb[16].mxu1 %v1523_v34 }
  0xa4   : > { %915 = vmatprep.mubr.bf16.mxu1 %v1525_v36 }
  0xab   : > { %916 = vmatmul.mubr.bf16.gmra.mrb[20].mxu1 %v1527_v38 }
  0xac   : > { %925 = vmatprep.mubr.bf16.mxu1 %v1529_v39 }
  0xb3   : > { %926 = vmatmul.mubr.bf16.gmra.mrb[24].mxu1 %v1531_v40 }
  0xb4   : > { %935 = vmatprep.mubr.bf16.mxu1 %v1533_v41  ;;  %v364_v41 = vld [vmem:[%s2122_s2 + $0x58] sm:$0xff] }
  0xbb   : > { %936 = vmatmul.mubr.bf16.gmra.mrb[28].mxu1 %v1535_v42 }
 0x139   : > { %v980_v43 = vpop.f32.mrb[0].mxu0 }
 0x13a   : > { %v982_v44 = vpop.f32.mrb[1].mxu0 }
 0x13b   : > { %v984_v45 = vpop.f32.mrb[2].mxu0 }
 0x13c   : > { %v986_v46 = vpop.f32.mrb[3].mxu0 }
 0x141   : > { %v990_v35 = vpop.f32.mrb[4].mxu0 }
 0x142   : > { %v992_v47 = vpop.f32.mrb[5].mxu0 }
 0x143   : > { %v994_v48 = vpop.f32.mrb[6].mxu0 }
 0x144   : > { %v996_v49 = vpop.f32.mrb[7].mxu0 }
 0x149   : > { %v1000_v50 = vpop.f32.mrb[8].mxu0 }
 0x14a   : > { %v1002_v51 = vpop.f32.mrb[9].mxu0 }
 0x14b   : > { %v1004_v52 = vpop.f32.mrb[10].mxu0 }
 0x14c   : > { %v1892_v53 = vpop.f32.mrb[11].mxu0 }
 0x151   : > { %v1010_v2 = vpop.f32.mrb[12].mxu0 }
 0x152   : > { %v1012_v5 = vpop.f32.mrb[13].mxu0 }
 0x153   : > { %v1909_v7 = vpop.f32.mrb[14].mxu0 }
 0x154   : > { %v1914_v9 = vpop.f32.mrb[15].mxu0 }
 0x156   : > { %v867_v55 = vpop.f32.mrb[0].mxu1 }
 0x157   : > { %v981_v56 = vadd.f32 %v980_v43, %v867_v55  ;;  %v869_v58 = vpop.f32.mrb[1].mxu1 }
 0x158   : > { %v983_v59 = vadd.f32 %v982_v44, %v869_v58  ;;  %v871_v61 = vpop.f32.mrb[2].mxu1 }
 0x159   : > { %v1059_v62 = vadd.f32 %v981_v56, %v353_v54  ;;  %v985_v63 = vadd.f32 %v984_v45, %v871_v61  ;;  %v873_v1 = vpop.f32.mrb[3].mxu1  ;;  %v1020_v22 = vpop.f32.mrb[16].mxu0  ;;  %v367_v56 = vld [vmem:[%s2122_s2 + $0x70] sm:$0xff] }
 0x15a   : > { %v1060_v3 = vadd.f32 %v983_v59, %v354_v57  ;;  %v987_v4 = vadd.f32 %v986_v46, %v873_v1  ;;  %v1022_v25 = vpop.f32.mrb[17].mxu0 }
 0x15b   : > { %1091 = vst [vmem:[%s2122_s2] sm:$0xff] %v1059_v62  ;;  %v1061_v6 = vadd.f32 %v985_v63, %v355_v60  ;;  %v1937_v27 = vpop.f32.mrb[18].mxu0  ;;  %v368_v60 = vld [vmem:[%s2122_s2 + $0x78] sm:$0xff] }
 0x15c   : > { %1092 = vst [vmem:[%s2122_s2 + $0x8] sm:$0xff] %v1060_v3  ;;  %v1062_v8 = vadd.f32 %v987_v4, %v356_v0  ;;  %v1942_v29 = vpop.f32.mrb[19].mxu0 }
 0x15d   : > { %1093 = vst [vmem:[%s2122_s2 + $0x10] sm:$0xff] %v1061_v6  ;;  %v369_v6 = vld [vmem:[%s2122_s2 + $0x80] sm:$0xff] }
 0x15e   : > { %1094 = vst [vmem:[%s2122_s2 + $0x18] sm:$0xff] %v1062_v8  ;;  %v877_v11 = vpop.f32.mrb[4].mxu1 }
 0x15f   : > { %v991_v12 = vadd.f32 %v990_v35, %v877_v11  ;;  %v879_v14 = vpop.f32.mrb[5].mxu1 }
 0x160   : > { %v993_v15 = vadd.f32 %v992_v47, %v879_v14  ;;  %v881_v17 = vpop.f32.mrb[6].mxu1 }
 0x161   : > { %v1063_v18 = vadd.f32 %v991_v12, %v357_v10  ;;  %v995_v19 = vadd.f32 %v994_v48, %v881_v17  ;;  %v883_v21 = vpop.f32.mrb[7].mxu1  ;;  %v1030_v43 = vpop.f32.mrb[20].mxu0  ;;  %v371_v12 = vld [vmem:[%s2122_s2 + $0x90] sm:$0xff] }
 0x162   : > { %v1064_v23 = vadd.f32 %v993_v15, %v358_v13  ;;  %v997_v24 = vadd.f32 %v996_v49, %v883_v21  ;;  %v1032_v46 = vpop.f32.mrb[21].mxu0 }
 0x163   : > { %1095 = vst [vmem:[%s2122_s2 + $0x20] sm:$0xff] %v1063_v18  ;;  %v1065_v26 = vadd.f32 %v995_v19, %v359_v16  ;;  %v1966_v47 = vpop.f32.mrb[22].mxu0  ;;  %v372_v16 = vld [vmem:[%s2122_s2 + $0x98] sm:$0xff] }
 0x164   : > { %1096 = vst [vmem:[%s2122_s2 + $0x28] sm:$0xff] %v1064_v23  ;;  %v1066_v28 = vadd.f32 %v997_v24, %v360_v20  ;;  %v1971_v49 = vpop.f32.mrb[23].mxu0 }
 0x165   : > { %1097 = vst [vmem:[%s2122_s2 + $0x30] sm:$0xff] %v1065_v26  ;;  %v373_v26 = vld [vmem:[%s2122_s2 + $0xa0] sm:$0xff] }
 0x166   : > { %1098 = vst [vmem:[%s2122_s2 + $0x38] sm:$0xff] %v1066_v28  ;;  %v887_v31 = vpop.f32.mrb[8].mxu1 }
 0x167   : > { %v1001_v32 = vadd.f32 %v1000_v50, %v887_v31  ;;  %v889_v34 = vpop.f32.mrb[9].mxu1  ;;  %v365_v50 = vld [vmem:[%s2122_s2 + $0x60] sm:$0xff] }
 0x168   : > { %v1003_v36 = vadd.f32 %v1002_v51, %v889_v34  ;;  %v891_v38 = vpop.f32.mrb[10].mxu1 }
 0x169   : > { %v1067_v39 = vadd.f32 %v1001_v32, %v361_v30  ;;  %v1005_v40 = vadd.f32 %v1004_v52, %v891_v38  ;;  %v893_v42 = vpop.f32.mrb[11].mxu1  ;;  %v1040_v62 = vpop.f32.mrb[24].mxu0  ;;  %v375_v32 = vld [vmem:[%s2122_s2 + $0xb0] sm:$0xff] }
 0x16a   : > { %v1068_v44 = vadd.f32 %v1003_v36, %v362_v33  ;;  %v1007_v45 = vadd.f32 %v1892_v53, %v893_v42  ;;  %v366_v53 = vld [vmem:[%s2122_s2 + $0x68] sm:$0xff]  ;;  %v1042_v1 = vpop.f32.mrb[25].mxu0 }
 0x16b   : > { %1099 = vst [vmem:[%s2122_s2 + $0x40] sm:$0xff] %v1067_v39  ;;  %v1069_v35 = vadd.f32 %v1005_v40, %v363_v37  ;;  %v1044_v3 = vpop.f32.mrb[26].mxu0  ;;  %v376_v37 = vld [vmem:[%s2122_s2 + $0xb8] sm:$0xff] }
 0x16c   : > { %1100 = vst [vmem:[%s2122_s2 + $0x48] sm:$0xff] %v1068_v44  ;;  %v1070_v48 = vadd.f32 %v1007_v45, %v364_v41 }
 0x16d   : > { %1101 = vst [vmem:[%s2122_s2 + $0x50] sm:$0xff] %v1069_v35 }
 0x16e   : > { %1102 = vst [vmem:[%s2122_s2 + $0x58] sm:$0xff] %v1070_v48  ;;  %v897_v51 = vpop.f32.mrb[12].mxu1  ;;  %v379_v48 = vld [vmem:[%s2122_s2 + $0xd0] sm:$0xff] }
 0x16f   : > { %v1011_v52 = vadd.f32 %v1010_v2, %v897_v51  ;;  %v899_v54 = vpop.f32.mrb[13].mxu1 }
 0x170   : > { %v1013_v55 = vadd.f32 %v1012_v5, %v899_v54  ;;  %v901_v57 = vpop.f32.mrb[14].mxu1  ;;  %v1046_v5 = vpop.f32.mrb[27].mxu0 }
 0x171   : > { %v1071_v58 = vadd.f32 %v1011_v52, %v365_v50  ;;  %v1015_v59 = vadd.f32 %v1909_v7, %v901_v57  ;;  %v903_v61 = vpop.f32.mrb[15].mxu1  ;;  %v1050_v18 = vpop.f32.mrb[28].mxu0  ;;  %v380_v52 = vld [vmem:[%s2122_s2 + $0xd8] sm:$0xff] }
 0x172   : > { %v1072_v63 = vadd.f32 %v1013_v55, %v366_v53  ;;  %v1017_v0 = vadd.f32 %v1914_v9, %v903_v61  ;;  %v370_v9 = vld [vmem:[%s2122_s2 + $0x88] sm:$0xff]  ;;  %v1052_v21 = vpop.f32.mrb[29].mxu0 }
 0x173   : > { %1103 = vst [vmem:[%s2122_s2 + $0x60] sm:$0xff] %v1071_v58  ;;  %v1073_v2 = vadd.f32 %v1015_v59, %v367_v56  ;;  %v1054_v23 = vpop.f32.mrb[30].mxu0  ;;  %v381_v58 = vld [vmem:[%s2122_s2 + $0xe0] sm:$0xff]  ;;  %v382_v61 = vld [vmem:[%s2122_s2 + $0xe8] sm:$0xff] }
 0x174   : > { %1104 = vst [vmem:[%s2122_s2 + $0x68] sm:$0xff] %v1072_v63  ;;  %v1074_v4 = vadd.f32 %v1017_v0, %v368_v60  ;;  %v383_v0 = vld [vmem:[%s2122_s2 + $0xf0] sm:$0xff] }
 0x175   : > { %1105 = vst [vmem:[%s2122_s2 + $0x70] sm:$0xff] %v1073_v2 }
 0x176   : > { %1106 = vst [vmem:[%s2122_s2 + $0x78] sm:$0xff] %v1074_v4  ;;  %v907_v7 = vpop.f32.mrb[16].mxu1  ;;  %v384_v4 = vld [vmem:[%s2122_s2 + $0xf8] sm:$0xff] }
 0x177   : > { %v1021_v8 = vadd.f32 %v1020_v22, %v907_v7  ;;  %v909_v10 = vpop.f32.mrb[17].mxu1 }
 0x178   : > { %v1023_v11 = vadd.f32 %v1022_v25, %v909_v10  ;;  %v911_v13 = vpop.f32.mrb[18].mxu1  ;;  %v1056_v25 = vpop.f32.mrb[31].mxu0 }
 0x179   : > { %v1075_v14 = vadd.f32 %v1021_v8, %v369_v6  ;;  %v1025_v15 = vadd.f32 %v1937_v27, %v911_v13  ;;  %v913_v17 = vpop.f32.mrb[19].mxu1 }
 0x17a   : > { %v1076_v19 = vadd.f32 %v1023_v11, %v370_v9  ;;  %v1027_v20 = vadd.f32 %v1942_v29, %v913_v17  ;;  %v374_v29 = vld [vmem:[%s2122_s2 + $0xa8] sm:$0xff] }
 0x17b   : > { %1107 = vst [vmem:[%s2122_s2 + $0x80] sm:$0xff] %v1075_v14  ;;  %v1077_v22 = vadd.f32 %v1025_v15, %v371_v12 }
 0x17c   : > { %1108 = vst [vmem:[%s2122_s2 + $0x88] sm:$0xff] %v1076_v19  ;;  %v1078_v24 = vadd.f32 %v1027_v20, %v372_v16 }
 0x17d   : > { %1109 = vst [vmem:[%s2122_s2 + $0x90] sm:$0xff] %v1077_v22 }
 0x17e   : > { %1110 = vst [vmem:[%s2122_s2 + $0x98] sm:$0xff] %v1078_v24  ;;  %v917_v27 = vpop.f32.mrb[20].mxu1 }
 0x17f   : > { %v1031_v28 = vadd.f32 %v1030_v43, %v917_v27  ;;  %v919_v30 = vpop.f32.mrb[21].mxu1  ;;  %v377_v43 = vld [vmem:[%s2122_s2 + $0xc0] sm:$0xff] }
 0x180   : > { %v1033_v31 = vadd.f32 %v1032_v46, %v919_v30  ;;  %v921_v33 = vpop.f32.mrb[22].mxu1  ;;  %v378_v46 = vld [vmem:[%s2122_s2 + $0xc8] sm:$0xff] }
 0x181   : > { %v1079_v34 = vadd.f32 %v1031_v28, %v373_v26  ;;  %v1035_v36 = vadd.f32 %v1966_v47, %v921_v33  ;;  %v923_v38 = vpop.f32.mrb[23].mxu1 }
 0x182   : > { %v1080_v39 = vadd.f32 %v1033_v31, %v374_v29  ;;  %v1037_v40 = vadd.f32 %v1971_v49, %v923_v38 }
 0x183   : > { %1111 = vst [vmem:[%s2122_s2 + $0xa0] sm:$0xff] %v1079_v34  ;;  %v1081_v41 = vadd.f32 %v1035_v36, %v375_v32 }
 0x184   : > { %1112 = vst [vmem:[%s2122_s2 + $0xa8] sm:$0xff] %v1080_v39  ;;  %v1082_v42 = vadd.f32 %v1037_v40, %v376_v37 }
 0x185   : > { %1113 = vst [vmem:[%s2122_s2 + $0xb0] sm:$0xff] %v1081_v41 }
 0x186   : > { %1114 = vst [vmem:[%s2122_s2 + $0xb8] sm:$0xff] %v1082_v42  ;;  %v927_v44 = vpop.f32.mrb[24].mxu1 }
 0x187   : > { %v1041_v45 = vadd.f32 %v1040_v62, %v927_v44  ;;  %v929_v35 = vpop.f32.mrb[25].mxu1 }
 0x188   : > { %v1043_v47 = vadd.f32 %v1042_v1, %v929_v35  ;;  %v931_v49 = vpop.f32.mrb[26].mxu1 }
 0x189   : > { %v1083_v50 = vadd.f32 %v1041_v45, %v377_v43  ;;  %v1045_v51 = vadd.f32 %v1044_v3, %v931_v49  ;;  %v933_v53 = vpop.f32.mrb[27].mxu1 }
 0x18a   : > { %v1084_v54 = vadd.f32 %v1043_v47, %v378_v46  ;;  %v1047_v55 = vadd.f32 %v1046_v5, %v933_v53 }
 0x18b   : > { %1115 = vst [vmem:[%s2122_s2 + $0xc0] sm:$0xff] %v1083_v50  ;;  %v1085_v56 = vadd.f32 %v1045_v51, %v379_v48 }
 0x18c   : > { %1116 = vst [vmem:[%s2122_s2 + $0xc8] sm:$0xff] %v1084_v54  ;;  %v1086_v57 = vadd.f32 %v1047_v55, %v380_v52 }
 0x18d   : > { %1117 = vst [vmem:[%s2122_s2 + $0xd0] sm:$0xff] %v1085_v56 }
 0x18e   : > { %1118 = vst [vmem:[%s2122_s2 + $0xd8] sm:$0xff] %v1086_v57  ;;  %v937_v59 = vpop.f32.mrb[28].mxu1 }
 0x18f   : > { %v1051_v60 = vadd.f32 %v1050_v18, %v937_v59  ;;  %v939_v62 = vpop.f32.mrb[29].mxu1 }
 0x190   : > { %v1053_v63 = vadd.f32 %v1052_v21, %v939_v62  ;;  %v941_v1 = vpop.f32.mrb[30].mxu1 }
 0x191   : > { %v1087_v2 = vadd.f32 %v1051_v60, %v381_v58  ;;  %v1055_v3 = vadd.f32 %v1054_v23, %v941_v1  ;;  %v943_v5 = vpop.f32.mrb[31].mxu1 }
 0x192   : > { %v1088_v6 = vadd.f32 %v1053_v63, %v382_v61  ;;  %v1057_v7 = vadd.f32 %v1056_v25, %v943_v5 }
 0x193   : > { %1119 = vst [vmem:[%s2122_s2 + $0xe0] sm:$0xff] %v1087_v2  ;;  %v1089_v8 = vadd.f32 %v1055_v3, %v383_v0 }
 0x194   : > { %1120 = vst [vmem:[%s2122_s2 + $0xe8] sm:$0xff] %v1088_v6  ;;  %v1090_v9 = vadd.f32 %v1057_v7, %v384_v4 }
 0x195   : > { %1121 = vst [vmem:[%s2122_s2 + $0xf0] sm:$0xff] %v1089_v8 }
 0x196   : > { %1122 = vst [vmem:[%s2122_s2 + $0xf8] sm:$0xff] %v1090_v9 }
 0x197 PF: > { %s12_s13 = sadd.s32 1, %s1574_s13   ;;  %s2123_s9 = smov %s1562_s10 }
 0x198   : > { %p9_p11 = scmp.ge.s32.totalorder %s12_s13, 20   ;;  %s2124_s10 = smov %s1628_s17 }
 0x199   : > { %s2125_s11 = smov %s1570_s12  ;;  %s2126_s12 = smov %s2128_s14 }
 0x19a   :  { %11 = sbr.rel (!%p9_p11) target bundleno = 3 (0x3), region = 102 }

// kernel: res3d_forward.109
= control target key start
LH: loop header
LB: loop body
LE: loop exit
PB: predicated region body
PF: predicated region fallthrough
CT: control target
= control target key end

     0   :  { %s1048_s9 = smov 0   ;;  %s1050_s10 = smov 0   ;;  %s1238_s0 = inlined_call_operand.vmem [shape: bf16[32,256], index: 0, kind: input, shape index: {}]   ;;  %s1239_s1 = inlined_call_operand.vmem [shape: bf16[256,512], index: 1, kind: input, shape index: {}]   ;;  %s1240_s2 = inlined_call_operand.vmem [shape: f32[32,512], index: 2, kind: output, shape index: {}]  }
   0x1   :  { %s1052_s11 = smov 0   ;;  %s1054_s12 = smov 0  }
   0x2   :  { %s1056_s13 = smov 0  }
   0x3 LB: > { %s27_s14 = sadd.s32 1, %s1027_s12  ;;  %s812_s15 = sadd.s32 4294967295, %s1031_s13   ;;  %s1031_s13 = sphi %s1056_s13, %s12_s13   ;;  %s1027_s12 = sphi %s1054_s12, %s1245_s12   ;;  %s1023_s11 = sphi %s1052_s11, %s1244_s11   ;;  %s1019_s10 = sphi %s1050_s10, %s1243_s10   ;;  %s1015_s9 = sphi %s1048_s9, %s1242_s9  }
   0x4   : > { %p29_p0 = scmp.ge.s32.totalorder %s27_s14, 2  ;;  %p75_p1 = scmp.ne.s32.totalorder %s1019_s10, %s1015_s9 }
   0x5   : > { %p76_p2 = scmp.eq.s32.totalorder %s1031_s13, 0  ;;  %p107_p4 = scmp.eq.s32.totalorder %s812_s15, 1 }
   0x6   : > { %s1247_s14 = smov (%p29_p0, %s27_s14), 0  ;;  %s68_s17 = sadd.s32 1, %s1019_s10 }
   0x7   : > { %p77_p3 = por %p76_p2, %p75_p1  ;;  %s64_s16 = ssub.s32 %s1027_s12, %s1247_s14 }
   0x8   : > { %p66_p5 = scmp.eq.s32.totalorder %s64_s16, 0  ;;  %p1083_p6 = por %p107_p4, %p75_p1 }
   0x9   : > { %p816_p7 = scmp.ge.s32.totalorder %s1031_s13, 2 }
   0xa   : > { %s1088_s19 = scalar_select %p66_p5, %s1019_s10, %s68_s17  }
   0xb   : > { %144 = sbr.rel (%p816_p7) target bundleno = 38 (0x26), region = 20 }
  0x12   : > { %147 = sbr.rel (!%p77_p3) target bundleno = 38 (0x26), region = 24  ;;  %s149_s20 = sand.u32 (%p77_p3), 1, %s1019_s10  }
  0x13   : > { %s864_s21 = sshll.u32 (%p77_p3), %s1027_s12, 3  ;;  %s817_s22 = sshll.u32 (%p77_p3), %s149_s20, 8 }
  0x14   : > { %s1096_s25 = scalar_lea.vmem (%p77_p3), %s1239_s1, %s864_s21  ;;  %s1101_s26 = scalar_lea.vmem (%p77_p3), [#allocation2], %s817_s22 }
  0x15   : > { %v247_v0 = vld [vmem:[%s1096_s25] sm:$0xff] (%p77_p3)  ;;  %v249_v1 = vld [vmem:[%s1096_s25 + $0x10] sm:$0xff] (%p77_p3) }
  0x16   : > { %v251_v2 = vld [vmem:[%s1096_s25 + $0x20] sm:$0xff] (%p77_p3)  ;;  %248 = vst [vmem:[%s1101_s26] sm:$0xff] (%p77_p3), %v247_v0  ;;  %250 = vst [vmem:[%s1101_s26 + $0x8] sm:$0xff] (%p77_p3), %v249_v1  ;;  %v253_v3 = vld [vmem:[%s1096_s25 + $0x30] sm:$0xff] (%p77_p3) }
  0x17   : > { %252 = vst [vmem:[%s1101_s26 + $0x10] sm:$0xff] (%p77_p3), %v251_v2  ;;  %v255_v4 = vld [vmem:[%s1096_s25 + $0x40] sm:$0xff] (%p77_p3)  ;;  %v257_v5 = vld [vmem:[%s1096_s25 + $0x50] sm:$0xff] (%p77_p3)  ;;  %254 = vst [vmem:[%s1101_s26 + $0x18] sm:$0xff] (%p77_p3), %v253_v3 }
  0x18   : > { %256 = vst [vmem:[%s1101_s26 + $0x20] sm:$0xff] (%p77_p3), %v255_v4  ;;  %258 = vst [vmem:[%s1101_s26 + $0x28] sm:$0xff] (%p77_p3), %v257_v5  ;;  %v259_v6 = vld [vmem:[%s1096_s25 + $0x60] sm:$0xff] (%p77_p3)  ;;  %v261_v7 = vld [vmem:[%s1096_s25 + $0x70] sm:$0xff] (%p77_p3) }
  0x19   : > { %v263_v8 = vld [vmem:[%s1096_s25 + $0x80] sm:$0xff]  ;;  %260 = vst [vmem:[%s1101_s26 + $0x30] sm:$0xff] %v259_v6  ;;  %262 = vst [vmem:[%s1101_s26 + $0x38] sm:$0xff] %v261_v7  ;;  %v265_v9 = vld [vmem:[%s1096_s25 + $0x90] sm:$0xff] }
  0x1a   : > { %264 = vst [vmem:[%s1101_s26 + $0x40] sm:$0xff] %v263_v8  ;;  %v267_v10 = vld [vmem:[%s1096_s25 + $0xa0] sm:$0xff]  ;;  %v269_v11 = vld [vmem:[%s1096_s25 + $0xb0] sm:$0xff]  ;;  %266 = vst [vmem:[%s1101_s26 + $0x48] sm:$0xff] %v265_v9 }
  0x1b   : > { %268 = vst [vmem:[%s1101_s26 + $0x50] sm:$0xff] %v267_v10  ;;  %270 = vst [vmem:[%s1101_s26 + $0x58] sm:$0xff] %v269_v11  ;;  %v271_v12 = vld [vmem:[%s1096_s25 + $0xc0] sm:$0xff]  ;;  %v273_v13 = vld [vmem:[%s1096_s25 + $0xd0] sm:$0xff] }
  0x1c   : > { %v275_v14 = vld [vmem:[%s1096_s25 + $0xe0] sm:$0xff]  ;;  %272 = vst [vmem:[%s1101_s26 + $0x60] sm:$0xff] %v271_v12  ;;  %274 = vst [vmem:[%s1101_s26 + $0x68] sm:$0xff] %v273_v13  ;;  %v277_v15 = vld [vmem:[%s1096_s25 + $0xf0] sm:$0xff] }
  0x1d   : > { %276 = vst [vmem:[%s1101_s26 + $0x70] sm:$0xff] %v275_v14  ;;  %v279_v16 = vld [vmem:[%s1096_s25 + $0x100] sm:$0xff]  ;;  %v281_v17 = vld [vmem:[%s1096_s25 + $0x110] sm:$0xff]  ;;  %278 = vst [vmem:[%s1101_s26 + $0x78] sm:$0xff] %v277_v15 }
  0x1e   : > { %280 = vst [vmem:[%s1101_s26 + $0x80] sm:$0xff] %v279_v16  ;;  %282 = vst [vmem:[%s1101_s26 + $0x88] sm:$0xff] %v281_v17  ;;  %v283_v18 = vld [vmem:[%s1096_s25 + $0x120] sm:$0xff]  ;;  %v285_v19 = vld [vmem:[%s1096_s25 + $0x130] sm:$0xff] }
  0x1f   : > { %v287_v20 = vld [vmem:[%s1096_s25 + $0x140] sm:$0xff]  ;;  %284 = vst [vmem:[%s1101_s26 + $0x90] sm:$0xff] %v283_v18  ;;  %286 = vst [vmem:[%s1101_s26 + $0x98] sm:$0xff] %v285_v19  ;;  %v289_v21 = vld [vmem:[%s1096_s25 + $0x150] sm:$0xff] }
  0x20   : > { %288 = vst [vmem:[%s1101_s26 + $0xa0] sm:$0xff] %v287_v20  ;;  %v291_v22 = vld [vmem:[%s1096_s25 + $0x160] sm:$0xff]  ;;  %v293_v23 = vld [vmem:[%s1096_s25 + $0x170] sm:$0xff]  ;;  %290 = vst [vmem:[%s1101_s26 + $0xa8] sm:$0xff] %v289_v21 }
  0x21   : > { %292 = vst [vmem:[%s1101_s26 + $0xb0] sm:$0xff] %v291_v22  ;;  %294 = vst [vmem:[%s1101_s26 + $0xb8] sm:$0xff] %v293_v23  ;;  %v295_v24 = vld [vmem:[%s1096_s25 + $0x180] sm:$0xff]  ;;  %v297_v25 = vld [vmem:[%s1096_s25 + $0x190] sm:$0xff] }
  0x22   : > { %v299_v26 = vld [vmem:[%s1096_s25 + $0x1a0] sm:$0xff]  ;;  %296 = vst [vmem:[%s1101_s26 + $0xc0] sm:$0xff] %v295_v24  ;;  %298 = vst [vmem:[%s1101_s26 + $0xc8] sm:$0xff] %v297_v25  ;;  %v301_v27 = vld [vmem:[%s1096_s25 + $0x1b0] sm:$0xff] }
  0x23   : > { %300 = vst [vmem:[%s1101_s26 + $0xd0] sm:$0xff] %v299_v26  ;;  %v303_v28 = vld [vmem:[%s1096_s25 + $0x1c0] sm:$0xff]  ;;  %v305_v29 = vld [vmem:[%s1096_s25 + $0x1d0] sm:$0xff]  ;;  %302 = vst [vmem:[%s1101_s26 + $0xd8] sm:$0xff] %v301_v27 }
  0x24   : > { %304 = vst [vmem:[%s1101_s26 + $0xe0] sm:$0xff] %v303_v28  ;;  %306 = vst [vmem:[%s1101_s26 + $0xe8] sm:$0xff] %v305_v29  ;;  %v307_v30 = vld [vmem:[%s1096_s25 + $0x1e0] sm:$0xff]  ;;  %v309_v31 = vld [vmem:[%s1096_s25 + $0x1f0] sm:$0xff] }
  0x25   : > { %308 = vst [vmem:[%s1101_s26 + $0xf0] sm:$0xff] %v307_v30  ;;  %310 = vst [vmem:[%s1101_s26 + $0xf8] sm:$0xff] %v309_v31 }
  0x26 PF: > { %p820_p8 = scmp.ge.s32.totalorder %s1031_s13, 1  ;;  %p315_p9 = scmp.lt.s32.totalorder %s1031_s13, 3 }
  0x28   : > { %p316_p10 = pnand %p820_p8, %p315_p9 }
  0x29   : > { %s322_s27 = sand.u32 (!%p316_p10), 1, %s1015_s9   ;;  %v989_v32 = vld [vmem:[%s1238_s0 + $0x4] ss:$8 sps:$4 sm:$0xff] (!%p316_p10)   ;;  %v992_v33 = vld [vmem:[%s1238_s0 + $0x14] ss:$8 sps:$4 sm:$0xff] (!%p316_p10)  }
  0x2a   : > { %319 = sbr.rel (%p316_p10) target bundleno = 334 (0x14e), region = 62  ;;  %s821_s28 = sshll.u32 (!%p316_p10), %s322_s27, 8  ;;  %636 = vmatprep.mubr.bf16.mxu0 (!%p316_p10), %v989_v32  ;;  %646 = vmatprep.mubr.bf16.mxu1 (!%p316_p10), %v992_v33  ;;  %v987_v2 = vld [vmem:[%s1238_s0] ss:$8 sps:$4 sm:$0xff] (!%p316_p10)   ;;  %v990_v3 = vld [vmem:[%s1238_s0 + $0x10] ss:$8 sps:$4 sm:$0xff] (!%p316_p10)  }
  0x2b   : > { %s1175_s5 = scalar_lea.vmem (!%p316_p10), [#allocation2], %s821_s28  ;;  %s822_s16 = sshll.u32 (!%p316_p10), %s322_s27, 6 }
  0x2c   : > { %v939_v34 = vld [vmem:[%s1175_s5 + $0x4] ss:$8 sps:$4 sm:$0xff] (!%p316_p10)   ;;  %v941_v35 = vld [vmem:[%s1175_s5] ss:$8 sps:$4 sm:$0xff] (!%p316_p10)   ;;  %v942_v36 = vld [vmem:[%s1175_s5 + $0x14] ss:$8 sps:$4 sm:$0xff] (!%p316_p10)  }
  0x2d   : > { %604 = vmatprep.subr.bf16.mxu0 (!%p316_p10), %v939_v34  ;;  %866 = vmatprep.subr.bf16.mxu1 (!%p316_p10), %v939_v34  ;;  %v944_v37 = vld [vmem:[%s1175_s5 + $0x10] ss:$8 sps:$4 sm:$0xff] (!%p316_p10)   ;;  %v945_v38 = vld [vmem:[%s1175_s5 + $0x24] ss:$8 sps:$4 sm:$0xff] (!%p316_p10)   ;;  %v947_v39 = vld [vmem:[%s1175_s5 + $0x20] ss:$8 sps:$4 sm:$0xff] (!%p316_p10)  }
  0x2e   : > { %605 = vmatpush1.bf16.msra.mxu0 (!%p316_p10), %v941_v35  ;;  %882 = vmatpush1.bf16.msra.mxu1 (!%p316_p10), %v941_v35  ;;  %v948_v40 = vld [vmem:[%s1175_s5 + $0x34] ss:$8 sps:$4 sm:$0xff] (!%p316_p10)   ;;  %v950_v41 = vld [vmem:[%s1175_s5 + $0x30] ss:$8 sps:$4 sm:$0xff] (!%p316_p10)   ;;  %v951_v42 = vld [vmem:[%s1175_s5 + $0x44] ss:$8 sps:$4 sm:$0xff] (!%p316_p10)  }
  0x2f   : > { %606 = vmatprep.subr.bf16.mxu0 (!%p316_p10), %v942_v36  ;;  %867 = vmatprep.subr.bf16.mxu1 (!%p316_p10), %v942_v36  ;;  %v953_v43 = vld [vmem:[%s1175_s5 + $0x40] ss:$8 sps:$4 sm:$0xff] (!%p316_p10)   ;;  %v954_v44 = vld [vmem:[%s1175_s5 + $0x54] ss:$8 sps:$4 sm:$0xff] (!%p316_p10)   ;;  %v956_v45 = vld [vmem:[%s1175_s5 + $0x50] ss:$8 sps:$4 sm:$0xff] (!%p316_p10)  }
  0x30   : > { %v957_v46 = vld [vmem:[%s1175_s5 + $0x64] ss:$8 sps:$4 sm:$0xff] (!%p316_p10)   ;;  %v959_v47 = vld [vmem:[%s1175_s5 + $0x60] ss:$8 sps:$4 sm:$0xff] (!%p316_p10)   ;;  %v960_v48 = vld [vmem:[%s1175_s5 + $0x74] ss:$8 sps:$4 sm:$0xff] (!%p316_p10)  }
  0x31   : > { %v962_v49 = vld [vmem:[%s1175_s5 + $0x70] ss:$8 sps:$4 sm:$0xff]   ;;  %v963_v50 = vld [vmem:[%s1175_s5 + $0x84] ss:$8 sps:$4 sm:$0xff]   ;;  %v965_v51 = vld [vmem:[%s1175_s5 + $0x80] ss:$8 sps:$4 sm:$0xff]  }
  0x32   : > { %607 = vmatpush1.bf16.msra.mxu0 %v944_v37  ;;  %883 = vmatpush1.bf16.msra.mxu1 %v944_v37  ;;  %v966_v52 = vld [vmem:[%s1175_s5 + $0x94] ss:$8 sps:$4 sm:$0xff]   ;;  %v968_v53 = vld [vmem:[%s1175_s5 + $0x90] ss:$8 sps:$4 sm:$0xff]   ;;  %v969_v54 = vld [vmem:[%s1175_s5 + $0xa4] ss:$8 sps:$4 sm:$0xff]  }
  0x33   : > { %608 = vmatprep.subr.bf16.mxu0 %v945_v38  ;;  %868 = vmatprep.subr.bf16.mxu1 %v945_v38  ;;  %v971_v55 = vld [vmem:[%s1175_s5 + $0xa0] ss:$8 sps:$4 sm:$0xff]   ;;  %v972_v56 = vld [vmem:[%s1175_s5 + $0xb4] ss:$8 sps:$4 sm:$0xff]   ;;  %v974_v57 = vld [vmem:[%s1175_s5 + $0xb0] ss:$8 sps:$4 sm:$0xff]  }
  0x34   : > { %v975_v58 = vld [vmem:[%s1175_s5 + $0xc4] ss:$8 sps:$4 sm:$0xff]   ;;  %v977_v59 = vld [vmem:[%s1175_s5 + $0xc0] ss:$8 sps:$4 sm:$0xff]   ;;  %v978_v60 = vld [vmem:[%s1175_s5 + $0xd4] ss:$8 sps:$4 sm:$0xff]  }
  0x35   : > { %v980_v61 = vld [vmem:[%s1175_s5 + $0xd0] ss:$8 sps:$4 sm:$0xff]   ;;  %v981_v62 = vld [vmem:[%s1175_s5 + $0xe4] ss:$8 sps:$4 sm:$0xff]   ;;  %v983_v63 = vld [vmem:[%s1175_s5 + $0xe0] ss:$8 sps:$4 sm:$0xff]  }
  0x36   : > { %609 = vmatpush1.bf16.msra.mxu0 %v947_v39  ;;  %884 = vmatpush1.bf16.msra.mxu1 %v947_v39  ;;  %v984_v0 = vld [vmem:[%s1175_s5 + $0xf4] ss:$8 sps:$4 sm:$0xff]   ;;  %v986_v1 = vld [vmem:[%s1175_s5 + $0xf0] ss:$8 sps:$4 sm:$0xff]   ;;  %s351_s17 = scalar_lea.vmem [#allocation3], %s822_s16  ;;  %s865_s9 = sshll.u32 (%p1083_p6), %s1023_s11, 4 }
  0x37   : > { %610 = vmatprep.subr.bf16.mxu0 %v948_v40  ;;  %869 = vmatprep.subr.bf16.mxu1 %v948_v40  ;;  %s685_s22 = scalar_lea.vmem (%p1083_p6), %s1240_s2, %s865_s9 }
  0x3a   : > { %611 = vmatpush1.bf16.msra.mxu0 %v950_v41  ;;  %885 = vmatpush1.bf16.msra.mxu1 %v950_v41 }
  0x3b   : > { %612 = vmatprep.subr.bf16.mxu0 %v951_v42  ;;  %870 = vmatprep.subr.bf16.mxu1 %v951_v42 }
  0x3e   : > { %613 = vmatpush1.bf16.msra.mxu0 %v953_v43  ;;  %886 = vmatpush1.bf16.msra.mxu1 %v953_v43 }
  0x3f   : > { %614 = vmatprep.subr.bf16.mxu0 %v954_v44  ;;  %871 = vmatprep.subr.bf16.mxu1 %v954_v44 }
  0x42   : > { %615 = vmatpush1.bf16.msra.mxu0 %v956_v45  ;;  %887 = vmatpush1.bf16.msra.mxu1 %v956_v45 }
  0x43   : > { %616 = vmatprep.subr.bf16.mxu0 %v957_v46  ;;  %872 = vmatprep.subr.bf16.mxu1 %v957_v46 }
  0x46   : > { %617 = vmatpush1.bf16.msra.mxu0 %v959_v47  ;;  %888 = vmatpush1.bf16.msra.mxu1 %v959_v47 }
  0x47   : > { %618 = vmatprep.subr.bf16.mxu0 %v960_v48  ;;  %873 = vmatprep.subr.bf16.mxu1 %v960_v48 }
  0x4a   : > { %619 = vmatpush1.bf16.msra.mxu0 %v962_v49  ;;  %889 = vmatpush1.bf16.msra.mxu1 %v962_v49 }
  0x4b   : > { %620 = vmatprep.subr.bf16.mxu0 %v963_v50  ;;  %874 = vmatprep.subr.bf16.mxu1 %v963_v50 }
  0x4e   : > { %621 = vmatpush1.bf16.msra.mxu0 %v965_v51  ;;  %890 = vmatpush1.bf16.msra.mxu1 %v965_v51 }
  0x4f   : > { %622 = vmatprep.subr.bf16.mxu0 %v966_v52  ;;  %875 = vmatprep.subr.bf16.mxu1 %v966_v52 }
  0x52   : > { %623 = vmatpush1.bf16.msra.mxu0 %v968_v53  ;;  %891 = vmatpush1.bf16.msra.mxu1 %v968_v53 }
  0x53   : > { %624 = vmatprep.subr.bf16.mxu0 %v969_v54  ;;  %876 = vmatprep.subr.bf16.mxu1 %v969_v54 }
  0x56   : > { %625 = vmatpush1.bf16.msra.mxu0 %v971_v55  ;;  %892 = vmatpush1.bf16.msra.mxu1 %v971_v55 }
  0x57   : > { %626 = vmatprep.subr.bf16.mxu0 %v972_v56  ;;  %877 = vmatprep.subr.bf16.mxu1 %v972_v56 }
  0x5a   : > { %627 = vmatpush1.bf16.msra.mxu0 %v974_v57  ;;  %893 = vmatpush1.bf16.msra.mxu1 %v974_v57 }
  0x5b   : > { %628 = vmatprep.subr.bf16.mxu0 %v975_v58  ;;  %878 = vmatprep.subr.bf16.mxu1 %v975_v58 }
  0x5e   : > { %629 = vmatpush1.bf16.msra.mxu0 %v977_v59  ;;  %894 = vmatpush1.bf16.msra.mxu1 %v977_v59 }
  0x5f   : > { %630 = vmatprep.subr.bf16.mxu0 %v978_v60  ;;  %879 = vmatprep.subr.bf16.mxu1 %v978_v60 }
  0x62   : > { %631 = vmatpush1.bf16.msra.mxu0 %v980_v61  ;;  %895 = vmatpush1.bf16.msra.mxu1 %v980_v61 }
  0x63   : > { %632 = vmatprep.subr.bf16.mxu0 %v981_v62  ;;  %880 = vmatprep.subr.bf16.mxu1 %v981_v62 }
  0x66   : > { %633 = vmatpush1.bf16.msra.mxu0 %v983_v63  ;;  %896 = vmatpush1.bf16.msra.mxu1 %v983_v63 }
  0x67   : > { %634 = vmatprep.subr.bf16.mxu0 %v984_v0  ;;  %881 = vmatprep.subr.bf16.mxu1 %v984_v0 }
  0x6a   : > { %635 = vmatpush1.bf16.msra.mxu0 %v986_v1  ;;  %897 = vmatpush1.bf16.msra.mxu1 %v986_v1 }
  0x6d   : > { %637 = vmatmul.mubr.bf16.vlgmr.msra.gmra.mrb[0].mxu0 %v987_v2  ;;  %647 = vmatmul.mubr.bf16.vlgmr.msra.gmra.mrb[0].mxu1 %v990_v3 }
 0x13e   : > { %679 = sbr.rel (!%p1083_p6) target bundleno = 334 (0x14e), region = 74 }
 0x140   : > { %v638_v4 = vpop.f32.mrb[0].mxu0  ;;  %v648_v5 = vpop.f32.mrb[0].mxu1 }
 0x141   : > { %v640_v6 = vpop.f32.mrb[1].mxu0  ;;  %v650_v7 = vpop.f32.mrb[1].mxu1  ;;  %665 = vst [vmem:[%s351_s17] sm:$0xff] %v638_v4  ;;  %669 = vst [vmem:[%s351_s17 + $0x20] sm:$0xff] %v648_v5 }
 0x142   : > { %v642_v8 = vpop.f32.mrb[2].mxu0  ;;  %v652_v9 = vpop.f32.mrb[2].mxu1  ;;  %666 = vst [vmem:[%s351_s17 + $0x8] sm:$0xff] %v640_v6  ;;  %670 = vst [vmem:[%s351_s17 + $0x28] sm:$0xff] %v650_v7 }
 0x143   : > { %v644_v10 = vpop.f32.mrb[3].mxu0  ;;  %v654_v11 = vpop.f32.mrb[3].mxu1  ;;  %667 = vst [vmem:[%s351_s17 + $0x10] sm:$0xff] %v642_v8  ;;  %671 = vst [vmem:[%s351_s17 + $0x30] sm:$0xff] %v652_v9 }
 0x144   : > { %668 = vst [vmem:[%s351_s17 + $0x18] sm:$0xff] %v644_v10  ;;  %672 = vst [vmem:[%s351_s17 + $0x38] sm:$0xff] %v654_v11 }
 0x148   : > { %v698_v12 = vld [vmem:[%s351_s17] sm:$0xff] }
 0x149   : > { %v700_v13 = vld [vmem:[%s351_s17 + $0x8] sm:$0xff]  ;;  %v706_v16 = vld [vmem:[%s351_s17 + $0x20] sm:$0xff]  ;;  %699 = vst [vmem:[%s685_s22] sm:$0xff] %v698_v12 }
 0x14a   : > { %v702_v14 = vld [vmem:[%s351_s17 + $0x10] sm:$0xff]  ;;  %v708_v17 = vld [vmem:[%s351_s17 + $0x28] sm:$0xff]  ;;  %701 = vst [vmem:[%s685_s22 + $0x8] sm:$0xff] %v700_v13  ;;  %707 = vst [vmem:[%s685_s22 + $0x40] sm:$0xff] %v706_v16 }
 0x14b   : > { %v704_v15 = vld [vmem:[%s351_s17 + $0x18] sm:$0xff]  ;;  %703 = vst [vmem:[%s685_s22 + $0x20] sm:$0xff] %v702_v14  ;;  %709 = vst [vmem:[%s685_s22 + $0x48] sm:$0xff] %v708_v17  ;;  %v710_v18 = vld [vmem:[%s351_s17 + $0x30] sm:$0xff] }
 0x14c   : > { %705 = vst [vmem:[%s685_s22 + $0x28] sm:$0xff] %v704_v15  ;;  %v712_v19 = vld [vmem:[%s351_s17 + $0x38] sm:$0xff]  ;;  %711 = vst [vmem:[%s685_s22 + $0x60] sm:$0xff] %v710_v18 }
 0x14d   : > { %713 = vst [vmem:[%s685_s22 + $0x68] sm:$0xff] %v712_v19 }
 0x14e PF: > { %s12_s13 = sadd.s32 1, %s1031_s13   ;;  %s1242_s9 = smov %s1019_s10 }
 0x14f   : > { %p9_p11 = scmp.ge.s32.totalorder %s12_s13, 4   ;;  %s1243_s10 = smov %s1088_s19 }
 0x150   : > { %s1244_s11 = smov %s1027_s12  ;;  %s1245_s12 = smov %s1247_s14 }
 0x151   :  { %11 = sbr.rel (!%p9_p11) target bundleno = 3 (0x3), region = 131 }

// kernel: res3d_forward.110
= control target key start
LH: loop header
LB: loop body
LE: loop exit
PB: predicated region body
PF: predicated region fallthrough
CT: control target
= control target key end

     0   :  { %v14_v0 = vlaneseq  ;;  %v202_v4 = vmov 1966171168   ;;  %v203_v13 = vmov 0.0   ;;  %s305_s0 = inlined_call_operand.vmem [shape: f32[32,512], index: 0, kind: input, shape index: {}]   ;;  %s306_s1 = inlined_call_operand.vmem [shape: f32[1,512], index: 1, kind: output, shape index: {0}]   ;;  %s307_s2 = inlined_call_operand.vmem [shape: f32[1,512], index: 2, kind: output, shape index: {1}]  }
   0x1   :  { %v20_v1 = vld [vmem:[%s305_s0] sm:$0xff]  ;;  %v21_v2 = vld [vmem:[%s305_s0 + $0x8] sm:$0xff]  ;;  %v22_v3 = vld [vmem:[%s305_s0 + $0x10] sm:$0xff]  ;;  %v80_v5 = vunpack.c.l.s4 %v202_v4 }
   0x2   :  { %vm228_vm0 = vcmp.lt.s32.totalorder %v14_v0, 512  ;;  %v23_v7 = vld [vmem:[%s305_s0 + $0x18] sm:$0xff]  ;;  %v24_v8 = vld [vmem:[%s305_s0 + $0x20] sm:$0xff]  ;;  %v25_v9 = vld [vmem:[%s305_s0 + $0x28] sm:$0xff]  ;;  %v83_v10 = vshrl.u32 %v14_v0, 7  ;;  %v109_v11 = vmul.f32 %v20_v1, %v20_v1  ;;  %v110_v12 = vmul.f32 %v21_v2, %v21_v2 }
   0x3   :  { %18 = vst.msk [vmem:[%s306_s1] sm:$0xf] %vm228_vm0, %v203_v13  ;;  %v26_v14 = vld [vmem:[%s305_s0 + $0x30] sm:$0xff]  ;;  %v27_v15 = vld [vmem:[%s305_s0 + $0x38] sm:$0xff]  ;;  %v37_v16 = vadd.f32 %v24_v8, %v20_v1  ;;  %v46_v17 = vadd.f32 %v25_v9, %v21_v2  ;;  %v81_v18 = vunpack.c.0.s8 %v80_v5  ;;  %19 = vst.msk [vmem:[%s307_s2] sm:$0xf] %vm228_vm0, %v203_v13  ;;  %v111_v19 = vmul.f32 %v22_v3, %v22_v3 }
   0x4   :  { %v28_v20 = vld [vmem:[%s305_s0 + $0x40] sm:$0xff]  ;;  %v29_v21 = vld [vmem:[%s305_s0 + $0x48] sm:$0xff]  ;;  %v55_v22 = vadd.f32 %v26_v14, %v22_v3  ;;  %v64_v23 = vadd.f32 %v27_v15, %v23_v7  ;;  %v112_v24 = vmul.f32 %v23_v7, %v23_v7  ;;  %v113_v25 = vmul.f32 %v24_v8, %v24_v8  ;;  %v30_v26 = vld [vmem:[%s305_s0 + $0x50] sm:$0xff] }
   0x5   :  { %v31_v27 = vld [vmem:[%s305_s0 + $0x58] sm:$0xff]  ;;  %v38_v28 = vadd.f32 %v37_v16, %v28_v20  ;;  %v47_v29 = vadd.f32 %v46_v17, %v29_v21  ;;  %v269_v30 = vsub.s32 %v81_v18, %v83_v10  ;;  %v114_v31 = vmul.f32 %v25_v9, %v25_v9  ;;  %v32_v32 = vld [vmem:[%s305_s0 + $0x60] sm:$0xff]  ;;  %v33_v33 = vld [vmem:[%s305_s0 + $0x68] sm:$0xff] }
   0x6   :  { %v56_v34 = vadd.f32 %v55_v22, %v30_v26  ;;  %v65_v35 = vadd.f32 %v64_v23, %v31_v27  ;;  %v115_v36 = vmul.f32 %v26_v14, %v26_v14  ;;  %v116_v37 = vmul.f32 %v27_v15, %v27_v15  ;;  %v34_v38 = vld [vmem:[%s305_s0 + $0x70] sm:$0xff]  ;;  %v35_v39 = vld [vmem:[%s305_s0 + $0x78] sm:$0xff] }
   0x7   :  { %v39_v40 = vadd.f32 %v38_v28, %v32_v32  ;;  %v48_v41 = vadd.f32 %v47_v29, %v33_v33  ;;  %v117_v42 = vmul.f32 %v28_v20, %v28_v20  ;;  %v118_v43 = vmul.f32 %v29_v21, %v29_v21 }
   0x8   :  { %v57_v44 = vadd.f32 %v56_v34, %v34_v38  ;;  %v66_v45 = vadd.f32 %v65_v35, %v35_v39  ;;  %v119_v46 = vmul.f32 %v30_v26, %v30_v26  ;;  %v120_v47 = vmul.f32 %v31_v27, %v31_v27 }
   0x9   :  { %v40_v48 = vrot.slane %v39_v40, 4  ;;  %v49_v49 = vrot.slane %v48_v41, 4  ;;  %v121_v50 = vmul.f32 %v32_v32, %v32_v32  ;;  %v122_v51 = vmul.f32 %v33_v33, %v33_v33 }
   0xa   :  { %v58_v52 = vrot.slane %v57_v44, 4  ;;  %v67_v53 = vrot.slane %v66_v45, 4  ;;  %v123_v54 = vmul.f32 %v34_v38, %v34_v38  ;;  %v124_v55 = vmul.f32 %v35_v39, %v35_v39 }
   0xb   :  { %v41_v56 = vadd.f32 %v40_v48, %v39_v40  ;;  %v50_v57 = vadd.f32 %v49_v49, %v48_v41  ;;  %v125_v58 = vadd.f32 %v113_v25, %v109_v11  ;;  %v134_v59 = vadd.f32 %v114_v31, %v110_v12 }
   0xc   :  { %v59_v60 = vadd.f32 %v58_v52, %v57_v44  ;;  %v68_v61 = vadd.f32 %v67_v53, %v66_v45  ;;  %v143_v62 = vadd.f32 %v115_v36, %v111_v19  ;;  %v152_v63 = vadd.f32 %v116_v37, %v112_v24 }
   0xd   :  { %v42_v0 = vrot.slane %v41_v56, 2  ;;  %v51_v1 = vrot.slane %v50_v57, 2  ;;  %v126_v2 = vadd.f32 %v125_v58, %v117_v42  ;;  %v135_v3 = vadd.f32 %v134_v59, %v118_v43 }
   0xe   :  { %v60_v4 = vrot.slane %v59_v60, 2  ;;  %v69_v5 = vrot.slane %v68_v61, 2  ;;  %v144_v7 = vadd.f32 %v143_v62, %v119_v46  ;;  %v153_v8 = vadd.f32 %v152_v63, %v120_v47  ;;  %v108_v63 = vld [vmem:[%s307_s2] sm:$0xf] }
   0xf   :  { %v43_v9 = vadd.f32 %v42_v0, %v41_v56  ;;  %v52_v10 = vadd.f32 %v51_v1, %v50_v57  ;;  %v127_v13 = vadd.f32 %v126_v2, %v121_v50  ;;  %v136_v14 = vadd.f32 %v135_v3, %v122_v51  ;;  %v36_v51 = vld [vmem:[%s306_s1] sm:$0xf] }
  0x10   :  { %v61_v15 = vadd.f32 %v60_v4, %v59_v60  ;;  %v70_v16 = vadd.f32 %v69_v5, %v68_v61  ;;  %v145_v11 = vadd.f32 %v144_v7, %v123_v54  ;;  %v154_v12 = vadd.f32 %v153_v8, %v124_v55 }
  0x11   :  { %v44_v17 = vrot.slane %v43_v9, 1  ;;  %v53_v18 = vrot.slane %v52_v10, 1  ;;  %v128_v19 = vrot.slane %v127_v13, 4  ;;  %v137_v20 = vrot.slane %v136_v14, 4 }
  0x12   :  { %v62_v21 = vrot.slane %v61_v15, 1  ;;  %v71_v22 = vrot.slane %v70_v16, 1  ;;  %v146_v23 = vrot.slane %v145_v11, 4  ;;  %v155_v24 = vrot.slane %v154_v12, 4 }
  0x13   :  { %v45_v25 = vadd.f32 %v44_v17, %v43_v9  ;;  %v54_v26 = vadd.f32 %v53_v18, %v52_v10  ;;  %v129_v27 = vadd.f32 %v128_v19, %v127_v13  ;;  %v138_v28 = vadd.f32 %v137_v20, %v136_v14 }
  0x14   :  { %v63_v29 = vadd.f32 %v62_v21, %v61_v15  ;;  %v72_v31 = vadd.f32 %v71_v22, %v70_v16  ;;  %v147_v32 = vadd.f32 %v146_v23, %v145_v11  ;;  %v156_v33 = vadd.f32 %v155_v24, %v154_v12 }
  0x15   :  { %v77_v34 = vcombine.low %v45_v25, %v54_v26  ;;  %v130_v35 = vrot.slane %v129_v27, 2  ;;  %v139_v36 = vrot.slane %v138_v28, 2 }
  0x16   :  { %v78_v37 = vcombine.low %v63_v29, %v72_v31  ;;  %v148_v38 = vrot.slane %v147_v32, 2  ;;  %v157_v39 = vrot.slane %v156_v33, 2 }
  0x17   :  { %v85_v40 = vrot.slane %v77_v34, %v269_v30  ;;  %v131_v41 = vadd.f32 %v130_v35, %v129_v27  ;;  %v140_v42 = vadd.f32 %v139_v36, %v138_v28 }
  0x18   :  { %v92_v43 = vrot.slane %v78_v37, %v269_v30  ;;  %v149_v44 = vadd.f32 %v148_v38, %v147_v32  ;;  %v158_v45 = vadd.f32 %v157_v39, %v156_v33 }
  0x19   :  { %v132_v46 = vrot.slane %v131_v41, 1  ;;  %v141_v47 = vrot.slane %v140_v42, 1 }
  0x1a   :  { %v93_v48 = vcombine.low %v85_v40, %v92_v43  ;;  %v150_v49 = vrot.slane %v149_v44, 1  ;;  %v159_v50 = vrot.slane %v158_v45, 1 }
  0x1b   :  { %v133_v52 = vadd.f32 %v132_v46, %v131_v41  ;;  %v142_v53 = vadd.f32 %v141_v47, %v140_v42 }
  0x1c   :  { %v100_v54 = vrot.slane %v93_v48, %v269_v30  ;;  %v151_v55 = vadd.f32 %v150_v49, %v149_v44  ;;  %v160_v56 = vadd.f32 %v159_v50, %v158_v45 }
  0x1d   :  { %v165_v57 = vcombine.low %v133_v52, %v142_v53 }
  0x1e   :  { %v102_v58 = vadd.f32 %v100_v54, %v36_v51  ;;  %v166_v59 = vcombine.low %v151_v55, %v160_v56 }
  0x1f   :  { %v173_v60 = vrot.slane %v165_v57, %v269_v30 }
  0x20   :  { %107 = vst.msk [vmem:[%s306_s1] sm:$0xf] %vm228_vm0, %v102_v58  ;;  %v180_v61 = vrot.slane %v166_v59, %v269_v30 }
  0x22   :  { %v181_v62 = vcombine.low %v173_v60, %v180_v61 }
  0x24   :  { %v188_v0 = vrot.slane %v181_v62, %v269_v30 }
  0x26   :  { %v190_v1 = vadd.f32 %v188_v0, %v108_v63 }
  0x28   :  { %191 = vst.msk [vmem:[%s307_s2] sm:$0xf] %vm228_vm0, %v190_v1 }

// kernel: res3d_forward.111
= control target key start
LH: loop header
LB: loop body
LE: loop exit
PB: predicated region body
PF: predicated region fallthrough
CT: control target
= control target key end

     0   :  { %v32_v0 = vlaneseq  ;;  %s248_s1 = inlined_call_operand.vmem [shape: f32[1,512], index: 1, kind: input, shape index: {}]   ;;  %s249_s2 = inlined_call_operand.vmem [shape: f32[1,512], index: 2, kind: input, shape index: {}]   ;;  %s250_s0 = inlined_call_operand.vmem [shape: f32[32,512], index: 0, kind: input, shape index: {}]   ;;  %s251_s3 = inlined_call_operand.vmem [shape: f32[32,512], index: 3, kind: output, shape index: {}]  }
   0x1   :  { %v30_v2 = vld [vmem:[%s248_s1] sm:$0xf]  ;;  %v15_v6 = vld [vmem:[%s250_s0 + $0x8] sm:$0xff]  ;;  %v16_v10 = vld [vmem:[%s250_s0 + $0x10] sm:$0xff] }
   0x2   :  { %v33_v1 = vshrl.u32 %v32_v0, 7  ;;  %v68_v3 = vld [vmem:[%s249_s2] sm:$0xf]  ;;  %v19_v12 = vld [vmem:[%s250_s0 + $0x28] sm:$0xff]  ;;  %v17_v17 = vld [vmem:[%s250_s0 + $0x18] sm:$0xff] }
   0x3   :  { %v14_v4 = vld [vmem:[%s250_s0] sm:$0xff]  ;;  %v20_v18 = vld [vmem:[%s250_s0 + $0x30] sm:$0xff]  ;;  %v21_v19 = vld [vmem:[%s250_s0 + $0x38] sm:$0xff] }
   0x4   :  { %v34_v5 = vsub.s32 0, %v33_v1  ;;  %v38_v7 = vsub.s32 1, %v33_v1  ;;  %v42_v8 = vsub.s32 2, %v33_v1  ;;  %v46_v9 = vsub.s32 3, %v33_v1  ;;  %v18_v11 = vld [vmem:[%s250_s0 + $0x20] sm:$0xff]  ;;  %v23_v29 = vld [vmem:[%s250_s0 + $0x48] sm:$0xff] }
   0x5   :  { %v22_v28 = vld [vmem:[%s250_s0 + $0x40] sm:$0xff]  ;;  %v24_v34 = vld [vmem:[%s250_s0 + $0x50] sm:$0xff]  ;;  %v25_v35 = vld [vmem:[%s250_s0 + $0x58] sm:$0xff] }
   0x6   :  { %v35_v13 = vrot.slane %v30_v2, %v34_v5  ;;  %v73_v14 = vrot.slane %v68_v3, %v34_v5  ;;  %v39_v15 = vrot.slane %v30_v2, %v38_v7  ;;  %v77_v16 = vrot.slane %v68_v3, %v38_v7  ;;  %v26_v36 = vld [vmem:[%s250_s0 + $0x60] sm:$0xff]  ;;  %v27_v41 = vld [vmem:[%s250_s0 + $0x68] sm:$0xff]  ;;  %v28_v42 = vld [vmem:[%s250_s0 + $0x70] sm:$0xff] }
   0x7   :  { %v43_v20 = vrot.slane %v30_v2, %v42_v8  ;;  %v81_v21 = vrot.slane %v68_v3, %v42_v8  ;;  %v47_v22 = vrot.slane %v30_v2, %v46_v9  ;;  %v85_v23 = vrot.slane %v68_v3, %v46_v9  ;;  %v29_v43 = vld [vmem:[%s250_s0 + $0x78] sm:$0xff] }
   0x8   :  { %v52_v24 = vmul.f32 %v35_v13, %v14_v4  ;;  %v53_v25 = vmul.f32 %v39_v15, %v15_v6  ;;  %v56_v26 = vmul.f32 %v35_v13, %v18_v11  ;;  %v57_v27 = vmul.f32 %v39_v15, %v19_v12 }
   0x9   :  { %v54_v30 = vmul.f32 %v43_v20, %v16_v10  ;;  %v55_v31 = vmul.f32 %v47_v22, %v17_v17  ;;  %v58_v32 = vmul.f32 %v43_v20, %v20_v18  ;;  %v59_v33 = vmul.f32 %v47_v22, %v21_v19 }
   0xa   :  { %v90_v37 = vadd.f32 %v73_v14, %v52_v24  ;;  %v91_v38 = vadd.f32 %v77_v16, %v53_v25  ;;  %v94_v39 = vadd.f32 %v73_v14, %v56_v26  ;;  %v95_v40 = vadd.f32 %v77_v16, %v57_v27 }
   0xb   :  { %v92_v44 = vadd.f32 %v81_v21, %v54_v30  ;;  %v93_v45 = vadd.f32 %v85_v23, %v55_v31  ;;  %v96_v46 = vadd.f32 %v81_v21, %v58_v32  ;;  %v97_v47 = vadd.f32 %v85_v23, %v59_v33 }
   0xc   :  { %106 = vst [vmem:[%s251_s3] sm:$0xff] %v90_v37  ;;  %107 = vst [vmem:[%s251_s3 + $0x8] sm:$0xff] %v91_v38  ;;  %v60_v48 = vmul.f32 %v35_v13, %v22_v28  ;;  %v61_v49 = vmul.f32 %v39_v15, %v23_v29  ;;  %v62_v50 = vmul.f32 %v43_v20, %v24_v34 }
   0xd   :  { %110 = vst [vmem:[%s251_s3 + $0x20] sm:$0xff] %v94_v39  ;;  %111 = vst [vmem:[%s251_s3 + $0x28] sm:$0xff] %v95_v40  ;;  %v63_v51 = vmul.f32 %v47_v22, %v25_v35  ;;  %v64_v52 = vmul.f32 %v35_v13, %v26_v36  ;;  %v65_v53 = vmul.f32 %v39_v15, %v27_v41 }
   0xe   :  { %108 = vst [vmem:[%s251_s3 + $0x10] sm:$0xff] %v92_v44  ;;  %109 = vst [vmem:[%s251_s3 + $0x18] sm:$0xff] %v93_v45  ;;  %v66_v54 = vmul.f32 %v43_v20, %v28_v42  ;;  %v67_v55 = vmul.f32 %v47_v22, %v29_v43  ;;  %v98_v56 = vadd.f32 %v73_v14, %v60_v48 }
   0xf   :  { %112 = vst [vmem:[%s251_s3 + $0x30] sm:$0xff] %v96_v46  ;;  %113 = vst [vmem:[%s251_s3 + $0x38] sm:$0xff] %v97_v47  ;;  %v99_v57 = vadd.f32 %v77_v16, %v61_v49  ;;  %v100_v58 = vadd.f32 %v81_v21, %v62_v50  ;;  %v101_v59 = vadd.f32 %v85_v23, %v63_v51 }
  0x10   :  { %v102_v60 = vadd.f32 %v73_v14, %v64_v52  ;;  %v103_v61 = vadd.f32 %v77_v16, %v65_v53  ;;  %v104_v62 = vadd.f32 %v81_v21, %v66_v54  ;;  %v105_v63 = vadd.f32 %v85_v23, %v67_v55  ;;  %114 = vst [vmem:[%s251_s3 + $0x40] sm:$0xff] %v98_v56 }
  0x11   :  { %115 = vst [vmem:[%s251_s3 + $0x48] sm:$0xff] %v99_v57  ;;  %116 = vst [vmem:[%s251_s3 + $0x50] sm:$0xff] %v100_v58 }
  0x12   :  { %117 = vst [vmem:[%s251_s3 + $0x58] sm:$0xff] %v101_v59  ;;  %118 = vst [vmem:[%s251_s3 + $0x60] sm:$0xff] %v102_v60 }
  0x13   :  { %119 = vst [vmem:[%s251_s3 + $0x68] sm:$0xff] %v103_v61  ;;  %120 = vst [vmem:[%s251_s3 + $0x70] sm:$0xff] %v104_v62 }
  0x14   :  { %121 = vst [vmem:[%s251_s3 + $0x78] sm:$0xff] %v105_v63 }

// kernel: res3d_forward.105
= control target key start
LH: loop header
LB: loop body
LE: loop exit
PB: predicated region body
PF: predicated region fallthrough
CT: control target
= control target key end

     0   :  { %s1799_s0 = inlined_call_operand.vmem [shape: bf16[32,6912], index: 0, kind: input, shape index: {}]   ;;  %s1800_s1 = inlined_call_operand.vmem [shape: bf16[6912,512], index: 1, kind: input, shape index: {}]   ;;  %s1801_s2 = inlined_call_operand.vmem [shape: f32[32,512], index: 2, kind: output, shape index: {}]  }
   0x1   :  { %1802 = sst [smem:[#allocation5_spill]] %s1799_s0 }
   0x2   :  { %s1446_s9 = smov 0   ;;  %s1448_s10 = smov 0  }
   0x3   :  { %s1450_s11 = smov 0   ;;  %s1452_s12 = smov 0  }
   0x4   :  { %s1454_s13 = smov 0   ;;  %s1456_s14 = smov 0  }
   0x5   :  { %s1458_s15 = smov 0   ;;  %s1460_s16 = smov 0  }
   0x6   :  { %s1462_s17 = smov 0   ;;  %s1464_s18 = smov 0  }
   0x7   :  { %s1466_s19 = smov 0  }
   0x8 LB: > { %s1078_s20 = sadd.s32 4294967295, %s1427_s19   ;;  %s24_s21 = sadd.s32 1, %s1419_s17  ;;  %s1427_s19 = sphi %s1466_s19, %s12_s19   ;;  %s1423_s18 = sphi %s1464_s18, %s1816_s18   ;;  %s1419_s17 = sphi %s1462_s17, %s1815_s17   ;;  %s1415_s16 = sphi %s1460_s16, %s1814_s16   ;;  %s1411_s15 = sphi %s1458_s15, %s1813_s15   ;;  %s1407_s14 = sphi %s1456_s14, %s1812_s14   ;;  %s1403_s13 = sphi %s1454_s13, %s1811_s13   ;;  %s1399_s12 = sphi %s1452_s12, %s1810_s12   ;;  %s1395_s11 = sphi %s1450_s11, %s1809_s11   ;;  %s1391_s10 = sphi %s1448_s10, %s1808_s10   ;;  %s1387_s9 = sphi %s1446_s9, %s1807_s9  }
   0x9   : > { %p25_p0 = scmp.ge.s32.totalorder %s24_s21, 18  ;;  %s27_s22 = sadd.s32 1, %s1423_s18 }
   0xa   : > { %s40_s23 = sadd.s32 1, %s1407_s14  ;;  %p47_p1 = scmp.ne.s32.totalorder %s1407_s14, %s1403_s13 }
   0xb   : > { %s1818_s21 = smov (%p25_p0, %s24_s21), 0  ;;  %s1820_s22 = smov (!%p25_p0, %s27_s22), %s1423_s18 }
   0xc   : > { %s36_s24 = ssub.s32 %s1419_s17, %s1818_s21  ;;  %p48_p2 = scmp.eq.s32.totalorder %s1427_s19, 0 }
   0xd   : > { %p29_p3 = scmp.ge.s32.totalorder %s1820_s22, 2  ;;  %p38_p4 = scmp.eq.s32.totalorder %s36_s24, 0 }
   0xe   : > { %p1513_p5 = por %p48_p2, %p47_p1  ;;  %s68_s26 = sadd.s32 1, %s1399_s12 }
   0xf   : > { %s1822_s22 = smov (%p29_p3, %s1820_s22), 0  ;;  %p75_p6 = scmp.ne.s32.totalorder %s1399_s12, %s1395_s11 }
  0x10   : > { %s1521_s27 = scalar_select %p38_p4, %s1407_s14, %s40_s23  }
  0x11   : > { %s64_s28 = ssub.s32 %s1423_s18, %s1822_s22  ;;  %p1527_p9 = por %p75_p6, %p48_p2 }
  0x12   : > { %s65_s29 = sor.u32 %s64_s28, %s36_s24  ;;  %p94_p7 = scmp.eq.s32.totalorder %s64_s28, 0 }
  0x13   : > { %p66_p8 = scmp.eq.s32.totalorder %s65_s29, 0  ;;  %s96_s3 = sadd.s32 1, %s1391_s10 }
  0x14   : > { %p106_p10 = scmp.ne.s32.totalorder %s1391_s10, %s1387_s9  ;;  %p107_p11 = scmp.eq.s32.totalorder %s1078_s20, 35 }
  0x15   : > { %s1535_s4 = scalar_select %p66_p8, %s1399_s12, %s68_s26  }
  0x16   : > { %s1538_s5 = scalar_select %p94_p7, %s1391_s10, %s96_s3  }
  0x17   : > { %p1540_p12 = por %p107_p11, %p106_p10  ;;  %p1081_p13 = scmp.ge.s32.totalorder %s1427_s19, 36 }
  0x19   : > { %129 = sbr.rel (%p1081_p13) target bundleno = 77 (0x4d), region = 16 }
  0x20   : > { %132 = sbr.rel (!%p1513_p5) target bundleno = 45 (0x2d), region = 20  ;;  %s134_s7 = sand.u32 (%p1513_p5), 1, %s1407_s14  }
  0x21   : > { %s1156_s8 = smul.u32 (%p1513_p5), 12, %s1419_s17  ;;  %s1806_s0 = sld [smem:[#allocation5_spill]] (%p1513_p5) }
  0x22   : > { %s1167_s23 = smul.u32 (%p1513_p5), 48, %s134_s7 }
  0x24   : > { %s136_s20 = scalar_lea.vmem (%p1513_p5), [#allocation2], %s1167_s23 }
  0x27   : > { %s142_s28 = scalar_lea.vmem %s1806_s0, %s1156_s8 }
  0x28   : > { %v157_v0 = vld [vmem:[%s142_s28] sm:$0xff]  ;;  %v159_v1 = vld [vmem:[%s142_s28 + $0xd8] sm:$0xff]  ;;  %v161_v2 = vld [vmem:[%s142_s28 + $0x1b0] sm:$0xff] }
  0x29   : > { %158 = vst [vmem:[%s136_s20] sm:$0xff] %v157_v0  ;;  %160 = vst [vmem:[%s136_s20 + $0xc] sm:$0xff] %v159_v1  ;;  %v163_v3 = vld [vmem:[%s142_s28 + $0x288] sm:$0xff]  ;;  %v1085_v5 = vld [vmem:[%s142_s28 + $0xe0] sm:$0xf] }
  0x2a   : > { %162 = vst [vmem:[%s136_s20 + $0x18] sm:$0xff] %v161_v2  ;;  %v1083_v4 = vld [vmem:[%s142_s28 + $0x8] sm:$0xf]  ;;  %164 = vst [vmem:[%s136_s20 + $0x24] sm:$0xff] %v163_v3  ;;  %v1087_v6 = vld [vmem:[%s142_s28 + $0x1b8] sm:$0xf] }
  0x2b   : > { %1084 = vst [vmem:[%s136_s20 + $0x8] sm:$0xf] %v1083_v4  ;;  %1086 = vst [vmem:[%s136_s20 + $0x14] sm:$0xf] %v1085_v5  ;;  %v1089_v7 = vld [vmem:[%s142_s28 + $0x290] sm:$0xf] }
  0x2c   : > { %1088 = vst [vmem:[%s136_s20 + $0x20] sm:$0xf] %v1087_v6  ;;  %1090 = vst [vmem:[%s136_s20 + $0x2c] sm:$0xf] %v1089_v7 }
  0x2d PF: > { %185 = sbr.rel (!%p1527_p9) target bundleno = 77 (0x4d), region = 46  ;;  %s187_s25 = sand.u32 (%p1527_p9), 1, %s1399_s12  }
  0x2e   : > { %s1168_s29 = smul.u32 (%p1527_p9), 384, %s187_s25  ;;  %s1091_s3 = sshll.u32 (%p1527_p9), %s1423_s18, 1 }
  0x2f   : > { %s1157_s7 = smul.u32 (%p1527_p9), 192, %s1419_s17 }
  0x30   : > { %s1565_s30 = scalar_lea.vmem (%p1527_p9), [#allocation3], %s1168_s29 }
  0x31   : > { %s193_s8 = sadd.s32 (%p1527_p9), %s1157_s7, %s1091_s3 }
  0x32   : > { %s1093_s23 = sshll.u32 (%p1527_p9), %s193_s8, 2 }
  0x33   : > { %s1560_s0 = scalar_lea.vmem (%p1527_p9), %s1800_s1, %s1093_s23 }
  0x34   : > { %v317_v8 = vld [vmem:[%s1560_s0] sm:$0xff]  ;;  %v319_v9 = vld [vmem:[%s1560_s0 + $0x10] sm:$0xff] }
  0x35   : > { %v321_v10 = vld [vmem:[%s1560_s0 + $0x20] sm:$0xff]  ;;  %318 = vst [vmem:[%s1565_s30] sm:$0xff] %v317_v8  ;;  %320 = vst [vmem:[%s1565_s30 + $0x8] sm:$0xff] %v319_v9  ;;  %v323_v11 = vld [vmem:[%s1560_s0 + $0x30] sm:$0xff] }
  0x36   : > { %322 = vst [vmem:[%s1565_s30 + $0x10] sm:$0xff] %v321_v10  ;;  %v325_v12 = vld [vmem:[%s1560_s0 + $0x40] sm:$0xff]  ;;  %v327_v13 = vld [vmem:[%s1560_s0 + $0x50] sm:$0xff]  ;;  %324 = vst [vmem:[%s1565_s30 + $0x18] sm:$0xff] %v323_v11 }
  0x37   : > { %326 = vst [vmem:[%s1565_s30 + $0x20] sm:$0xff] %v325_v12  ;;  %328 = vst [vmem:[%s1565_s30 + $0x28] sm:$0xff] %v327_v13  ;;  %v329_v14 = vld [vmem:[%s1560_s0 + $0x60] sm:$0xff]  ;;  %v331_v15 = vld [vmem:[%s1560_s0 + $0x70] sm:$0xff] }
  0x38   : > { %v333_v16 = vld [vmem:[%s1560_s0 + $0x80] sm:$0xff]  ;;  %330 = vst [vmem:[%s1565_s30 + $0x30] sm:$0xff] %v329_v14  ;;  %332 = vst [vmem:[%s1565_s30 + $0x38] sm:$0xff] %v331_v15  ;;  %v335_v17 = vld [vmem:[%s1560_s0 + $0x90] sm:$0xff] }
  0x39   : > { %334 = vst [vmem:[%s1565_s30 + $0x40] sm:$0xff] %v333_v16  ;;  %v337_v18 = vld [vmem:[%s1560_s0 + $0xa0] sm:$0xff]  ;;  %v339_v19 = vld [vmem:[%s1560_s0 + $0xb0] sm:$0xff]  ;;  %336 = vst [vmem:[%s1565_s30 + $0x48] sm:$0xff] %v335_v17 }
  0x3a   : > { %338 = vst [vmem:[%s1565_s30 + $0x50] sm:$0xff] %v337_v18  ;;  %340 = vst [vmem:[%s1565_s30 + $0x58] sm:$0xff] %v339_v19  ;;  %v341_v20 = vld [vmem:[%s1560_s0 + $0xc0] sm:$0xff]  ;;  %v343_v21 = vld [vmem:[%s1560_s0 + $0xd0] sm:$0xff] }
  0x3b   : > { %v345_v22 = vld [vmem:[%s1560_s0 + $0xe0] sm:$0xff]  ;;  %342 = vst [vmem:[%s1565_s30 + $0x60] sm:$0xff] %v341_v20  ;;  %344 = vst [vmem:[%s1565_s30 + $0x68] sm:$0xff] %v343_v21  ;;  %v347_v23 = vld [vmem:[%s1560_s0 + $0xf0] sm:$0xff] }
  0x3c   : > { %346 = vst [vmem:[%s1565_s30 + $0x70] sm:$0xff] %v345_v22  ;;  %v349_v24 = vld [vmem:[%s1560_s0 + $0x100] sm:$0xff]  ;;  %v351_v25 = vld [vmem:[%s1560_s0 + $0x110] sm:$0xff]  ;;  %348 = vst [vmem:[%s1565_s30 + $0x78] sm:$0xff] %v347_v23 }
  0x3d   : > { %350 = vst [vmem:[%s1565_s30 + $0x80] sm:$0xff] %v349_v24  ;;  %352 = vst [vmem:[%s1565_s30 + $0x88] sm:$0xff] %v351_v25  ;;  %v353_v26 = vld [vmem:[%s1560_s0 + $0x120] sm:$0xff]  ;;  %v355_v27 = vld [vmem:[%s1560_s0 + $0x130] sm:$0xff] }
  0x3e   : > { %v357_v28 = vld [vmem:[%s1560_s0 + $0x140] sm:$0xff]  ;;  %354 = vst [vmem:[%s1565_s30 + $0x90] sm:$0xff] %v353_v26  ;;  %356 = vst [vmem:[%s1565_s30 + $0x98] sm:$0xff] %v355_v27  ;;  %v359_v29 = vld [vmem:[%s1560_s0 + $0x150] sm:$0xff] }
  0x3f   : > { %358 = vst [vmem:[%s1565_s30 + $0xa0] sm:$0xff] %v357_v28  ;;  %v361_v30 = vld [vmem:[%s1560_s0 + $0x160] sm:$0xff]  ;;  %v363_v31 = vld [vmem:[%s1560_s0 + $0x170] sm:$0xff]  ;;  %360 = vst [vmem:[%s1565_s30 + $0xa8] sm:$0xff] %v359_v29 }
  0x40   : > { %362 = vst [vmem:[%s1565_s30 + $0xb0] sm:$0xff] %v361_v30  ;;  %364 = vst [vmem:[%s1565_s30 + $0xb8] sm:$0xff] %v363_v31  ;;  %v365_v32 = vld [vmem:[%s1560_s0 + $0x180] sm:$0xff]  ;;  %v367_v33 = vld [vmem:[%s1560_s0 + $0x190] sm:$0xff] }
  0x41   : > { %v369_v34 = vld [vmem:[%s1560_s0 + $0x1a0] sm:$0xff]  ;;  %366 = vst [vmem:[%s1565_s30 + $0xc0] sm:$0xff] %v365_v32  ;;  %368 = vst [vmem:[%s1565_s30 + $0xc8] sm:$0xff] %v367_v33  ;;  %v371_v35 = vld [vmem:[%s1560_s0 + $0x1b0] sm:$0xff] }
  0x42   : > { %370 = vst [vmem:[%s1565_s30 + $0xd0] sm:$0xff] %v369_v34  ;;  %v373_v36 = vld [vmem:[%s1560_s0 + $0x1c0] sm:$0xff]  ;;  %v375_v37 = vld [vmem:[%s1560_s0 + $0x1d0] sm:$0xff]  ;;  %372 = vst [vmem:[%s1565_s30 + $0xd8] sm:$0xff] %v371_v35 }
  0x43   : > { %374 = vst [vmem:[%s1565_s30 + $0xe0] sm:$0xff] %v373_v36  ;;  %376 = vst [vmem:[%s1565_s30 + $0xe8] sm:$0xff] %v375_v37  ;;  %v377_v38 = vld [vmem:[%s1560_s0 + $0x1e0] sm:$0xff]  ;;  %v379_v39 = vld [vmem:[%s1560_s0 + $0x1f0] sm:$0xff] }
  0x44   : > { %v381_v40 = vld [vmem:[%s1560_s0 + $0x200] sm:$0xff]  ;;  %378 = vst [vmem:[%s1565_s30 + $0xf0] sm:$0xff] %v377_v38  ;;  %380 = vst [vmem:[%s1565_s30 + $0xf8] sm:$0xff] %v379_v39  ;;  %v383_v41 = vld [vmem:[%s1560_s0 + $0x210] sm:$0xff] }
  0x45   : > { %382 = vst [vmem:[%s1565_s30 + $0x100] sm:$0xff] %v381_v40  ;;  %v385_v42 = vld [vmem:[%s1560_s0 + $0x220] sm:$0xff]  ;;  %v387_v43 = vld [vmem:[%s1560_s0 + $0x230] sm:$0xff]  ;;  %384 = vst [vmem:[%s1565_s30 + $0x108] sm:$0xff] %v383_v41 }
  0x46   : > { %386 = vst [vmem:[%s1565_s30 + $0x110] sm:$0xff] %v385_v42  ;;  %388 = vst [vmem:[%s1565_s30 + $0x118] sm:$0xff] %v387_v43  ;;  %v389_v44 = vld [vmem:[%s1560_s0 + $0x240] sm:$0xff]  ;;  %v391_v45 = vld [vmem:[%s1560_s0 + $0x250] sm:$0xff] }
  0x47   : > { %v393_v46 = vld [vmem:[%s1560_s0 + $0x260] sm:$0xff]  ;;  %390 = vst [vmem:[%s1565_s30 + $0x120] sm:$0xff] %v389_v44  ;;  %392 = vst [vmem:[%s1565_s30 + $0x128] sm:$0xff] %v391_v45  ;;  %v395_v47 = vld [vmem:[%s1560_s0 + $0x270] sm:$0xff] }
  0x48   : > { %394 = vst [vmem:[%s1565_s30 + $0x130] sm:$0xff] %v393_v46  ;;  %v397_v48 = vld [vmem:[%s1560_s0 + $0x280] sm:$0xff]  ;;  %v399_v49 = vld [vmem:[%s1560_s0 + $0x290] sm:$0xff]  ;;  %396 = vst [vmem:[%s1565_s30 + $0x138] sm:$0xff] %v395_v47 }
  0x49   : > { %398 = vst [vmem:[%s1565_s30 + $0x140] sm:$0xff] %v397_v48  ;;  %400 = vst [vmem:[%s1565_s30 + $0x148] sm:$0xff] %v399_v49  ;;  %v401_v50 = vld [vmem:[%s1560_s0 + $0x2a0] sm:$0xff]  ;;  %v403_v51 = vld [vmem:[%s1560_s0 + $0x2b0] sm:$0xff] }
  0x4a   : > { %v405_v52 = vld [vmem:[%s1560_s0 + $0x2c0] sm:$0xff]  ;;  %402 = vst [vmem:[%s1565_s30 + $0x150] sm:$0xff] %v401_v50  ;;  %404 = vst [vmem:[%s1565_s30 + $0x158] sm:$0xff] %v403_v51  ;;  %v407_v53 = vld [vmem:[%s1560_s0 + $0x2d0] sm:$0xff] }
  0x4b   : > { %406 = vst [vmem:[%s1565_s30 + $0x160] sm:$0xff] %v405_v52  ;;  %v409_v54 = vld [vmem:[%s1560_s0 + $0x2e0] sm:$0xff]  ;;  %v411_v55 = vld [vmem:[%s1560_s0 + $0x2f0] sm:$0xff]  ;;  %408 = vst [vmem:[%s1565_s30 + $0x168] sm:$0xff] %v407_v53 }
  0x4c   : > { %410 = vst [vmem:[%s1565_s30 + $0x170] sm:$0xff] %v409_v54  ;;  %412 = vst [vmem:[%s1565_s30 + $0x178] sm:$0xff] %v411_v55 }
  0x4d PF: > { %p1094_p0 = scmp.ge.s32.totalorder %s1427_s19, 1  ;;  %p417_p1 = scmp.lt.s32.totalorder %s1427_s19, 37 }
  0x4f   : > { %p418_p2 = pnand %p1094_p0, %p417_p1 }
  0x50   : > { %s424_s28 = sand.u32 (!%p418_p2), 1, %s1403_s13   ;;  %s431_s20 = sand.u32 (!%p418_p2), 1, %s1395_s11  }
  0x51   : > { %421 = sbr.rel (%p418_p2) target bundleno = 396 (0x18c), region = 84  ;;  %s452_s29 = sand.u32 (!%p418_p2), 1, %s1387_s9  }
  0x52   : > { %s1169_s25 = smul.u32 (!%p418_p2), 48, %s424_s28  ;;  %s1095_s0 = sshll.u32 (!%p418_p2), %s452_s29, 6 }
  0x53   : > { %s1170_s3 = smul.u32 (!%p418_p2), 384, %s431_s20  ;;  %s1669_s23 = scalar_lea.vmem (!%p418_p2), [#allocation4], %s1095_s0 }
  0x54   : > { %s1665_s7 = scalar_lea.vmem (!%p418_p2), [#allocation2], %s1169_s25  ;;  %p1096_p3 = scmp.ne.s32.totalorder (!%p418_p2), %s1411_s15, 0 }
  0x55   : > { %s1667_s8 = scalar_lea.vmem (!%p418_p2), [#allocation3], %s1170_s3 }
  0x58   : > { %465 = sbr.rel (%p1096_p3) target bundleno = 95 (0x5f), region = 96  ;;  %v1429_v56 = vmov (!%p1096_p3), 0.0  }
  0x59   : > { %466 = vst [vmem:[%s1669_s23] sm:$0xff] (!%p1096_p3), %v1429_v56  ;;  %467 = vst [vmem:[%s1669_s23 + $0x8] sm:$0xff] (!%p1096_p3), %v1429_v56 }
  0x5a   : > { %468 = vst [vmem:[%s1669_s23 + $0x10] sm:$0xff] (!%p1096_p3), %v1429_v56  ;;  %469 = vst [vmem:[%s1669_s23 + $0x18] sm:$0xff] (!%p1096_p3), %v1429_v56 }
  0x5b   : > { %470 = vst [vmem:[%s1669_s23 + $0x20] sm:$0xff] (!%p1096_p3), %v1429_v56  ;;  %471 = vst [vmem:[%s1669_s23 + $0x28] sm:$0xff] (!%p1096_p3), %v1429_v56 }
  0x5c   : > { %472 = vst [vmem:[%s1669_s23 + $0x30] sm:$0xff] (!%p1096_p3), %v1429_v56  ;;  %473 = vst [vmem:[%s1669_s23 + $0x38] sm:$0xff] (!%p1096_p3), %v1429_v56 }
  0x5f PF: > { %v1261_v57 = vld [vmem:[%s1667_s8 + $0x4] ss:$8 sps:$4 sm:$0xff]   ;;  %v1263_v58 = vld [vmem:[%s1667_s8] ss:$8 sps:$4 sm:$0xff]   ;;  %v1430_v59 = vmov 0   ;;  %s1158_s9 = sshll.u32 (%p1540_p12), %s1415_s16, 4 }
  0x60   : > { %895 = vmatprep.mubr.bf16.mxu0 %v1430_v59  ;;  %810 = vmatprep.subr.bf16.mxu1 %v1261_v57  ;;  %v1264_v60 = vld [vmem:[%s1667_s8 + $0x14] ss:$8 sps:$4 sm:$0xff]   ;;  %v1266_v61 = vld [vmem:[%s1667_s8 + $0x10] ss:$8 sps:$4 sm:$0xff]   ;;  %v1267_v62 = vld [vmem:[%s1667_s8 + $0x24] ss:$8 sps:$4 sm:$0xff]   ;;  %s944_s15 = scalar_lea.vmem (%p1540_p12), %s1801_s2, %s1158_s9 }
  0x61   : > { %811 = vmatpush1.bf16.msra.mxu1 %v1263_v58  ;;  %v1269_v63 = vld [vmem:[%s1667_s8 + $0x20] ss:$8 sps:$4 sm:$0xff]   ;;  %v1270_v0 = vld [vmem:[%s1667_s8 + $0x34] ss:$8 sps:$4 sm:$0xff]   ;;  %v1272_v1 = vld [vmem:[%s1667_s8 + $0x30] ss:$8 sps:$4 sm:$0xff]  }
  0x62   : > { %812 = vmatprep.subr.bf16.mxu1 %v1264_v60  ;;  %v1285_v2 = vld [vmem:[%s1667_s8 + $0x104] ss:$8 sps:$4 sm:$0xff]   ;;  %v1287_v3 = vld [vmem:[%s1667_s8 + $0x100] ss:$8 sps:$4 sm:$0xff]   ;;  %v1291_v5 = vld [vmem:[%s1667_s8 + $0x114] ss:$8 sps:$4 sm:$0xff]  }
  0x63   : > { %v1273_v4 = vld [vmem:[%s1667_s8 + $0x44] ss:$8 sps:$4 sm:$0xff]   ;;  %863 = vmatprep.subr.bf16.mxu0 %v1285_v2  ;;  %v1293_v6 = vld [vmem:[%s1667_s8 + $0x110] ss:$8 sps:$4 sm:$0xff]   ;;  %v1275_v7 = vld [vmem:[%s1667_s8 + $0x40] ss:$8 sps:$4 sm:$0xff]  }
  0x64   : > { %864 = vmatpush1.bf16.msra.mxu0 %v1287_v3  ;;  %v1276_v8 = vld [vmem:[%s1667_s8 + $0x54] ss:$8 sps:$4 sm:$0xff]   ;;  %v1297_v9 = vld [vmem:[%s1667_s8 + $0x124] ss:$8 sps:$4 sm:$0xff]   ;;  %v1299_v10 = vld [vmem:[%s1667_s8 + $0x120] ss:$8 sps:$4 sm:$0xff]  }
  0x65   : > { %813 = vmatpush1.bf16.msra.mxu1 %v1266_v61  ;;  %865 = vmatprep.subr.bf16.mxu0 %v1291_v5  ;;  %v1278_v11 = vld [vmem:[%s1667_s8 + $0x50] ss:$8 sps:$4 sm:$0xff]   ;;  %v1303_v12 = vld [vmem:[%s1667_s8 + $0x134] ss:$8 sps:$4 sm:$0xff]   ;;  %v1279_v13 = vld [vmem:[%s1667_s8 + $0x64] ss:$8 sps:$4 sm:$0xff]  }
  0x66   : > { %814 = vmatprep.subr.bf16.mxu1 %v1267_v62  ;;  %v1305_v14 = vld [vmem:[%s1667_s8 + $0x130] ss:$8 sps:$4 sm:$0xff]   ;;  %v1281_v15 = vld [vmem:[%s1667_s8 + $0x60] ss:$8 sps:$4 sm:$0xff]   ;;  %v1309_v16 = vld [vmem:[%s1667_s8 + $0x144] ss:$8 sps:$4 sm:$0xff]  }
  0x67   : > { %v1282_v17 = vld [vmem:[%s1667_s8 + $0x74] ss:$8 sps:$4 sm:$0xff]   ;;  %v1311_v18 = vld [vmem:[%s1667_s8 + $0x140] ss:$8 sps:$4 sm:$0xff]   ;;  %v1284_v19 = vld [vmem:[%s1667_s8 + $0x70] ss:$8 sps:$4 sm:$0xff]  }
  0x68   : > { %866 = vmatpush1.bf16.msra.mxu0 %v1293_v6  ;;  %v1315_v20 = vld [vmem:[%s1667_s8 + $0x154] ss:$8 sps:$4 sm:$0xff]   ;;  %v1288_v21 = vld [vmem:[%s1667_s8 + $0x84] ss:$8 sps:$4 sm:$0xff]   ;;  %v1317_v22 = vld [vmem:[%s1667_s8 + $0x150] ss:$8 sps:$4 sm:$0xff]  }
  0x69   : > { %815 = vmatpush1.bf16.msra.mxu1 %v1269_v63  ;;  %867 = vmatprep.subr.bf16.mxu0 %v1297_v9  ;;  %v1290_v23 = vld [vmem:[%s1667_s8 + $0x80] ss:$8 sps:$4 sm:$0xff]   ;;  %v1321_v24 = vld [vmem:[%s1667_s8 + $0x164] ss:$8 sps:$4 sm:$0xff]   ;;  %v1294_v25 = vld [vmem:[%s1667_s8 + $0x94] ss:$8 sps:$4 sm:$0xff]  }
  0x6a   : > { %816 = vmatprep.subr.bf16.mxu1 %v1270_v0  ;;  %v1296_v26 = vld [vmem:[%s1667_s8 + $0x90] ss:$8 sps:$4 sm:$0xff]   ;;  %v1323_v27 = vld [vmem:[%s1667_s8 + $0x160] ss:$8 sps:$4 sm:$0xff]   ;;  %v1327_v29 = vld [vmem:[%s1667_s8 + $0x174] ss:$8 sps:$4 sm:$0xff]  }
  0x6b   : > { %v1336_v28 = vld [vmem:[%s1665_s7 + $0x4] ss:$12 sps:$4 sm:$0xff]   ;;  %v1333_v34 = vld [vmem:[%s1665_s7 + $0x8] ss:$12 sps:$4 sm:$0xff]   ;;  %v1337_v39 = vld [vmem:[%s1665_s7 + $0x20] ss:$12 sps:$4 sm:$0xff]  }
  0x6c   : > { %868 = vmatpush1.bf16.msra.mxu0 %v1299_v10  ;;  %v1300_v30 = vld [vmem:[%s1667_s8 + $0xa4] ss:$8 sps:$4 sm:$0xff]   ;;  %842 = vmatprep.mubr.bf16.mxu1 %v1336_v28  ;;  %v1329_v31 = vld [vmem:[%s1667_s8 + $0x170] ss:$8 sps:$4 sm:$0xff]   ;;  %v1302_v32 = vld [vmem:[%s1667_s8 + $0xa0] ss:$8 sps:$4 sm:$0xff]  }
  0x6d   : > { %817 = vmatpush1.bf16.msra.mxu1 %v1272_v1  ;;  %869 = vmatprep.subr.bf16.mxu0 %v1303_v12  ;;  %v1306_v33 = vld [vmem:[%s1667_s8 + $0xb4] ss:$8 sps:$4 sm:$0xff]   ;;  %v1308_v35 = vld [vmem:[%s1667_s8 + $0xb0] ss:$8 sps:$4 sm:$0xff]   ;;  %v1312_v36 = vld [vmem:[%s1667_s8 + $0xc4] ss:$8 sps:$4 sm:$0xff]  }
  0x6e   : > { %818 = vmatprep.subr.bf16.mxu1 %v1273_v4  ;;  %v1314_v37 = vld [vmem:[%s1667_s8 + $0xc0] ss:$8 sps:$4 sm:$0xff]   ;;  %v1318_v38 = vld [vmem:[%s1667_s8 + $0xd4] ss:$8 sps:$4 sm:$0xff]   ;;  %v1320_v40 = vld [vmem:[%s1667_s8 + $0xd0] ss:$8 sps:$4 sm:$0xff]  }
  0x6f   : > { %v1324_v41 = vld [vmem:[%s1667_s8 + $0xe4] ss:$8 sps:$4 sm:$0xff]   ;;  %v1326_v42 = vld [vmem:[%s1667_s8 + $0xe0] ss:$8 sps:$4 sm:$0xff]   ;;  %v1330_v43 = vld [vmem:[%s1667_s8 + $0xf4] ss:$8 sps:$4 sm:$0xff]  }
  0x70   : > { %870 = vmatpush1.bf16.msra.mxu0 %v1305_v14  ;;  %v1332_v44 = vld [vmem:[%s1667_s8 + $0xf0] ss:$8 sps:$4 sm:$0xff]   ;;  %v474_v56 = vld [vmem:[%s1669_s23] sm:$0xff] }
  0x71   : > { %819 = vmatpush1.bf16.msra.mxu1 %v1275_v7  ;;  %871 = vmatprep.subr.bf16.mxu0 %v1309_v16  ;;  %v1334_v45 = vld [vmem:[%s1665_s7] ss:$12 sps:$4 sm:$0xff]   ;;  %v1338_v46 = vld [vmem:[%s1665_s7 + $0x1c] ss:$12 sps:$4 sm:$0xff]   ;;  %v1340_v47 = vld [vmem:[%s1665_s7 + $0x18] ss:$12 sps:$4 sm:$0xff]  }
  0x72   : > { %820 = vmatprep.subr.bf16.mxu1 %v1276_v8  ;;  %v476_v62 = vld [vmem:[%s1669_s23 + $0x10] sm:$0xff]  ;;  %v477_v2 = vld [vmem:[%s1669_s23 + $0x18] sm:$0xff]  ;;  %v478_v8 = vld [vmem:[%s1669_s23 + $0x20] sm:$0xff] }
  0x73   : > { %v480_v14 = vld [vmem:[%s1669_s23 + $0x30] sm:$0xff] }
  0x74   : > { %872 = vmatpush1.bf16.msra.mxu0 %v1311_v18  ;;  %v481_v18 = vld [vmem:[%s1669_s23 + $0x38] sm:$0xff] }
  0x75   : > { %821 = vmatpush1.bf16.msra.mxu1 %v1278_v11  ;;  %873 = vmatprep.subr.bf16.mxu0 %v1315_v20  ;;  %v479_v11 = vld [vmem:[%s1669_s23 + $0x28] sm:$0xff] }
  0x76   : > { %822 = vmatprep.subr.bf16.mxu1 %v1279_v13 }
  0x78   : > { %874 = vmatpush1.bf16.msra.mxu0 %v1317_v22 }
  0x79   : > { %823 = vmatpush1.bf16.msra.mxu1 %v1281_v15  ;;  %875 = vmatprep.subr.bf16.mxu0 %v1321_v24 }
  0x7a   : > { %824 = vmatprep.subr.bf16.mxu1 %v1282_v17 }
  0x7c   : > { %876 = vmatpush1.bf16.msra.mxu0 %v1323_v27 }
  0x7d   : > { %825 = vmatpush1.bf16.msra.mxu1 %v1284_v19  ;;  %877 = vmatprep.subr.bf16.mxu0 %v1327_v29 }
  0x7e   : > { %826 = vmatprep.subr.bf16.mxu1 %v1288_v21 }
  0x80   : > { %878 = vmatpush1.bf16.msra.mxu0 %v1329_v31 }
  0x81   : > { %827 = vmatpush1.bf16.msra.mxu1 %v1290_v23 }
  0x82   : > { %828 = vmatprep.subr.bf16.mxu1 %v1294_v25 }
  0x83   : > { %896 = vmatmul.mubr.bf16.vlgmr.msra.gmra.mrb[0].mxu0 %v1333_v34 }
  0x84   : > { %905 = vmatprep.mubr.bf16.mxu0 %v1430_v59  ;;  %v475_v59 = vld [vmem:[%s1669_s23 + $0x8] sm:$0xff] }
  0x85   : > { %829 = vmatpush1.bf16.msra.mxu1 %v1296_v26 }
  0x86   : > { %830 = vmatprep.subr.bf16.mxu1 %v1300_v30 }
  0x89   : > { %831 = vmatpush1.bf16.msra.mxu1 %v1302_v32 }
  0x8a   : > { %832 = vmatprep.subr.bf16.mxu1 %v1306_v33 }
  0x8b   : > { %906 = vmatmul.mubr.bf16.gmra.mrb[4].mxu0 %v1337_v39 }
  0x8d   : > { %833 = vmatpush1.bf16.msra.mxu1 %v1308_v35 }
  0x8e   : > { %834 = vmatprep.subr.bf16.mxu1 %v1312_v36 }
  0x91   : > { %835 = vmatpush1.bf16.msra.mxu1 %v1314_v37 }
  0x92   : > { %836 = vmatprep.subr.bf16.mxu1 %v1318_v38 }
  0x95   : > { %837 = vmatpush1.bf16.msra.mxu1 %v1320_v40 }
  0x96   : > { %838 = vmatprep.subr.bf16.mxu1 %v1324_v41 }
  0x99   : > { %839 = vmatpush1.bf16.msra.mxu1 %v1326_v42 }
  0x9a   : > { %840 = vmatprep.subr.bf16.mxu1 %v1330_v43 }
  0x9d   : > { %841 = vmatpush1.bf16.msra.mxu1 %v1332_v44 }
  0xa0   : > { %843 = vmatmul.mubr.bf16.vlgmr.msra.gmra.mrb[0].mxu1 %v1334_v45 }
  0xa1   : > { %852 = vmatprep.mubr.bf16.mxu1 %v1338_v46 }
  0xa8   : > { %853 = vmatmul.mubr.bf16.gmra.mrb[4].mxu1 %v1340_v47 }
 0x156   : > { %v897_v48 = vpop.f32.mrb[0].mxu0 }
 0x157   : > { %v899_v49 = vpop.f32.mrb[1].mxu0 }
 0x158   : > { %v901_v50 = vpop.f32.mrb[2].mxu0 }
 0x159   : > { %v903_v51 = vpop.f32.mrb[3].mxu0 }
 0x15e   : > { %v907_v52 = vpop.f32.mrb[4].mxu0 }
 0x15f   : > { %v909_v53 = vpop.f32.mrb[5].mxu0 }
 0x160   : > { %v911_v54 = vpop.f32.mrb[6].mxu0 }
 0x161   : > { %v913_v55 = vpop.f32.mrb[7].mxu0 }
 0x173   : > { %v844_v57 = vpop.f32.mrb[0].mxu1 }
 0x174   : > { %v898_v58 = vadd.f32 %v897_v48, %v844_v57  ;;  %v846_v60 = vpop.f32.mrb[1].mxu1 }
 0x175   : > { %v900_v61 = vadd.f32 %v899_v49, %v846_v60  ;;  %v848_v63 = vpop.f32.mrb[2].mxu1 }
 0x176   : > { %v916_v0 = vadd.f32 %v898_v58, %v474_v56  ;;  %v902_v1 = vadd.f32 %v901_v50, %v848_v63  ;;  %v850_v3 = vpop.f32.mrb[3].mxu1 }
 0x177   : > { %v917_v4 = vadd.f32 %v900_v61, %v475_v59  ;;  %v904_v5 = vadd.f32 %v903_v51, %v850_v3 }
 0x178   : > { %924 = vst [vmem:[%s1669_s23] sm:$0xff] %v916_v0  ;;  %v918_v6 = vadd.f32 %v902_v1, %v476_v62 }
 0x179   : > { %925 = vst [vmem:[%s1669_s23 + $0x8] sm:$0xff] %v917_v4  ;;  %v919_v7 = vadd.f32 %v904_v5, %v477_v2 }
 0x17a   : > { %926 = vst [vmem:[%s1669_s23 + $0x10] sm:$0xff] %v918_v6 }
 0x17b   : > { %927 = vst [vmem:[%s1669_s23 + $0x18] sm:$0xff] %v919_v7  ;;  %v854_v9 = vpop.f32.mrb[4].mxu1 }
 0x17c   : > { %v908_v10 = vadd.f32 %v907_v52, %v854_v9  ;;  %v856_v12 = vpop.f32.mrb[5].mxu1 }
 0x17d   : > { %v910_v13 = vadd.f32 %v909_v53, %v856_v12  ;;  %v858_v15 = vpop.f32.mrb[6].mxu1  ;;  %938 = sbr.rel (!%p1540_p12) target bundleno = 396 (0x18c), region = 100 }
 0x17e   : > { %v920_v16 = vadd.f32 %v908_v10, %v478_v8  ;;  %v912_v17 = vadd.f32 %v911_v54, %v858_v15  ;;  %v860_v19 = vpop.f32.mrb[7].mxu1 }
 0x17f   : > { %v921_v20 = vadd.f32 %v910_v13, %v479_v11  ;;  %v914_v21 = vadd.f32 %v913_v55, %v860_v19  ;;  %v957_v24 = vld [vmem:[%s1669_s23] sm:$0xff] (%p1540_p12) }
 0x180   : > { %928 = vst [vmem:[%s1669_s23 + $0x20] sm:$0xff] %v920_v16  ;;  %v922_v22 = vadd.f32 %v912_v17, %v480_v14  ;;  %v959_v25 = vld [vmem:[%s1669_s23 + $0x8] sm:$0xff] (%p1540_p12)  ;;  %958 = vst [vmem:[%s944_s15] sm:$0xff] (%p1540_p12), %v957_v24 }
 0x181   : > { %929 = vst [vmem:[%s1669_s23 + $0x28] sm:$0xff] %v921_v20  ;;  %v923_v23 = vadd.f32 %v914_v21, %v481_v18  ;;  %v961_v26 = vld [vmem:[%s1669_s23 + $0x10] sm:$0xff] (%p1540_p12)  ;;  %960 = vst [vmem:[%s944_s15 + $0x8] sm:$0xff] (%p1540_p12), %v959_v25 }
 0x182   : > { %930 = vst [vmem:[%s1669_s23 + $0x30] sm:$0xff] %v922_v22  ;;  %v963_v27 = vld [vmem:[%s1669_s23 + $0x18] sm:$0xff] (%p1540_p12)  ;;  %962 = vst [vmem:[%s944_s15 + $0x20] sm:$0xff] (%p1540_p12), %v961_v26 }
 0x183   : > { %931 = vst [vmem:[%s1669_s23 + $0x38] sm:$0xff] %v923_v23  ;;  %964 = vst [vmem:[%s944_s15 + $0x28] sm:$0xff] (%p1540_p12), %v963_v27 }
 0x187   : > { %v965_v28 = vld [vmem:[%s1669_s23 + $0x20] sm:$0xff] }
 0x188   : > { %v967_v29 = vld [vmem:[%s1669_s23 + $0x28] sm:$0xff]  ;;  %966 = vst [vmem:[%s944_s15 + $0x40] sm:$0xff] %v965_v28 }
 0x189   : > { %968 = vst [vmem:[%s944_s15 + $0x48] sm:$0xff] %v967_v29  ;;  %v969_v30 = vld [vmem:[%s1669_s23 + $0x30] sm:$0xff] }
 0x18a   : > { %v971_v31 = vld [vmem:[%s1669_s23 + $0x38] sm:$0xff]  ;;  %970 = vst [vmem:[%s944_s15 + $0x60] sm:$0xff] %v969_v30 }
 0x18b   : > { %972 = vst [vmem:[%s944_s15 + $0x68] sm:$0xff] %v971_v31 }
 0x18c PF: > { %s12_s19 = sadd.s32 1, %s1427_s19   ;;  %s1807_s9 = smov %s1391_s10 }
 0x18d   : > { %p9_p4 = scmp.ge.s32.totalorder %s12_s19, 38   ;;  %s1808_s10 = smov %s1538_s5 }
 0x18e   : > { %s1809_s11 = smov %s1399_s12  ;;  %s1810_s12 = smov %s1535_s4 }
 0x18f   : > { %s1811_s13 = smov %s1407_s14  ;;  %s1812_s14 = smov %s1521_s27 }
 0x190   : > { %s1813_s15 = smov %s1419_s17  ;;  %s1814_s16 = smov %s1423_s18 }
 0x191   : > { %s1815_s17 = smov %s1818_s21  ;;  %s1816_s18 = smov %s1822_s22 }
 0x192   :  { %11 = sbr.rel (!%p9_p4) target bundleno = 8 (0x8), region = 168 }

// kernel: res3d_forward.107
= control target key start
LH: loop header
LB: loop body
LE: loop exit
PB: predicated region body
PF: predicated region fallthrough
CT: control target
= control target key end

     0   :  { %v32_v0 = vlaneseq  ;;  %s270_s1 = inlined_call_operand.vmem [shape: f32[1,512], index: 1, kind: input, shape index: {}]   ;;  %s271_s2 = inlined_call_operand.vmem [shape: f32[1,512], index: 2, kind: input, shape index: {}]   ;;  %s272_s0 = inlined_call_operand.vmem [shape: f32[32,512], index: 0, kind: input, shape index: {}]   ;;  %s273_s3 = inlined_call_operand.vmem [shape: f32[32,512], index: 3, kind: output, shape index: {}]  }
   0x1   :  { %v30_v2 = vld [vmem:[%s270_s1] sm:$0xf]  ;;  %v15_v6 = vld [vmem:[%s272_s0 + $0x8] sm:$0xff]  ;;  %v16_v10 = vld [vmem:[%s272_s0 + $0x10] sm:$0xff] }
   0x2   :  { %v33_v1 = vshrl.u32 %v32_v0, 7  ;;  %v68_v3 = vld [vmem:[%s271_s2] sm:$0xf]  ;;  %v19_v12 = vld [vmem:[%s272_s0 + $0x28] sm:$0xff]  ;;  %v17_v17 = vld [vmem:[%s272_s0 + $0x18] sm:$0xff] }
   0x3   :  { %v14_v4 = vld [vmem:[%s272_s0] sm:$0xff]  ;;  %v20_v18 = vld [vmem:[%s272_s0 + $0x30] sm:$0xff]  ;;  %v21_v19 = vld [vmem:[%s272_s0 + $0x38] sm:$0xff] }
   0x4   :  { %v34_v5 = vsub.s32 0, %v33_v1  ;;  %v38_v7 = vsub.s32 1, %v33_v1  ;;  %v42_v8 = vsub.s32 2, %v33_v1  ;;  %v46_v9 = vsub.s32 3, %v33_v1  ;;  %v18_v11 = vld [vmem:[%s272_s0 + $0x20] sm:$0xff]  ;;  %v23_v37 = vld [vmem:[%s272_s0 + $0x48] sm:$0xff] }
   0x5   :  { %v22_v36 = vld [vmem:[%s272_s0 + $0x40] sm:$0xff]  ;;  %v24_v38 = vld [vmem:[%s272_s0 + $0x50] sm:$0xff]  ;;  %v25_v43 = vld [vmem:[%s272_s0 + $0x58] sm:$0xff] }
   0x6   :  { %v35_v13 = vrot.slane %v30_v2, %v34_v5  ;;  %v183_v14 = vrot.slane %v68_v3, %v34_v5  ;;  %v39_v15 = vrot.slane %v30_v2, %v38_v7  ;;  %v77_v16 = vrot.slane %v68_v3, %v38_v7  ;;  %v26_v44 = vld [vmem:[%s272_s0 + $0x60] sm:$0xff]  ;;  %v27_v45 = vld [vmem:[%s272_s0 + $0x68] sm:$0xff]  ;;  %v28_v50 = vld [vmem:[%s272_s0 + $0x70] sm:$0xff] }
   0x7   :  { %v43_v20 = vrot.slane %v30_v2, %v42_v8  ;;  %v81_v21 = vrot.slane %v68_v3, %v42_v8  ;;  %v47_v22 = vrot.slane %v30_v2, %v46_v9  ;;  %v85_v23 = vrot.slane %v68_v3, %v46_v9  ;;  %v29_v51 = vld [vmem:[%s272_s0 + $0x78] sm:$0xff] }
   0x8   :  { %v52_v24 = vmul.f32 %v35_v13, %v14_v4  ;;  %v53_v25 = vmul.f32 %v39_v15, %v15_v6  ;;  %v56_v26 = vmul.f32 %v35_v13, %v18_v11  ;;  %v57_v27 = vmul.f32 %v39_v15, %v19_v12 }
   0x9   :  { %v54_v28 = vmul.f32 %v43_v20, %v16_v10  ;;  %v55_v29 = vmul.f32 %v47_v22, %v17_v17  ;;  %v58_v30 = vmul.f32 %v43_v20, %v20_v18  ;;  %v59_v31 = vmul.f32 %v47_v22, %v21_v19 }
   0xa   :  { %v90_v32 = vadd.f32 %v183_v14, %v52_v24  ;;  %v91_v33 = vadd.f32 %v77_v16, %v53_v25  ;;  %v94_v34 = vadd.f32 %v183_v14, %v56_v26  ;;  %v95_v35 = vadd.f32 %v77_v16, %v57_v27 }
   0xb   :  { %v92_v39 = vadd.f32 %v81_v21, %v54_v28  ;;  %v93_v40 = vadd.f32 %v85_v23, %v55_v29  ;;  %v96_v41 = vadd.f32 %v81_v21, %v58_v30  ;;  %v97_v42 = vadd.f32 %v85_v23, %v59_v31 }
   0xc   :  { %v106_v46 = vmax.f32 %v90_v32, 0.0  ;;  %v107_v47 = vmax.f32 %v91_v33, 0.0  ;;  %v110_v48 = vmax.f32 %v94_v34, 0.0  ;;  %v111_v49 = vmax.f32 %v95_v35, 0.0 }
   0xd   :  { %v108_v52 = vmax.f32 %v92_v39, 0.0  ;;  %v109_v53 = vmax.f32 %v93_v40, 0.0  ;;  %v112_v54 = vmax.f32 %v96_v41, 0.0  ;;  %v113_v55 = vmax.f32 %v97_v42, 0.0 }
   0xe   :  { %122 = vst [vmem:[%s273_s3] sm:$0xff] %v106_v46  ;;  %123 = vst [vmem:[%s273_s3 + $0x8] sm:$0xff] %v107_v47  ;;  %v60_v56 = vmul.f32 %v35_v13, %v22_v36  ;;  %v61_v57 = vmul.f32 %v39_v15, %v23_v37  ;;  %v62_v58 = vmul.f32 %v43_v20, %v24_v38 }
   0xf   :  { %126 = vst [vmem:[%s273_s3 + $0x20] sm:$0xff] %v110_v48  ;;  %127 = vst [vmem:[%s273_s3 + $0x28] sm:$0xff] %v111_v49  ;;  %v63_v59 = vmul.f32 %v47_v22, %v25_v43  ;;  %v64_v60 = vmul.f32 %v35_v13, %v26_v44  ;;  %v65_v61 = vmul.f32 %v39_v15, %v27_v45 }
  0x10   :  { %124 = vst [vmem:[%s273_s3 + $0x10] sm:$0xff] %v108_v52  ;;  %125 = vst [vmem:[%s273_s3 + $0x18] sm:$0xff] %v109_v53  ;;  %v66_v62 = vmul.f32 %v43_v20, %v28_v50  ;;  %v67_v63 = vmul.f32 %v47_v22, %v29_v51  ;;  %v98_v0 = vadd.f32 %v183_v14, %v60_v56 }
  0x11   :  { %128 = vst [vmem:[%s273_s3 + $0x30] sm:$0xff] %v112_v54  ;;  %129 = vst [vmem:[%s273_s3 + $0x38] sm:$0xff] %v113_v55  ;;  %v99_v1 = vadd.f32 %v77_v16, %v61_v57  ;;  %v100_v2 = vadd.f32 %v81_v21, %v62_v58  ;;  %v101_v3 = vadd.f32 %v85_v23, %v63_v59 }
  0x12   :  { %v102_v4 = vadd.f32 %v183_v14, %v64_v60  ;;  %v103_v5 = vadd.f32 %v77_v16, %v65_v61  ;;  %v104_v6 = vadd.f32 %v81_v21, %v66_v62  ;;  %v105_v7 = vadd.f32 %v85_v23, %v67_v63 }
  0x13   :  { %v114_v8 = vmax.f32 %v98_v0, 0.0  ;;  %v115_v9 = vmax.f32 %v99_v1, 0.0  ;;  %v116_v10 = vmax.f32 %v100_v2, 0.0  ;;  %v117_v11 = vmax.f32 %v101_v3, 0.0 }
  0x14   :  { %v118_v12 = vmax.f32 %v102_v4, 0.0  ;;  %v119_v17 = vmax.f32 %v103_v5, 0.0  ;;  %v120_v13 = vmax.f32 %v104_v6, 0.0  ;;  %v121_v15 = vmax.f32 %v105_v7, 0.0 }
  0x15   :  { %130 = vst [vmem:[%s273_s3 + $0x40] sm:$0xff] %v114_v8  ;;  %131 = vst [vmem:[%s273_s3 + $0x48] sm:$0xff] %v115_v9 }
  0x16   :  { %132 = vst [vmem:[%s273_s3 + $0x50] sm:$0xff] %v116_v10  ;;  %133 = vst [vmem:[%s273_s3 + $0x58] sm:$0xff] %v117_v11 }
  0x17   :  { %134 = vst [vmem:[%s273_s3 + $0x60] sm:$0xff] %v118_v12  ;;  %135 = vst [vmem:[%s273_s3 + $0x68] sm:$0xff] %v119_v17 }
  0x18   :  { %136 = vst [vmem:[%s273_s3 + $0x70] sm:$0xff] %v120_v13  ;;  %137 = vst [vmem:[%s273_s3 + $0x78] sm:$0xff] %v121_v15 }

// kernel: res3d_forward.108
= control target key start
LH: loop header
LB: loop body
LE: loop exit
PB: predicated region body
PF: predicated region fallthrough
CT: control target
= control target key end

     0   :  { %s2039_s0 = inlined_call_operand.vmem [shape: bf16[32,13824], index: 0, kind: input, shape index: {}]   ;;  %s2040_s1 = inlined_call_operand.vmem [shape: bf16[13824,512], index: 1, kind: input, shape index: {}]   ;;  %s2041_s2 = inlined_call_operand.vmem [shape: f32[32,512], index: 2, kind: output, shape index: {}]  }
   0x1   :  { %2042 = sst [smem:[#allocation5_spill]] %s2039_s0 }
   0x2   :  { %s1638_s9 = smov 0   ;;  %s1640_s10 = smov 0  }
   0x3   :  { %s1642_s11 = smov 0   ;;  %s1644_s12 = smov 0  }
   0x4   :  { %s1646_s13 = smov 0   ;;  %s1648_s14 = smov 0  }
   0x5   :  { %s1650_s15 = smov 0   ;;  %s1652_s16 = smov 0  }
   0x6   :  { %s1654_s17 = smov 0   ;;  %s1656_s18 = smov 0  }
   0x7   :  { %s1658_s19 = smov 0  }
   0x8 LB: > { %s1232_s20 = sadd.s32 4294967295, %s1620_s19   ;;  %s24_s21 = sadd.s32 1, %s1612_s17  ;;  %s1620_s19 = sphi %s1658_s19, %s12_s19   ;;  %s1616_s18 = sphi %s1656_s18, %s2056_s18   ;;  %s1612_s17 = sphi %s1654_s17, %s2055_s17   ;;  %s1608_s16 = sphi %s1652_s16, %s2054_s16   ;;  %s1604_s15 = sphi %s1650_s15, %s2053_s15   ;;  %s1600_s14 = sphi %s1648_s14, %s2052_s14   ;;  %s1596_s13 = sphi %s1646_s13, %s2051_s13   ;;  %s1592_s12 = sphi %s1644_s12, %s2050_s12   ;;  %s1588_s11 = sphi %s1642_s11, %s2049_s11   ;;  %s1584_s10 = sphi %s1640_s10, %s2048_s10   ;;  %s1580_s9 = sphi %s1638_s9, %s2047_s9  }
   0x9   : > { %p25_p0 = scmp.ge.s32.totalorder %s24_s21, 27  ;;  %s27_s22 = sadd.s32 1, %s1616_s18 }
   0xa   : > { %s40_s23 = sadd.s32 1, %s1600_s14  ;;  %p47_p1 = scmp.ne.s32.totalorder %s1600_s14, %s1596_s13 }
   0xb   : > { %s2058_s21 = smov (%p25_p0, %s24_s21), 0  ;;  %s2060_s22 = smov (!%p25_p0, %s27_s22), %s1616_s18 }
   0xc   : > { %s36_s24 = ssub.s32 %s1612_s17, %s2058_s21  ;;  %p48_p2 = scmp.eq.s32.totalorder %s1620_s19, 0 }
   0xd   : > { %p29_p3 = scmp.ge.s32.totalorder %s2060_s22, 2  ;;  %p38_p4 = scmp.eq.s32.totalorder %s36_s24, 0 }
   0xe   : > { %p1705_p5 = por %p48_p2, %p47_p1  ;;  %s68_s26 = sadd.s32 1, %s1592_s12 }
   0xf   : > { %s2062_s22 = smov (%p29_p3, %s2060_s22), 0  ;;  %p75_p6 = scmp.ne.s32.totalorder %s1592_s12, %s1588_s11 }
  0x10   : > { %s1713_s27 = scalar_select %p38_p4, %s1600_s14, %s40_s23  }
  0x11   : > { %s64_s28 = ssub.s32 %s1616_s18, %s2062_s22  ;;  %p1719_p9 = por %p75_p6, %p48_p2 }
  0x12   : > { %s65_s29 = sor.u32 %s64_s28, %s36_s24  ;;  %p94_p7 = scmp.eq.s32.totalorder %s64_s28, 0 }
  0x13   : > { %p66_p8 = scmp.eq.s32.totalorder %s65_s29, 0  ;;  %s96_s3 = sadd.s32 1, %s1584_s10 }
  0x14   : > { %p106_p10 = scmp.ne.s32.totalorder %s1584_s10, %s1580_s9  ;;  %p107_p11 = scmp.eq.s32.totalorder %s1232_s20, 53 }
  0x15   : > { %s1727_s4 = scalar_select %p66_p8, %s1592_s12, %s68_s26  }
  0x16   : > { %s1730_s5 = scalar_select %p94_p7, %s1584_s10, %s96_s3  }
  0x17   : > { %p1732_p12 = por %p107_p11, %p106_p10  ;;  %p1235_p13 = scmp.ge.s32.totalorder %s1620_s19, 54 }
  0x19   : > { %129 = sbr.rel (%p1235_p13) target bundleno = 85 (0x55), region = 16 }
  0x20   : > { %132 = sbr.rel (!%p1705_p5) target bundleno = 46 (0x2e), region = 20  ;;  %s134_s7 = sand.u32 (%p1705_p5), 1, %s1600_s14  }
  0x21   : > { %s1326_s8 = sshll.u32 (%p1705_p5), %s1612_s17, 4  ;;  %s1236_s23 = sshll.u32 (%p1705_p5), %s134_s7, 6 }
  0x22   : > { %s2046_s0 = sld [smem:[#allocation5_spill]] (%p1705_p5)  ;;  %s136_s20 = scalar_lea.vmem (%p1705_p5), [#allocation2], %s1236_s23 }
  0x28   : > { %s142_s28 = scalar_lea.vmem %s2046_s0, %s1326_s8 }
  0x29   : > { %v155_v0 = vld [vmem:[%s142_s28] sm:$0xff]  ;;  %v157_v1 = vld [vmem:[%s142_s28 + $0x8] sm:$0xff]  ;;  %v159_v2 = vld [vmem:[%s142_s28 + $0x1b0] sm:$0xff] }
  0x2a   : > { %156 = vst [vmem:[%s136_s20] sm:$0xff] %v155_v0  ;;  %158 = vst [vmem:[%s136_s20 + $0x8] sm:$0xff] %v157_v1  ;;  %v161_v3 = vld [vmem:[%s142_s28 + $0x1b8] sm:$0xff]  ;;  %v163_v4 = vld [vmem:[%s142_s28 + $0x360] sm:$0xff] }
  0x2b   : > { %160 = vst [vmem:[%s136_s20 + $0x10] sm:$0xff] %v159_v2  ;;  %v165_v5 = vld [vmem:[%s142_s28 + $0x368] sm:$0xff]  ;;  %162 = vst [vmem:[%s136_s20 + $0x18] sm:$0xff] %v161_v3  ;;  %v167_v6 = vld [vmem:[%s142_s28 + $0x510] sm:$0xff] }
  0x2c   : > { %164 = vst [vmem:[%s136_s20 + $0x20] sm:$0xff] %v163_v4  ;;  %166 = vst [vmem:[%s136_s20 + $0x28] sm:$0xff] %v165_v5  ;;  %v169_v7 = vld [vmem:[%s142_s28 + $0x518] sm:$0xff] }
  0x2d   : > { %168 = vst [vmem:[%s136_s20 + $0x30] sm:$0xff] %v167_v6  ;;  %170 = vst [vmem:[%s136_s20 + $0x38] sm:$0xff] %v169_v7 }
  0x2e PF: > { %176 = sbr.rel (!%p1719_p9) target bundleno = 85 (0x55), region = 43  ;;  %s178_s25 = sand.u32 (%p1719_p9), 1, %s1592_s12  }
  0x2f   : > { %s1241_s29 = sshll.u32 (%p1719_p9), %s1616_s18, 1  ;;  %s1239_s3 = sshll.u32 (%p1719_p9), %s178_s25, 9 }
  0x30   : > { %s1327_s7 = sshll.u32 (%p1719_p9), %s1612_s17, 8  ;;  %s1757_s30 = scalar_lea.vmem (%p1719_p9), [#allocation3], %s1239_s3 }
  0x31   : > { %s184_s8 = sadd.s32 (%p1719_p9), %s1327_s7, %s1241_s29 }
  0x32   : > { %s1243_s23 = sshll.u32 (%p1719_p9), %s184_s8, 2 }
  0x33   : > { %s1752_s0 = scalar_lea.vmem (%p1719_p9), %s2040_s1, %s1243_s23 }
  0x34   : > { %v340_v8 = vld [vmem:[%s1752_s0] sm:$0xff] (%p1719_p9)  ;;  %v342_v9 = vld [vmem:[%s1752_s0 + $0x10] sm:$0xff] (%p1719_p9) }
  0x35   : > { %v344_v10 = vld [vmem:[%s1752_s0 + $0x20] sm:$0xff]  ;;  %341 = vst [vmem:[%s1757_s30] sm:$0xff] %v340_v8  ;;  %343 = vst [vmem:[%s1757_s30 + $0x8] sm:$0xff] %v342_v9  ;;  %v346_v11 = vld [vmem:[%s1752_s0 + $0x30] sm:$0xff] }
  0x36   : > { %345 = vst [vmem:[%s1757_s30 + $0x10] sm:$0xff] %v344_v10  ;;  %v348_v12 = vld [vmem:[%s1752_s0 + $0x40] sm:$0xff]  ;;  %v350_v13 = vld [vmem:[%s1752_s0 + $0x50] sm:$0xff]  ;;  %347 = vst [vmem:[%s1757_s30 + $0x18] sm:$0xff] %v346_v11 }
  0x37   : > { %349 = vst [vmem:[%s1757_s30 + $0x20] sm:$0xff] %v348_v12  ;;  %351 = vst [vmem:[%s1757_s30 + $0x28] sm:$0xff] %v350_v13  ;;  %v352_v14 = vld [vmem:[%s1752_s0 + $0x60] sm:$0xff]  ;;  %v354_v15 = vld [vmem:[%s1752_s0 + $0x70] sm:$0xff] }
  0x38   : > { %v356_v16 = vld [vmem:[%s1752_s0 + $0x80] sm:$0xff]  ;;  %353 = vst [vmem:[%s1757_s30 + $0x30] sm:$0xff] %v352_v14  ;;  %355 = vst [vmem:[%s1757_s30 + $0x38] sm:$0xff] %v354_v15  ;;  %v358_v17 = vld [vmem:[%s1752_s0 + $0x90] sm:$0xff] }
  0x39   : > { %357 = vst [vmem:[%s1757_s30 + $0x40] sm:$0xff] %v356_v16  ;;  %v360_v18 = vld [vmem:[%s1752_s0 + $0xa0] sm:$0xff]  ;;  %v362_v19 = vld [vmem:[%s1752_s0 + $0xb0] sm:$0xff]  ;;  %359 = vst [vmem:[%s1757_s30 + $0x48] sm:$0xff] %v358_v17 }
  0x3a   : > { %361 = vst [vmem:[%s1757_s30 + $0x50] sm:$0xff] %v360_v18  ;;  %363 = vst [vmem:[%s1757_s30 + $0x58] sm:$0xff] %v362_v19  ;;  %v364_v20 = vld [vmem:[%s1752_s0 + $0xc0] sm:$0xff]  ;;  %v366_v21 = vld [vmem:[%s1752_s0 + $0xd0] sm:$0xff] }
  0x3b   : > { %v368_v22 = vld [vmem:[%s1752_s0 + $0xe0] sm:$0xff]  ;;  %365 = vst [vmem:[%s1757_s30 + $0x60] sm:$0xff] %v364_v20  ;;  %367 = vst [vmem:[%s1757_s30 + $0x68] sm:$0xff] %v366_v21  ;;  %v370_v23 = vld [vmem:[%s1752_s0 + $0xf0] sm:$0xff] }
  0x3c   : > { %369 = vst [vmem:[%s1757_s30 + $0x70] sm:$0xff] %v368_v22  ;;  %v372_v24 = vld [vmem:[%s1752_s0 + $0x100] sm:$0xff]  ;;  %v374_v25 = vld [vmem:[%s1752_s0 + $0x110] sm:$0xff]  ;;  %371 = vst [vmem:[%s1757_s30 + $0x78] sm:$0xff] %v370_v23 }
  0x3d   : > { %373 = vst [vmem:[%s1757_s30 + $0x80] sm:$0xff] %v372_v24  ;;  %375 = vst [vmem:[%s1757_s30 + $0x88] sm:$0xff] %v374_v25  ;;  %v376_v26 = vld [vmem:[%s1752_s0 + $0x120] sm:$0xff]  ;;  %v378_v27 = vld [vmem:[%s1752_s0 + $0x130] sm:$0xff] }
  0x3e   : > { %v380_v28 = vld [vmem:[%s1752_s0 + $0x140] sm:$0xff]  ;;  %377 = vst [vmem:[%s1757_s30 + $0x90] sm:$0xff] %v376_v26  ;;  %379 = vst [vmem:[%s1757_s30 + $0x98] sm:$0xff] %v378_v27  ;;  %v382_v29 = vld [vmem:[%s1752_s0 + $0x150] sm:$0xff] }
  0x3f   : > { %381 = vst [vmem:[%s1757_s30 + $0xa0] sm:$0xff] %v380_v28  ;;  %v384_v30 = vld [vmem:[%s1752_s0 + $0x160] sm:$0xff]  ;;  %v386_v31 = vld [vmem:[%s1752_s0 + $0x170] sm:$0xff]  ;;  %383 = vst [vmem:[%s1757_s30 + $0xa8] sm:$0xff] %v382_v29 }
  0x40   : > { %385 = vst [vmem:[%s1757_s30 + $0xb0] sm:$0xff] %v384_v30  ;;  %387 = vst [vmem:[%s1757_s30 + $0xb8] sm:$0xff] %v386_v31  ;;  %v388_v32 = vld [vmem:[%s1752_s0 + $0x180] sm:$0xff]  ;;  %v390_v33 = vld [vmem:[%s1752_s0 + $0x190] sm:$0xff] }
  0x41   : > { %v392_v34 = vld [vmem:[%s1752_s0 + $0x1a0] sm:$0xff]  ;;  %389 = vst [vmem:[%s1757_s30 + $0xc0] sm:$0xff] %v388_v32  ;;  %391 = vst [vmem:[%s1757_s30 + $0xc8] sm:$0xff] %v390_v33  ;;  %v394_v35 = vld [vmem:[%s1752_s0 + $0x1b0] sm:$0xff] }
  0x42   : > { %393 = vst [vmem:[%s1757_s30 + $0xd0] sm:$0xff] %v392_v34  ;;  %v396_v36 = vld [vmem:[%s1752_s0 + $0x1c0] sm:$0xff]  ;;  %v398_v37 = vld [vmem:[%s1752_s0 + $0x1d0] sm:$0xff]  ;;  %395 = vst [vmem:[%s1757_s30 + $0xd8] sm:$0xff] %v394_v35 }
  0x43   : > { %397 = vst [vmem:[%s1757_s30 + $0xe0] sm:$0xff] %v396_v36  ;;  %399 = vst [vmem:[%s1757_s30 + $0xe8] sm:$0xff] %v398_v37  ;;  %v400_v38 = vld [vmem:[%s1752_s0 + $0x1e0] sm:$0xff]  ;;  %v402_v39 = vld [vmem:[%s1752_s0 + $0x1f0] sm:$0xff] }
  0x44   : > { %v404_v40 = vld [vmem:[%s1752_s0 + $0x200] sm:$0xff]  ;;  %401 = vst [vmem:[%s1757_s30 + $0xf0] sm:$0xff] %v400_v38  ;;  %403 = vst [vmem:[%s1757_s30 + $0xf8] sm:$0xff] %v402_v39  ;;  %v406_v41 = vld [vmem:[%s1752_s0 + $0x210] sm:$0xff] }
  0x45   : > { %405 = vst [vmem:[%s1757_s30 + $0x100] sm:$0xff] %v404_v40  ;;  %v408_v42 = vld [vmem:[%s1752_s0 + $0x220] sm:$0xff]  ;;  %v410_v43 = vld [vmem:[%s1752_s0 + $0x230] sm:$0xff]  ;;  %407 = vst [vmem:[%s1757_s30 + $0x108] sm:$0xff] %v406_v41 }
  0x46   : > { %409 = vst [vmem:[%s1757_s30 + $0x110] sm:$0xff] %v408_v42  ;;  %411 = vst [vmem:[%s1757_s30 + $0x118] sm:$0xff] %v410_v43  ;;  %v412_v44 = vld [vmem:[%s1752_s0 + $0x240] sm:$0xff]  ;;  %v414_v45 = vld [vmem:[%s1752_s0 + $0x250] sm:$0xff] }
  0x47   : > { %v416_v46 = vld [vmem:[%s1752_s0 + $0x260] sm:$0xff]  ;;  %413 = vst [vmem:[%s1757_s30 + $0x120] sm:$0xff] %v412_v44  ;;  %415 = vst [vmem:[%s1757_s30 + $0x128] sm:$0xff] %v414_v45  ;;  %v418_v47 = vld [vmem:[%s1752_s0 + $0x270] sm:$0xff] }
  0x48   : > { %417 = vst [vmem:[%s1757_s30 + $0x130] sm:$0xff] %v416_v46  ;;  %v420_v48 = vld [vmem:[%s1752_s0 + $0x280] sm:$0xff]  ;;  %v422_v49 = vld [vmem:[%s1752_s0 + $0x290] sm:$0xff]  ;;  %419 = vst [vmem:[%s1757_s30 + $0x138] sm:$0xff] %v418_v47 }
  0x49   : > { %421 = vst [vmem:[%s1757_s30 + $0x140] sm:$0xff] %v420_v48  ;;  %423 = vst [vmem:[%s1757_s30 + $0x148] sm:$0xff] %v422_v49  ;;  %v424_v50 = vld [vmem:[%s1752_s0 + $0x2a0] sm:$0xff]  ;;  %v426_v51 = vld [vmem:[%s1752_s0 + $0x2b0] sm:$0xff] }
  0x4a   : > { %v428_v52 = vld [vmem:[%s1752_s0 + $0x2c0] sm:$0xff]  ;;  %425 = vst [vmem:[%s1757_s30 + $0x150] sm:$0xff] %v424_v50  ;;  %427 = vst [vmem:[%s1757_s30 + $0x158] sm:$0xff] %v426_v51  ;;  %v430_v53 = vld [vmem:[%s1752_s0 + $0x2d0] sm:$0xff] }
  0x4b   : > { %429 = vst [vmem:[%s1757_s30 + $0x160] sm:$0xff] %v428_v52  ;;  %v432_v54 = vld [vmem:[%s1752_s0 + $0x2e0] sm:$0xff]  ;;  %v434_v55 = vld [vmem:[%s1752_s0 + $0x2f0] sm:$0xff]  ;;  %431 = vst [vmem:[%s1757_s30 + $0x168] sm:$0xff] %v430_v53 }
  0x4c   : > { %433 = vst [vmem:[%s1757_s30 + $0x170] sm:$0xff] %v432_v54  ;;  %435 = vst [vmem:[%s1757_s30 + $0x178] sm:$0xff] %v434_v55  ;;  %v436_v56 = vld [vmem:[%s1752_s0 + $0x300] sm:$0xff]  ;;  %v438_v57 = vld [vmem:[%s1752_s0 + $0x310] sm:$0xff] }
  0x4d   : > { %v440_v58 = vld [vmem:[%s1752_s0 + $0x320] sm:$0xff]  ;;  %437 = vst [vmem:[%s1757_s30 + $0x180] sm:$0xff] %v436_v56  ;;  %439 = vst [vmem:[%s1757_s30 + $0x188] sm:$0xff] %v438_v57  ;;  %v442_v59 = vld [vmem:[%s1752_s0 + $0x330] sm:$0xff] }
  0x4e   : > { %441 = vst [vmem:[%s1757_s30 + $0x190] sm:$0xff] %v440_v58  ;;  %v444_v60 = vld [vmem:[%s1752_s0 + $0x340] sm:$0xff]  ;;  %v446_v61 = vld [vmem:[%s1752_s0 + $0x350] sm:$0xff]  ;;  %443 = vst [vmem:[%s1757_s30 + $0x198] sm:$0xff] %v442_v59 }
  0x4f   : > { %445 = vst [vmem:[%s1757_s30 + $0x1a0] sm:$0xff] %v444_v60  ;;  %447 = vst [vmem:[%s1757_s30 + $0x1a8] sm:$0xff] %v446_v61  ;;  %v448_v62 = vld [vmem:[%s1752_s0 + $0x360] sm:$0xff]  ;;  %v450_v63 = vld [vmem:[%s1752_s0 + $0x370] sm:$0xff] }
  0x50   : > { %v452_v0 = vld [vmem:[%s1752_s0 + $0x380] sm:$0xff]  ;;  %449 = vst [vmem:[%s1757_s30 + $0x1b0] sm:$0xff] %v448_v62  ;;  %451 = vst [vmem:[%s1757_s30 + $0x1b8] sm:$0xff] %v450_v63  ;;  %v454_v1 = vld [vmem:[%s1752_s0 + $0x390] sm:$0xff] }
  0x51   : > { %453 = vst [vmem:[%s1757_s30 + $0x1c0] sm:$0xff] %v452_v0  ;;  %v456_v2 = vld [vmem:[%s1752_s0 + $0x3a0] sm:$0xff]  ;;  %v458_v3 = vld [vmem:[%s1752_s0 + $0x3b0] sm:$0xff]  ;;  %455 = vst [vmem:[%s1757_s30 + $0x1c8] sm:$0xff] %v454_v1 }
  0x52   : > { %457 = vst [vmem:[%s1757_s30 + $0x1d0] sm:$0xff] %v456_v2  ;;  %459 = vst [vmem:[%s1757_s30 + $0x1d8] sm:$0xff] %v458_v3  ;;  %v460_v4 = vld [vmem:[%s1752_s0 + $0x3c0] sm:$0xff]  ;;  %v462_v5 = vld [vmem:[%s1752_s0 + $0x3d0] sm:$0xff] }
  0x53   : > { %v464_v6 = vld [vmem:[%s1752_s0 + $0x3e0] sm:$0xff]  ;;  %461 = vst [vmem:[%s1757_s30 + $0x1e0] sm:$0xff] %v460_v4  ;;  %463 = vst [vmem:[%s1757_s30 + $0x1e8] sm:$0xff] %v462_v5  ;;  %v466_v7 = vld [vmem:[%s1752_s0 + $0x3f0] sm:$0xff] }
  0x54   : > { %465 = vst [vmem:[%s1757_s30 + $0x1f0] sm:$0xff] %v464_v6  ;;  %467 = vst [vmem:[%s1757_s30 + $0x1f8] sm:$0xff] %v466_v7 }
  0x55 PF: > { %p1244_p0 = scmp.ge.s32.totalorder %s1620_s19, 1  ;;  %p472_p1 = scmp.lt.s32.totalorder %s1620_s19, 55 }
  0x57   : > { %p473_p2 = pnand %p1244_p0, %p472_p1 }
  0x58   : > { %s479_s28 = sand.u32 (!%p473_p2), 1, %s1596_s13   ;;  %s486_s20 = sand.u32 (!%p473_p2), 1, %s1588_s11  }
  0x59   : > { %476 = sbr.rel (%p473_p2) target bundleno = 405 (0x195), region = 81  ;;  %s1245_s25 = sshll.u32 (!%p473_p2), %s479_s28, 6 }
  0x5a   : > { %s1246_s29 = sshll.u32 (!%p473_p2), %s486_s20, 9  ;;  %s507_s3 = sand.u32 (!%p473_p2), 1, %s1580_s9  }
  0x5b   : > { %s1247_s7 = sshll.u32 (!%p473_p2), %s507_s3, 6  ;;  %s1889_s8 = scalar_lea.vmem (!%p473_p2), [#allocation2], %s1245_s25 }
  0x5c   : > { %s1891_s0 = scalar_lea.vmem (!%p473_p2), [#allocation3], %s1246_s29  ;;  %s1893_s23 = scalar_lea.vmem (!%p473_p2), [#allocation4], %s1247_s7 }
  0x5d   : > { %p1248_p3 = scmp.ne.s32.totalorder (!%p473_p2), %s1604_s15, 0 }
  0x60   : > { %519 = sbr.rel (%p1248_p3) target bundleno = 103 (0x67), region = 93  ;;  %v1622_v8 = vmov (!%p1248_p3), 0.0  }
  0x61   : > { %520 = vst [vmem:[%s1893_s23] sm:$0xff] (!%p1248_p3), %v1622_v8  ;;  %521 = vst [vmem:[%s1893_s23 + $0x8] sm:$0xff] (!%p1248_p3), %v1622_v8 }
  0x62   : > { %522 = vst [vmem:[%s1893_s23 + $0x10] sm:$0xff] (!%p1248_p3), %v1622_v8  ;;  %523 = vst [vmem:[%s1893_s23 + $0x18] sm:$0xff] (!%p1248_p3), %v1622_v8 }
  0x63   : > { %524 = vst [vmem:[%s1893_s23 + $0x20] sm:$0xff] (!%p1248_p3), %v1622_v8  ;;  %525 = vst [vmem:[%s1893_s23 + $0x28] sm:$0xff] (!%p1248_p3), %v1622_v8 }
  0x64   : > { %526 = vst [vmem:[%s1893_s23 + $0x30] sm:$0xff] (!%p1248_p3), %v1622_v8  ;;  %527 = vst [vmem:[%s1893_s23 + $0x38] sm:$0xff] (!%p1248_p3), %v1622_v8 }
  0x67 PF: > { %v1426_v9 = vld [vmem:[%s1891_s0 + $0x4] ss:$8 sps:$4 sm:$0xff]   ;;  %v1430_v11 = vld [vmem:[%s1891_s0] ss:$8 sps:$4 sm:$0xff]   ;;  %v1432_v13 = vld [vmem:[%s1891_s0 + $0x14] ss:$8 sps:$4 sm:$0xff]  }
  0x68   : > { %v1428_v10 = vld [vmem:[%s1891_s0 + $0x104] ss:$8 sps:$4 sm:$0xff]   ;;  %968 = vmatprep.subr.bf16.mxu1 %v1426_v9  ;;  %v1431_v12 = vld [vmem:[%s1891_s0 + $0x100] ss:$8 sps:$4 sm:$0xff]   ;;  %v1434_v14 = vld [vmem:[%s1891_s0 + $0x114] ss:$8 sps:$4 sm:$0xff]  }
  0x69   : > { %1021 = vmatprep.subr.bf16.mxu0 %v1428_v10  ;;  %969 = vmatpush1.bf16.msra.mxu1 %v1430_v11  ;;  %v1436_v15 = vld [vmem:[%s1891_s0 + $0x10] ss:$8 sps:$4 sm:$0xff]   ;;  %v1438_v17 = vld [vmem:[%s1891_s0 + $0x24] ss:$8 sps:$4 sm:$0xff]   ;;  %v1442_v19 = vld [vmem:[%s1891_s0 + $0x20] ss:$8 sps:$4 sm:$0xff]  }
  0x6a   : > { %1022 = vmatpush1.bf16.msra.mxu0 %v1431_v12  ;;  %970 = vmatprep.subr.bf16.mxu1 %v1432_v13  ;;  %v1437_v16 = vld [vmem:[%s1891_s0 + $0x110] ss:$8 sps:$4 sm:$0xff]   ;;  %v1440_v18 = vld [vmem:[%s1891_s0 + $0x124] ss:$8 sps:$4 sm:$0xff]   ;;  %v1443_v20 = vld [vmem:[%s1891_s0 + $0x120] ss:$8 sps:$4 sm:$0xff]  }
  0x6b   : > { %1023 = vmatprep.subr.bf16.mxu0 %v1434_v14  ;;  %v1444_v21 = vld [vmem:[%s1891_s0 + $0x34] ss:$8 sps:$4 sm:$0xff]   ;;  %v1448_v23 = vld [vmem:[%s1891_s0 + $0x30] ss:$8 sps:$4 sm:$0xff]   ;;  %v1450_v25 = vld [vmem:[%s1891_s0 + $0x44] ss:$8 sps:$4 sm:$0xff]  }
  0x6c   : > { %v1446_v22 = vld [vmem:[%s1891_s0 + $0x134] ss:$8 sps:$4 sm:$0xff]   ;;  %v1449_v24 = vld [vmem:[%s1891_s0 + $0x130] ss:$8 sps:$4 sm:$0xff]   ;;  %v1452_v26 = vld [vmem:[%s1891_s0 + $0x144] ss:$8 sps:$4 sm:$0xff]  }
  0x6d   : > { %971 = vmatpush1.bf16.msra.mxu1 %v1436_v15  ;;  %v1454_v27 = vld [vmem:[%s1891_s0 + $0x40] ss:$8 sps:$4 sm:$0xff]   ;;  %v1456_v29 = vld [vmem:[%s1891_s0 + $0x54] ss:$8 sps:$4 sm:$0xff]   ;;  %v1460_v31 = vld [vmem:[%s1891_s0 + $0x50] ss:$8 sps:$4 sm:$0xff]  }
  0x6e   : > { %1024 = vmatpush1.bf16.msra.mxu0 %v1437_v16  ;;  %972 = vmatprep.subr.bf16.mxu1 %v1438_v17  ;;  %v1455_v28 = vld [vmem:[%s1891_s0 + $0x140] ss:$8 sps:$4 sm:$0xff]   ;;  %v1458_v30 = vld [vmem:[%s1891_s0 + $0x154] ss:$8 sps:$4 sm:$0xff]   ;;  %v1461_v32 = vld [vmem:[%s1891_s0 + $0x150] ss:$8 sps:$4 sm:$0xff]  }
  0x6f   : > { %1025 = vmatprep.subr.bf16.mxu0 %v1440_v18  ;;  %v1462_v33 = vld [vmem:[%s1891_s0 + $0x64] ss:$8 sps:$4 sm:$0xff]   ;;  %v1466_v35 = vld [vmem:[%s1891_s0 + $0x60] ss:$8 sps:$4 sm:$0xff]   ;;  %v1468_v37 = vld [vmem:[%s1891_s0 + $0x74] ss:$8 sps:$4 sm:$0xff]  }
  0x70   : > { %v1464_v34 = vld [vmem:[%s1891_s0 + $0x164] ss:$8 sps:$4 sm:$0xff]   ;;  %v1467_v36 = vld [vmem:[%s1891_s0 + $0x160] ss:$8 sps:$4 sm:$0xff]   ;;  %v1470_v38 = vld [vmem:[%s1891_s0 + $0x174] ss:$8 sps:$4 sm:$0xff]  }
  0x71   : > { %973 = vmatpush1.bf16.msra.mxu1 %v1442_v19  ;;  %v1472_v39 = vld [vmem:[%s1891_s0 + $0x70] ss:$8 sps:$4 sm:$0xff]   ;;  %v1474_v41 = vld [vmem:[%s1891_s0 + $0x84] ss:$8 sps:$4 sm:$0xff]   ;;  %v1478_v43 = vld [vmem:[%s1891_s0 + $0x80] ss:$8 sps:$4 sm:$0xff]  }
  0x72   : > { %1026 = vmatpush1.bf16.msra.mxu0 %v1443_v20  ;;  %974 = vmatprep.subr.bf16.mxu1 %v1444_v21  ;;  %v1473_v40 = vld [vmem:[%s1891_s0 + $0x170] ss:$8 sps:$4 sm:$0xff]   ;;  %v1476_v42 = vld [vmem:[%s1891_s0 + $0x184] ss:$8 sps:$4 sm:$0xff]   ;;  %v1479_v44 = vld [vmem:[%s1891_s0 + $0x180] ss:$8 sps:$4 sm:$0xff]  }
  0x73   : > { %1027 = vmatprep.subr.bf16.mxu0 %v1446_v22  ;;  %v1480_v45 = vld [vmem:[%s1891_s0 + $0x94] ss:$8 sps:$4 sm:$0xff]   ;;  %v1484_v47 = vld [vmem:[%s1891_s0 + $0x90] ss:$8 sps:$4 sm:$0xff]   ;;  %v1486_v49 = vld [vmem:[%s1891_s0 + $0xa4] ss:$8 sps:$4 sm:$0xff]  }
  0x74   : > { %v1482_v46 = vld [vmem:[%s1891_s0 + $0x194] ss:$8 sps:$4 sm:$0xff]   ;;  %v1485_v48 = vld [vmem:[%s1891_s0 + $0x190] ss:$8 sps:$4 sm:$0xff]   ;;  %v1488_v50 = vld [vmem:[%s1891_s0 + $0x1a4] ss:$8 sps:$4 sm:$0xff]  }
  0x75   : > { %975 = vmatpush1.bf16.msra.mxu1 %v1448_v23  ;;  %v1490_v51 = vld [vmem:[%s1891_s0 + $0xa0] ss:$8 sps:$4 sm:$0xff]   ;;  %v1492_v53 = vld [vmem:[%s1891_s0 + $0xb4] ss:$8 sps:$4 sm:$0xff]   ;;  %v1496_v55 = vld [vmem:[%s1891_s0 + $0xb0] ss:$8 sps:$4 sm:$0xff]  }
  0x76   : > { %1028 = vmatpush1.bf16.msra.mxu0 %v1449_v24  ;;  %976 = vmatprep.subr.bf16.mxu1 %v1450_v25  ;;  %v1491_v52 = vld [vmem:[%s1891_s0 + $0x1a0] ss:$8 sps:$4 sm:$0xff]   ;;  %v1494_v54 = vld [vmem:[%s1891_s0 + $0x1b4] ss:$8 sps:$4 sm:$0xff]   ;;  %v1497_v56 = vld [vmem:[%s1891_s0 + $0x1b0] ss:$8 sps:$4 sm:$0xff]  }
  0x77   : > { %1029 = vmatprep.subr.bf16.mxu0 %v1452_v26  ;;  %v1498_v57 = vld [vmem:[%s1891_s0 + $0xc4] ss:$8 sps:$4 sm:$0xff]   ;;  %v1502_v61 = vld [vmem:[%s1891_s0 + $0xc0] ss:$8 sps:$4 sm:$0xff]   ;;  %v1504_v63 = vld [vmem:[%s1891_s0 + $0xd4] ss:$8 sps:$4 sm:$0xff]  }
  0x78   : > { %v1524_v58 = vld [vmem:[%s1889_s8 + $0x4] ss:$16 sps:$4 sm:$0xff]   ;;  %v1527_v60 = vld [vmem:[%s1889_s8 + $0xc] ss:$16 sps:$4 sm:$0xff]   ;;  %v1503_v62 = vld [vmem:[%s1891_s0 + $0x1c0] ss:$8 sps:$4 sm:$0xff]  }
  0x79   : > { %977 = vmatpush1.bf16.msra.mxu1 %v1454_v27  ;;  %v1500_v59 = vld [vmem:[%s1891_s0 + $0x1c4] ss:$8 sps:$4 sm:$0xff]   ;;  %1000 = vmatprep.mubr.bf16.mxu1 %v1524_v58  ;;  %v1506_v0 = vld [vmem:[%s1891_s0 + $0x1d4] ss:$8 sps:$4 sm:$0xff]   ;;  %v1508_v1 = vld [vmem:[%s1891_s0 + $0xd0] ss:$8 sps:$4 sm:$0xff]  }
  0x7a   : > { %1030 = vmatpush1.bf16.msra.mxu0 %v1455_v28  ;;  %978 = vmatprep.subr.bf16.mxu1 %v1456_v29  ;;  %v1509_v2 = vld [vmem:[%s1891_s0 + $0x1d0] ss:$8 sps:$4 sm:$0xff]   ;;  %v1510_v3 = vld [vmem:[%s1891_s0 + $0xe4] ss:$8 sps:$4 sm:$0xff]   ;;  %v1514_v5 = vld [vmem:[%s1891_s0 + $0xe0] ss:$8 sps:$4 sm:$0xff]  }
  0x7b   : > { %1031 = vmatprep.subr.bf16.mxu0 %v1458_v30  ;;  %1053 = vmatprep.mubr.bf16.mxu0 %v1527_v60  ;;  %v1512_v4 = vld [vmem:[%s1891_s0 + $0x1e4] ss:$8 sps:$4 sm:$0xff]   ;;  %v1515_v6 = vld [vmem:[%s1891_s0 + $0x1e0] ss:$8 sps:$4 sm:$0xff]   ;;  %v1516_v7 = vld [vmem:[%s1891_s0 + $0xf4] ss:$8 sps:$4 sm:$0xff]  }
  0x7c   : > { %v1518_v8 = vld [vmem:[%s1891_s0 + $0x1f4] ss:$8 sps:$4 sm:$0xff]   ;;  %v1520_v9 = vld [vmem:[%s1891_s0 + $0xf0] ss:$8 sps:$4 sm:$0xff]   ;;  %v528_v18 = vld [vmem:[%s1893_s23] sm:$0xff]  ;;  %s1328_s9 = sshll.u32 (%p1732_p12), %s1608_s16, 4 }
  0x7d   : > { %979 = vmatpush1.bf16.msra.mxu1 %v1460_v31  ;;  %v1521_v10 = vld [vmem:[%s1891_s0 + $0x1f0] ss:$8 sps:$4 sm:$0xff]   ;;  %v1528_v13 = vld [vmem:[%s1889_s8 + $0x24] ss:$16 sps:$4 sm:$0xff]   ;;  %v1530_v14 = vld [vmem:[%s1889_s8 + $0x2c] ss:$16 sps:$4 sm:$0xff]   ;;  %s1102_s15 = scalar_lea.vmem (%p1732_p12), %s2041_s2, %s1328_s9 }
  0x7e   : > { %1032 = vmatpush1.bf16.msra.mxu0 %v1461_v32  ;;  %980 = vmatprep.subr.bf16.mxu1 %v1462_v33  ;;  %v1522_v11 = vld [vmem:[%s1889_s8] ss:$16 sps:$4 sm:$0xff]   ;;  %v1525_v12 = vld [vmem:[%s1889_s8 + $0x8] ss:$16 sps:$4 sm:$0xff]  }
  0x7f   : > { %1033 = vmatprep.subr.bf16.mxu0 %v1464_v34  ;;  %v1532_v15 = vld [vmem:[%s1889_s8 + $0x20] ss:$16 sps:$4 sm:$0xff]   ;;  %v1533_v16 = vld [vmem:[%s1889_s8 + $0x28] ss:$16 sps:$4 sm:$0xff]  }
  0x80   : > { %v529_v22 = vld [vmem:[%s1893_s23 + $0x8] sm:$0xff]  ;;  %v530_v26 = vld [vmem:[%s1893_s23 + $0x10] sm:$0xff]  ;;  %v531_v31 = vld [vmem:[%s1893_s23 + $0x18] sm:$0xff] }
  0x81   : > { %981 = vmatpush1.bf16.msra.mxu1 %v1466_v35 }
  0x82   : > { %1034 = vmatpush1.bf16.msra.mxu0 %v1467_v36  ;;  %982 = vmatprep.subr.bf16.mxu1 %v1468_v37 }
  0x83   : > { %1035 = vmatprep.subr.bf16.mxu0 %v1470_v38  ;;  %v532_v38 = vld [vmem:[%s1893_s23 + $0x20] sm:$0xff] }
  0x85   : > { %983 = vmatpush1.bf16.msra.mxu1 %v1472_v39 }
  0x86   : > { %1036 = vmatpush1.bf16.msra.mxu0 %v1473_v40  ;;  %984 = vmatprep.subr.bf16.mxu1 %v1474_v41 }
  0x87   : > { %1037 = vmatprep.subr.bf16.mxu0 %v1476_v42  ;;  %v533_v42 = vld [vmem:[%s1893_s23 + $0x28] sm:$0xff] }
  0x89   : > { %985 = vmatpush1.bf16.msra.mxu1 %v1478_v43 }
  0x8a   : > { %1038 = vmatpush1.bf16.msra.mxu0 %v1479_v44  ;;  %986 = vmatprep.subr.bf16.mxu1 %v1480_v45 }
  0x8b   : > { %1039 = vmatprep.subr.bf16.mxu0 %v1482_v46  ;;  %v534_v46 = vld [vmem:[%s1893_s23 + $0x30] sm:$0xff] }
  0x8d   : > { %987 = vmatpush1.bf16.msra.mxu1 %v1484_v47 }
  0x8e   : > { %1040 = vmatpush1.bf16.msra.mxu0 %v1485_v48  ;;  %988 = vmatprep.subr.bf16.mxu1 %v1486_v49 }
  0x8f   : > { %1041 = vmatprep.subr.bf16.mxu0 %v1488_v50 }
  0x91   : > { %989 = vmatpush1.bf16.msra.mxu1 %v1490_v51  ;;  %v535_v51 = vld [vmem:[%s1893_s23 + $0x38] sm:$0xff] }
  0x92   : > { %1042 = vmatpush1.bf16.msra.mxu0 %v1491_v52  ;;  %990 = vmatprep.subr.bf16.mxu1 %v1492_v53 }
  0x93   : > { %1043 = vmatprep.subr.bf16.mxu0 %v1494_v54 }
  0x95   : > { %991 = vmatpush1.bf16.msra.mxu1 %v1496_v55 }
  0x96   : > { %1044 = vmatpush1.bf16.msra.mxu0 %v1497_v56  ;;  %992 = vmatprep.subr.bf16.mxu1 %v1498_v57 }
  0x97   : > { %1045 = vmatprep.subr.bf16.mxu0 %v1500_v59 }
  0x99   : > { %993 = vmatpush1.bf16.msra.mxu1 %v1502_v61 }
  0x9a   : > { %1046 = vmatpush1.bf16.msra.mxu0 %v1503_v62  ;;  %994 = vmatprep.subr.bf16.mxu1 %v1504_v63 }
  0x9b   : > { %1047 = vmatprep.subr.bf16.mxu0 %v1506_v0 }
  0x9d   : > { %995 = vmatpush1.bf16.msra.mxu1 %v1508_v1 }
  0x9e   : > { %1048 = vmatpush1.bf16.msra.mxu0 %v1509_v2  ;;  %996 = vmatprep.subr.bf16.mxu1 %v1510_v3 }
  0x9f   : > { %1049 = vmatprep.subr.bf16.mxu0 %v1512_v4 }
  0xa1   : > { %997 = vmatpush1.bf16.msra.mxu1 %v1514_v5 }
  0xa2   : > { %1050 = vmatpush1.bf16.msra.mxu0 %v1515_v6  ;;  %998 = vmatprep.subr.bf16.mxu1 %v1516_v7 }
  0xa3   : > { %1051 = vmatprep.subr.bf16.mxu0 %v1518_v8 }
  0xa5   : > { %999 = vmatpush1.bf16.msra.mxu1 %v1520_v9 }
  0xa6   : > { %1052 = vmatpush1.bf16.msra.mxu0 %v1521_v10 }
  0xa8   : > { %1001 = vmatmul.mubr.bf16.vlgmr.msra.gmra.mrb[0].mxu1 %v1522_v11 }
  0xa9   : > { %1054 = vmatmul.mubr.bf16.vlgmr.msra.gmra.mrb[0].mxu0 %v1525_v12  ;;  %1010 = vmatprep.mubr.bf16.mxu1 %v1528_v13 }
  0xaa   : > { %1063 = vmatprep.mubr.bf16.mxu0 %v1530_v14 }
  0xb0   : > { %1011 = vmatmul.mubr.bf16.gmra.mrb[4].mxu1 %v1532_v15 }
  0xb1   : > { %1064 = vmatmul.mubr.bf16.gmra.mrb[4].mxu0 %v1533_v16 }
 0x17b   : > { %v1002_v17 = vpop.f32.mrb[0].mxu1 }
 0x17c   : > { %v1055_v19 = vpop.f32.mrb[0].mxu0  ;;  %v1004_v21 = vpop.f32.mrb[1].mxu1 }
 0x17d   : > { %v1056_v20 = vadd.f32 %v1055_v19, %v1002_v17  ;;  %v1057_v23 = vpop.f32.mrb[1].mxu0  ;;  %v1006_v25 = vpop.f32.mrb[2].mxu1 }
 0x17e   : > { %v1058_v24 = vadd.f32 %v1057_v23, %v1004_v21  ;;  %v1059_v27 = vpop.f32.mrb[2].mxu0  ;;  %v1008_v30 = vpop.f32.mrb[3].mxu1 }
 0x17f   : > { %v1074_v28 = vadd.f32 %v1056_v20, %v528_v18  ;;  %v1060_v29 = vadd.f32 %v1059_v27, %v1006_v25  ;;  %v1061_v32 = vpop.f32.mrb[3].mxu0 }
 0x180   : > { %v1075_v33 = vadd.f32 %v1058_v24, %v529_v22  ;;  %v1062_v34 = vadd.f32 %v1061_v32, %v1008_v30 }
 0x181   : > { %1082 = vst [vmem:[%s1893_s23] sm:$0xff] %v1074_v28  ;;  %v1076_v35 = vadd.f32 %v1060_v29, %v530_v26 }
 0x182   : > { %1083 = vst [vmem:[%s1893_s23 + $0x8] sm:$0xff] %v1075_v33  ;;  %v1077_v36 = vadd.f32 %v1062_v34, %v531_v31 }
 0x183   : > { %1084 = vst [vmem:[%s1893_s23 + $0x10] sm:$0xff] %v1076_v35  ;;  %v1012_v37 = vpop.f32.mrb[4].mxu1 }
 0x184   : > { %1085 = vst [vmem:[%s1893_s23 + $0x18] sm:$0xff] %v1077_v36  ;;  %v1065_v39 = vpop.f32.mrb[4].mxu0  ;;  %v1014_v41 = vpop.f32.mrb[5].mxu1 }
 0x185   : > { %v1066_v40 = vadd.f32 %v1065_v39, %v1012_v37  ;;  %v1067_v43 = vpop.f32.mrb[5].mxu0  ;;  %v1016_v45 = vpop.f32.mrb[6].mxu1 }
 0x186   : > { %v1068_v44 = vadd.f32 %v1067_v43, %v1014_v41  ;;  %v1069_v47 = vpop.f32.mrb[6].mxu0  ;;  %v1018_v50 = vpop.f32.mrb[7].mxu1  ;;  %1096 = sbr.rel (!%p1732_p12) target bundleno = 405 (0x195), region = 97 }
 0x187   : > { %v1078_v48 = vadd.f32 %v1066_v40, %v532_v38  ;;  %v1070_v49 = vadd.f32 %v1069_v47, %v1016_v45  ;;  %v1071_v52 = vpop.f32.mrb[7].mxu0 }
 0x188   : > { %v1079_v53 = vadd.f32 %v1068_v44, %v533_v42  ;;  %v1072_v54 = vadd.f32 %v1071_v52, %v1018_v50  ;;  %v1115_v57 = vld [vmem:[%s1893_s23] sm:$0xff] (%p1732_p12) }
 0x189   : > { %1086 = vst [vmem:[%s1893_s23 + $0x20] sm:$0xff] %v1078_v48  ;;  %v1080_v55 = vadd.f32 %v1070_v49, %v534_v46  ;;  %v1117_v58 = vld [vmem:[%s1893_s23 + $0x8] sm:$0xff] (%p1732_p12)  ;;  %1116 = vst [vmem:[%s1102_s15] sm:$0xff] (%p1732_p12), %v1115_v57 }
 0x18a   : > { %1087 = vst [vmem:[%s1893_s23 + $0x28] sm:$0xff] %v1079_v53  ;;  %v1081_v56 = vadd.f32 %v1072_v54, %v535_v51  ;;  %v1119_v59 = vld [vmem:[%s1893_s23 + $0x10] sm:$0xff] (%p1732_p12)  ;;  %1118 = vst [vmem:[%s1102_s15 + $0x8] sm:$0xff] (%p1732_p12), %v1117_v58 }
 0x18b   : > { %1088 = vst [vmem:[%s1893_s23 + $0x30] sm:$0xff] %v1080_v55  ;;  %v1121_v60 = vld [vmem:[%s1893_s23 + $0x18] sm:$0xff] (%p1732_p12)  ;;  %1120 = vst [vmem:[%s1102_s15 + $0x20] sm:$0xff] (%p1732_p12), %v1119_v59 }
 0x18c   : > { %1089 = vst [vmem:[%s1893_s23 + $0x38] sm:$0xff] %v1081_v56  ;;  %1122 = vst [vmem:[%s1102_s15 + $0x28] sm:$0xff] (%p1732_p12), %v1121_v60 }
 0x190   : > { %v1123_v61 = vld [vmem:[%s1893_s23 + $0x20] sm:$0xff] }
 0x191   : > { %v1125_v62 = vld [vmem:[%s1893_s23 + $0x28] sm:$0xff]  ;;  %1124 = vst [vmem:[%s1102_s15 + $0x40] sm:$0xff] %v1123_v61 }
 0x192   : > { %1126 = vst [vmem:[%s1102_s15 + $0x48] sm:$0xff] %v1125_v62  ;;  %v1127_v63 = vld [vmem:[%s1893_s23 + $0x30] sm:$0xff] }
 0x193   : > { %v1129_v0 = vld [vmem:[%s1893_s23 + $0x38] sm:$0xff]  ;;  %1128 = vst [vmem:[%s1102_s15 + $0x60] sm:$0xff] %v1127_v63 }
 0x194   : > { %1130 = vst [vmem:[%s1102_s15 + $0x68] sm:$0xff] %v1129_v0 }
 0x195 PF: > { %s12_s19 = sadd.s32 1, %s1620_s19   ;;  %s2047_s9 = smov %s1584_s10 }
 0x196   : > { %p9_p4 = scmp.ge.s32.totalorder %s12_s19, 56   ;;  %s2048_s10 = smov %s1730_s5 }
 0x197   : > { %s2049_s11 = smov %s1592_s12  ;;  %s2050_s12 = smov %s1727_s4 }
 0x198   : > { %s2051_s13 = smov %s1600_s14  ;;  %s2052_s14 = smov %s1713_s27 }
 0x199   : > { %s2053_s15 = smov %s1612_s17  ;;  %s2054_s16 = smov %s1616_s18 }
 0x19a   : > { %s2055_s17 = smov %s2058_s21  ;;  %s2056_s18 = smov %s2062_s22 }
 0x19b   :  { %11 = sbr.rel (!%p9_p4) target bundleno = 8 (0x8), region = 159 }

// kernel: res3d_forward.113
= control target key start
LH: loop header
LB: loop body
LE: loop exit
PB: predicated region body
PF: predicated region fallthrough
CT: control target
= control target key end

     0   :  { %v35_v0 = vlaneseq  ;;  %s400_s1 = inlined_call_operand.vmem [shape: f32[1,512], index: 1, kind: input, shape index: {}]   ;;  %s401_s2 = inlined_call_operand.vmem [shape: f32[1,512], index: 2, kind: input, shape index: {}]   ;;  %s402_s0 = inlined_call_operand.vmem [shape: f32[32,512], index: 0, kind: input, shape index: {}]   ;;  %s403_s3 = inlined_call_operand.vmem [shape: f32[32,512], index: 3, kind: input, shape index: {}]   ;;  %s404_s4 = inlined_call_operand.vmem [shape: f32[32,512], index: 4, kind: output, shape index: {}]  }
   0x1   :  { %v33_v2 = vld [vmem:[%s400_s1] sm:$0xf]  ;;  %v18_v6 = vld [vmem:[%s402_s0 + $0x8] sm:$0xff]  ;;  %v19_v10 = vld [vmem:[%s402_s0 + $0x10] sm:$0xff] }
   0x2   :  { %v36_v1 = vshrl.u32 %v35_v0, 7  ;;  %v71_v3 = vld [vmem:[%s401_s2] sm:$0xf]  ;;  %v22_v12 = vld [vmem:[%s402_s0 + $0x28] sm:$0xff]  ;;  %v20_v17 = vld [vmem:[%s402_s0 + $0x18] sm:$0xff] }
   0x3   :  { %v17_v4 = vld [vmem:[%s402_s0] sm:$0xff]  ;;  %v23_v18 = vld [vmem:[%s402_s0 + $0x30] sm:$0xff]  ;;  %v24_v19 = vld [vmem:[%s402_s0 + $0x38] sm:$0xff] }
   0x4   :  { %v37_v5 = vsub.s32 0, %v36_v1  ;;  %v41_v7 = vsub.s32 1, %v36_v1  ;;  %v45_v8 = vsub.s32 2, %v36_v1  ;;  %v49_v9 = vsub.s32 3, %v36_v1  ;;  %v21_v11 = vld [vmem:[%s402_s0 + $0x20] sm:$0xff]  ;;  %v110_v27 = vld [vmem:[%s403_s3 + $0x8] sm:$0xff] }
   0x5   :  { %v109_v25 = vld [vmem:[%s403_s3] sm:$0xff]  ;;  %v111_v31 = vld [vmem:[%s403_s3 + $0x10] sm:$0xff]  ;;  %v114_v34 = vld [vmem:[%s403_s3 + $0x28] sm:$0xff] }
   0x6   :  { %v223_v13 = vrot.slane %v33_v2, %v37_v5  ;;  %v225_v14 = vrot.slane %v71_v3, %v37_v5  ;;  %v227_v15 = vrot.slane %v33_v2, %v41_v7  ;;  %v229_v16 = vrot.slane %v71_v3, %v41_v7  ;;  %v113_v33 = vld [vmem:[%s403_s3 + $0x20] sm:$0xff]  ;;  %v112_v39 = vld [vmem:[%s403_s3 + $0x18] sm:$0xff]  ;;  %v115_v42 = vld [vmem:[%s403_s3 + $0x30] sm:$0xff] }
   0x7   :  { %v240_v20 = vrot.slane %v33_v2, %v45_v8  ;;  %v242_v21 = vrot.slane %v71_v3, %v45_v8  ;;  %v244_v22 = vrot.slane %v33_v2, %v49_v9  ;;  %v246_v23 = vrot.slane %v71_v3, %v49_v9  ;;  %v116_v43 = vld [vmem:[%s403_s3 + $0x38] sm:$0xff]  ;;  %v25_v52 = vld [vmem:[%s402_s0 + $0x40] sm:$0xff]  ;;  %v26_v53 = vld [vmem:[%s402_s0 + $0x48] sm:$0xff] }
   0x8   :  { %v55_v24 = vmul.f32 %v223_v13, %v17_v4  ;;  %v56_v26 = vmul.f32 %v227_v15, %v18_v6  ;;  %v59_v28 = vmul.f32 %v223_v13, %v21_v11  ;;  %v60_v29 = vmul.f32 %v227_v15, %v22_v12  ;;  %v27_v54 = vld [vmem:[%s402_s0 + $0x50] sm:$0xff]  ;;  %v28_v59 = vld [vmem:[%s402_s0 + $0x58] sm:$0xff]  ;;  %v29_v60 = vld [vmem:[%s402_s0 + $0x60] sm:$0xff] }
   0x9   :  { %v57_v30 = vmul.f32 %v240_v20, %v19_v10  ;;  %v58_v32 = vmul.f32 %v244_v22, %v20_v17  ;;  %v61_v35 = vmul.f32 %v240_v20, %v23_v18  ;;  %v62_v36 = vmul.f32 %v244_v22, %v24_v19  ;;  %v30_v61 = vld [vmem:[%s402_s0 + $0x68] sm:$0xff]  ;;  %v31_v2 = vld [vmem:[%s402_s0 + $0x70] sm:$0xff]  ;;  %v32_v3 = vld [vmem:[%s402_s0 + $0x78] sm:$0xff] }
   0xa   :  { %v93_v37 = vadd.f32 %v225_v14, %v55_v24  ;;  %v94_v38 = vadd.f32 %v229_v16, %v56_v26  ;;  %v97_v40 = vadd.f32 %v225_v14, %v59_v28  ;;  %v98_v41 = vadd.f32 %v229_v16, %v60_v29  ;;  %v117_v9 = vld [vmem:[%s403_s3 + $0x40] sm:$0xff]  ;;  %v118_v11 = vld [vmem:[%s403_s3 + $0x48] sm:$0xff]  ;;  %v119_v18 = vld [vmem:[%s403_s3 + $0x50] sm:$0xff] }
   0xb   :  { %v95_v44 = vadd.f32 %v242_v21, %v57_v30  ;;  %v96_v45 = vadd.f32 %v246_v23, %v58_v32  ;;  %v99_v46 = vadd.f32 %v242_v21, %v61_v35  ;;  %v100_v47 = vadd.f32 %v246_v23, %v62_v36  ;;  %v120_v19 = vld [vmem:[%s403_s3 + $0x58] sm:$0xff] }
   0xc   :  { %v125_v48 = vadd.f32 %v109_v25, %v93_v37  ;;  %v126_v49 = vadd.f32 %v110_v27, %v94_v38  ;;  %v129_v50 = vadd.f32 %v113_v33, %v97_v40  ;;  %v130_v51 = vadd.f32 %v114_v34, %v98_v41  ;;  %v121_v25 = vld [vmem:[%s403_s3 + $0x60] sm:$0xff] }
   0xd   :  { %v127_v55 = vadd.f32 %v111_v31, %v95_v44  ;;  %v128_v56 = vadd.f32 %v112_v39, %v96_v45  ;;  %v131_v57 = vadd.f32 %v115_v42, %v99_v46  ;;  %v132_v58 = vadd.f32 %v116_v43, %v100_v47 }
   0xe   :  { %v141_v62 = vmax.f32 %v125_v48, 0.0  ;;  %v142_v63 = vmax.f32 %v126_v49, 0.0  ;;  %v145_v0 = vmax.f32 %v129_v50, 0.0  ;;  %v146_v1 = vmax.f32 %v130_v51, 0.0 }
   0xf   :  { %v143_v4 = vmax.f32 %v127_v55, 0.0  ;;  %v144_v5 = vmax.f32 %v128_v56, 0.0  ;;  %v147_v6 = vmax.f32 %v131_v57, 0.0  ;;  %v148_v7 = vmax.f32 %v132_v58, 0.0 }
  0x10   :  { %157 = vst [vmem:[%s404_s4] sm:$0xff] %v141_v62  ;;  %158 = vst [vmem:[%s404_s4 + $0x8] sm:$0xff] %v142_v63  ;;  %v63_v8 = vmul.f32 %v223_v13, %v25_v52  ;;  %v64_v10 = vmul.f32 %v227_v15, %v26_v53  ;;  %v65_v12 = vmul.f32 %v240_v20, %v27_v54 }
  0x11   :  { %161 = vst [vmem:[%s404_s4 + $0x20] sm:$0xff] %v145_v0  ;;  %162 = vst [vmem:[%s404_s4 + $0x28] sm:$0xff] %v146_v1  ;;  %v66_v17 = vmul.f32 %v244_v22, %v28_v59  ;;  %v67_v24 = vmul.f32 %v223_v13, %v29_v60  ;;  %v68_v26 = vmul.f32 %v227_v15, %v30_v61  ;;  %v122_v13 = vld [vmem:[%s403_s3 + $0x68] sm:$0xff]  ;;  %v123_v15 = vld [vmem:[%s403_s3 + $0x70] sm:$0xff] }
  0x12   :  { %159 = vst [vmem:[%s404_s4 + $0x10] sm:$0xff] %v143_v4  ;;  %160 = vst [vmem:[%s404_s4 + $0x18] sm:$0xff] %v144_v5  ;;  %v69_v27 = vmul.f32 %v240_v20, %v31_v2  ;;  %v70_v28 = vmul.f32 %v244_v22, %v32_v3  ;;  %v101_v29 = vadd.f32 %v225_v14, %v63_v8  ;;  %v124_v20 = vld [vmem:[%s403_s3 + $0x78] sm:$0xff] }
  0x13   :  { %163 = vst [vmem:[%s404_s4 + $0x30] sm:$0xff] %v147_v6  ;;  %164 = vst [vmem:[%s404_s4 + $0x38] sm:$0xff] %v148_v7  ;;  %v102_v30 = vadd.f32 %v229_v16, %v64_v10  ;;  %v103_v31 = vadd.f32 %v242_v21, %v65_v12  ;;  %v104_v32 = vadd.f32 %v246_v23, %v66_v17 }
  0x14   :  { %v105_v22 = vadd.f32 %v225_v14, %v67_v24  ;;  %v106_v33 = vadd.f32 %v229_v16, %v68_v26  ;;  %v107_v34 = vadd.f32 %v242_v21, %v69_v27  ;;  %v108_v35 = vadd.f32 %v246_v23, %v70_v28 }
  0x15   :  { %v133_v36 = vadd.f32 %v117_v9, %v101_v29  ;;  %v134_v37 = vadd.f32 %v118_v11, %v102_v30  ;;  %v135_v38 = vadd.f32 %v119_v18, %v103_v31  ;;  %v136_v39 = vadd.f32 %v120_v19, %v104_v32 }
  0x16   :  { %v137_v40 = vadd.f32 %v121_v25, %v105_v22  ;;  %v138_v41 = vadd.f32 %v122_v13, %v106_v33  ;;  %v139_v42 = vadd.f32 %v123_v15, %v107_v34  ;;  %v140_v43 = vadd.f32 %v124_v20, %v108_v35 }
  0x17   :  { %v149_v44 = vmax.f32 %v133_v36, 0.0  ;;  %v150_v45 = vmax.f32 %v134_v37, 0.0  ;;  %v151_v46 = vmax.f32 %v135_v38, 0.0  ;;  %v152_v47 = vmax.f32 %v136_v39, 0.0 }
  0x18   :  { %v153_v48 = vmax.f32 %v137_v40, 0.0  ;;  %v154_v14 = vmax.f32 %v138_v41, 0.0  ;;  %v155_v49 = vmax.f32 %v139_v42, 0.0  ;;  %v156_v16 = vmax.f32 %v140_v43, 0.0 }
  0x19   :  { %165 = vst [vmem:[%s404_s4 + $0x40] sm:$0xff] %v149_v44  ;;  %166 = vst [vmem:[%s404_s4 + $0x48] sm:$0xff] %v150_v45 }
  0x1a   :  { %167 = vst [vmem:[%s404_s4 + $0x50] sm:$0xff] %v151_v46  ;;  %168 = vst [vmem:[%s404_s4 + $0x58] sm:$0xff] %v152_v47 }
  0x1b   :  { %169 = vst [vmem:[%s404_s4 + $0x60] sm:$0xff] %v153_v48  ;;  %170 = vst [vmem:[%s404_s4 + $0x68] sm:$0xff] %v154_v14 }
  0x1c   :  { %171 = vst [vmem:[%s404_s4 + $0x70] sm:$0xff] %v155_v49  ;;  %172 = vst [vmem:[%s404_s4 + $0x78] sm:$0xff] %v156_v16 }

// kernel: res3d_forward.120
= control target key start
LH: loop header
LB: loop body
LE: loop exit
PB: predicated region body
PF: predicated region fallthrough
CT: control target
= control target key end

     0   :  { %s631_s1 = inlined_call_operand.vmem [shape: bf16[512,128], index: 1, kind: input, shape index: {}]   ;;  %s632_s0 = inlined_call_operand.vmem [shape: bf16[8,512], index: 0, kind: input, shape index: {}]   ;;  %s633_s2 = inlined_call_operand.vmem [shape: f32[1,128], index: 2, kind: input, shape index: {}]   ;;  %s634_s3 = inlined_call_operand.vmem [shape: f32[8,128], index: 3, kind: output, shape index: {}]  }
   0x1   :  { %v467_v0 = vld [vmem:[%s631_s1 + $0x40] sm:$0xff]   ;;  %v471_v4 = vld [vmem:[%s631_s1 + $0x48] sm:$0xff]   ;;  %v475_v8 = vld [vmem:[%s631_s1 + $0x50] sm:$0xff]  }
   0x2   :  { %v468_v1 = vld [vmem:[%s631_s1 + $0xc0] sm:$0xff]   ;;  %423 = vmatprep.subr.bf16.mxu0 %v467_v0  ;;  %v472_v5 = vld [vmem:[%s631_s1 + $0xc8] sm:$0xff]   ;;  %v476_v9 = vld [vmem:[%s631_s1 + $0xd0] sm:$0xff]  }
   0x3   :  { %v469_v2 = vld [vmem:[%s631_s1] sm:$0xff]   ;;  %445 = vmatprep.subr.bf16.mxu1 %v468_v1  ;;  %v473_v6 = vld [vmem:[%s631_s1 + $0x8] sm:$0xff]   ;;  %v477_v10 = vld [vmem:[%s631_s1 + $0x10] sm:$0xff]  }
   0x4   :  { %v470_v3 = vld [vmem:[%s631_s1 + $0x80] sm:$0xff]   ;;  %424 = vmatpush3.bf16.msra.mxu0 %v469_v2  ;;  %v474_v7 = vld [vmem:[%s631_s1 + $0x88] sm:$0xff]   ;;  %v478_v11 = vld [vmem:[%s631_s1 + $0x90] sm:$0xff]  }
   0x5   :  { %446 = vmatpush3.bf16.msra.mxu1 %v470_v3  ;;  %425 = vmatprep.subr.bf16.mxu0 %v471_v4  ;;  %v479_v12 = vld [vmem:[%s631_s1 + $0x58] sm:$0xff]   ;;  %v483_v16 = vld [vmem:[%s631_s1 + $0x60] sm:$0xff]   ;;  %v487_v20 = vld [vmem:[%s631_s1 + $0x68] sm:$0xff]  }
   0x6   :  { %447 = vmatprep.subr.bf16.mxu1 %v472_v5  ;;  %v480_v13 = vld [vmem:[%s631_s1 + $0xd8] sm:$0xff]   ;;  %v484_v17 = vld [vmem:[%s631_s1 + $0xe0] sm:$0xff]   ;;  %v488_v21 = vld [vmem:[%s631_s1 + $0xe8] sm:$0xff]  }
   0x7   :  { %v481_v14 = vld [vmem:[%s631_s1 + $0x18] sm:$0xff]   ;;  %v485_v18 = vld [vmem:[%s631_s1 + $0x20] sm:$0xff]   ;;  %v489_v22 = vld [vmem:[%s631_s1 + $0x28] sm:$0xff]  }
   0x8   :  { %426 = vmatpush3.bf16.msra.mxu0 %v473_v6  ;;  %v482_v15 = vld [vmem:[%s631_s1 + $0x98] sm:$0xff]   ;;  %v486_v19 = vld [vmem:[%s631_s1 + $0xa0] sm:$0xff]   ;;  %v490_v23 = vld [vmem:[%s631_s1 + $0xa8] sm:$0xff]  }
   0x9   :  { %448 = vmatpush3.bf16.msra.mxu1 %v474_v7  ;;  %427 = vmatprep.subr.bf16.mxu0 %v475_v8  ;;  %v491_v24 = vld [vmem:[%s631_s1 + $0x70] sm:$0xff]   ;;  %v495_v28 = vld [vmem:[%s631_s1 + $0x78] sm:$0xff]   ;;  %v28_v32 = vld [vmem:[%s632_s0] sm:$0xff] }
   0xa   :  { %449 = vmatprep.subr.bf16.mxu1 %v476_v9  ;;  %v492_v25 = vld [vmem:[%s631_s1 + $0xf0] sm:$0xff]   ;;  %v496_v29 = vld [vmem:[%s631_s1 + $0xf8] sm:$0xff]   ;;  %v29_v33 = vld [vmem:[%s632_s0 + $0x8] sm:$0xff]  ;;  %v387_v34 = vcombine.low %v28_v32, %v28_v32  ;;  %v388_v35 = vcombine.high %v28_v32, %v28_v32 }
   0xb   :  { %v493_v26 = vld [vmem:[%s631_s1 + $0x30] sm:$0xff]   ;;  %v497_v30 = vld [vmem:[%s631_s1 + $0x38] sm:$0xff]   ;;  %v389_v36 = vcombine.low %v29_v33, %v29_v33  ;;  %v390_v37 = vcombine.high %v29_v33, %v29_v33  ;;  %v386_v46 = vld [vmem:[%s633_s2] ss:$0 sm:$0xff] }
   0xc   :  { %428 = vmatpush3.bf16.msra.mxu0 %v477_v10  ;;  %v494_v27 = vld [vmem:[%s631_s1 + $0xb0] sm:$0xff]   ;;  %v498_v31 = vld [vmem:[%s631_s1 + $0xb8] sm:$0xff]   ;;  %332 = vmatprep.mubr.bf16.mxu0 %v388_v35 }
   0xd   :  { %450 = vmatpush3.bf16.msra.mxu1 %v478_v11  ;;  %429 = vmatprep.subr.bf16.mxu0 %v479_v12 }
   0xe   :  { %451 = vmatprep.subr.bf16.mxu1 %v480_v13  ;;  %372 = vmatprep.mubr.bf16.mxu1 %v390_v37 }
  0x10   :  { %430 = vmatpush3.bf16.msra.mxu0 %v481_v14 }
  0x11   :  { %452 = vmatpush3.bf16.msra.mxu1 %v482_v15  ;;  %431 = vmatprep.subr.bf16.mxu0 %v483_v16 }
  0x12   :  { %453 = vmatprep.subr.bf16.mxu1 %v484_v17 }
  0x14   :  { %432 = vmatpush3.bf16.msra.mxu0 %v485_v18 }
  0x15   :  { %454 = vmatpush3.bf16.msra.mxu1 %v486_v19  ;;  %433 = vmatprep.subr.bf16.mxu0 %v487_v20 }
  0x16   :  { %455 = vmatprep.subr.bf16.mxu1 %v488_v21 }
  0x18   :  { %434 = vmatpush3.bf16.msra.mxu0 %v489_v22 }
  0x19   :  { %456 = vmatpush3.bf16.msra.mxu1 %v490_v23  ;;  %435 = vmatprep.subr.bf16.mxu0 %v491_v24 }
  0x1a   :  { %457 = vmatprep.subr.bf16.mxu1 %v492_v25 }
  0x1c   :  { %436 = vmatpush3.bf16.msra.mxu0 %v493_v26 }
  0x1d   :  { %458 = vmatpush3.bf16.msra.mxu1 %v494_v27  ;;  %437 = vmatprep.subr.bf16.mxu0 %v495_v28 }
  0x1e   :  { %459 = vmatprep.subr.bf16.mxu1 %v496_v29 }
  0x20   :  { %438 = vmatpush3.bf16.msra.mxu0 %v497_v30 }
  0x21   :  { %460 = vmatpush3.bf16.msra.mxu1 %v498_v31 }
  0x23   :  { %333 = vmatmul.mubr.bf16.vlgmr.msra.gmra.mrb[0].mxu0 %v387_v34 }
  0x24   :  { %373 = vmatmul.mubr.bf16.vlgmr.msra.gmra.mrb[0].mxu1 %v389_v36 }
  0xf6   :  { %v439_v38 = vpop.f32.mrb[0].mxu0 }
  0xf7   :  { %v461_v39 = vpop.f32.mrb[0].mxu1  ;;  %v440_v40 = vpop.f32.mrb[1].mxu0 }
  0xf8   :  { %v462_v41 = vpop.f32.mrb[1].mxu1  ;;  %v441_v42 = vadd.f32 %v440_v40, %v439_v38  ;;  %v442_v44 = vpop.f32.mrb[2].mxu0 }
  0xf9   :  { %v463_v43 = vadd.f32 %v462_v41, %v461_v39  ;;  %v464_v45 = vpop.f32.mrb[2].mxu1  ;;  %v443_v47 = vpop.f32.mrb[3].mxu0 }
  0xfa   :  { %v465_v48 = vpop.f32.mrb[3].mxu1 }
  0xfb   :  { %v375_v49 = vadd.f32 %v463_v43, %v441_v42 }
  0xfd   :  { %v380_v50 = vadd.f32 %v386_v46, %v375_v49 }
  0xff   :  { %381 = vst [vmem:[%s634_s3] sm:$0xff] %v380_v50 }

// kernel: res3d_forward.121
= control target key start
LH: loop header
LB: loop body
LE: loop exit
PB: predicated region body
PF: predicated region fallthrough
CT: control target
= control target key end

     0   :  { %s43_s0 = inlined_call_operand.vmem [shape: f32[8,128], index: 0, kind: input, shape index: {}]   ;;  %s44_s1 = inlined_call_operand.vmem [shape: f32[8,128], index: 1, kind: output, shape index: {}]  }
   0x1   :  { %v8_v0 = vld [vmem:[%s43_s0] sm:$0xff] }
   0x2   :  { %9 = vmax.xlane.f32.xlu0 %v8_v0 }
  0x8f   :  { %v10_v1 = vpop.xlane.xlu0 %9 }
  0x90   :  { %v11_v2 = vsub.f32 %v8_v0, %v10_v1 }
  0x92   :  { %v12_v3 = vmul.f32 1.442695, %v11_v2 }
  0x94   :  { %23 = vpow2.f32 %v12_v3 }
  0x9e   :  { %v24_v4 = vpop.eup %23 }
  0x9f   :  { %14 = vadd.xlane.f32.xlu0 %v24_v4 }
 0x12c   :  { %v15_v5 = vpop.xlane.xlu0 %14 }
 0x12d   :  { %25 = vrcp.f32 %v15_v5 }
 0x137   :  { %v26_v6 = vpop.eup %25 }
 0x138   :  { %v17_v7 = vmul.f32 %v26_v6, %v24_v4 }
 0x13a   :  { %18 = vst [vmem:[%s44_s1] sm:$0xff] %v17_v7 }

</bundles_post_ra>
